<compile_context>
chip_gen: v6e
topology: v6e:2x2x1
jax: 0.10.0
libtpu: 0.0.40
codegen_flags: <defaults>
</compile_context>

<pallas_src>
import jax
import jax.numpy as jnp
from jax.experimental import pallas as pl
from jax.experimental.pallas import tpu as pltpu

ARCH_SMALL = [
    [16, 3, 16, 16, True, 'RE', 2, 1],
    [16, 3, 72, 24, False, 'RE', 2, 1],
    [24, 3, 88, 24, False, 'RE', 1, 1],
    [24, 5, 96, 40, True, 'HS', 2, 1],
    [40, 5, 240, 40, True, 'HS', 1, 1],
    [40, 5, 240, 40, True, 'HS', 1, 1],
    [40, 5, 120, 48, True, 'HS', 1, 1],
    [48, 5, 144, 48, True, 'HS', 1, 1],
    [48, 5, 288, 96, True, 'HS', 2, 1],
    [96, 5, 576, 96, True, 'HS', 1, 1],
    [96, 5, 576, 96, True, 'HS', 1, 1],
]


def _make_divisible(v, divisor=8):
    new_v = max(divisor, int(v + divisor / 2) // divisor * divisor)
    if new_v < 0.9 * v:
        new_v += divisor
    return new_v


def _round_up(v, m):
    return ((v + m - 1) // m) * m


def _apply_act(y, act):
    if act == 'relu':
        return jnp.maximum(y, 0.0)
    if act == 'hardswish':
        return y * (jnp.clip(y + 3.0, 0.0, 6.0) * (1.0 / 6.0))
    return y  # 'none'


def _vmem_spec():
    return pl.BlockSpec(memory_space=pltpu.MemorySpace.VMEM)


# ----------------------------- single fused whole-prefix kernel -----------------------------

def _make_fused_kernel(cfgs, CP):
    B = cfgs[0]['B']

    def kernel(*refs):
        it = iter(refs)
        x_ref = next(it)
        blk_refs = []
        for cfg in cfgs:
            d = {}
            if cfg['has_pre']:
                d['wpre'], d['bpre'] = next(it), next(it)
            d['wdw'], d['bdw'] = next(it), next(it)
            if cfg['has_se']:
                d['w1'], d['b1'], d['w2'], d['b2'] = next(it), next(it), next(it), next(it)
            d['wproj'], d['bproj'] = next(it), next(it)
            blk_refs.append(d)
        o_ref = next(it)
        scr = [(next(it), next(it)) for _ in cfgs]   # (pad_ref, y_ref) per block

        x = x_ref[...]                               # block-0 input = bf16 stem im2col patches
        for cfg, r, (pad_ref, y_ref) in zip(cfgs, blk_refs, scr):
            H, W, k, s, p = cfg['H'], cfg['W'], cfg['k'], cfg['s'], cfg['p']
            Ho, Wo, Lo, Wa = cfg['Ho'], cfg['Wo'], cfg['Lo'], cfg['Wa']
            rz_lo, rz_hi = cfg['rz']
            M_out = cfg['M_out']
            rpb = Ho * Wo                            # rows per image in the block output

            # ---- expand 1x1 conv (or fused stem matmul): MXU bf16 operands, f32 epilogue ----
            if cfg['has_pre']:
                h = jnp.dot(x.astype(jnp.bfloat16), r['wpre'][...],
                            preferred_element_type=jnp.float32) + r['bpre'][...]
                h = _apply_act(h, cfg['act_pre'])
            else:
                h = x.astype(jnp.float32)

            # ---- halo-only zeroing + sublane-aligned scatter into the padded-row scratch ----
            # Layout: image row rr occupies pad_ref[rr*Wa : (rr+1)*Wa, :], data at cols [Lo, Lo+W).
            zl = jnp.zeros((Lo, CP), jnp.float32)
            zr = jnp.zeros((rz_hi - rz_lo, CP), jnp.float32) if rz_hi > rz_lo else None
            for rr in range(B * H):
                base = rr * Wa
                pad_ref[base:base + Lo, :] = zl                          # left halo (aligned)
                if zr is not None:
                    pad_ref[base + rz_lo:base + rz_hi, :] = zr           # tiny right sliver
                pad_ref[base + Lo:base + Lo + W, :] = h[rr * W:(rr + 1) * W, :]

            # ---- depthwise conv at output rows only: strided tap reads, register accumulate,
            #      one store per output row (no one-hot gather, no full-slab RMW) ----
            wtaps = [r['wdw'][t:t + 1, :] for t in range(k * k)]
            bdw = r['bdw'][...]
            for b in range(B):
                for yo in range(Ho):
                    acc = None
                    for di in range(k):
                        yi = s * yo + di - p
                        if yi < 0 or yi >= H:
                            continue                                     # vertical zero-pad tap
                        base = (b * H + yi) * Wa + (Lo - p)
                        for dj in range(k):
                            if s == 1:
                                v = pad_ref[base + dj:base + dj + Wo, :]
                            else:
                                v = pad_ref[pl.ds(base + dj, Wo, stride=s), :]
                            term = v * wtaps[di * k + dj]
                            acc = term if acc is None else acc + term
                    orow = (b * Ho + yo) * Wo
                    y_ref[orow:orow + Wo, :] = _apply_act(acc + bdw, cfg['act'])

            y = y_ref[...]

            # ---- squeeze-excitation: static per-batch mean + tiny bf16 FCs + select-broadcast ----
            if cfg['has_se']:
                sqs = []
                for b in range(B):
                    m = jnp.mean(y[b * rpb:(b + 1) * rpb, :], axis=0, keepdims=True)
                    sq = jnp.dot(m.astype(jnp.bfloat16), r['w1'][...],
                                 preferred_element_type=jnp.float32) + r['b1'][...]
                    sq = jnp.maximum(sq, 0.0)                            # ReLU
                    sq = jnp.dot(sq.astype(jnp.bfloat16), r['w2'][...],
                                 preferred_element_type=jnp.float32) + r['b2'][...]
                    sq = jnp.clip(sq + 3.0, 0.0, 6.0) * (1.0 / 6.0)      # Hardsigmoid
                    sqs.append(sq)
                row_id = jax.lax.broadcasted_iota(jnp.int32, (M_out, 1), 0)
                scale = sqs[-1]
                for b in range(B - 2, -1, -1):
                    scale = jnp.where(row_id < (b + 1) * rpb, sqs[b], scale)
                y = y * scale

            # ---- project 1x1 conv + fused residual add ----
            out = jnp.dot(y.astype(jnp.bfloat16), r['wproj'][...],
                          preferred_element_type=jnp.float32) + r['bproj'][...]
            if cfg['shortcut']:
                out = out + x
            x = out

        o_ref[...] = x                                                   # single lane-dense store

    return kernel


# ----------------------------- stem im2col (3-channel input only, XLA) -----------------------------

def _stem_patches(x_nhwc, k, s, p, CP):
    B, H, W, Cin = x_nhwc.shape
    xp = jnp.pad(x_nhwc, ((0, 0), (p, p), (p, p), (0, 0)))
    Ho = (H + 2 * p - k) // s + 1
    Wo = (W + 2 * p - k) // s + 1
    taps = [xp[:, i:i + s * (Ho - 1) + 1:s, j:j + s * (Wo - 1) + 1:s, :]
            for i in range(k) for j in range(k)]
    pt = jnp.stack(taps, axis=3).reshape(B * Ho * Wo, k * k * Cin)
    assert k * k * Cin <= CP
    return jnp.pad(pt, ((0, 0), (0, CP - k * k * Cin)))


# ----------------------------- deterministic parameter init (BN folded, padded) -----------------------------

def _init_conv(key, kh, kw, cin, cout):
    fan_in = kh * kw * cin
    return jax.random.normal(key, (kh, kw, cin, cout), jnp.float32) / jnp.sqrt(float(fan_in))


def _init_bn(key, c):
    k1, k2 = jax.random.split(key)
    gamma = 1.0 + 0.1 * jax.random.normal(k1, (c,), jnp.float32)
    beta = 0.1 * jax.random.normal(k2, (c,), jnp.float32)
    running_mean = jnp.zeros((c,), jnp.float32)
    running_var = jnp.ones((c,), jnp.float32)
    eps = 1e-3
    scale = gamma / jnp.sqrt(running_var + eps)
    bias = beta - running_mean * scale
    return scale, bias


def _pad2d(a, rows, cols):
    out = jnp.zeros((rows, cols), jnp.float32)
    return out.at[:a.shape[0], :a.shape[1]].set(a)


def _pad_row(v, cols):
    return jnp.zeros((1, cols), jnp.float32).at[0, :v.shape[0]].set(v)


def init_params(key, arch_setting, split_layer, *, batch=2, in_hw=(32, 32)):
    assert 2 <= split_layer <= 4
    n_blocks = {2: 4, 3: 7, 4: len(arch_setting)}[split_layer]
    keys = iter(jax.random.split(key, 512))

    k0, s0, p0 = 3, 2, 1
    H, W = in_hw
    H1 = (H + 2 * p0 - k0) // s0 + 1
    W1 = (W + 2 * p0 - k0) // s0 + 1
    first_out = arch_setting[0][0]

    # single lane-dense channel padding used everywhere
    max_c = max([first_out, k0 * k0 * 3] +
                [_make_divisible(c) for cfg in arch_setting[:n_blocks]
                 for c in (cfg[0], cfg[2], cfg[3])])
    CP = _round_up(max_c, 128)

    # ---- stem conv (3x3, stride 2, Hardswish), BN folded; becomes block 0's 'pre' matmul ----
    w = _init_conv(next(keys), k0, k0, 3, first_out)
    scale, bias = _init_bn(next(keys), first_out)
    w = (w * scale[None, None, None, :]).reshape(k0 * k0 * 3, first_out)
    stem = (_pad2d(w, CP, CP).astype(jnp.bfloat16), _pad_row(bias, CP))

    blocks = []
    cur_H, cur_W = H1, W1
    for bi, row in enumerate(arch_setting[:n_blocks]):
        cin_raw, k, cexp_raw, cout_raw, use_se, act_s, stride, dilation = row
        assert dilation == 1  # TODO(synk): dilated depthwise not needed for this prefix
        cin = _make_divisible(cin_raw)
        cexp = _make_divisible(cexp_raw)
        cout = _make_divisible(cout_raw)
        act = 'hardswish' if act_s == 'HS' else 'relu'
        s = 1 if dilation > 1 else stride
        p = (k - 1) // 2 * dilation
        shortcut = (stride == 1 and cin_raw == cout_raw)

        blk = {}
        if bi == 0:
            assert cexp == cin, "stem fusion assumes the first block has no expand conv"
            blk['wpre'], blk['bpre'] = stem
            has_pre, act_pre = True, 'hardswish'
        elif cexp != cin:
            w = _init_conv(next(keys), 1, 1, cin, cexp).reshape(cin, cexp)
            scale, bias = _init_bn(next(keys), cexp)
            blk['wpre'] = _pad2d(w * scale[None, :], CP, CP).astype(jnp.bfloat16)
            blk['bpre'] = _pad_row(bias, CP)
            has_pre, act_pre = True, act
        else:
            has_pre, act_pre = False, 'none'

        w = jax.random.normal(next(keys), (k, k, cexp), jnp.float32) / float(k)
        scale, bias = _init_bn(next(keys), cexp)
        blk['wdw'] = _pad2d((w * scale[None, None, :]).reshape(k * k, cexp), k * k, CP)
        blk['bdw'] = _pad_row(bias, CP)

        if use_se:
            csq = _make_divisible(cexp // 4, 8)
            w1 = jax.random.normal(next(keys), (cexp, csq), jnp.float32) / jnp.sqrt(float(cexp))
            b1 = 0.01 * jax.random.normal(next(keys), (csq,), jnp.float32)
            w2 = jax.random.normal(next(keys), (csq, cexp), jnp.float32) / jnp.sqrt(float(csq))
            b2 = 0.01 * jax.random.normal(next(keys), (cexp,), jnp.float32)
            blk['w1'] = _pad2d(w1, CP, CP).astype(jnp.bfloat16)
            blk['b1'] = _pad_row(b1, CP)
            blk['w2'] = _pad2d(w2, CP, CP).astype(jnp.bfloat16)
            blk['b2'] = _pad_row(b2, CP)

        w = _init_conv(next(keys), 1, 1, cexp, cout).reshape(cexp, cout)
        scale, bias = _init_bn(next(keys), cout)
        blk['wproj'] = _pad2d(w * scale[None, :], CP, CP).astype(jnp.bfloat16)
        blk['bproj'] = _pad_row(bias, CP)

        # ---- depthwise geometry: sublane-aligned padded-row layout (data starts at col Lo=8) ----
        Lo = 8
        assert p <= Lo
        Ho = (cur_H + 2 * p - k) // s + 1
        Wo = (cur_W + 2 * p - k) // s + 1
        max_col = Lo - p + (k - 1) + s * (Wo - 1)          # rightmost column ever read by a tap
        Wa = _round_up(max(max_col + 1, Lo + cur_W), 8)    # aligned padded-row width
        rz_lo = Lo + cur_W                                 # right halo columns that must be zero
        rz_hi = max(rz_lo, max_col + 1)

        blk['cfg'] = dict(B=batch, H=cur_H, W=cur_W, k=k, s=s, p=p,
                          Ho=Ho, Wo=Wo, Lo=Lo, Wa=Wa, rz=(rz_lo, rz_hi),
                          M_in=batch * cur_H * cur_W, M_out=batch * Ho * Wo,
                          has_pre=has_pre, act_pre=act_pre, act=act,
                          has_se=bool(use_se), shortcut=shortcut)
        blk['cout'] = cout
        blocks.append(blk)
        cur_H, cur_W = Ho, Wo

    return {'meta': {'CP': CP, 'stem_k': k0, 'stem_s': s0, 'stem_p': p0}, 'blocks': blocks}


# ----------------------------- forward -----------------------------

def forward(params, x_nchw):
    meta = params['meta']
    CP = meta['CP']
    blocks = params['blocks']
    cfgs = [blk['cfg'] for blk in blocks]
    B = x_nchw.shape[0]

    x = jnp.transpose(x_nchw, (0, 2, 3, 1)).astype(jnp.float32)            # NCHW -> NHWC
    # Stem im2col stays in XLA (3-channel input => tiny patch slab); bf16 halves kernel DMA.
    patches = _stem_patches(x, meta['stem_k'], meta['stem_s'], meta['stem_p'], CP)
    patches = patches.astype(jnp.bfloat16)

    inputs = [patches]
    for blk, cfg in zip(blocks, cfgs):
        if cfg['has_pre']:
            inputs += [blk['wpre'], blk['bpre']]
        inputs += [blk['wdw'], blk['bdw']]
        if cfg['has_se']:
            inputs += [blk['w1'], blk['b1'], blk['w2'], blk['b2']]
        inputs += [blk['wproj'], blk['bproj']]

    scratch = []
    for cfg in cfgs:
        scratch.append(pltpu.VMEM((cfg['B'] * cfg['H'] * cfg['Wa'], CP), jnp.float32))  # padded rows
        scratch.append(pltpu.VMEM((cfg['M_out'], CP), jnp.float32))                     # dw output

    last = cfgs[-1]
    out_flat = pl.pallas_call(
        _make_fused_kernel(cfgs, CP),
        out_shape=jax.ShapeDtypeStruct((last['M_out'], CP), jnp.float32),
        in_specs=[_vmem_spec()] * len(inputs),
        out_specs=_vmem_spec(),
        scratch_shapes=scratch,
    )(*inputs)

    cout = blocks[-1]['cout']
    out = out_flat.reshape(B, last['Ho'], last['Wo'], CP)[:, :, :, :cout]   # drop lane padding
    return jnp.transpose(out, (0, 3, 1, 2))                                 # NHWC -> NCHW


if __name__ == "__main__":
    key = jax.random.PRNGKey(0)
    kx, kp = jax.random.split(key)

    # args.arch = 'mobilenet_v3_small', args.split_layer = 2
    params = init_params(kp, ARCH_SMALL, split_layer=2, batch=2, in_hw=(32, 32))

    # PyTorch-convention NCHW input
    x = jax.random.normal(kx, (2, 3, 32, 32), jnp.float32)

    out = jax.jit(lambda inp: forward(params, inp))(x)
    out = jax.block_until_ready(out)

    # stem conv (stride 2) + 4 inverted-residual blocks (strides 2,2,1,2): 32 -> 2 spatial, 40 ch
    assert out.shape == (2, 40, 2, 2), out.shape
    assert bool(jnp.all(jnp.isfinite(out)))
    print("KERNEL_OK")
</pallas_src>

<mosaic_0001>
module attributes {stable_mosaic.version = 11 : i64} {
  func.func @kernel(%arg0: memref<512x128xbf16, #tpu.memory_space<vmem>>, %arg1: memref<128x128xbf16, #tpu.memory_space<vmem>>, %arg2: memref<1x128xf32, #tpu.memory_space<vmem>>, %arg3: memref<9x128xf32, #tpu.memory_space<vmem>>, %arg4: memref<1x128xf32, #tpu.memory_space<vmem>>, %arg5: memref<128x128xbf16, #tpu.memory_space<vmem>>, %arg6: memref<1x128xf32, #tpu.memory_space<vmem>>, %arg7: memref<128x128xbf16, #tpu.memory_space<vmem>>, %arg8: memref<1x128xf32, #tpu.memory_space<vmem>>, %arg9: memref<128x128xbf16, #tpu.memory_space<vmem>>, %arg10: memref<1x128xf32, #tpu.memory_space<vmem>>, %arg11: memref<128x128xbf16, #tpu.memory_space<vmem>>, %arg12: memref<1x128xf32, #tpu.memory_space<vmem>>, %arg13: memref<9x128xf32, #tpu.memory_space<vmem>>, %arg14: memref<1x128xf32, #tpu.memory_space<vmem>>, %arg15: memref<128x128xbf16, #tpu.memory_space<vmem>>, %arg16: memref<1x128xf32, #tpu.memory_space<vmem>>, %arg17: memref<128x128xbf16, #tpu.memory_space<vmem>>, %arg18: memref<1x128xf32, #tpu.memory_space<vmem>>, %arg19: memref<9x128xf32, #tpu.memory_space<vmem>>, %arg20: memref<1x128xf32, #tpu.memory_space<vmem>>, %arg21: memref<128x128xbf16, #tpu.memory_space<vmem>>, %arg22: memref<1x128xf32, #tpu.memory_space<vmem>>, %arg23: memref<128x128xbf16, #tpu.memory_space<vmem>>, %arg24: memref<1x128xf32, #tpu.memory_space<vmem>>, %arg25: memref<25x128xf32, #tpu.memory_space<vmem>>, %arg26: memref<1x128xf32, #tpu.memory_space<vmem>>, %arg27: memref<128x128xbf16, #tpu.memory_space<vmem>>, %arg28: memref<1x128xf32, #tpu.memory_space<vmem>>, %arg29: memref<128x128xbf16, #tpu.memory_space<vmem>>, %arg30: memref<1x128xf32, #tpu.memory_space<vmem>>, %arg31: memref<128x128xbf16, #tpu.memory_space<vmem>>, %arg32: memref<1x128xf32, #tpu.memory_space<vmem>>, %arg33: memref<8x128xf32, #tpu.memory_space<vmem>>, %arg34: memref<768x128xf32, #tpu.memory_space<vmem>>, %arg35: memref<128x128xf32, #tpu.memory_space<vmem>>, %arg36: memref<256x128xf32, #tpu.memory_space<vmem>>, %arg37: memref<32x128xf32, #tpu.memory_space<vmem>>, %arg38: memref<128x128xf32, #tpu.memory_space<vmem>>, %arg39: memref<32x128xf32, #tpu.memory_space<vmem>>, %arg40: memref<128x128xf32, #tpu.memory_space<vmem>>, %arg41: memref<8x128xf32, #tpu.memory_space<vmem>>) attributes {dimension_semantics = [], scalar_prefetch = 0 : i64, scratch_operands = 8 : i64, tpu.core_type = #tpu.core_type<tc>} {
    %c0 = arith.constant 0 : index
    %c0_0 = arith.constant 0 : index
    %0 = vector.load %arg0[%c0, %c0_0] : memref<512x128xbf16, #tpu.memory_space<vmem>>, vector<512x128xbf16>
    %c0_1 = arith.constant 0 : index
    %c0_2 = arith.constant 0 : index
    %1 = vector.load %arg1[%c0_1, %c0_2] : memref<128x128xbf16, #tpu.memory_space<vmem>>, vector<128x128xbf16>
    %cst = arith.constant dense<0.000000e+00> : vector<512x128xf32>
    %2 = tpu.matmul %0, %1, %cst {dimension_numbers = #tpu.dot_dimension_numbers<[1], [0], [0], [1], [0, 0, 1, 1], [], []>} : vector<512x128xbf16>, vector<128x128xbf16>, vector<512x128xf32> -> vector<512x128xf32>
    %c0_3 = arith.constant 0 : index
    %c0_4 = arith.constant 0 : index
    %3 = vector.load %arg2[%c0_3, %c0_4] : memref<1x128xf32, #tpu.memory_space<vmem>>, vector<1x128xf32>
    %4 = vector.broadcast %3 : vector<1x128xf32> to vector<512x128xf32>
    %5 = arith.addf %2, %4 : vector<512x128xf32>
    %cst_5 = arith.constant 3.000000e+00 : f32
    %6 = vector.broadcast %cst_5 : f32 to vector<512x128xf32>
    %7 = arith.addf %5, %6 : vector<512x128xf32>
    %cst_6 = arith.constant 0.000000e+00 : f32
    %cst_7 = arith.constant 6.000000e+00 : f32
    %8 = vector.broadcast %cst_6 : f32 to vector<512x128xf32>
    %9 = arith.maximumf %8, %7 : vector<512x128xf32>
    %10 = vector.broadcast %cst_7 : f32 to vector<512x128xf32>
    %11 = arith.minimumf %10, %9 : vector<512x128xf32>
    %cst_8 = arith.constant 0.166666672 : f32
    %12 = vector.broadcast %cst_8 : f32 to vector<512x128xf32>
    %13 = arith.mulf %11, %12 : vector<512x128xf32>
    %14 = arith.mulf %5, %13 : vector<512x128xf32>
    %cst_9 = arith.constant 0.000000e+00 : f32
    %15 = vector.broadcast %cst_9 : f32 to vector<8x128xf32>
    %c0_10 = arith.constant 0 : index
    %c0_11 = arith.constant 0 : index
    %16 = vector.load %arg34[%c0_10, %c0_11] : memref<768x128xf32, #tpu.memory_space<vmem>>, vector<8x128xf32>
    tpu.vector_store %arg34[%c0_10, %c0_11], %15 {strides = array<i32>} : memref<768x128xf32, #tpu.memory_space<vmem>>, vector<8x128xf32>,
    %17 = vector.extract_strided_slice %14 {offsets = [0, 0], sizes = [16, 128], strides = [1, 1]} : vector<512x128xf32> to vector<16x128xf32>
    %c8 = arith.constant 8 : index
    %c0_12 = arith.constant 0 : index
    %18 = vector.load %arg34[%c8, %c0_12] : memref<768x128xf32, #tpu.memory_space<vmem>>, vector<16x128xf32>
    tpu.vector_store %arg34[%c8, %c0_12], %17 {strides = array<i32>} : memref<768x128xf32, #tpu.memory_space<vmem>>, vector<16x128xf32>,
    %c24 = arith.constant 24 : index
    %c0_13 = arith.constant 0 : index
    %19 = vector.load %arg34[%c24, %c0_13] : memref<768x128xf32, #tpu.memory_space<vmem>>, vector<8x128xf32>
    tpu.vector_store %arg34[%c24, %c0_13], %15 {strides = array<i32>} : memref<768x128xf32, #tpu.memory_space<vmem>>, vector<8x128xf32>,
    %20 = vector.extract_strided_slice %14 {offsets = [16, 0], sizes = [16, 128], strides = [1, 1]} : vector<512x128xf32> to vector<16x128xf32>
    %c32 = arith.constant 32 : index
    %c0_14 = arith.constant 0 : index
    %21 = vector.load %arg34[%c32, %c0_14] : memref<768x128xf32, #tpu.memory_space<vmem>>, vector<16x128xf32>
    tpu.vector_store %arg34[%c32, %c0_14], %20 {strides = array<i32>} : memref<768x128xf32, #tpu.memory_space<vmem>>, vector<16x128xf32>,
    %c48 = arith.constant 48 : index
    %c0_15 = arith.constant 0 : index
    %22 = vector.load %arg34[%c48, %c0_15] : memref<768x128xf32, #tpu.memory_space<vmem>>, vector<8x128xf32>
    tpu.vector_store %arg34[%c48, %c0_15], %15 {strides = array<i32>} : memref<768x128xf32, #tpu.memory_space<vmem>>, vector<8x128xf32>,
    %23 = vector.extract_strided_slice %14 {offsets = [32, 0], sizes = [16, 128], strides = [1, 1]} : vector<512x128xf32> to vector<16x128xf32>
    %c56 = arith.constant 56 : index
    %c0_16 = arith.constant 0 : index
    %24 = vector.load %arg34[%c56, %c0_16] : memref<768x128xf32, #tpu.memory_space<vmem>>, vector<16x128xf32>
    tpu.vector_store %arg34[%c56, %c0_16], %23 {strides = array<i32>} : memref<768x128xf32, #tpu.memory_space<vmem>>, vector<16x128xf32>,
    %c72 = arith.constant 72 : index
    %c0_17 = arith.constant 0 : index
    %25 = vector.load %arg34[%c72, %c0_17] : memref<768x128xf32, #tpu.memory_space<vmem>>, vector<8x128xf32>
    tpu.vector_store %arg34[%c72, %c0_17], %15 {strides = array<i32>} : memref<768x128xf32, #tpu.memory_space<vmem>>, vector<8x128xf32>,
    %26 = vector.extract_strided_slice %14 {offsets = [48, 0], sizes = [16, 128], strides = [1, 1]} : vector<512x128xf32> to vector<16x128xf32>
    %c80 = arith.constant 80 : index
    %c0_18 = arith.constant 0 : index
    %27 = vector.load %arg34[%c80, %c0_18] : memref<768x128xf32, #tpu.memory_space<vmem>>, vector<16x128xf32>
    tpu.vector_store %arg34[%c80, %c0_18], %26 {strides = array<i32>} : memref<768x128xf32, #tpu.memory_space<vmem>>, vector<16x128xf32>,
    %c96 = arith.constant 96 : index
    %c0_19 = arith.constant 0 : index
    %28 = vector.load %arg34[%c96, %c0_19] : memref<768x128xf32, #tpu.memory_space<vmem>>, vector<8x128xf32>
    tpu.vector_store %arg34[%c96, %c0_19], %15 {strides = array<i32>} : memref<768x128xf32, #tpu.memory_space<vmem>>, vector<8x128xf32>,
    %29 = vector.extract_strided_slice %14 {offsets = [64, 0], sizes = [16, 128], strides = [1, 1]} : vector<512x128xf32> to vector<16x128xf32>
    %c104 = arith.constant 104 : index
    %c0_20 = arith.constant 0 : index
    %30 = vector.load %arg34[%c104, %c0_20] : memref<768x128xf32, #tpu.memory_space<vmem>>, vector<16x128xf32>
    tpu.vector_store %arg34[%c104, %c0_20], %29 {strides = array<i32>} : memref<768x128xf32, #tpu.memory_space<vmem>>, vector<16x128xf32>,
    %c120 = arith.constant 120 : index
    %c0_21 = arith.constant 0 : index
    %31 = vector.load %arg34[%c120, %c0_21] : memref<768x128xf32, #tpu.memory_space<vmem>>, vector<8x128xf32>
    tpu.vector_store %arg34[%c120, %c0_21], %15 {strides = array<i32>} : memref<768x128xf32, #tpu.memory_space<vmem>>, vector<8x128xf32>,
    %32 = vector.extract_strided_slice %14 {offsets = [80, 0], sizes = [16, 128], strides = [1, 1]} : vector<512x128xf32> to vector<16x128xf32>
    %c128 = arith.constant 128 : index
    %c0_22 = arith.constant 0 : index
    %33 = vector.load %arg34[%c128, %c0_22] : memref<768x128xf32, #tpu.memory_space<vmem>>, vector<16x128xf32>
    tpu.vector_store %arg34[%c128, %c0_22], %32 {strides = array<i32>} : memref<768x128xf32, #tpu.memory_space<vmem>>, vector<16x128xf32>,
    %c144 = arith.constant 144 : index
    %c0_23 = arith.constant 0 : index
    %34 = vector.load %arg34[%c144, %c0_23] : memref<768x128xf32, #tpu.memory_space<vmem>>, vector<8x128xf32>
    tpu.vector_store %arg34[%c144, %c0_23], %15 {strides = array<i32>} : memref<768x128xf32, #tpu.memory_space<vmem>>, vector<8x128xf32>,
    %35 = vector.extract_strided_slice %14 {offsets = [96, 0], sizes = [16, 128], strides = [1, 1]} : vector<512x128xf32> to vector<16x128xf32>
    %c152 = arith.constant 152 : index
    %c0_24 = arith.constant 0 : index
    %36 = vector.load %arg34[%c152, %c0_24] : memref<768x128xf32, #tpu.memory_space<vmem>>, vector<16x128xf32>
    tpu.vector_store %arg34[%c152, %c0_24], %35 {strides = array<i32>} : memref<768x128xf32, #tpu.memory_space<vmem>>, vector<16x128xf32>,
    %c168 = arith.constant 168 : index
    %c0_25 = arith.constant 0 : index
    %37 = vector.load %arg34[%c168, %c0_25] : memref<768x128xf32, #tpu.memory_space<vmem>>, vector<8x128xf32>
    tpu.vector_store %arg34[%c168, %c0_25], %15 {strides = array<i32>} : memref<768x128xf32, #tpu.memory_space<vmem>>, vector<8x128xf32>,
    %38 = vector.extract_strided_slice %14 {offsets = [112, 0], sizes = [16, 128], strides = [1, 1]} : vector<512x128xf32> to vector<16x128xf32>
    %c176 = arith.constant 176 : index
    %c0_26 = arith.constant 0 : index
    %39 = vector.load %arg34[%c176, %c0_26] : memref<768x128xf32, #tpu.memory_space<vmem>>, vector<16x128xf32>
    tpu.vector_store %arg34[%c176, %c0_26], %38 {strides = array<i32>} : memref<768x128xf32, #tpu.memory_space<vmem>>, vector<16x128xf32>,
    %c192 = arith.constant 192 : index
    %c0_27 = arith.constant 0 : index
    %40 = vector.load %arg34[%c192, %c0_27] : memref<768x128xf32, #tpu.memory_space<vmem>>, vector<8x128xf32>
    tpu.vector_store %arg34[%c192, %c0_27], %15 {strides = array<i32>} : memref<768x128xf32, #tpu.memory_space<vmem>>, vector<8x128xf32>,
    %41 = vector.extract_strided_slice %14 {offsets = [128, 0], sizes = [16, 128], strides = [1, 1]} : vector<512x128xf32> to vector<16x128xf32>
    %c200 = arith.constant 200 : index
    %c0_28 = arith.constant 0 : index
    %42 = vector.load %arg34[%c200, %c0_28] : memref<768x128xf32, #tpu.memory_space<vmem>>, vector<16x128xf32>
    tpu.vector_store %arg34[%c200, %c0_28], %41 {strides = array<i32>} : memref<768x128xf32, #tpu.memory_space<vmem>>, vector<16x128xf32>,
    %c216 = arith.constant 216 : index
    %c0_29 = arith.constant 0 : index
    %43 = vector.load %arg34[%c216, %c0_29] : memref<768x128xf32, #tpu.memory_space<vmem>>, vector<8x128xf32>
    tpu.vector_store %arg34[%c216, %c0_29], %15 {strides = array<i32>} : memref<768x128xf32, #tpu.memory_space<vmem>>, vector<8x128xf32>,
    %44 = vector.extract_strided_slice %14 {offsets = [144, 0], sizes = [16, 128], strides = [1, 1]} : vector<512x128xf32> to vector<16x128xf32>
    %c224 = arith.constant 224 : index
    %c0_30 = arith.constant 0 : index
    %45 = vector.load %arg34[%c224, %c0_30] : memref<768x128xf32, #tpu.memory_space<vmem>>, vector<16x128xf32>
    tpu.vector_store %arg34[%c224, %c0_30], %44 {strides = array<i32>} : memref<768x128xf32, #tpu.memory_space<vmem>>, vector<16x128xf32>,
    %c240 = arith.constant 240 : index
    %c0_31 = arith.constant 0 : index
    %46 = vector.load %arg34[%c240, %c0_31] : memref<768x128xf32, #tpu.memory_space<vmem>>, vector<8x128xf32>
    tpu.vector_store %arg34[%c240, %c0_31], %15 {strides = array<i32>} : memref<768x128xf32, #tpu.memory_space<vmem>>, vector<8x128xf32>,
    %47 = vector.extract_strided_slice %14 {offsets = [160, 0], sizes = [16, 128], strides = [1, 1]} : vector<512x128xf32> to vector<16x128xf32>
    %c248 = arith.constant 248 : index
    %c0_32 = arith.constant 0 : index
    %48 = vector.load %arg34[%c248, %c0_32] : memref<768x128xf32, #tpu.memory_space<vmem>>, vector<16x128xf32>
    tpu.vector_store %arg34[%c248, %c0_32], %47 {strides = array<i32>} : memref<768x128xf32, #tpu.memory_space<vmem>>, vector<16x128xf32>,
    %c264 = arith.constant 264 : index
    %c0_33 = arith.constant 0 : index
    %49 = vector.load %arg34[%c264, %c0_33] : memref<768x128xf32, #tpu.memory_space<vmem>>, vector<8x128xf32>
    tpu.vector_store %arg34[%c264, %c0_33], %15 {strides = array<i32>} : memref<768x128xf32, #tpu.memory_space<vmem>>, vector<8x128xf32>,
    %50 = vector.extract_strided_slice %14 {offsets = [176, 0], sizes = [16, 128], strides = [1, 1]} : vector<512x128xf32> to vector<16x128xf32>
    %c272 = arith.constant 272 : index
    %c0_34 = arith.constant 0 : index
    %51 = vector.load %arg34[%c272, %c0_34] : memref<768x128xf32, #tpu.memory_space<vmem>>, vector<16x128xf32>
    tpu.vector_store %arg34[%c272, %c0_34], %50 {strides = array<i32>} : memref<768x128xf32, #tpu.memory_space<vmem>>, vector<16x128xf32>,
    %c288 = arith.constant 288 : index
    %c0_35 = arith.constant 0 : index
    %52 = vector.load %arg34[%c288, %c0_35] : memref<768x128xf32, #tpu.memory_space<vmem>>, vector<8x128xf32>
    tpu.vector_store %arg34[%c288, %c0_35], %15 {strides = array<i32>} : memref<768x128xf32, #tpu.memory_space<vmem>>, vector<8x128xf32>,
    %53 = vector.extract_strided_slice %14 {offsets = [192, 0], sizes = [16, 128], strides = [1, 1]} : vector<512x128xf32> to vector<16x128xf32>
    %c296 = arith.constant 296 : index
    %c0_36 = arith.constant 0 : index
    %54 = vector.load %arg34[%c296, %c0_36] : memref<768x128xf32, #tpu.memory_space<vmem>>, vector<16x128xf32>
    tpu.vector_store %arg34[%c296, %c0_36], %53 {strides = array<i32>} : memref<768x128xf32, #tpu.memory_space<vmem>>, vector<16x128xf32>,
    %c312 = arith.constant 312 : index
    %c0_37 = arith.constant 0 : index
    %55 = vector.load %arg34[%c312, %c0_37] : memref<768x128xf32, #tpu.memory_space<vmem>>, vector<8x128xf32>
    tpu.vector_store %arg34[%c312, %c0_37], %15 {strides = array<i32>} : memref<768x128xf32, #tpu.memory_space<vmem>>, vector<8x128xf32>,
    %56 = vector.extract_strided_slice %14 {offsets = [208, 0], sizes = [16, 128], strides = [1, 1]} : vector<512x128xf32> to vector<16x128xf32>
    %c320 = arith.constant 320 : index
    %c0_38 = arith.constant 0 : index
    %57 = vector.load %arg34[%c320, %c0_38] : memref<768x128xf32, #tpu.memory_space<vmem>>, vector<16x128xf32>
    tpu.vector_store %arg34[%c320, %c0_38], %56 {strides = array<i32>} : memref<768x128xf32, #tpu.memory_space<vmem>>, vector<16x128xf32>,
    %c336 = arith.constant 336 : index
    %c0_39 = arith.constant 0 : index
    %58 = vector.load %arg34[%c336, %c0_39] : memref<768x128xf32, #tpu.memory_space<vmem>>, vector<8x128xf32>
    tpu.vector_store %arg34[%c336, %c0_39], %15 {strides = array<i32>} : memref<768x128xf32, #tpu.memory_space<vmem>>, vector<8x128xf32>,
    %59 = vector.extract_strided_slice %14 {offsets = [224, 0], sizes = [16, 128], strides = [1, 1]} : vector<512x128xf32> to vector<16x128xf32>
    %c344 = arith.constant 344 : index
    %c0_40 = arith.constant 0 : index
    %60 = vector.load %arg34[%c344, %c0_40] : memref<768x128xf32, #tpu.memory_space<vmem>>, vector<16x128xf32>
    tpu.vector_store %arg34[%c344, %c0_40], %59 {strides = array<i32>} : memref<768x128xf32, #tpu.memory_space<vmem>>, vector<16x128xf32>,
    %c360 = arith.constant 360 : index
    %c0_41 = arith.constant 0 : index
    %61 = vector.load %arg34[%c360, %c0_41] : memref<768x128xf32, #tpu.memory_space<vmem>>, vector<8x128xf32>
    tpu.vector_store %arg34[%c360, %c0_41], %15 {strides = array<i32>} : memref<768x128xf32, #tpu.memory_space<vmem>>, vector<8x128xf32>,
    %62 = vector.extract_strided_slice %14 {offsets = [240, 0], sizes = [16, 128], strides = [1, 1]} : vector<512x128xf32> to vector<16x128xf32>
    %c368 = arith.constant 368 : index
    %c0_42 = arith.constant 0 : index
    %63 = vector.load %arg34[%c368, %c0_42] : memref<768x128xf32, #tpu.memory_space<vmem>>, vector<16x128xf32>
    tpu.vector_store %arg34[%c368, %c0_42], %62 {strides = array<i32>} : memref<768x128xf32, #tpu.memory_space<vmem>>, vector<16x128xf32>,
    %c384 = arith.constant 384 : index
    %c0_43 = arith.constant 0 : index
    %64 = vector.load %arg34[%c384, %c0_43] : memref<768x128xf32, #tpu.memory_space<vmem>>, vector<8x128xf32>
    tpu.vector_store %arg34[%c384, %c0_43], %15 {strides = array<i32>} : memref<768x128xf32, #tpu.memory_space<vmem>>, vector<8x128xf32>,
    %65 = vector.extract_strided_slice %14 {offsets = [256, 0], sizes = [16, 128], strides = [1, 1]} : vector<512x128xf32> to vector<16x128xf32>
    %c392 = arith.constant 392 : index
    %c0_44 = arith.constant 0 : index
    %66 = vector.load %arg34[%c392, %c0_44] : memref<768x128xf32, #tpu.memory_space<vmem>>, vector<16x128xf32>
    tpu.vector_store %arg34[%c392, %c0_44], %65 {strides = array<i32>} : memref<768x128xf32, #tpu.memory_space<vmem>>, vector<16x128xf32>,
    %c408 = arith.constant 408 : index
    %c0_45 = arith.constant 0 : index
    %67 = vector.load %arg34[%c408, %c0_45] : memref<768x128xf32, #tpu.memory_space<vmem>>, vector<8x128xf32>
    tpu.vector_store %arg34[%c408, %c0_45], %15 {strides = array<i32>} : memref<768x128xf32, #tpu.memory_space<vmem>>, vector<8x128xf32>,
    %68 = vector.extract_strided_slice %14 {offsets = [272, 0], sizes = [16, 128], strides = [1, 1]} : vector<512x128xf32> to vector<16x128xf32>
    %c416 = arith.constant 416 : index
    %c0_46 = arith.constant 0 : index
    %69 = vector.load %arg34[%c416, %c0_46] : memref<768x128xf32, #tpu.memory_space<vmem>>, vector<16x128xf32>
    tpu.vector_store %arg34[%c416, %c0_46], %68 {strides = array<i32>} : memref<768x128xf32, #tpu.memory_space<vmem>>, vector<16x128xf32>,
    %c432 = arith.constant 432 : index
    %c0_47 = arith.constant 0 : index
    %70 = vector.load %arg34[%c432, %c0_47] : memref<768x128xf32, #tpu.memory_space<vmem>>, vector<8x128xf32>
    tpu.vector_store %arg34[%c432, %c0_47], %15 {strides = array<i32>} : memref<768x128xf32, #tpu.memory_space<vmem>>, vector<8x128xf32>,
    %71 = vector.extract_strided_slice %14 {offsets = [288, 0], sizes = [16, 128], strides = [1, 1]} : vector<512x128xf32> to vector<16x128xf32>
    %c440 = arith.constant 440 : index
    %c0_48 = arith.constant 0 : index
    %72 = vector.load %arg34[%c440, %c0_48] : memref<768x128xf32, #tpu.memory_space<vmem>>, vector<16x128xf32>
    tpu.vector_store %arg34[%c440, %c0_48], %71 {strides = array<i32>} : memref<768x128xf32, #tpu.memory_space<vmem>>, vector<16x128xf32>,
    %c456 = arith.constant 456 : index
    %c0_49 = arith.constant 0 : index
    %73 = vector.load %arg34[%c456, %c0_49] : memref<768x128xf32, #tpu.memory_space<vmem>>, vector<8x128xf32>
    tpu.vector_store %arg34[%c456, %c0_49], %15 {strides = array<i32>} : memref<768x128xf32, #tpu.memory_space<vmem>>, vector<8x128xf32>,
    %74 = vector.extract_strided_slice %14 {offsets = [304, 0], sizes = [16, 128], strides = [1, 1]} : vector<512x128xf32> to vector<16x128xf32>
    %c464 = arith.constant 464 : index
    %c0_50 = arith.constant 0 : index
    %75 = vector.load %arg34[%c464, %c0_50] : memref<768x128xf32, #tpu.memory_space<vmem>>, vector<16x128xf32>
    tpu.vector_store %arg34[%c464, %c0_50], %74 {strides = array<i32>} : memref<768x128xf32, #tpu.memory_space<vmem>>, vector<16x128xf32>,
    %c480 = arith.constant 480 : index
    %c0_51 = arith.constant 0 : index
    %76 = vector.load %arg34[%c480, %c0_51] : memref<768x128xf32, #tpu.memory_space<vmem>>, vector<8x128xf32>
    tpu.vector_store %arg34[%c480, %c0_51], %15 {strides = array<i32>} : memref<768x128xf32, #tpu.memory_space<vmem>>, vector<8x128xf32>,
    %77 = vector.extract_strided_slice %14 {offsets = [320, 0], sizes = [16, 128], strides = [1, 1]} : vector<512x128xf32> to vector<16x128xf32>
    %c488 = arith.constant 488 : index
    %c0_52 = arith.constant 0 : index
    %78 = vector.load %arg34[%c488, %c0_52] : memref<768x128xf32, #tpu.memory_space<vmem>>, vector<16x128xf32>
    tpu.vector_store %arg34[%c488, %c0_52], %77 {strides = array<i32>} : memref<768x128xf32, #tpu.memory_space<vmem>>, vector<16x128xf32>,
    %c504 = arith.constant 504 : index
    %c0_53 = arith.constant 0 : index
    %79 = vector.load %arg34[%c504, %c0_53] : memref<768x128xf32, #tpu.memory_space<vmem>>, vector<8x128xf32>
    tpu.vector_store %arg34[%c504, %c0_53], %15 {strides = array<i32>} : memref<768x128xf32, #tpu.memory_space<vmem>>, vector<8x128xf32>,
    %80 = vector.extract_strided_slice %14 {offsets = [336, 0], sizes = [16, 128], strides = [1, 1]} : vector<512x128xf32> to vector<16x128xf32>
    %c512 = arith.constant 512 : index
    %c0_54 = arith.constant 0 : index
    %81 = vector.load %arg34[%c512, %c0_54] : memref<768x128xf32, #tpu.memory_space<vmem>>, vector<16x128xf32>
    tpu.vector_store %arg34[%c512, %c0_54], %80 {strides = array<i32>} : memref<768x128xf32, #tpu.memory_space<vmem>>, vector<16x128xf32>,
    %c528 = arith.constant 528 : index
    %c0_55 = arith.constant 0 : index
    %82 = vector.load %arg34[%c528, %c0_55] : memref<768x128xf32, #tpu.memory_space<vmem>>, vector<8x128xf32>
    tpu.vector_store %arg34[%c528, %c0_55], %15 {strides = array<i32>} : memref<768x128xf32, #tpu.memory_space<vmem>>, vector<8x128xf32>,
    %83 = vector.extract_strided_slice %14 {offsets = [352, 0], sizes = [16, 128], strides = [1, 1]} : vector<512x128xf32> to vector<16x128xf32>
    %c536 = arith.constant 536 : index
    %c0_56 = arith.constant 0 : index
    %84 = vector.load %arg34[%c536, %c0_56] : memref<768x128xf32, #tpu.memory_space<vmem>>, vector<16x128xf32>
    tpu.vector_store %arg34[%c536, %c0_56], %83 {strides = array<i32>} : memref<768x128xf32, #tpu.memory_space<vmem>>, vector<16x128xf32>,
    %c552 = arith.constant 552 : index
    %c0_57 = arith.constant 0 : index
    %85 = vector.load %arg34[%c552, %c0_57] : memref<768x128xf32, #tpu.memory_space<vmem>>, vector<8x128xf32>
    tpu.vector_store %arg34[%c552, %c0_57], %15 {strides = array<i32>} : memref<768x128xf32, #tpu.memory_space<vmem>>, vector<8x128xf32>,
    %86 = vector.extract_strided_slice %14 {offsets = [368, 0], sizes = [16, 128], strides = [1, 1]} : vector<512x128xf32> to vector<16x128xf32>
    %c560 = arith.constant 560 : index
    %c0_58 = arith.constant 0 : index
    %87 = vector.load %arg34[%c560, %c0_58] : memref<768x128xf32, #tpu.memory_space<vmem>>, vector<16x128xf32>
    tpu.vector_store %arg34[%c560, %c0_58], %86 {strides = array<i32>} : memref<768x128xf32, #tpu.memory_space<vmem>>, vector<16x128xf32>,
    %c576 = arith.constant 576 : index
    %c0_59 = arith.constant 0 : index
    %88 = vector.load %arg34[%c576, %c0_59] : memref<768x128xf32, #tpu.memory_space<vmem>>, vector<8x128xf32>
    tpu.vector_store %arg34[%c576, %c0_59], %15 {strides = array<i32>} : memref<768x128xf32, #tpu.memory_space<vmem>>, vector<8x128xf32>,
    %89 = vector.extract_strided_slice %14 {offsets = [384, 0], sizes = [16, 128], strides = [1, 1]} : vector<512x128xf32> to vector<16x128xf32>
    %c584 = arith.constant 584 : index
    %c0_60 = arith.constant 0 : index
    %90 = vector.load %arg34[%c584, %c0_60] : memref<768x128xf32, #tpu.memory_space<vmem>>, vector<16x128xf32>
    tpu.vector_store %arg34[%c584, %c0_60], %89 {strides = array<i32>} : memref<768x128xf32, #tpu.memory_space<vmem>>, vector<16x128xf32>,
    %c600 = arith.constant 600 : index
    %c0_61 = arith.constant 0 : index
    %91 = vector.load %arg34[%c600, %c0_61] : memref<768x128xf32, #tpu.memory_space<vmem>>, vector<8x128xf32>
    tpu.vector_store %arg34[%c600, %c0_61], %15 {strides = array<i32>} : memref<768x128xf32, #tpu.memory_space<vmem>>, vector<8x128xf32>,
    %92 = vector.extract_strided_slice %14 {offsets = [400, 0], sizes = [16, 128], strides = [1, 1]} : vector<512x128xf32> to vector<16x128xf32>
    %c608 = arith.constant 608 : index
    %c0_62 = arith.constant 0 : index
    %93 = vector.load %arg34[%c608, %c0_62] : memref<768x128xf32, #tpu.memory_space<vmem>>, vector<16x128xf32>
    tpu.vector_store %arg34[%c608, %c0_62], %92 {strides = array<i32>} : memref<768x128xf32, #tpu.memory_space<vmem>>, vector<16x128xf32>,
    %c624 = arith.constant 624 : index
    %c0_63 = arith.constant 0 : index
    %94 = vector.load %arg34[%c624, %c0_63] : memref<768x128xf32, #tpu.memory_space<vmem>>, vector<8x128xf32>
    tpu.vector_store %arg34[%c624, %c0_63], %15 {strides = array<i32>} : memref<768x128xf32, #tpu.memory_space<vmem>>, vector<8x128xf32>,
    %95 = vector.extract_strided_slice %14 {offsets = [416, 0], sizes = [16, 128], strides = [1, 1]} : vector<512x128xf32> to vector<16x128xf32>
    %c632 = arith.constant 632 : index
    %c0_64 = arith.constant 0 : index
    %96 = vector.load %arg34[%c632, %c0_64] : memref<768x128xf32, #tpu.memory_space<vmem>>, vector<16x128xf32>
    tpu.vector_store %arg34[%c632, %c0_64], %95 {strides = array<i32>} : memref<768x128xf32, #tpu.memory_space<vmem>>, vector<16x128xf32>,
    %c648 = arith.constant 648 : index
    %c0_65 = arith.constant 0 : index
    %97 = vector.load %arg34[%c648, %c0_65] : memref<768x128xf32, #tpu.memory_space<vmem>>, vector<8x128xf32>
    tpu.vector_store %arg34[%c648, %c0_65], %15 {strides = array<i32>} : memref<768x128xf32, #tpu.memory_space<vmem>>, vector<8x128xf32>,
    %98 = vector.extract_strided_slice %14 {offsets = [432, 0], sizes = [16, 128], strides = [1, 1]} : vector<512x128xf32> to vector<16x128xf32>
    %c656 = arith.constant 656 : index
    %c0_66 = arith.constant 0 : index
    %99 = vector.load %arg34[%c656, %c0_66] : memref<768x128xf32, #tpu.memory_space<vmem>>, vector<16x128xf32>
    tpu.vector_store %arg34[%c656, %c0_66], %98 {strides = array<i32>} : memref<768x128xf32, #tpu.memory_space<vmem>>, vector<16x128xf32>,
    %c672 = arith.constant 672 : index
    %c0_67 = arith.constant 0 : index
    %100 = vector.load %arg34[%c672, %c0_67] : memref<768x128xf32, #tpu.memory_space<vmem>>, vector<8x128xf32>
    tpu.vector_store %arg34[%c672, %c0_67], %15 {strides = array<i32>} : memref<768x128xf32, #tpu.memory_space<vmem>>, vector<8x128xf32>,
    %101 = vector.extract_strided_slice %14 {offsets = [448, 0], sizes = [16, 128], strides = [1, 1]} : vector<512x128xf32> to vector<16x128xf32>
    %c680 = arith.constant 680 : index
    %c0_68 = arith.constant 0 : index
    %102 = vector.load %arg34[%c680, %c0_68] : memref<768x128xf32, #tpu.memory_space<vmem>>, vector<16x128xf32>
    tpu.vector_store %arg34[%c680, %c0_68], %101 {strides = array<i32>} : memref<768x128xf32, #tpu.memory_space<vmem>>, vector<16x128xf32>,
    %c696 = arith.constant 696 : index
    %c0_69 = arith.constant 0 : index
    %103 = vector.load %arg34[%c696, %c0_69] : memref<768x128xf32, #tpu.memory_space<vmem>>, vector<8x128xf32>
    tpu.vector_store %arg34[%c696, %c0_69], %15 {strides = array<i32>} : memref<768x128xf32, #tpu.memory_space<vmem>>, vector<8x128xf32>,
    %104 = vector.extract_strided_slice %14 {offsets = [464, 0], sizes = [16, 128], strides = [1, 1]} : vector<512x128xf32> to vector<16x128xf32>
    %c704 = arith.constant 704 : index
    %c0_70 = arith.constant 0 : index
    %105 = vector.load %arg34[%c704, %c0_70] : memref<768x128xf32, #tpu.memory_space<vmem>>, vector<16x128xf32>
    tpu.vector_store %arg34[%c704, %c0_70], %104 {strides = array<i32>} : memref<768x128xf32, #tpu.memory_space<vmem>>, vector<16x128xf32>,
    %c720 = arith.constant 720 : index
    %c0_71 = arith.constant 0 : index
    %106 = vector.load %arg34[%c720, %c0_71] : memref<768x128xf32, #tpu.memory_space<vmem>>, vector<8x128xf32>
    tpu.vector_store %arg34[%c720, %c0_71], %15 {strides = array<i32>} : memref<768x128xf32, #tpu.memory_space<vmem>>, vector<8x128xf32>,
    %107 = vector.extract_strided_slice %14 {offsets = [480, 0], sizes = [16, 128], strides = [1, 1]} : vector<512x128xf32> to vector<16x128xf32>
    %c728 = arith.constant 728 : index
    %c0_72 = arith.constant 0 : index
    %108 = vector.load %arg34[%c728, %c0_72] : memref<768x128xf32, #tpu.memory_space<vmem>>, vector<16x128xf32>
    tpu.vector_store %arg34[%c728, %c0_72], %107 {strides = array<i32>} : memref<768x128xf32, #tpu.memory_space<vmem>>, vector<16x128xf32>,
    %c744 = arith.constant 744 : index
    %c0_73 = arith.constant 0 : index
    %109 = vector.load %arg34[%c744, %c0_73] : memref<768x128xf32, #tpu.memory_space<vmem>>, vector<8x128xf32>
    tpu.vector_store %arg34[%c744, %c0_73], %15 {strides = array<i32>} : memref<768x128xf32, #tpu.memory_space<vmem>>, vector<8x128xf32>,
    %110 = vector.extract_strided_slice %14 {offsets = [496, 0], sizes = [16, 128], strides = [1, 1]} : vector<512x128xf32> to vector<16x128xf32>
    %c752 = arith.constant 752 : index
    %c0_74 = arith.constant 0 : index
    %111 = vector.load %arg34[%c752, %c0_74] : memref<768x128xf32, #tpu.memory_space<vmem>>, vector<16x128xf32>
    tpu.vector_store %arg34[%c752, %c0_74], %110 {strides = array<i32>} : memref<768x128xf32, #tpu.memory_space<vmem>>, vector<16x128xf32>,
    %c0_75 = arith.constant 0 : index
    %c0_76 = arith.constant 0 : index
    %112 = vector.load %arg3[%c0_75, %c0_76] : memref<9x128xf32, #tpu.memory_space<vmem>>, vector<1x128xf32>
    %c1 = arith.constant 1 : index
    %c0_77 = arith.constant 0 : index
    %113 = vector.load %arg3[%c1, %c0_77] : memref<9x128xf32, #tpu.memory_space<vmem>>, vector<1x128xf32>
    %c2 = arith.constant 2 : index
    %c0_78 = arith.constant 0 : index
    %114 = vector.load %arg3[%c2, %c0_78] : memref<9x128xf32, #tpu.memory_space<vmem>>, vector<1x128xf32>
    %c3 = arith.constant 3 : index
    %c0_79 = arith.constant 0 : index
    %115 = vector.load %arg3[%c3, %c0_79] : memref<9x128xf32, #tpu.memory_space<vmem>>, vector<1x128xf32>
    %c4 = arith.constant 4 : index
    %c0_80 = arith.constant 0 : index
    %116 = vector.load %arg3[%c4, %c0_80] : memref<9x128xf32, #tpu.memory_space<vmem>>, vector<1x128xf32>
    %c5 = arith.constant 5 : index
    %c0_81 = arith.constant 0 : index
    %117 = vector.load %arg3[%c5, %c0_81] : memref<9x128xf32, #tpu.memory_space<vmem>>, vector<1x128xf32>
    %c6 = arith.constant 6 : index
    %c0_82 = arith.constant 0 : index
    %118 = vector.load %arg3[%c6, %c0_82] : memref<9x128xf32, #tpu.memory_space<vmem>>, vector<1x128xf32>
    %c7 = arith.constant 7 : index
    %c0_83 = arith.constant 0 : index
    %119 = vector.load %arg3[%c7, %c0_83] : memref<9x128xf32, #tpu.memory_space<vmem>>, vector<1x128xf32>
    %c8_84 = arith.constant 8 : index
    %c0_85 = arith.constant 0 : index
    %120 = vector.load %arg3[%c8_84, %c0_85] : memref<9x128xf32, #tpu.memory_space<vmem>>, vector<1x128xf32>
    %c0_86 = arith.constant 0 : index
    %c0_87 = arith.constant 0 : index
    %121 = vector.load %arg4[%c0_86, %c0_87] : memref<1x128xf32, #tpu.memory_space<vmem>>, vector<1x128xf32>
    %c7_88 = arith.constant 7 : index
    %c0_89 = arith.constant 0 : index
    %122 = tpu.strided_load %arg34[%c7_88, %c0_89] {strides = array<i32: 2, 1>} : memref<768x128xf32, #tpu.memory_space<vmem>>, vector<8x128xf32>
    %123 = vector.broadcast %115 : vector<1x128xf32> to vector<8x128xf32>
    %124 = arith.mulf %122, %123 : vector<8x128xf32>
    %c8_90 = arith.constant 8 : index
    %c0_91 = arith.constant 0 : index
    %125 = tpu.strided_load %arg34[%c8_90, %c0_91] {strides = array<i32: 2, 1>} : memref<768x128xf32, #tpu.memory_space<vmem>>, vector<8x128xf32>
    %126 = vector.broadcast %116 : vector<1x128xf32> to vector<8x128xf32>
    %127 = arith.mulf %125, %126 : vector<8x128xf32>
    %128 = arith.addf %124, %127 : vector<8x128xf32>
    %c9 = arith.constant 9 : index
    %c0_92 = arith.constant 0 : index
    %129 = tpu.strided_load %arg34[%c9, %c0_92] {strides = array<i32: 2, 1>} : memref<768x128xf32, #tpu.memory_space<vmem>>, vector<8x128xf32>
    %130 = vector.broadcast %117 : vector<1x128xf32> to vector<8x128xf32>
    %131 = arith.mulf %129, %130 : vector<8x128xf32>
    %132 = arith.addf %128, %131 : vector<8x128xf32>
    %c31 = arith.constant 31 : index
    %c0_93 = arith.constant 0 : index
    %133 = tpu.strided_load %arg34[%c31, %c0_93] {strides = array<i32: 2, 1>} : memref<768x128xf32, #tpu.memory_space<vmem>>, vector<8x128xf32>
    %134 = vector.broadcast %118 : vector<1x128xf32> to vector<8x128xf32>
    %135 = arith.mulf %133, %134 : vector<8x128xf32>
    %136 = arith.addf %132, %135 : vector<8x128xf32>
    %c32_94 = arith.constant 32 : index
    %c0_95 = arith.constant 0 : index
    %137 = tpu.strided_load %arg34[%c32_94, %c0_95] {strides = array<i32: 2, 1>} : memref<768x128xf32, #tpu.memory_space<vmem>>, vector<8x128xf32>
    %138 = vector.broadcast %119 : vector<1x128xf32> to vector<8x128xf32>
    %139 = arith.mulf %137, %138 : vector<8x128xf32>
    %140 = arith.addf %136, %139 : vector<8x128xf32>
    %c33 = arith.constant 33 : index
    %c0_96 = arith.constant 0 : index
    %141 = tpu.strided_load %arg34[%c33, %c0_96] {strides = array<i32: 2, 1>} : memref<768x128xf32, #tpu.memory_space<vmem>>, vector<8x128xf32>
    %142 = vector.broadcast %120 : vector<1x128xf32> to vector<8x128xf32>
    %143 = arith.mulf %141, %142 : vector<8x128xf32>
    %144 = arith.addf %140, %143 : vector<8x128xf32>
    %145 = vector.broadcast %121 : vector<1x128xf32> to vector<8x128xf32>
    %146 = arith.addf %144, %145 : vector<8x128xf32>
    %cst_97 = arith.constant 0.000000e+00 : f32
    %147 = vector.broadcast %cst_97 : f32 to vector<8x128xf32>
    %148 = arith.maximumf %146, %147 : vector<8x128xf32>
    %c0_98 = arith.constant 0 : index
    %c0_99 = arith.constant 0 : index
    %149 = vector.load %arg35[%c0_98, %c0_99] : memref<128x128xf32, #tpu.memory_space<vmem>>, vector<8x128xf32>
    tpu.vector_store %arg35[%c0_98, %c0_99], %148 {strides = array<i32>} : memref<128x128xf32, #tpu.memory_space<vmem>>, vector<8x128xf32>,
    %c31_100 = arith.constant 31 : index
    %c0_101 = arith.constant 0 : index
    %150 = tpu.strided_load %arg34[%c31_100, %c0_101] {strides = array<i32: 2, 1>} : memref<768x128xf32, #tpu.memory_space<vmem>>, vector<8x128xf32>
    %151 = vector.broadcast %112 : vector<1x128xf32> to vector<8x128xf32>
    %152 = arith.mulf %150, %151 : vector<8x128xf32>
    %c32_102 = arith.constant 32 : index
    %c0_103 = arith.constant 0 : index
    %153 = tpu.strided_load %arg34[%c32_102, %c0_103] {strides = array<i32: 2, 1>} : memref<768x128xf32, #tpu.memory_space<vmem>>, vector<8x128xf32>
    %154 = vector.broadcast %113 : vector<1x128xf32> to vector<8x128xf32>
    %155 = arith.mulf %153, %154 : vector<8x128xf32>
    %156 = arith.addf %152, %155 : vector<8x128xf32>
    %c33_104 = arith.constant 33 : index
    %c0_105 = arith.constant 0 : index
    %157 = tpu.strided_load %arg34[%c33_104, %c0_105] {strides = array<i32: 2, 1>} : memref<768x128xf32, #tpu.memory_space<vmem>>, vector<8x128xf32>
    %158 = vector.broadcast %114 : vector<1x128xf32> to vector<8x128xf32>
    %159 = arith.mulf %157, %158 : vector<8x128xf32>
    %160 = arith.addf %156, %159 : vector<8x128xf32>
    %c55 = arith.constant 55 : index
    %c0_106 = arith.constant 0 : index
    %161 = tpu.strided_load %arg34[%c55, %c0_106] {strides = array<i32: 2, 1>} : memref<768x128xf32, #tpu.memory_space<vmem>>, vector<8x128xf32>
    %162 = vector.broadcast %115 : vector<1x128xf32> to vector<8x128xf32>
    %163 = arith.mulf %161, %162 : vector<8x128xf32>
    %164 = arith.addf %160, %163 : vector<8x128xf32>
    %c56_107 = arith.constant 56 : index
    %c0_108 = arith.constant 0 : index
    %165 = tpu.strided_load %arg34[%c56_107, %c0_108] {strides = array<i32: 2, 1>} : memref<768x128xf32, #tpu.memory_space<vmem>>, vector<8x128xf32>
    %166 = vector.broadcast %116 : vector<1x128xf32> to vector<8x128xf32>
    %167 = arith.mulf %165, %166 : vector<8x128xf32>
    %168 = arith.addf %164, %167 : vector<8x128xf32>
    %c57 = arith.constant 57 : index
    %c0_109 = arith.constant 0 : index
    %169 = tpu.strided_load %arg34[%c57, %c0_109] {strides = array<i32: 2, 1>} : memref<768x128xf32, #tpu.memory_space<vmem>>, vector<8x128xf32>
    %170 = vector.broadcast %117 : vector<1x128xf32> to vector<8x128xf32>
    %171 = arith.mulf %169, %170 : vector<8x128xf32>
    %172 = arith.addf %168, %171 : vector<8x128xf32>
    %c79 = arith.constant 79 : index
    %c0_110 = arith.constant 0 : index
    %173 = tpu.strided_load %arg34[%c79, %c0_110] {strides = array<i32: 2, 1>} : memref<768x128xf32, #tpu.memory_space<vmem>>, vector<8x128xf32>
    %174 = vector.broadcast %118 : vector<1x128xf32> to vector<8x128xf32>
    %175 = arith.mulf %173, %174 : vector<8x128xf32>
    %176 = arith.addf %172, %175 : vector<8x128xf32>
    %c80_111 = arith.constant 80 : index
    %c0_112 = arith.constant 0 : index
    %177 = tpu.strided_load %arg34[%c80_111, %c0_112] {strides = array<i32: 2, 1>} : memref<768x128xf32, #tpu.memory_space<vmem>>, vector<8x128xf32>
    %178 = vector.broadcast %119 : vector<1x128xf32> to vector<8x128xf32>
    %179 = arith.mulf %177, %178 : vector<8x128xf32>
    %180 = arith.addf %176, %179 : vector<8x128xf32>
    %c81 = arith.constant 81 : index
    %c0_113 = arith.constant 0 : index
    %181 = tpu.strided_load %arg34[%c81, %c0_113] {strides = array<i32: 2, 1>} : memref<768x128xf32, #tpu.memory_space<vmem>>, vector<8x128xf32>
    %182 = vector.broadcast %120 : vector<1x128xf32> to vector<8x128xf32>
    %183 = arith.mulf %181, %182 : vector<8x128xf32>
    %184 = arith.addf %180, %183 : vector<8x128xf32>
    %185 = vector.broadcast %121 : vector<1x128xf32> to vector<8x128xf32>
    %186 = arith.addf %184, %185 : vector<8x128xf32>
    %cst_114 = arith.constant 0.000000e+00 : f32
    %187 = vector.broadcast %cst_114 : f32 to vector<8x128xf32>
    %188 = arith.maximumf %186, %187 : vector<8x128xf32>
    %c8_115 = arith.constant 8 : index
    %c0_116 = arith.constant 0 : index
    %189 = vector.load %arg35[%c8_115, %c0_116] : memref<128x128xf32, #tpu.memory_space<vmem>>, vector<8x128xf32>
    tpu.vector_store %arg35[%c8_115, %c0_116], %188 {strides = array<i32>} : memref<128x128xf32, #tpu.memory_space<vmem>>, vector<8x128xf32>,
    %c79_117 = arith.constant 79 : index
    %c0_118 = arith.constant 0 : index
    %190 = tpu.strided_load %arg34[%c79_117, %c0_118] {strides = array<i32: 2, 1>} : memref<768x128xf32, #tpu.memory_space<vmem>>, vector<8x128xf32>
    %191 = vector.broadcast %112 : vector<1x128xf32> to vector<8x128xf32>
    %192 = arith.mulf %190, %191 : vector<8x128xf32>
    %c80_119 = arith.constant 80 : index
    %c0_120 = arith.constant 0 : index
    %193 = tpu.strided_load %arg34[%c80_119, %c0_120] {strides = array<i32: 2, 1>} : memref<768x128xf32, #tpu.memory_space<vmem>>, vector<8x128xf32>
    %194 = vector.broadcast %113 : vector<1x128xf32> to vector<8x128xf32>
    %195 = arith.mulf %193, %194 : vector<8x128xf32>
    %196 = arith.addf %192, %195 : vector<8x128xf32>
    %c81_121 = arith.constant 81 : index
    %c0_122 = arith.constant 0 : index
    %197 = tpu.strided_load %arg34[%c81_121, %c0_122] {strides = array<i32: 2, 1>} : memref<768x128xf32, #tpu.memory_space<vmem>>, vector<8x128xf32>
    %198 = vector.broadcast %114 : vector<1x128xf32> to vector<8x128xf32>
    %199 = arith.mulf %197, %198 : vector<8x128xf32>
    %200 = arith.addf %196, %199 : vector<8x128xf32>
    %c103 = arith.constant 103 : index
    %c0_123 = arith.constant 0 : index
    %201 = tpu.strided_load %arg34[%c103, %c0_123] {strides = array<i32: 2, 1>} : memref<768x128xf32, #tpu.memory_space<vmem>>, vector<8x128xf32>
    %202 = vector.broadcast %115 : vector<1x128xf32> to vector<8x128xf32>
    %203 = arith.mulf %201, %202 : vector<8x128xf32>
    %204 = arith.addf %200, %203 : vector<8x128xf32>
    %c104_124 = arith.constant 104 : index
    %c0_125 = arith.constant 0 : index
    %205 = tpu.strided_load %arg34[%c104_124, %c0_125] {strides = array<i32: 2, 1>} : memref<768x128xf32, #tpu.memory_space<vmem>>, vector<8x128xf32>
    %206 = vector.broadcast %116 : vector<1x128xf32> to vector<8x128xf32>
    %207 = arith.mulf %205, %206 : vector<8x128xf32>
    %208 = arith.addf %204, %207 : vector<8x128xf32>
    %c105 = arith.constant 105 : index
    %c0_126 = arith.constant 0 : index
    %209 = tpu.strided_load %arg34[%c105, %c0_126] {strides = array<i32: 2, 1>} : memref<768x128xf32, #tpu.memory_space<vmem>>, vector<8x128xf32>
    %210 = vector.broadcast %117 : vector<1x128xf32> to vector<8x128xf32>
    %211 = arith.mulf %209, %210 : vector<8x128xf32>
    %212 = arith.addf %208, %211 : vector<8x128xf32>
    %c127 = arith.constant 127 : index
    %c0_127 = arith.constant 0 : index
    %213 = tpu.strided_load %arg34[%c127, %c0_127] {strides = array<i32: 2, 1>} : memref<768x128xf32, #tpu.memory_space<vmem>>, vector<8x128xf32>
    %214 = vector.broadcast %118 : vector<1x128xf32> to vector<8x128xf32>
    %215 = arith.mulf %213, %214 : vector<8x128xf32>
    %216 = arith.addf %212, %215 : vector<8x128xf32>
    %c128_128 = arith.constant 128 : index
    %c0_129 = arith.constant 0 : index
    %217 = tpu.strided_load %arg34[%c128_128, %c0_129] {strides = array<i32: 2, 1>} : memref<768x128xf32, #tpu.memory_space<vmem>>, vector<8x128xf32>
    %218 = vector.broadcast %119 : vector<1x128xf32> to vector<8x128xf32>
    %219 = arith.mulf %217, %218 : vector<8x128xf32>
    %220 = arith.addf %216, %219 : vector<8x128xf32>
    %c129 = arith.constant 129 : index
    %c0_130 = arith.constant 0 : index
    %221 = tpu.strided_load %arg34[%c129, %c0_130] {strides = array<i32: 2, 1>} : memref<768x128xf32, #tpu.memory_space<vmem>>, vector<8x128xf32>
    %222 = vector.broadcast %120 : vector<1x128xf32> to vector<8x128xf32>
    %223 = arith.mulf %221, %222 : vector<8x128xf32>
    %224 = arith.addf %220, %223 : vector<8x128xf32>
    %225 = vector.broadcast %121 : vector<1x128xf32> to vector<8x128xf32>
    %226 = arith.addf %224, %225 : vector<8x128xf32>
    %cst_131 = arith.constant 0.000000e+00 : f32
    %227 = vector.broadcast %cst_131 : f32 to vector<8x128xf32>
    %228 = arith.maximumf %226, %227 : vector<8x128xf32>
    %c16 = arith.constant 16 : index
    %c0_132 = arith.constant 0 : index
    %229 = vector.load %arg35[%c16, %c0_132] : memref<128x128xf32, #tpu.memory_space<vmem>>, vector<8x128xf32>
    tpu.vector_store %arg35[%c16, %c0_132], %228 {strides = array<i32>} : memref<128x128xf32, #tpu.memory_space<vmem>>, vector<8x128xf32>,
    %c127_133 = arith.constant 127 : index
    %c0_134 = arith.constant 0 : index
    %230 = tpu.strided_load %arg34[%c127_133, %c0_134] {strides = array<i32: 2, 1>} : memref<768x128xf32, #tpu.memory_space<vmem>>, vector<8x128xf32>
    %231 = vector.broadcast %112 : vector<1x128xf32> to vector<8x128xf32>
    %232 = arith.mulf %230, %231 : vector<8x128xf32>
    %c128_135 = arith.constant 128 : index
    %c0_136 = arith.constant 0 : index
    %233 = tpu.strided_load %arg34[%c128_135, %c0_136] {strides = array<i32: 2, 1>} : memref<768x128xf32, #tpu.memory_space<vmem>>, vector<8x128xf32>
    %234 = vector.broadcast %113 : vector<1x128xf32> to vector<8x128xf32>
    %235 = arith.mulf %233, %234 : vector<8x128xf32>
    %236 = arith.addf %232, %235 : vector<8x128xf32>
    %c129_137 = arith.constant 129 : index
    %c0_138 = arith.constant 0 : index
    %237 = tpu.strided_load %arg34[%c129_137, %c0_138] {strides = array<i32: 2, 1>} : memref<768x128xf32, #tpu.memory_space<vmem>>, vector<8x128xf32>
    %238 = vector.broadcast %114 : vector<1x128xf32> to vector<8x128xf32>
    %239 = arith.mulf %237, %238 : vector<8x128xf32>
    %240 = arith.addf %236, %239 : vector<8x128xf32>
    %c151 = arith.constant 151 : index
    %c0_139 = arith.constant 0 : index
    %241 = tpu.strided_load %arg34[%c151, %c0_139] {strides = array<i32: 2, 1>} : memref<768x128xf32, #tpu.memory_space<vmem>>, vector<8x128xf32>
    %242 = vector.broadcast %115 : vector<1x128xf32> to vector<8x128xf32>
    %243 = arith.mulf %241, %242 : vector<8x128xf32>
    %244 = arith.addf %240, %243 : vector<8x128xf32>
    %c152_140 = arith.constant 152 : index
    %c0_141 = arith.constant 0 : index
    %245 = tpu.strided_load %arg34[%c152_140, %c0_141] {strides = array<i32: 2, 1>} : memref<768x128xf32, #tpu.memory_space<vmem>>, vector<8x128xf32>
    %246 = vector.broadcast %116 : vector<1x128xf32> to vector<8x128xf32>
    %247 = arith.mulf %245, %246 : vector<8x128xf32>
    %248 = arith.addf %244, %247 : vector<8x128xf32>
    %c153 = arith.constant 153 : index
    %c0_142 = arith.constant 0 : index
    %249 = tpu.strided_load %arg34[%c153, %c0_142] {strides = array<i32: 2, 1>} : memref<768x128xf32, #tpu.memory_space<vmem>>, vector<8x128xf32>
    %250 = vector.broadcast %117 : vector<1x128xf32> to vector<8x128xf32>
    %251 = arith.mulf %249, %250 : vector<8x128xf32>
    %252 = arith.addf %248, %251 : vector<8x128xf32>
    %c175 = arith.constant 175 : index
    %c0_143 = arith.constant 0 : index
    %253 = tpu.strided_load %arg34[%c175, %c0_143] {strides = array<i32: 2, 1>} : memref<768x128xf32, #tpu.memory_space<vmem>>, vector<8x128xf32>
    %254 = vector.broadcast %118 : vector<1x128xf32> to vector<8x128xf32>
    %255 = arith.mulf %253, %254 : vector<8x128xf32>
    %256 = arith.addf %252, %255 : vector<8x128xf32>
    %c176_144 = arith.constant 176 : index
    %c0_145 = arith.constant 0 : index
    %257 = tpu.strided_load %arg34[%c176_144, %c0_145] {strides = array<i32: 2, 1>} : memref<768x128xf32, #tpu.memory_space<vmem>>, vector<8x128xf32>
    %258 = vector.broadcast %119 : vector<1x128xf32> to vector<8x128xf32>
    %259 = arith.mulf %257, %258 : vector<8x128xf32>
    %260 = arith.addf %256, %259 : vector<8x128xf32>
    %c177 = arith.constant 177 : index
    %c0_146 = arith.constant 0 : index
    %261 = tpu.strided_load %arg34[%c177, %c0_146] {strides = array<i32: 2, 1>} : memref<768x128xf32, #tpu.memory_space<vmem>>, vector<8x128xf32>
    %262 = vector.broadcast %120 : vector<1x128xf32> to vector<8x128xf32>
    %263 = arith.mulf %261, %262 : vector<8x128xf32>
    %264 = arith.addf %260, %263 : vector<8x128xf32>
    %265 = vector.broadcast %121 : vector<1x128xf32> to vector<8x128xf32>
    %266 = arith.addf %264, %265 : vector<8x128xf32>
    %cst_147 = arith.constant 0.000000e+00 : f32
    %267 = vector.broadcast %cst_147 : f32 to vector<8x128xf32>
    %268 = arith.maximumf %266, %267 : vector<8x128xf32>
    %c24_148 = arith.constant 24 : index
    %c0_149 = arith.constant 0 : index
    %269 = vector.load %arg35[%c24_148, %c0_149] : memref<128x128xf32, #tpu.memory_space<vmem>>, vector<8x128xf32>
    tpu.vector_store %arg35[%c24_148, %c0_149], %268 {strides = array<i32>} : memref<128x128xf32, #tpu.memory_space<vmem>>, vector<8x128xf32>,
    %c175_150 = arith.constant 175 : index
    %c0_151 = arith.constant 0 : index
    %270 = tpu.strided_load %arg34[%c175_150, %c0_151] {strides = array<i32: 2, 1>} : memref<768x128xf32, #tpu.memory_space<vmem>>, vector<8x128xf32>
    %271 = vector.broadcast %112 : vector<1x128xf32> to vector<8x128xf32>
    %272 = arith.mulf %270, %271 : vector<8x128xf32>
    %c176_152 = arith.constant 176 : index
    %c0_153 = arith.constant 0 : index
    %273 = tpu.strided_load %arg34[%c176_152, %c0_153] {strides = array<i32: 2, 1>} : memref<768x128xf32, #tpu.memory_space<vmem>>, vector<8x128xf32>
    %274 = vector.broadcast %113 : vector<1x128xf32> to vector<8x128xf32>
    %275 = arith.mulf %273, %274 : vector<8x128xf32>
    %276 = arith.addf %272, %275 : vector<8x128xf32>
    %c177_154 = arith.constant 177 : index
    %c0_155 = arith.constant 0 : index
    %277 = tpu.strided_load %arg34[%c177_154, %c0_155] {strides = array<i32: 2, 1>} : memref<768x128xf32, #tpu.memory_space<vmem>>, vector<8x128xf32>
    %278 = vector.broadcast %114 : vector<1x128xf32> to vector<8x128xf32>
    %279 = arith.mulf %277, %278 : vector<8x128xf32>
    %280 = arith.addf %276, %279 : vector<8x128xf32>
    %c199 = arith.constant 199 : index
    %c0_156 = arith.constant 0 : index
    %281 = tpu.strided_load %arg34[%c199, %c0_156] {strides = array<i32: 2, 1>} : memref<768x128xf32, #tpu.memory_space<vmem>>, vector<8x128xf32>
    %282 = vector.broadcast %115 : vector<1x128xf32> to vector<8x128xf32>
    %283 = arith.mulf %281, %282 : vector<8x128xf32>
    %284 = arith.addf %280, %283 : vector<8x128xf32>
    %c200_157 = arith.constant 200 : index
    %c0_158 = arith.constant 0 : index
    %285 = tpu.strided_load %arg34[%c200_157, %c0_158] {strides = array<i32: 2, 1>} : memref<768x128xf32, #tpu.memory_space<vmem>>, vector<8x128xf32>
    %286 = vector.broadcast %116 : vector<1x128xf32> to vector<8x128xf32>
    %287 = arith.mulf %285, %286 : vector<8x128xf32>
    %288 = arith.addf %284, %287 : vector<8x128xf32>
    %c201 = arith.constant 201 : index
    %c0_159 = arith.constant 0 : index
    %289 = tpu.strided_load %arg34[%c201, %c0_159] {strides = array<i32: 2, 1>} : memref<768x128xf32, #tpu.memory_space<vmem>>, vector<8x128xf32>
    %290 = vector.broadcast %117 : vector<1x128xf32> to vector<8x128xf32>
    %291 = arith.mulf %289, %290 : vector<8x128xf32>
    %292 = arith.addf %288, %291 : vector<8x128xf32>
    %c223 = arith.constant 223 : index
    %c0_160 = arith.constant 0 : index
    %293 = tpu.strided_load %arg34[%c223, %c0_160] {strides = array<i32: 2, 1>} : memref<768x128xf32, #tpu.memory_space<vmem>>, vector<8x128xf32>
    %294 = vector.broadcast %118 : vector<1x128xf32> to vector<8x128xf32>
    %295 = arith.mulf %293, %294 : vector<8x128xf32>
    %296 = arith.addf %292, %295 : vector<8x128xf32>
    %c224_161 = arith.constant 224 : index
    %c0_162 = arith.constant 0 : index
    %297 = tpu.strided_load %arg34[%c224_161, %c0_162] {strides = array<i32: 2, 1>} : memref<768x128xf32, #tpu.memory_space<vmem>>, vector<8x128xf32>
    %298 = vector.broadcast %119 : vector<1x128xf32> to vector<8x128xf32>
    %299 = arith.mulf %297, %298 : vector<8x128xf32>
    %300 = arith.addf %296, %299 : vector<8x128xf32>
    %c225 = arith.constant 225 : index
    %c0_163 = arith.constant 0 : index
    %301 = tpu.strided_load %arg34[%c225, %c0_163] {strides = array<i32: 2, 1>} : memref<768x128xf32, #tpu.memory_space<vmem>>, vector<8x128xf32>
    %302 = vector.broadcast %120 : vector<1x128xf32> to vector<8x128xf32>
    %303 = arith.mulf %301, %302 : vector<8x128xf32>
    %304 = arith.addf %300, %303 : vector<8x128xf32>
    %305 = vector.broadcast %121 : vector<1x128xf32> to vector<8x128xf32>
    %306 = arith.addf %304, %305 : vector<8x128xf32>
    %cst_164 = arith.constant 0.000000e+00 : f32
    %307 = vector.broadcast %cst_164 : f32 to vector<8x128xf32>
    %308 = arith.maximumf %306, %307 : vector<8x128xf32>
    %c32_165 = arith.constant 32 : index
    %c0_166 = arith.constant 0 : index
    %309 = vector.load %arg35[%c32_165, %c0_166] : memref<128x128xf32, #tpu.memory_space<vmem>>, vector<8x128xf32>
    tpu.vector_store %arg35[%c32_165, %c0_166], %308 {strides = array<i32>} : memref<128x128xf32, #tpu.memory_space<vmem>>, vector<8x128xf32>,
    %c223_167 = arith.constant 223 : index
    %c0_168 = arith.constant 0 : index
    %310 = tpu.strided_load %arg34[%c223_167, %c0_168] {strides = array<i32: 2, 1>} : memref<768x128xf32, #tpu.memory_space<vmem>>, vector<8x128xf32>
    %311 = vector.broadcast %112 : vector<1x128xf32> to vector<8x128xf32>
    %312 = arith.mulf %310, %311 : vector<8x128xf32>
    %c224_169 = arith.constant 224 : index
    %c0_170 = arith.constant 0 : index
    %313 = tpu.strided_load %arg34[%c224_169, %c0_170] {strides = array<i32: 2, 1>} : memref<768x128xf32, #tpu.memory_space<vmem>>, vector<8x128xf32>
    %314 = vector.broadcast %113 : vector<1x128xf32> to vector<8x128xf32>
    %315 = arith.mulf %313, %314 : vector<8x128xf32>
    %316 = arith.addf %312, %315 : vector<8x128xf32>
    %c225_171 = arith.constant 225 : index
    %c0_172 = arith.constant 0 : index
    %317 = tpu.strided_load %arg34[%c225_171, %c0_172] {strides = array<i32: 2, 1>} : memref<768x128xf32, #tpu.memory_space<vmem>>, vector<8x128xf32>
    %318 = vector.broadcast %114 : vector<1x128xf32> to vector<8x128xf32>
    %319 = arith.mulf %317, %318 : vector<8x128xf32>
    %320 = arith.addf %316, %319 : vector<8x128xf32>
    %c247 = arith.constant 247 : index
    %c0_173 = arith.constant 0 : index
    %321 = tpu.strided_load %arg34[%c247, %c0_173] {strides = array<i32: 2, 1>} : memref<768x128xf32, #tpu.memory_space<vmem>>, vector<8x128xf32>
    %322 = vector.broadcast %115 : vector<1x128xf32> to vector<8x128xf32>
    %323 = arith.mulf %321, %322 : vector<8x128xf32>
    %324 = arith.addf %320, %323 : vector<8x128xf32>
    %c248_174 = arith.constant 248 : index
    %c0_175 = arith.constant 0 : index
    %325 = tpu.strided_load %arg34[%c248_174, %c0_175] {strides = array<i32: 2, 1>} : memref<768x128xf32, #tpu.memory_space<vmem>>, vector<8x128xf32>
    %326 = vector.broadcast %116 : vector<1x128xf32> to vector<8x128xf32>
    %327 = arith.mulf %325, %326 : vector<8x128xf32>
    %328 = arith.addf %324, %327 : vector<8x128xf32>
    %c249 = arith.constant 249 : index
    %c0_176 = arith.constant 0 : index
    %329 = tpu.strided_load %arg34[%c249, %c0_176] {strides = array<i32: 2, 1>} : memref<768x128xf32, #tpu.memory_space<vmem>>, vector<8x128xf32>
    %330 = vector.broadcast %117 : vector<1x128xf32> to vector<8x128xf32>
    %331 = arith.mulf %329, %330 : vector<8x128xf32>
    %332 = arith.addf %328, %331 : vector<8x128xf32>
    %c271 = arith.constant 271 : index
    %c0_177 = arith.constant 0 : index
    %333 = tpu.strided_load %arg34[%c271, %c0_177] {strides = array<i32: 2, 1>} : memref<768x128xf32, #tpu.memory_space<vmem>>, vector<8x128xf32>
    %334 = vector.broadcast %118 : vector<1x128xf32> to vector<8x128xf32>
    %335 = arith.mulf %333, %334 : vector<8x128xf32>
    %336 = arith.addf %332, %335 : vector<8x128xf32>
    %c272_178 = arith.constant 272 : index
    %c0_179 = arith.constant 0 : index
    %337 = tpu.strided_load %arg34[%c272_178, %c0_179] {strides = array<i32: 2, 1>} : memref<768x128xf32, #tpu.memory_space<vmem>>, vector<8x128xf32>
    %338 = vector.broadcast %119 : vector<1x128xf32> to vector<8x128xf32>
    %339 = arith.mulf %337, %338 : vector<8x128xf32>
    %340 = arith.addf %336, %339 : vector<8x128xf32>
    %c273 = arith.constant 273 : index
    %c0_180 = arith.constant 0 : index
    %341 = tpu.strided_load %arg34[%c273, %c0_180] {strides = array<i32: 2, 1>} : memref<768x128xf32, #tpu.memory_space<vmem>>, vector<8x128xf32>
    %342 = vector.broadcast %120 : vector<1x128xf32> to vector<8x128xf32>
    %343 = arith.mulf %341, %342 : vector<8x128xf32>
    %344 = arith.addf %340, %343 : vector<8x128xf32>
    %345 = vector.broadcast %121 : vector<1x128xf32> to vector<8x128xf32>
    %346 = arith.addf %344, %345 : vector<8x128xf32>
    %cst_181 = arith.constant 0.000000e+00 : f32
    %347 = vector.broadcast %cst_181 : f32 to vector<8x128xf32>
    %348 = arith.maximumf %346, %347 : vector<8x128xf32>
    %c40 = arith.constant 40 : index
    %c0_182 = arith.constant 0 : index
    %349 = vector.load %arg35[%c40, %c0_182] : memref<128x128xf32, #tpu.memory_space<vmem>>, vector<8x128xf32>
    tpu.vector_store %arg35[%c40, %c0_182], %348 {strides = array<i32>} : memref<128x128xf32, #tpu.memory_space<vmem>>, vector<8x128xf32>,
    %c271_183 = arith.constant 271 : index
    %c0_184 = arith.constant 0 : index
    %350 = tpu.strided_load %arg34[%c271_183, %c0_184] {strides = array<i32: 2, 1>} : memref<768x128xf32, #tpu.memory_space<vmem>>, vector<8x128xf32>
    %351 = vector.broadcast %112 : vector<1x128xf32> to vector<8x128xf32>
    %352 = arith.mulf %350, %351 : vector<8x128xf32>
    %c272_185 = arith.constant 272 : index
    %c0_186 = arith.constant 0 : index
    %353 = tpu.strided_load %arg34[%c272_185, %c0_186] {strides = array<i32: 2, 1>} : memref<768x128xf32, #tpu.memory_space<vmem>>, vector<8x128xf32>
    %354 = vector.broadcast %113 : vector<1x128xf32> to vector<8x128xf32>
    %355 = arith.mulf %353, %354 : vector<8x128xf32>
    %356 = arith.addf %352, %355 : vector<8x128xf32>
    %c273_187 = arith.constant 273 : index
    %c0_188 = arith.constant 0 : index
    %357 = tpu.strided_load %arg34[%c273_187, %c0_188] {strides = array<i32: 2, 1>} : memref<768x128xf32, #tpu.memory_space<vmem>>, vector<8x128xf32>
    %358 = vector.broadcast %114 : vector<1x128xf32> to vector<8x128xf32>
    %359 = arith.mulf %357, %358 : vector<8x128xf32>
    %360 = arith.addf %356, %359 : vector<8x128xf32>
    %c295 = arith.constant 295 : index
    %c0_189 = arith.constant 0 : index
    %361 = tpu.strided_load %arg34[%c295, %c0_189] {strides = array<i32: 2, 1>} : memref<768x128xf32, #tpu.memory_space<vmem>>, vector<8x128xf32>
    %362 = vector.broadcast %115 : vector<1x128xf32> to vector<8x128xf32>
    %363 = arith.mulf %361, %362 : vector<8x128xf32>
    %364 = arith.addf %360, %363 : vector<8x128xf32>
    %c296_190 = arith.constant 296 : index
    %c0_191 = arith.constant 0 : index
    %365 = tpu.strided_load %arg34[%c296_190, %c0_191] {strides = array<i32: 2, 1>} : memref<768x128xf32, #tpu.memory_space<vmem>>, vector<8x128xf32>
    %366 = vector.broadcast %116 : vector<1x128xf32> to vector<8x128xf32>
    %367 = arith.mulf %365, %366 : vector<8x128xf32>
    %368 = arith.addf %364, %367 : vector<8x128xf32>
    %c297 = arith.constant 297 : index
    %c0_192 = arith.constant 0 : index
    %369 = tpu.strided_load %arg34[%c297, %c0_192] {strides = array<i32: 2, 1>} : memref<768x128xf32, #tpu.memory_space<vmem>>, vector<8x128xf32>
    %370 = vector.broadcast %117 : vector<1x128xf32> to vector<8x128xf32>
    %371 = arith.mulf %369, %370 : vector<8x128xf32>
    %372 = arith.addf %368, %371 : vector<8x128xf32>
    %c319 = arith.constant 319 : index
    %c0_193 = arith.constant 0 : index
    %373 = tpu.strided_load %arg34[%c319, %c0_193] {strides = array<i32: 2, 1>} : memref<768x128xf32, #tpu.memory_space<vmem>>, vector<8x128xf32>
    %374 = vector.broadcast %118 : vector<1x128xf32> to vector<8x128xf32>
    %375 = arith.mulf %373, %374 : vector<8x128xf32>
    %376 = arith.addf %372, %375 : vector<8x128xf32>
    %c320_194 = arith.constant 320 : index
    %c0_195 = arith.constant 0 : index
    %377 = tpu.strided_load %arg34[%c320_194, %c0_195] {strides = array<i32: 2, 1>} : memref<768x128xf32, #tpu.memory_space<vmem>>, vector<8x128xf32>
    %378 = vector.broadcast %119 : vector<1x128xf32> to vector<8x128xf32>
    %379 = arith.mulf %377, %378 : vector<8x128xf32>
    %380 = arith.addf %376, %379 : vector<8x128xf32>
    %c321 = arith.constant 321 : index
    %c0_196 = arith.constant 0 : index
    %381 = tpu.strided_load %arg34[%c321, %c0_196] {strides = array<i32: 2, 1>} : memref<768x128xf32, #tpu.memory_space<vmem>>, vector<8x128xf32>
    %382 = vector.broadcast %120 : vector<1x128xf32> to vector<8x128xf32>
    %383 = arith.mulf %381, %382 : vector<8x128xf32>
    %384 = arith.addf %380, %383 : vector<8x128xf32>
    %385 = vector.broadcast %121 : vector<1x128xf32> to vector<8x128xf32>
    %386 = arith.addf %384, %385 : vector<8x128xf32>
    %cst_197 = arith.constant 0.000000e+00 : f32
    %387 = vector.broadcast %cst_197 : f32 to vector<8x128xf32>
    %388 = arith.maximumf %386, %387 : vector<8x128xf32>
    %c48_198 = arith.constant 48 : index
    %c0_199 = arith.constant 0 : index
    %389 = vector.load %arg35[%c48_198, %c0_199] : memref<128x128xf32, #tpu.memory_space<vmem>>, vector<8x128xf32>
    tpu.vector_store %arg35[%c48_198, %c0_199], %388 {strides = array<i32>} : memref<128x128xf32, #tpu.memory_space<vmem>>, vector<8x128xf32>,
    %c319_200 = arith.constant 319 : index
    %c0_201 = arith.constant 0 : index
    %390 = tpu.strided_load %arg34[%c319_200, %c0_201] {strides = array<i32: 2, 1>} : memref<768x128xf32, #tpu.memory_space<vmem>>, vector<8x128xf32>
    %391 = vector.broadcast %112 : vector<1x128xf32> to vector<8x128xf32>
    %392 = arith.mulf %390, %391 : vector<8x128xf32>
    %c320_202 = arith.constant 320 : index
    %c0_203 = arith.constant 0 : index
    %393 = tpu.strided_load %arg34[%c320_202, %c0_203] {strides = array<i32: 2, 1>} : memref<768x128xf32, #tpu.memory_space<vmem>>, vector<8x128xf32>
    %394 = vector.broadcast %113 : vector<1x128xf32> to vector<8x128xf32>
    %395 = arith.mulf %393, %394 : vector<8x128xf32>
    %396 = arith.addf %392, %395 : vector<8x128xf32>
    %c321_204 = arith.constant 321 : index
    %c0_205 = arith.constant 0 : index
    %397 = tpu.strided_load %arg34[%c321_204, %c0_205] {strides = array<i32: 2, 1>} : memref<768x128xf32, #tpu.memory_space<vmem>>, vector<8x128xf32>
    %398 = vector.broadcast %114 : vector<1x128xf32> to vector<8x128xf32>
    %399 = arith.mulf %397, %398 : vector<8x128xf32>
    %400 = arith.addf %396, %399 : vector<8x128xf32>
    %c343 = arith.constant 343 : index
    %c0_206 = arith.constant 0 : index
    %401 = tpu.strided_load %arg34[%c343, %c0_206] {strides = array<i32: 2, 1>} : memref<768x128xf32, #tpu.memory_space<vmem>>, vector<8x128xf32>
    %402 = vector.broadcast %115 : vector<1x128xf32> to vector<8x128xf32>
    %403 = arith.mulf %401, %402 : vector<8x128xf32>
    %404 = arith.addf %400, %403 : vector<8x128xf32>
    %c344_207 = arith.constant 344 : index
    %c0_208 = arith.constant 0 : index
    %405 = tpu.strided_load %arg34[%c344_207, %c0_208] {strides = array<i32: 2, 1>} : memref<768x128xf32, #tpu.memory_space<vmem>>, vector<8x128xf32>
    %406 = vector.broadcast %116 : vector<1x128xf32> to vector<8x128xf32>
    %407 = arith.mulf %405, %406 : vector<8x128xf32>
    %408 = arith.addf %404, %407 : vector<8x128xf32>
    %c345 = arith.constant 345 : index
    %c0_209 = arith.constant 0 : index
    %409 = tpu.strided_load %arg34[%c345, %c0_209] {strides = array<i32: 2, 1>} : memref<768x128xf32, #tpu.memory_space<vmem>>, vector<8x128xf32>
    %410 = vector.broadcast %117 : vector<1x128xf32> to vector<8x128xf32>
    %411 = arith.mulf %409, %410 : vector<8x128xf32>
    %412 = arith.addf %408, %411 : vector<8x128xf32>
    %c367 = arith.constant 367 : index
    %c0_210 = arith.constant 0 : index
    %413 = tpu.strided_load %arg34[%c367, %c0_210] {strides = array<i32: 2, 1>} : memref<768x128xf32, #tpu.memory_space<vmem>>, vector<8x128xf32>
    %414 = vector.broadcast %118 : vector<1x128xf32> to vector<8x128xf32>
    %415 = arith.mulf %413, %414 : vector<8x128xf32>
    %416 = arith.addf %412, %415 : vector<8x128xf32>
    %c368_211 = arith.constant 368 : index
    %c0_212 = arith.constant 0 : index
    %417 = tpu.strided_load %arg34[%c368_211, %c0_212] {strides = array<i32: 2, 1>} : memref<768x128xf32, #tpu.memory_space<vmem>>, vector<8x128xf32>
    %418 = vector.broadcast %119 : vector<1x128xf32> to vector<8x128xf32>
    %419 = arith.mulf %417, %418 : vector<8x128xf32>
    %420 = arith.addf %416, %419 : vector<8x128xf32>
    %c369 = arith.constant 369 : index
    %c0_213 = arith.constant 0 : index
    %421 = tpu.strided_load %arg34[%c369, %c0_213] {strides = array<i32: 2, 1>} : memref<768x128xf32, #tpu.memory_space<vmem>>, vector<8x128xf32>
    %422 = vector.broadcast %120 : vector<1x128xf32> to vector<8x128xf32>
    %423 = arith.mulf %421, %422 : vector<8x128xf32>
    %424 = arith.addf %420, %423 : vector<8x128xf32>
    %425 = vector.broadcast %121 : vector<1x128xf32> to vector<8x128xf32>
    %426 = arith.addf %424, %425 : vector<8x128xf32>
    %cst_214 = arith.constant 0.000000e+00 : f32
    %427 = vector.broadcast %cst_214 : f32 to vector<8x128xf32>
    %428 = arith.maximumf %426, %427 : vector<8x128xf32>
    %c56_215 = arith.constant 56 : index
    %c0_216 = arith.constant 0 : index
    %429 = vector.load %arg35[%c56_215, %c0_216] : memref<128x128xf32, #tpu.memory_space<vmem>>, vector<8x128xf32>
    tpu.vector_store %arg35[%c56_215, %c0_216], %428 {strides = array<i32>} : memref<128x128xf32, #tpu.memory_space<vmem>>, vector<8x128xf32>,
    %c391 = arith.constant 391 : index
    %c0_217 = arith.constant 0 : index
    %430 = tpu.strided_load %arg34[%c391, %c0_217] {strides = array<i32: 2, 1>} : memref<768x128xf32, #tpu.memory_space<vmem>>, vector<8x128xf32>
    %431 = vector.broadcast %115 : vector<1x128xf32> to vector<8x128xf32>
    %432 = arith.mulf %430, %431 : vector<8x128xf32>
    %c392_218 = arith.constant 392 : index
    %c0_219 = arith.constant 0 : index
    %433 = tpu.strided_load %arg34[%c392_218, %c0_219] {strides = array<i32: 2, 1>} : memref<768x128xf32, #tpu.memory_space<vmem>>, vector<8x128xf32>
    %434 = vector.broadcast %116 : vector<1x128xf32> to vector<8x128xf32>
    %435 = arith.mulf %433, %434 : vector<8x128xf32>
    %436 = arith.addf %432, %435 : vector<8x128xf32>
    %c393 = arith.constant 393 : index
    %c0_220 = arith.constant 0 : index
    %437 = tpu.strided_load %arg34[%c393, %c0_220] {strides = array<i32: 2, 1>} : memref<768x128xf32, #tpu.memory_space<vmem>>, vector<8x128xf32>
    %438 = vector.broadcast %117 : vector<1x128xf32> to vector<8x128xf32>
    %439 = arith.mulf %437, %438 : vector<8x128xf32>
    %440 = arith.addf %436, %439 : vector<8x128xf32>
    %c415 = arith.constant 415 : index
    %c0_221 = arith.constant 0 : index
    %441 = tpu.strided_load %arg34[%c415, %c0_221] {strides = array<i32: 2, 1>} : memref<768x128xf32, #tpu.memory_space<vmem>>, vector<8x128xf32>
    %442 = vector.broadcast %118 : vector<1x128xf32> to vector<8x128xf32>
    %443 = arith.mulf %441, %442 : vector<8x128xf32>
    %444 = arith.addf %440, %443 : vector<8x128xf32>
    %c416_222 = arith.constant 416 : index
    %c0_223 = arith.constant 0 : index
    %445 = tpu.strided_load %arg34[%c416_222, %c0_223] {strides = array<i32: 2, 1>} : memref<768x128xf32, #tpu.memory_space<vmem>>, vector<8x128xf32>
    %446 = vector.broadcast %119 : vector<1x128xf32> to vector<8x128xf32>
    %447 = arith.mulf %445, %446 : vector<8x128xf32>
    %448 = arith.addf %444, %447 : vector<8x128xf32>
    %c417 = arith.constant 417 : index
    %c0_224 = arith.constant 0 : index
    %449 = tpu.strided_load %arg34[%c417, %c0_224] {strides = array<i32: 2, 1>} : memref<768x128xf32, #tpu.memory_space<vmem>>, vector<8x128xf32>
    %450 = vector.broadcast %120 : vector<1x128xf32> to vector<8x128xf32>
    %451 = arith.mulf %449, %450 : vector<8x128xf32>
    %452 = arith.addf %448, %451 : vector<8x128xf32>
    %453 = vector.broadcast %121 : vector<1x128xf32> to vector<8x128xf32>
    %454 = arith.addf %452, %453 : vector<8x128xf32>
    %cst_225 = arith.constant 0.000000e+00 : f32
    %455 = vector.broadcast %cst_225 : f32 to vector<8x128xf32>
    %456 = arith.maximumf %454, %455 : vector<8x128xf32>
    %c64 = arith.constant 64 : index
    %c0_226 = arith.constant 0 : index
    %457 = vector.load %arg35[%c64, %c0_226] : memref<128x128xf32, #tpu.memory_space<vmem>>, vector<8x128xf32>
    tpu.vector_store %arg35[%c64, %c0_226], %456 {strides = array<i32>} : memref<128x128xf32, #tpu.memory_space<vmem>>, vector<8x128xf32>,
    %c415_227 = arith.constant 415 : index
    %c0_228 = arith.constant 0 : index
    %458 = tpu.strided_load %arg34[%c415_227, %c0_228] {strides = array<i32: 2, 1>} : memref<768x128xf32, #tpu.memory_space<vmem>>, vector<8x128xf32>
    %459 = vector.broadcast %112 : vector<1x128xf32> to vector<8x128xf32>
    %460 = arith.mulf %458, %459 : vector<8x128xf32>
    %c416_229 = arith.constant 416 : index
    %c0_230 = arith.constant 0 : index
    %461 = tpu.strided_load %arg34[%c416_229, %c0_230] {strides = array<i32: 2, 1>} : memref<768x128xf32, #tpu.memory_space<vmem>>, vector<8x128xf32>
    %462 = vector.broadcast %113 : vector<1x128xf32> to vector<8x128xf32>
    %463 = arith.mulf %461, %462 : vector<8x128xf32>
    %464 = arith.addf %460, %463 : vector<8x128xf32>
    %c417_231 = arith.constant 417 : index
    %c0_232 = arith.constant 0 : index
    %465 = tpu.strided_load %arg34[%c417_231, %c0_232] {strides = array<i32: 2, 1>} : memref<768x128xf32, #tpu.memory_space<vmem>>, vector<8x128xf32>
    %466 = vector.broadcast %114 : vector<1x128xf32> to vector<8x128xf32>
    %467 = arith.mulf %465, %466 : vector<8x128xf32>
    %468 = arith.addf %464, %467 : vector<8x128xf32>
    %c439 = arith.constant 439 : index
    %c0_233 = arith.constant 0 : index
    %469 = tpu.strided_load %arg34[%c439, %c0_233] {strides = array<i32: 2, 1>} : memref<768x128xf32, #tpu.memory_space<vmem>>, vector<8x128xf32>
    %470 = vector.broadcast %115 : vector<1x128xf32> to vector<8x128xf32>
    %471 = arith.mulf %469, %470 : vector<8x128xf32>
    %472 = arith.addf %468, %471 : vector<8x128xf32>
    %c440_234 = arith.constant 440 : index
    %c0_235 = arith.constant 0 : index
    %473 = tpu.strided_load %arg34[%c440_234, %c0_235] {strides = array<i32: 2, 1>} : memref<768x128xf32, #tpu.memory_space<vmem>>, vector<8x128xf32>
    %474 = vector.broadcast %116 : vector<1x128xf32> to vector<8x128xf32>
    %475 = arith.mulf %473, %474 : vector<8x128xf32>
    %476 = arith.addf %472, %475 : vector<8x128xf32>
    %c441 = arith.constant 441 : index
    %c0_236 = arith.constant 0 : index
    %477 = tpu.strided_load %arg34[%c441, %c0_236] {strides = array<i32: 2, 1>} : memref<768x128xf32, #tpu.memory_space<vmem>>, vector<8x128xf32>
    %478 = vector.broadcast %117 : vector<1x128xf32> to vector<8x128xf32>
    %479 = arith.mulf %477, %478 : vector<8x128xf32>
    %480 = arith.addf %476, %479 : vector<8x128xf32>
    %c463 = arith.constant 463 : index
    %c0_237 = arith.constant 0 : index
    %481 = tpu.strided_load %arg34[%c463, %c0_237] {strides = array<i32: 2, 1>} : memref<768x128xf32, #tpu.memory_space<vmem>>, vector<8x128xf32>
    %482 = vector.broadcast %118 : vector<1x128xf32> to vector<8x128xf32>
    %483 = arith.mulf %481, %482 : vector<8x128xf32>
    %484 = arith.addf %480, %483 : vector<8x128xf32>
    %c464_238 = arith.constant 464 : index
    %c0_239 = arith.constant 0 : index
    %485 = tpu.strided_load %arg34[%c464_238, %c0_239] {strides = array<i32: 2, 1>} : memref<768x128xf32, #tpu.memory_space<vmem>>, vector<8x128xf32>
    %486 = vector.broadcast %119 : vector<1x128xf32> to vector<8x128xf32>
    %487 = arith.mulf %485, %486 : vector<8x128xf32>
    %488 = arith.addf %484, %487 : vector<8x128xf32>
    %c465 = arith.constant 465 : index
    %c0_240 = arith.constant 0 : index
    %489 = tpu.strided_load %arg34[%c465, %c0_240] {strides = array<i32: 2, 1>} : memref<768x128xf32, #tpu.memory_space<vmem>>, vector<8x128xf32>
    %490 = vector.broadcast %120 : vector<1x128xf32> to vector<8x128xf32>
    %491 = arith.mulf %489, %490 : vector<8x128xf32>
    %492 = arith.addf %488, %491 : vector<8x128xf32>
    %493 = vector.broadcast %121 : vector<1x128xf32> to vector<8x128xf32>
    %494 = arith.addf %492, %493 : vector<8x128xf32>
    %cst_241 = arith.constant 0.000000e+00 : f32
    %495 = vector.broadcast %cst_241 : f32 to vector<8x128xf32>
    %496 = arith.maximumf %494, %495 : vector<8x128xf32>
    %c72_242 = arith.constant 72 : index
    %c0_243 = arith.constant 0 : index
    %497 = vector.load %arg35[%c72_242, %c0_243] : memref<128x128xf32, #tpu.memory_space<vmem>>, vector<8x128xf32>
    tpu.vector_store %arg35[%c72_242, %c0_243], %496 {strides = array<i32>} : memref<128x128xf32, #tpu.memory_space<vmem>>, vector<8x128xf32>,
    %c463_244 = arith.constant 463 : index
    %c0_245 = arith.constant 0 : index
    %498 = tpu.strided_load %arg34[%c463_244, %c0_245] {strides = array<i32: 2, 1>} : memref<768x128xf32, #tpu.memory_space<vmem>>, vector<8x128xf32>
    %499 = vector.broadcast %112 : vector<1x128xf32> to vector<8x128xf32>
    %500 = arith.mulf %498, %499 : vector<8x128xf32>
    %c464_246 = arith.constant 464 : index
    %c0_247 = arith.constant 0 : index
    %501 = tpu.strided_load %arg34[%c464_246, %c0_247] {strides = array<i32: 2, 1>} : memref<768x128xf32, #tpu.memory_space<vmem>>, vector<8x128xf32>
    %502 = vector.broadcast %113 : vector<1x128xf32> to vector<8x128xf32>
    %503 = arith.mulf %501, %502 : vector<8x128xf32>
    %504 = arith.addf %500, %503 : vector<8x128xf32>
    %c465_248 = arith.constant 465 : index
    %c0_249 = arith.constant 0 : index
    %505 = tpu.strided_load %arg34[%c465_248, %c0_249] {strides = array<i32: 2, 1>} : memref<768x128xf32, #tpu.memory_space<vmem>>, vector<8x128xf32>
    %506 = vector.broadcast %114 : vector<1x128xf32> to vector<8x128xf32>
    %507 = arith.mulf %505, %506 : vector<8x128xf32>
    %508 = arith.addf %504, %507 : vector<8x128xf32>
    %c487 = arith.constant 487 : index
    %c0_250 = arith.constant 0 : index
    %509 = tpu.strided_load %arg34[%c487, %c0_250] {strides = array<i32: 2, 1>} : memref<768x128xf32, #tpu.memory_space<vmem>>, vector<8x128xf32>
    %510 = vector.broadcast %115 : vector<1x128xf32> to vector<8x128xf32>
    %511 = arith.mulf %509, %510 : vector<8x128xf32>
    %512 = arith.addf %508, %511 : vector<8x128xf32>
    %c488_251 = arith.constant 488 : index
    %c0_252 = arith.constant 0 : index
    %513 = tpu.strided_load %arg34[%c488_251, %c0_252] {strides = array<i32: 2, 1>} : memref<768x128xf32, #tpu.memory_space<vmem>>, vector<8x128xf32>
    %514 = vector.broadcast %116 : vector<1x128xf32> to vector<8x128xf32>
    %515 = arith.mulf %513, %514 : vector<8x128xf32>
    %516 = arith.addf %512, %515 : vector<8x128xf32>
    %c489 = arith.constant 489 : index
    %c0_253 = arith.constant 0 : index
    %517 = tpu.strided_load %arg34[%c489, %c0_253] {strides = array<i32: 2, 1>} : memref<768x128xf32, #tpu.memory_space<vmem>>, vector<8x128xf32>
    %518 = vector.broadcast %117 : vector<1x128xf32> to vector<8x128xf32>
    %519 = arith.mulf %517, %518 : vector<8x128xf32>
    %520 = arith.addf %516, %519 : vector<8x128xf32>
    %c511 = arith.constant 511 : index
    %c0_254 = arith.constant 0 : index
    %521 = tpu.strided_load %arg34[%c511, %c0_254] {strides = array<i32: 2, 1>} : memref<768x128xf32, #tpu.memory_space<vmem>>, vector<8x128xf32>
    %522 = vector.broadcast %118 : vector<1x128xf32> to vector<8x128xf32>
    %523 = arith.mulf %521, %522 : vector<8x128xf32>
    %524 = arith.addf %520, %523 : vector<8x128xf32>
    %c512_255 = arith.constant 512 : index
    %c0_256 = arith.constant 0 : index
    %525 = tpu.strided_load %arg34[%c512_255, %c0_256] {strides = array<i32: 2, 1>} : memref<768x128xf32, #tpu.memory_space<vmem>>, vector<8x128xf32>
    %526 = vector.broadcast %119 : vector<1x128xf32> to vector<8x128xf32>
    %527 = arith.mulf %525, %526 : vector<8x128xf32>
    %528 = arith.addf %524, %527 : vector<8x128xf32>
    %c513 = arith.constant 513 : index
    %c0_257 = arith.constant 0 : index
    %529 = tpu.strided_load %arg34[%c513, %c0_257] {strides = array<i32: 2, 1>} : memref<768x128xf32, #tpu.memory_space<vmem>>, vector<8x128xf32>
    %530 = vector.broadcast %120 : vector<1x128xf32> to vector<8x128xf32>
    %531 = arith.mulf %529, %530 : vector<8x128xf32>
    %532 = arith.addf %528, %531 : vector<8x128xf32>
    %533 = vector.broadcast %121 : vector<1x128xf32> to vector<8x128xf32>
    %534 = arith.addf %532, %533 : vector<8x128xf32>
    %cst_258 = arith.constant 0.000000e+00 : f32
    %535 = vector.broadcast %cst_258 : f32 to vector<8x128xf32>
    %536 = arith.maximumf %534, %535 : vector<8x128xf32>
    %c80_259 = arith.constant 80 : index
    %c0_260 = arith.constant 0 : index
    %537 = vector.load %arg35[%c80_259, %c0_260] : memref<128x128xf32, #tpu.memory_space<vmem>>, vector<8x128xf32>
    tpu.vector_store %arg35[%c80_259, %c0_260], %536 {strides = array<i32>} : memref<128x128xf32, #tpu.memory_space<vmem>>, vector<8x128xf32>,
    %c511_261 = arith.constant 511 : index
    %c0_262 = arith.constant 0 : index
    %538 = tpu.strided_load %arg34[%c511_261, %c0_262] {strides = array<i32: 2, 1>} : memref<768x128xf32, #tpu.memory_space<vmem>>, vector<8x128xf32>
    %539 = vector.broadcast %112 : vector<1x128xf32> to vector<8x128xf32>
    %540 = arith.mulf %538, %539 : vector<8x128xf32>
    %c512_263 = arith.constant 512 : index
    %c0_264 = arith.constant 0 : index
    %541 = tpu.strided_load %arg34[%c512_263, %c0_264] {strides = array<i32: 2, 1>} : memref<768x128xf32, #tpu.memory_space<vmem>>, vector<8x128xf32>
    %542 = vector.broadcast %113 : vector<1x128xf32> to vector<8x128xf32>
    %543 = arith.mulf %541, %542 : vector<8x128xf32>
    %544 = arith.addf %540, %543 : vector<8x128xf32>
    %c513_265 = arith.constant 513 : index
    %c0_266 = arith.constant 0 : index
    %545 = tpu.strided_load %arg34[%c513_265, %c0_266] {strides = array<i32: 2, 1>} : memref<768x128xf32, #tpu.memory_space<vmem>>, vector<8x128xf32>
    %546 = vector.broadcast %114 : vector<1x128xf32> to vector<8x128xf32>
    %547 = arith.mulf %545, %546 : vector<8x128xf32>
    %548 = arith.addf %544, %547 : vector<8x128xf32>
    %c535 = arith.constant 535 : index
    %c0_267 = arith.constant 0 : index
    %549 = tpu.strided_load %arg34[%c535, %c0_267] {strides = array<i32: 2, 1>} : memref<768x128xf32, #tpu.memory_space<vmem>>, vector<8x128xf32>
    %550 = vector.broadcast %115 : vector<1x128xf32> to vector<8x128xf32>
    %551 = arith.mulf %549, %550 : vector<8x128xf32>
    %552 = arith.addf %548, %551 : vector<8x128xf32>
    %c536_268 = arith.constant 536 : index
    %c0_269 = arith.constant 0 : index
    %553 = tpu.strided_load %arg34[%c536_268, %c0_269] {strides = array<i32: 2, 1>} : memref<768x128xf32, #tpu.memory_space<vmem>>, vector<8x128xf32>
    %554 = vector.broadcast %116 : vector<1x128xf32> to vector<8x128xf32>
    %555 = arith.mulf %553, %554 : vector<8x128xf32>
    %556 = arith.addf %552, %555 : vector<8x128xf32>
    %c537 = arith.constant 537 : index
    %c0_270 = arith.constant 0 : index
    %557 = tpu.strided_load %arg34[%c537, %c0_270] {strides = array<i32: 2, 1>} : memref<768x128xf32, #tpu.memory_space<vmem>>, vector<8x128xf32>
    %558 = vector.broadcast %117 : vector<1x128xf32> to vector<8x128xf32>
    %559 = arith.mulf %557, %558 : vector<8x128xf32>
    %560 = arith.addf %556, %559 : vector<8x128xf32>
    %c559 = arith.constant 559 : index
    %c0_271 = arith.constant 0 : index
    %561 = tpu.strided_load %arg34[%c559, %c0_271] {strides = array<i32: 2, 1>} : memref<768x128xf32, #tpu.memory_space<vmem>>, vector<8x128xf32>
    %562 = vector.broadcast %118 : vector<1x128xf32> to vector<8x128xf32>
    %563 = arith.mulf %561, %562 : vector<8x128xf32>
    %564 = arith.addf %560, %563 : vector<8x128xf32>
    %c560_272 = arith.constant 560 : index
    %c0_273 = arith.constant 0 : index
    %565 = tpu.strided_load %arg34[%c560_272, %c0_273] {strides = array<i32: 2, 1>} : memref<768x128xf32, #tpu.memory_space<vmem>>, vector<8x128xf32>
    %566 = vector.broadcast %119 : vector<1x128xf32> to vector<8x128xf32>
    %567 = arith.mulf %565, %566 : vector<8x128xf32>
    %568 = arith.addf %564, %567 : vector<8x128xf32>
    %c561 = arith.constant 561 : index
    %c0_274 = arith.constant 0 : index
    %569 = tpu.strided_load %arg34[%c561, %c0_274] {strides = array<i32: 2, 1>} : memref<768x128xf32, #tpu.memory_space<vmem>>, vector<8x128xf32>
    %570 = vector.broadcast %120 : vector<1x128xf32> to vector<8x128xf32>
    %571 = arith.mulf %569, %570 : vector<8x128xf32>
    %572 = arith.addf %568, %571 : vector<8x128xf32>
    %573 = vector.broadcast %121 : vector<1x128xf32> to vector<8x128xf32>
    %574 = arith.addf %572, %573 : vector<8x128xf32>
    %cst_275 = arith.constant 0.000000e+00 : f32
    %575 = vector.broadcast %cst_275 : f32 to vector<8x128xf32>
    %576 = arith.maximumf %574, %575 : vector<8x128xf32>
    %c88 = arith.constant 88 : index
    %c0_276 = arith.constant 0 : index
    %577 = vector.load %arg35[%c88, %c0_276] : memref<128x128xf32, #tpu.memory_space<vmem>>, vector<8x128xf32>
    tpu.vector_store %arg35[%c88, %c0_276], %576 {strides = array<i32>} : memref<128x128xf32, #tpu.memory_space<vmem>>, vector<8x128xf32>,
    %c559_277 = arith.constant 559 : index
    %c0_278 = arith.constant 0 : index
    %578 = tpu.strided_load %arg34[%c559_277, %c0_278] {strides = array<i32: 2, 1>} : memref<768x128xf32, #tpu.memory_space<vmem>>, vector<8x128xf32>
    %579 = vector.broadcast %112 : vector<1x128xf32> to vector<8x128xf32>
    %580 = arith.mulf %578, %579 : vector<8x128xf32>
    %c560_279 = arith.constant 560 : index
    %c0_280 = arith.constant 0 : index
    %581 = tpu.strided_load %arg34[%c560_279, %c0_280] {strides = array<i32: 2, 1>} : memref<768x128xf32, #tpu.memory_space<vmem>>, vector<8x128xf32>
    %582 = vector.broadcast %113 : vector<1x128xf32> to vector<8x128xf32>
    %583 = arith.mulf %581, %582 : vector<8x128xf32>
    %584 = arith.addf %580, %583 : vector<8x128xf32>
    %c561_281 = arith.constant 561 : index
    %c0_282 = arith.constant 0 : index
    %585 = tpu.strided_load %arg34[%c561_281, %c0_282] {strides = array<i32: 2, 1>} : memref<768x128xf32, #tpu.memory_space<vmem>>, vector<8x128xf32>
    %586 = vector.broadcast %114 : vector<1x128xf32> to vector<8x128xf32>
    %587 = arith.mulf %585, %586 : vector<8x128xf32>
    %588 = arith.addf %584, %587 : vector<8x128xf32>
    %c583 = arith.constant 583 : index
    %c0_283 = arith.constant 0 : index
    %589 = tpu.strided_load %arg34[%c583, %c0_283] {strides = array<i32: 2, 1>} : memref<768x128xf32, #tpu.memory_space<vmem>>, vector<8x128xf32>
    %590 = vector.broadcast %115 : vector<1x128xf32> to vector<8x128xf32>
    %591 = arith.mulf %589, %590 : vector<8x128xf32>
    %592 = arith.addf %588, %591 : vector<8x128xf32>
    %c584_284 = arith.constant 584 : index
    %c0_285 = arith.constant 0 : index
    %593 = tpu.strided_load %arg34[%c584_284, %c0_285] {strides = array<i32: 2, 1>} : memref<768x128xf32, #tpu.memory_space<vmem>>, vector<8x128xf32>
    %594 = vector.broadcast %116 : vector<1x128xf32> to vector<8x128xf32>
    %595 = arith.mulf %593, %594 : vector<8x128xf32>
    %596 = arith.addf %592, %595 : vector<8x128xf32>
    %c585 = arith.constant 585 : index
    %c0_286 = arith.constant 0 : index
    %597 = tpu.strided_load %arg34[%c585, %c0_286] {strides = array<i32: 2, 1>} : memref<768x128xf32, #tpu.memory_space<vmem>>, vector<8x128xf32>
    %598 = vector.broadcast %117 : vector<1x128xf32> to vector<8x128xf32>
    %599 = arith.mulf %597, %598 : vector<8x128xf32>
    %600 = arith.addf %596, %599 : vector<8x128xf32>
    %c607 = arith.constant 607 : index
    %c0_287 = arith.constant 0 : index
    %601 = tpu.strided_load %arg34[%c607, %c0_287] {strides = array<i32: 2, 1>} : memref<768x128xf32, #tpu.memory_space<vmem>>, vector<8x128xf32>
    %602 = vector.broadcast %118 : vector<1x128xf32> to vector<8x128xf32>
    %603 = arith.mulf %601, %602 : vector<8x128xf32>
    %604 = arith.addf %600, %603 : vector<8x128xf32>
    %c608_288 = arith.constant 608 : index
    %c0_289 = arith.constant 0 : index
    %605 = tpu.strided_load %arg34[%c608_288, %c0_289] {strides = array<i32: 2, 1>} : memref<768x128xf32, #tpu.memory_space<vmem>>, vector<8x128xf32>
    %606 = vector.broadcast %119 : vector<1x128xf32> to vector<8x128xf32>
    %607 = arith.mulf %605, %606 : vector<8x128xf32>
    %608 = arith.addf %604, %607 : vector<8x128xf32>
    %c609 = arith.constant 609 : index
    %c0_290 = arith.constant 0 : index
    %609 = tpu.strided_load %arg34[%c609, %c0_290] {strides = array<i32: 2, 1>} : memref<768x128xf32, #tpu.memory_space<vmem>>, vector<8x128xf32>
    %610 = vector.broadcast %120 : vector<1x128xf32> to vector<8x128xf32>
    %611 = arith.mulf %609, %610 : vector<8x128xf32>
    %612 = arith.addf %608, %611 : vector<8x128xf32>
    %613 = vector.broadcast %121 : vector<1x128xf32> to vector<8x128xf32>
    %614 = arith.addf %612, %613 : vector<8x128xf32>
    %cst_291 = arith.constant 0.000000e+00 : f32
    %615 = vector.broadcast %cst_291 : f32 to vector<8x128xf32>
    %616 = arith.maximumf %614, %615 : vector<8x128xf32>
    %c96_292 = arith.constant 96 : index
    %c0_293 = arith.constant 0 : index
    %617 = vector.load %arg35[%c96_292, %c0_293] : memref<128x128xf32, #tpu.memory_space<vmem>>, vector<8x128xf32>
    tpu.vector_store %arg35[%c96_292, %c0_293], %616 {strides = array<i32>} : memref<128x128xf32, #tpu.memory_space<vmem>>, vector<8x128xf32>,
    %c607_294 = arith.constant 607 : index
    %c0_295 = arith.constant 0 : index
    %618 = tpu.strided_load %arg34[%c607_294, %c0_295] {strides = array<i32: 2, 1>} : memref<768x128xf32, #tpu.memory_space<vmem>>, vector<8x128xf32>
    %619 = vector.broadcast %112 : vector<1x128xf32> to vector<8x128xf32>
    %620 = arith.mulf %618, %619 : vector<8x128xf32>
    %c608_296 = arith.constant 608 : index
    %c0_297 = arith.constant 0 : index
    %621 = tpu.strided_load %arg34[%c608_296, %c0_297] {strides = array<i32: 2, 1>} : memref<768x128xf32, #tpu.memory_space<vmem>>, vector<8x128xf32>
    %622 = vector.broadcast %113 : vector<1x128xf32> to vector<8x128xf32>
    %623 = arith.mulf %621, %622 : vector<8x128xf32>
    %624 = arith.addf %620, %623 : vector<8x128xf32>
    %c609_298 = arith.constant 609 : index
    %c0_299 = arith.constant 0 : index
    %625 = tpu.strided_load %arg34[%c609_298, %c0_299] {strides = array<i32: 2, 1>} : memref<768x128xf32, #tpu.memory_space<vmem>>, vector<8x128xf32>
    %626 = vector.broadcast %114 : vector<1x128xf32> to vector<8x128xf32>
    %627 = arith.mulf %625, %626 : vector<8x128xf32>
    %628 = arith.addf %624, %627 : vector<8x128xf32>
    %c631 = arith.constant 631 : index
    %c0_300 = arith.constant 0 : index
    %629 = tpu.strided_load %arg34[%c631, %c0_300] {strides = array<i32: 2, 1>} : memref<768x128xf32, #tpu.memory_space<vmem>>, vector<8x128xf32>
    %630 = vector.broadcast %115 : vector<1x128xf32> to vector<8x128xf32>
    %631 = arith.mulf %629, %630 : vector<8x128xf32>
    %632 = arith.addf %628, %631 : vector<8x128xf32>
    %c632_301 = arith.constant 632 : index
    %c0_302 = arith.constant 0 : index
    %633 = tpu.strided_load %arg34[%c632_301, %c0_302] {strides = array<i32: 2, 1>} : memref<768x128xf32, #tpu.memory_space<vmem>>, vector<8x128xf32>
    %634 = vector.broadcast %116 : vector<1x128xf32> to vector<8x128xf32>
    %635 = arith.mulf %633, %634 : vector<8x128xf32>
    %636 = arith.addf %632, %635 : vector<8x128xf32>
    %c633 = arith.constant 633 : index
    %c0_303 = arith.constant 0 : index
    %637 = tpu.strided_load %arg34[%c633, %c0_303] {strides = array<i32: 2, 1>} : memref<768x128xf32, #tpu.memory_space<vmem>>, vector<8x128xf32>
    %638 = vector.broadcast %117 : vector<1x128xf32> to vector<8x128xf32>
    %639 = arith.mulf %637, %638 : vector<8x128xf32>
    %640 = arith.addf %636, %639 : vector<8x128xf32>
    %c655 = arith.constant 655 : index
    %c0_304 = arith.constant 0 : index
    %641 = tpu.strided_load %arg34[%c655, %c0_304] {strides = array<i32: 2, 1>} : memref<768x128xf32, #tpu.memory_space<vmem>>, vector<8x128xf32>
    %642 = vector.broadcast %118 : vector<1x128xf32> to vector<8x128xf32>
    %643 = arith.mulf %641, %642 : vector<8x128xf32>
    %644 = arith.addf %640, %643 : vector<8x128xf32>
    %c656_305 = arith.constant 656 : index
    %c0_306 = arith.constant 0 : index
    %645 = tpu.strided_load %arg34[%c656_305, %c0_306] {strides = array<i32: 2, 1>} : memref<768x128xf32, #tpu.memory_space<vmem>>, vector<8x128xf32>
    %646 = vector.broadcast %119 : vector<1x128xf32> to vector<8x128xf32>
    %647 = arith.mulf %645, %646 : vector<8x128xf32>
    %648 = arith.addf %644, %647 : vector<8x128xf32>
    %c657 = arith.constant 657 : index
    %c0_307 = arith.constant 0 : index
    %649 = tpu.strided_load %arg34[%c657, %c0_307] {strides = array<i32: 2, 1>} : memref<768x128xf32, #tpu.memory_space<vmem>>, vector<8x128xf32>
    %650 = vector.broadcast %120 : vector<1x128xf32> to vector<8x128xf32>
    %651 = arith.mulf %649, %650 : vector<8x128xf32>
    %652 = arith.addf %648, %651 : vector<8x128xf32>
    %653 = vector.broadcast %121 : vector<1x128xf32> to vector<8x128xf32>
    %654 = arith.addf %652, %653 : vector<8x128xf32>
    %cst_308 = arith.constant 0.000000e+00 : f32
    %655 = vector.broadcast %cst_308 : f32 to vector<8x128xf32>
    %656 = arith.maximumf %654, %655 : vector<8x128xf32>
    %c104_309 = arith.constant 104 : index
    %c0_310 = arith.constant 0 : index
    %657 = vector.load %arg35[%c104_309, %c0_310] : memref<128x128xf32, #tpu.memory_space<vmem>>, vector<8x128xf32>
    tpu.vector_store %arg35[%c104_309, %c0_310], %656 {strides = array<i32>} : memref<128x128xf32, #tpu.memory_space<vmem>>, vector<8x128xf32>,
    %c655_311 = arith.constant 655 : index
    %c0_312 = arith.constant 0 : index
    %658 = tpu.strided_load %arg34[%c655_311, %c0_312] {strides = array<i32: 2, 1>} : memref<768x128xf32, #tpu.memory_space<vmem>>, vector<8x128xf32>
    %659 = vector.broadcast %112 : vector<1x128xf32> to vector<8x128xf32>
    %660 = arith.mulf %658, %659 : vector<8x128xf32>
    %c656_313 = arith.constant 656 : index
    %c0_314 = arith.constant 0 : index
    %661 = tpu.strided_load %arg34[%c656_313, %c0_314] {strides = array<i32: 2, 1>} : memref<768x128xf32, #tpu.memory_space<vmem>>, vector<8x128xf32>
    %662 = vector.broadcast %113 : vector<1x128xf32> to vector<8x128xf32>
    %663 = arith.mulf %661, %662 : vector<8x128xf32>
    %664 = arith.addf %660, %663 : vector<8x128xf32>
    %c657_315 = arith.constant 657 : index
    %c0_316 = arith.constant 0 : index
    %665 = tpu.strided_load %arg34[%c657_315, %c0_316] {strides = array<i32: 2, 1>} : memref<768x128xf32, #tpu.memory_space<vmem>>, vector<8x128xf32>
    %666 = vector.broadcast %114 : vector<1x128xf32> to vector<8x128xf32>
    %667 = arith.mulf %665, %666 : vector<8x128xf32>
    %668 = arith.addf %664, %667 : vector<8x128xf32>
    %c679 = arith.constant 679 : index
    %c0_317 = arith.constant 0 : index
    %669 = tpu.strided_load %arg34[%c679, %c0_317] {strides = array<i32: 2, 1>} : memref<768x128xf32, #tpu.memory_space<vmem>>, vector<8x128xf32>
    %670 = vector.broadcast %115 : vector<1x128xf32> to vector<8x128xf32>
    %671 = arith.mulf %669, %670 : vector<8x128xf32>
    %672 = arith.addf %668, %671 : vector<8x128xf32>
    %c680_318 = arith.constant 680 : index
    %c0_319 = arith.constant 0 : index
    %673 = tpu.strided_load %arg34[%c680_318, %c0_319] {strides = array<i32: 2, 1>} : memref<768x128xf32, #tpu.memory_space<vmem>>, vector<8x128xf32>
    %674 = vector.broadcast %116 : vector<1x128xf32> to vector<8x128xf32>
    %675 = arith.mulf %673, %674 : vector<8x128xf32>
    %676 = arith.addf %672, %675 : vector<8x128xf32>
    %c681 = arith.constant 681 : index
    %c0_320 = arith.constant 0 : index
    %677 = tpu.strided_load %arg34[%c681, %c0_320] {strides = array<i32: 2, 1>} : memref<768x128xf32, #tpu.memory_space<vmem>>, vector<8x128xf32>
    %678 = vector.broadcast %117 : vector<1x128xf32> to vector<8x128xf32>
    %679 = arith.mulf %677, %678 : vector<8x128xf32>
    %680 = arith.addf %676, %679 : vector<8x128xf32>
    %c703 = arith.constant 703 : index
    %c0_321 = arith.constant 0 : index
    %681 = tpu.strided_load %arg34[%c703, %c0_321] {strides = array<i32: 2, 1>} : memref<768x128xf32, #tpu.memory_space<vmem>>, vector<8x128xf32>
    %682 = vector.broadcast %118 : vector<1x128xf32> to vector<8x128xf32>
    %683 = arith.mulf %681, %682 : vector<8x128xf32>
    %684 = arith.addf %680, %683 : vector<8x128xf32>
    %c704_322 = arith.constant 704 : index
    %c0_323 = arith.constant 0 : index
    %685 = tpu.strided_load %arg34[%c704_322, %c0_323] {strides = array<i32: 2, 1>} : memref<768x128xf32, #tpu.memory_space<vmem>>, vector<8x128xf32>
    %686 = vector.broadcast %119 : vector<1x128xf32> to vector<8x128xf32>
    %687 = arith.mulf %685, %686 : vector<8x128xf32>
    %688 = arith.addf %684, %687 : vector<8x128xf32>
    %c705 = arith.constant 705 : index
    %c0_324 = arith.constant 0 : index
    %689 = tpu.strided_load %arg34[%c705, %c0_324] {strides = array<i32: 2, 1>} : memref<768x128xf32, #tpu.memory_space<vmem>>, vector<8x128xf32>
    %690 = vector.broadcast %120 : vector<1x128xf32> to vector<8x128xf32>
    %691 = arith.mulf %689, %690 : vector<8x128xf32>
    %692 = arith.addf %688, %691 : vector<8x128xf32>
    %693 = vector.broadcast %121 : vector<1x128xf32> to vector<8x128xf32>
    %694 = arith.addf %692, %693 : vector<8x128xf32>
    %cst_325 = arith.constant 0.000000e+00 : f32
    %695 = vector.broadcast %cst_325 : f32 to vector<8x128xf32>
    %696 = arith.maximumf %694, %695 : vector<8x128xf32>
    %c112 = arith.constant 112 : index
    %c0_326 = arith.constant 0 : index
    %697 = vector.load %arg35[%c112, %c0_326] : memref<128x128xf32, #tpu.memory_space<vmem>>, vector<8x128xf32>
    tpu.vector_store %arg35[%c112, %c0_326], %696 {strides = array<i32>} : memref<128x128xf32, #tpu.memory_space<vmem>>, vector<8x128xf32>,
    %c703_327 = arith.constant 703 : index
    %c0_328 = arith.constant 0 : index
    %698 = tpu.strided_load %arg34[%c703_327, %c0_328] {strides = array<i32: 2, 1>} : memref<768x128xf32, #tpu.memory_space<vmem>>, vector<8x128xf32>
    %699 = vector.broadcast %112 : vector<1x128xf32> to vector<8x128xf32>
    %700 = arith.mulf %698, %699 : vector<8x128xf32>
    %c704_329 = arith.constant 704 : index
    %c0_330 = arith.constant 0 : index
    %701 = tpu.strided_load %arg34[%c704_329, %c0_330] {strides = array<i32: 2, 1>} : memref<768x128xf32, #tpu.memory_space<vmem>>, vector<8x128xf32>
    %702 = vector.broadcast %113 : vector<1x128xf32> to vector<8x128xf32>
    %703 = arith.mulf %701, %702 : vector<8x128xf32>
    %704 = arith.addf %700, %703 : vector<8x128xf32>
    %c705_331 = arith.constant 705 : index
    %c0_332 = arith.constant 0 : index
    %705 = tpu.strided_load %arg34[%c705_331, %c0_332] {strides = array<i32: 2, 1>} : memref<768x128xf32, #tpu.memory_space<vmem>>, vector<8x128xf32>
    %706 = vector.broadcast %114 : vector<1x128xf32> to vector<8x128xf32>
    %707 = arith.mulf %705, %706 : vector<8x128xf32>
    %708 = arith.addf %704, %707 : vector<8x128xf32>
    %c727 = arith.constant 727 : index
    %c0_333 = arith.constant 0 : index
    %709 = tpu.strided_load %arg34[%c727, %c0_333] {strides = array<i32: 2, 1>} : memref<768x128xf32, #tpu.memory_space<vmem>>, vector<8x128xf32>
    %710 = vector.broadcast %115 : vector<1x128xf32> to vector<8x128xf32>
    %711 = arith.mulf %709, %710 : vector<8x128xf32>
    %712 = arith.addf %708, %711 : vector<8x128xf32>
    %c728_334 = arith.constant 728 : index
    %c0_335 = arith.constant 0 : index
    %713 = tpu.strided_load %arg34[%c728_334, %c0_335] {strides = array<i32: 2, 1>} : memref<768x128xf32, #tpu.memory_space<vmem>>, vector<8x128xf32>
    %714 = vector.broadcast %116 : vector<1x128xf32> to vector<8x128xf32>
    %715 = arith.mulf %713, %714 : vector<8x128xf32>
    %716 = arith.addf %712, %715 : vector<8x128xf32>
    %c729 = arith.constant 729 : index
    %c0_336 = arith.constant 0 : index
    %717 = tpu.strided_load %arg34[%c729, %c0_336] {strides = array<i32: 2, 1>} : memref<768x128xf32, #tpu.memory_space<vmem>>, vector<8x128xf32>
    %718 = vector.broadcast %117 : vector<1x128xf32> to vector<8x128xf32>
    %719 = arith.mulf %717, %718 : vector<8x128xf32>
    %720 = arith.addf %716, %719 : vector<8x128xf32>
    %c751 = arith.constant 751 : index
    %c0_337 = arith.constant 0 : index
    %721 = tpu.strided_load %arg34[%c751, %c0_337] {strides = array<i32: 2, 1>} : memref<768x128xf32, #tpu.memory_space<vmem>>, vector<8x128xf32>
    %722 = vector.broadcast %118 : vector<1x128xf32> to vector<8x128xf32>
    %723 = arith.mulf %721, %722 : vector<8x128xf32>
    %724 = arith.addf %720, %723 : vector<8x128xf32>
    %c752_338 = arith.constant 752 : index
    %c0_339 = arith.constant 0 : index
    %725 = tpu.strided_load %arg34[%c752_338, %c0_339] {strides = array<i32: 2, 1>} : memref<768x128xf32, #tpu.memory_space<vmem>>, vector<8x128xf32>
    %726 = vector.broadcast %119 : vector<1x128xf32> to vector<8x128xf32>
    %727 = arith.mulf %725, %726 : vector<8x128xf32>
    %728 = arith.addf %724, %727 : vector<8x128xf32>
    %c753 = arith.constant 753 : index
    %c0_340 = arith.constant 0 : index
    %729 = tpu.strided_load %arg34[%c753, %c0_340] {strides = array<i32: 2, 1>} : memref<768x128xf32, #tpu.memory_space<vmem>>, vector<8x128xf32>
    %730 = vector.broadcast %120 : vector<1x128xf32> to vector<8x128xf32>
    %731 = arith.mulf %729, %730 : vector<8x128xf32>
    %732 = arith.addf %728, %731 : vector<8x128xf32>
    %733 = vector.broadcast %121 : vector<1x128xf32> to vector<8x128xf32>
    %734 = arith.addf %732, %733 : vector<8x128xf32>
    %cst_341 = arith.constant 0.000000e+00 : f32
    %735 = vector.broadcast %cst_341 : f32 to vector<8x128xf32>
    %736 = arith.maximumf %734, %735 : vector<8x128xf32>
    %c120_342 = arith.constant 120 : index
    %c0_343 = arith.constant 0 : index
    %737 = vector.load %arg35[%c120_342, %c0_343] : memref<128x128xf32, #tpu.memory_space<vmem>>, vector<8x128xf32>
    tpu.vector_store %arg35[%c120_342, %c0_343], %736 {strides = array<i32>} : memref<128x128xf32, #tpu.memory_space<vmem>>, vector<8x128xf32>,
    %c0_344 = arith.constant 0 : index
    %c0_345 = arith.constant 0 : index
    %738 = vector.load %arg35[%c0_344, %c0_345] : memref<128x128xf32, #tpu.memory_space<vmem>>, vector<128x128xf32>
    %739 = vector.extract_strided_slice %738 {offsets = [0, 0], sizes = [64, 128], strides = [1, 1]} : vector<128x128xf32> to vector<64x128xf32>
    %cst_346 = arith.constant dense<0.000000e+00> : vector<128xf32>
    %740 = vector.multi_reduction <add>, %739, %cst_346 [0] : vector<64x128xf32> to vector<128xf32>
    %741 = vector.shape_cast %740 : vector<128xf32> to vector<1x128xf32>
    %cst_347 = arith.constant 6.400000e+01 : f32
    %742 = vector.broadcast %cst_347 : f32 to vector<1x128xf32>
    %743 = arith.divf %741, %742 : vector<1x128xf32>
    %744 = arith.truncf %743 : vector<1x128xf32> to vector<1x128xbf16>
    %c0_348 = arith.constant 0 : index
    %c0_349 = arith.constant 0 : index
    %745 = vector.load %arg5[%c0_348, %c0_349] : memref<128x128xbf16, #tpu.memory_space<vmem>>, vector<128x128xbf16>
    %cst_350 = arith.constant dense<0.000000e+00> : vector<1x128xf32>
    %746 = tpu.matmul %744, %745, %cst_350 {dimension_numbers = #tpu.dot_dimension_numbers<[1], [0], [0], [1], [0, 0, 1, 1], [], []>} : vector<1x128xbf16>, vector<128x128xbf16>, vector<1x128xf32> -> vector<1x128xf32>
    %c0_351 = arith.constant 0 : index
    %c0_352 = arith.constant 0 : index
    %747 = vector.load %arg6[%c0_351, %c0_352] : memref<1x128xf32, #tpu.memory_space<vmem>>, vector<1x128xf32>
    %748 = arith.addf %746, %747 : vector<1x128xf32>
    %cst_353 = arith.constant 0.000000e+00 : f32
    %749 = vector.broadcast %cst_353 : f32 to vector<1x128xf32>
    %750 = arith.maximumf %748, %749 : vector<1x128xf32>
    %751 = arith.truncf %750 : vector<1x128xf32> to vector<1x128xbf16>
    %c0_354 = arith.constant 0 : index
    %c0_355 = arith.constant 0 : index
    %752 = vector.load %arg7[%c0_354, %c0_355] : memref<128x128xbf16, #tpu.memory_space<vmem>>, vector<128x128xbf16>
    %cst_356 = arith.constant dense<0.000000e+00> : vector<1x128xf32>
    %753 = tpu.matmul %751, %752, %cst_356 {dimension_numbers = #tpu.dot_dimension_numbers<[1], [0], [0], [1], [0, 0, 1, 1], [], []>} : vector<1x128xbf16>, vector<128x128xbf16>, vector<1x128xf32> -> vector<1x128xf32>
    %c0_357 = arith.constant 0 : index
    %c0_358 = arith.constant 0 : index
    %754 = vector.load %arg8[%c0_357, %c0_358] : memref<1x128xf32, #tpu.memory_space<vmem>>, vector<1x128xf32>
    %755 = arith.addf %753, %754 : vector<1x128xf32>
    %cst_359 = arith.constant 3.000000e+00 : f32
    %756 = vector.broadcast %cst_359 : f32 to vector<1x128xf32>
    %757 = arith.addf %755, %756 : vector<1x128xf32>
    %cst_360 = arith.constant 0.000000e+00 : f32
    %cst_361 = arith.constant 6.000000e+00 : f32
    %758 = vector.broadcast %cst_360 : f32 to vector<1x128xf32>
    %759 = arith.maximumf %758, %757 : vector<1x128xf32>
    %760 = vector.broadcast %cst_361 : f32 to vector<1x128xf32>
    %761 = arith.minimumf %760, %759 : vector<1x128xf32>
    %cst_362 = arith.constant 0.166666672 : f32
    %762 = vector.broadcast %cst_362 : f32 to vector<1x128xf32>
    %763 = arith.mulf %761, %762 : vector<1x128xf32>
    %764 = vector.extract_strided_slice %738 {offsets = [64, 0], sizes = [64, 128], strides = [1, 1]} : vector<128x128xf32> to vector<64x128xf32>
    %cst_363 = arith.constant dense<0.000000e+00> : vector<128xf32>
    %765 = vector.multi_reduction <add>, %764, %cst_363 [0] : vector<64x128xf32> to vector<128xf32>
    %766 = vector.shape_cast %765 : vector<128xf32> to vector<1x128xf32>
    %cst_364 = arith.constant 6.400000e+01 : f32
    %767 = vector.broadcast %cst_364 : f32 to vector<1x128xf32>
    %768 = arith.divf %766, %767 : vector<1x128xf32>
    %769 = arith.truncf %768 : vector<1x128xf32> to vector<1x128xbf16>
    %c0_365 = arith.constant 0 : index
    %c0_366 = arith.constant 0 : index
    %770 = vector.load %arg5[%c0_365, %c0_366] : memref<128x128xbf16, #tpu.memory_space<vmem>>, vector<128x128xbf16>
    %cst_367 = arith.constant dense<0.000000e+00> : vector<1x128xf32>
    %771 = tpu.matmul %769, %770, %cst_367 {dimension_numbers = #tpu.dot_dimension_numbers<[1], [0], [0], [1], [0, 0, 1, 1], [], []>} : vector<1x128xbf16>, vector<128x128xbf16>, vector<1x128xf32> -> vector<1x128xf32>
    %c0_368 = arith.constant 0 : index
    %c0_369 = arith.constant 0 : index
    %772 = vector.load %arg6[%c0_368, %c0_369] : memref<1x128xf32, #tpu.memory_space<vmem>>, vector<1x128xf32>
    %773 = arith.addf %771, %772 : vector<1x128xf32>
    %cst_370 = arith.constant 0.000000e+00 : f32
    %774 = vector.broadcast %cst_370 : f32 to vector<1x128xf32>
    %775 = arith.maximumf %773, %774 : vector<1x128xf32>
    %776 = arith.truncf %775 : vector<1x128xf32> to vector<1x128xbf16>
    %c0_371 = arith.constant 0 : index
    %c0_372 = arith.constant 0 : index
    %777 = vector.load %arg7[%c0_371, %c0_372] : memref<128x128xbf16, #tpu.memory_space<vmem>>, vector<128x128xbf16>
    %cst_373 = arith.constant dense<0.000000e+00> : vector<1x128xf32>
    %778 = tpu.matmul %776, %777, %cst_373 {dimension_numbers = #tpu.dot_dimension_numbers<[1], [0], [0], [1], [0, 0, 1, 1], [], []>} : vector<1x128xbf16>, vector<128x128xbf16>, vector<1x128xf32> -> vector<1x128xf32>
    %c0_374 = arith.constant 0 : index
    %c0_375 = arith.constant 0 : index
    %779 = vector.load %arg8[%c0_374, %c0_375] : memref<1x128xf32, #tpu.memory_space<vmem>>, vector<1x128xf32>
    %780 = arith.addf %778, %779 : vector<1x128xf32>
    %cst_376 = arith.constant 3.000000e+00 : f32
    %781 = vector.broadcast %cst_376 : f32 to vector<1x128xf32>
    %782 = arith.addf %780, %781 : vector<1x128xf32>
    %cst_377 = arith.constant 0.000000e+00 : f32
    %cst_378 = arith.constant 6.000000e+00 : f32
    %783 = vector.broadcast %cst_377 : f32 to vector<1x128xf32>
    %784 = arith.maximumf %783, %782 : vector<1x128xf32>
    %785 = vector.broadcast %cst_378 : f32 to vector<1x128xf32>
    %786 = arith.minimumf %785, %784 : vector<1x128xf32>
    %cst_379 = arith.constant 0.166666672 : f32
    %787 = vector.broadcast %cst_379 : f32 to vector<1x128xf32>
    %788 = arith.mulf %786, %787 : vector<1x128xf32>
    %789 = tpu.iota {dimensions = array<i32: 0>} : vector<128x1xi32>
    %c64_i32 = arith.constant 64 : i32
    %790 = vector.broadcast %c64_i32 : i32 to vector<128x1xi32>
    %791 = arith.cmpi slt, %789, %790 : vector<128x1xi32>
    %792 = vector.shape_cast %791 : vector<128x1xi1> to vector<128x1xi1>
    %793 = vector.broadcast %792 : vector<128x1xi1> to vector<128x128xi1>
    %794 = vector.shape_cast %763 : vector<1x128xf32> to vector<1x128xf32>
    %795 = vector.broadcast %794 : vector<1x128xf32> to vector<128x128xf32>
    %796 = vector.shape_cast %788 : vector<1x128xf32> to vector<1x128xf32>
    %797 = vector.broadcast %796 : vector<1x128xf32> to vector<128x128xf32>
    %798 = arith.select %793, %795, %797 : vector<128x128xi1>, vector<128x128xf32>
    %799 = arith.mulf %738, %798 : vector<128x128xf32>
    %800 = arith.truncf %799 : vector<128x128xf32> to vector<128x128xbf16>
    %c0_380 = arith.constant 0 : index
    %c0_381 = arith.constant 0 : index
    %801 = vector.load %arg9[%c0_380, %c0_381] : memref<128x128xbf16, #tpu.memory_space<vmem>>, vector<128x128xbf16>
    %cst_382 = arith.constant dense<0.000000e+00> : vector<128x128xf32>
    %802 = tpu.matmul %800, %801, %cst_382 {dimension_numbers = #tpu.dot_dimension_numbers<[1], [0], [0], [1], [0, 0, 1, 1], [], []>} : vector<128x128xbf16>, vector<128x128xbf16>, vector<128x128xf32> -> vector<128x128xf32>
    %c0_383 = arith.constant 0 : index
    %c0_384 = arith.constant 0 : index
    %803 = vector.load %arg10[%c0_383, %c0_384] : memref<1x128xf32, #tpu.memory_space<vmem>>, vector<1x128xf32>
    %804 = vector.broadcast %803 : vector<1x128xf32> to vector<128x128xf32>
    %805 = arith.addf %802, %804 : vector<128x128xf32>
    %806 = arith.truncf %805 : vector<128x128xf32> to vector<128x128xbf16>
    %c0_385 = arith.constant 0 : index
    %c0_386 = arith.constant 0 : index
    %807 = vector.load %arg11[%c0_385, %c0_386] : memref<128x128xbf16, #tpu.memory_space<vmem>>, vector<128x128xbf16>
    %cst_387 = arith.constant dense<0.000000e+00> : vector<128x128xf32>
    %808 = tpu.matmul %806, %807, %cst_387 {dimension_numbers = #tpu.dot_dimension_numbers<[1], [0], [0], [1], [0, 0, 1, 1], [], []>} : vector<128x128xbf16>, vector<128x128xbf16>, vector<128x128xf32> -> vector<128x128xf32>
    %c0_388 = arith.constant 0 : index
    %c0_389 = arith.constant 0 : index
    %809 = vector.load %arg12[%c0_388, %c0_389] : memref<1x128xf32, #tpu.memory_space<vmem>>, vector<1x128xf32>
    %810 = vector.broadcast %809 : vector<1x128xf32> to vector<128x128xf32>
    %811 = arith.addf %808, %810 : vector<128x128xf32>
    %cst_390 = arith.constant 0.000000e+00 : f32
    %812 = vector.broadcast %cst_390 : f32 to vector<128x128xf32>
    %813 = arith.maximumf %811, %812 : vector<128x128xf32>
    %cst_391 = arith.constant 0.000000e+00 : f32
    %814 = vector.broadcast %cst_391 : f32 to vector<8x128xf32>
    %c0_392 = arith.constant 0 : index
    %c0_393 = arith.constant 0 : index
    %815 = vector.load %arg36[%c0_392, %c0_393] : memref<256x128xf32, #tpu.memory_space<vmem>>, vector<8x128xf32>
    tpu.vector_store %arg36[%c0_392, %c0_393], %814 {strides = array<i32>} : memref<256x128xf32, #tpu.memory_space<vmem>>, vector<8x128xf32>,
    %816 = vector.extract_strided_slice %813 {offsets = [0, 0], sizes = [8, 128], strides = [1, 1]} : vector<128x128xf32> to vector<8x128xf32>
    %c8_394 = arith.constant 8 : index
    %c0_395 = arith.constant 0 : index
    %817 = vector.load %arg36[%c8_394, %c0_395] : memref<256x128xf32, #tpu.memory_space<vmem>>, vector<8x128xf32>
    tpu.vector_store %arg36[%c8_394, %c0_395], %816 {strides = array<i32>} : memref<256x128xf32, #tpu.memory_space<vmem>>, vector<8x128xf32>,
    %c16_396 = arith.constant 16 : index
    %c0_397 = arith.constant 0 : index
    %818 = vector.load %arg36[%c16_396, %c0_397] : memref<256x128xf32, #tpu.memory_space<vmem>>, vector<8x128xf32>
    tpu.vector_store %arg36[%c16_396, %c0_397], %814 {strides = array<i32>} : memref<256x128xf32, #tpu.memory_space<vmem>>, vector<8x128xf32>,
    %819 = vector.extract_strided_slice %813 {offsets = [8, 0], sizes = [8, 128], strides = [1, 1]} : vector<128x128xf32> to vector<8x128xf32>
    %c24_398 = arith.constant 24 : index
    %c0_399 = arith.constant 0 : index
    %820 = vector.load %arg36[%c24_398, %c0_399] : memref<256x128xf32, #tpu.memory_space<vmem>>, vector<8x128xf32>
    tpu.vector_store %arg36[%c24_398, %c0_399], %819 {strides = array<i32>} : memref<256x128xf32, #tpu.memory_space<vmem>>, vector<8x128xf32>,
    %c32_400 = arith.constant 32 : index
    %c0_401 = arith.constant 0 : index
    %821 = vector.load %arg36[%c32_400, %c0_401] : memref<256x128xf32, #tpu.memory_space<vmem>>, vector<8x128xf32>
    tpu.vector_store %arg36[%c32_400, %c0_401], %814 {strides = array<i32>} : memref<256x128xf32, #tpu.memory_space<vmem>>, vector<8x128xf32>,
    %822 = vector.extract_strided_slice %813 {offsets = [16, 0], sizes = [8, 128], strides = [1, 1]} : vector<128x128xf32> to vector<8x128xf32>
    %c40_402 = arith.constant 40 : index
    %c0_403 = arith.constant 0 : index
    %823 = vector.load %arg36[%c40_402, %c0_403] : memref<256x128xf32, #tpu.memory_space<vmem>>, vector<8x128xf32>
    tpu.vector_store %arg36[%c40_402, %c0_403], %822 {strides = array<i32>} : memref<256x128xf32, #tpu.memory_space<vmem>>, vector<8x128xf32>,
    %c48_404 = arith.constant 48 : index
    %c0_405 = arith.constant 0 : index
    %824 = vector.load %arg36[%c48_404, %c0_405] : memref<256x128xf32, #tpu.memory_space<vmem>>, vector<8x128xf32>
    tpu.vector_store %arg36[%c48_404, %c0_405], %814 {strides = array<i32>} : memref<256x128xf32, #tpu.memory_space<vmem>>, vector<8x128xf32>,
    %825 = vector.extract_strided_slice %813 {offsets = [24, 0], sizes = [8, 128], strides = [1, 1]} : vector<128x128xf32> to vector<8x128xf32>
    %c56_406 = arith.constant 56 : index
    %c0_407 = arith.constant 0 : index
    %826 = vector.load %arg36[%c56_406, %c0_407] : memref<256x128xf32, #tpu.memory_space<vmem>>, vector<8x128xf32>
    tpu.vector_store %arg36[%c56_406, %c0_407], %825 {strides = array<i32>} : memref<256x128xf32, #tpu.memory_space<vmem>>, vector<8x128xf32>,
    %c64_408 = arith.constant 64 : index
    %c0_409 = arith.constant 0 : index
    %827 = vector.load %arg36[%c64_408, %c0_409] : memref<256x128xf32, #tpu.memory_space<vmem>>, vector<8x128xf32>
    tpu.vector_store %arg36[%c64_408, %c0_409], %814 {strides = array<i32>} : memref<256x128xf32, #tpu.memory_space<vmem>>, vector<8x128xf32>,
    %828 = vector.extract_strided_slice %813 {offsets = [32, 0], sizes = [8, 128], strides = [1, 1]} : vector<128x128xf32> to vector<8x128xf32>
    %c72_410 = arith.constant 72 : index
    %c0_411 = arith.constant 0 : index
    %829 = vector.load %arg36[%c72_410, %c0_411] : memref<256x128xf32, #tpu.memory_space<vmem>>, vector<8x128xf32>
    tpu.vector_store %arg36[%c72_410, %c0_411], %828 {strides = array<i32>} : memref<256x128xf32, #tpu.memory_space<vmem>>, vector<8x128xf32>,
    %c80_412 = arith.constant 80 : index
    %c0_413 = arith.constant 0 : index
    %830 = vector.load %arg36[%c80_412, %c0_413] : memref<256x128xf32, #tpu.memory_space<vmem>>, vector<8x128xf32>
    tpu.vector_store %arg36[%c80_412, %c0_413], %814 {strides = array<i32>} : memref<256x128xf32, #tpu.memory_space<vmem>>, vector<8x128xf32>,
    %831 = vector.extract_strided_slice %813 {offsets = [40, 0], sizes = [8, 128], strides = [1, 1]} : vector<128x128xf32> to vector<8x128xf32>
    %c88_414 = arith.constant 88 : index
    %c0_415 = arith.constant 0 : index
    %832 = vector.load %arg36[%c88_414, %c0_415] : memref<256x128xf32, #tpu.memory_space<vmem>>, vector<8x128xf32>
    tpu.vector_store %arg36[%c88_414, %c0_415], %831 {strides = array<i32>} : memref<256x128xf32, #tpu.memory_space<vmem>>, vector<8x128xf32>,
    %c96_416 = arith.constant 96 : index
    %c0_417 = arith.constant 0 : index
    %833 = vector.load %arg36[%c96_416, %c0_417] : memref<256x128xf32, #tpu.memory_space<vmem>>, vector<8x128xf32>
    tpu.vector_store %arg36[%c96_416, %c0_417], %814 {strides = array<i32>} : memref<256x128xf32, #tpu.memory_space<vmem>>, vector<8x128xf32>,
    %834 = vector.extract_strided_slice %813 {offsets = [48, 0], sizes = [8, 128], strides = [1, 1]} : vector<128x128xf32> to vector<8x128xf32>
    %c104_418 = arith.constant 104 : index
    %c0_419 = arith.constant 0 : index
    %835 = vector.load %arg36[%c104_418, %c0_419] : memref<256x128xf32, #tpu.memory_space<vmem>>, vector<8x128xf32>
    tpu.vector_store %arg36[%c104_418, %c0_419], %834 {strides = array<i32>} : memref<256x128xf32, #tpu.memory_space<vmem>>, vector<8x128xf32>,
    %c112_420 = arith.constant 112 : index
    %c0_421 = arith.constant 0 : index
    %836 = vector.load %arg36[%c112_420, %c0_421] : memref<256x128xf32, #tpu.memory_space<vmem>>, vector<8x128xf32>
    tpu.vector_store %arg36[%c112_420, %c0_421], %814 {strides = array<i32>} : memref<256x128xf32, #tpu.memory_space<vmem>>, vector<8x128xf32>,
    %837 = vector.extract_strided_slice %813 {offsets = [56, 0], sizes = [8, 128], strides = [1, 1]} : vector<128x128xf32> to vector<8x128xf32>
    %c120_422 = arith.constant 120 : index
    %c0_423 = arith.constant 0 : index
    %838 = vector.load %arg36[%c120_422, %c0_423] : memref<256x128xf32, #tpu.memory_space<vmem>>, vector<8x128xf32>
    tpu.vector_store %arg36[%c120_422, %c0_423], %837 {strides = array<i32>} : memref<256x128xf32, #tpu.memory_space<vmem>>, vector<8x128xf32>,
    %c128_424 = arith.constant 128 : index
    %c0_425 = arith.constant 0 : index
    %839 = vector.load %arg36[%c128_424, %c0_425] : memref<256x128xf32, #tpu.memory_space<vmem>>, vector<8x128xf32>
    tpu.vector_store %arg36[%c128_424, %c0_425], %814 {strides = array<i32>} : memref<256x128xf32, #tpu.memory_space<vmem>>, vector<8x128xf32>,
    %840 = vector.extract_strided_slice %813 {offsets = [64, 0], sizes = [8, 128], strides = [1, 1]} : vector<128x128xf32> to vector<8x128xf32>
    %c136 = arith.constant 136 : index
    %c0_426 = arith.constant 0 : index
    %841 = vector.load %arg36[%c136, %c0_426] : memref<256x128xf32, #tpu.memory_space<vmem>>, vector<8x128xf32>
    tpu.vector_store %arg36[%c136, %c0_426], %840 {strides = array<i32>} : memref<256x128xf32, #tpu.memory_space<vmem>>, vector<8x128xf32>,
    %c144_427 = arith.constant 144 : index
    %c0_428 = arith.constant 0 : index
    %842 = vector.load %arg36[%c144_427, %c0_428] : memref<256x128xf32, #tpu.memory_space<vmem>>, vector<8x128xf32>
    tpu.vector_store %arg36[%c144_427, %c0_428], %814 {strides = array<i32>} : memref<256x128xf32, #tpu.memory_space<vmem>>, vector<8x128xf32>,
    %843 = vector.extract_strided_slice %813 {offsets = [72, 0], sizes = [8, 128], strides = [1, 1]} : vector<128x128xf32> to vector<8x128xf32>
    %c152_429 = arith.constant 152 : index
    %c0_430 = arith.constant 0 : index
    %844 = vector.load %arg36[%c152_429, %c0_430] : memref<256x128xf32, #tpu.memory_space<vmem>>, vector<8x128xf32>
    tpu.vector_store %arg36[%c152_429, %c0_430], %843 {strides = array<i32>} : memref<256x128xf32, #tpu.memory_space<vmem>>, vector<8x128xf32>,
    %c160 = arith.constant 160 : index
    %c0_431 = arith.constant 0 : index
    %845 = vector.load %arg36[%c160, %c0_431] : memref<256x128xf32, #tpu.memory_space<vmem>>, vector<8x128xf32>
    tpu.vector_store %arg36[%c160, %c0_431], %814 {strides = array<i32>} : memref<256x128xf32, #tpu.memory_space<vmem>>, vector<8x128xf32>,
    %846 = vector.extract_strided_slice %813 {offsets = [80, 0], sizes = [8, 128], strides = [1, 1]} : vector<128x128xf32> to vector<8x128xf32>
    %c168_432 = arith.constant 168 : index
    %c0_433 = arith.constant 0 : index
    %847 = vector.load %arg36[%c168_432, %c0_433] : memref<256x128xf32, #tpu.memory_space<vmem>>, vector<8x128xf32>
    tpu.vector_store %arg36[%c168_432, %c0_433], %846 {strides = array<i32>} : memref<256x128xf32, #tpu.memory_space<vmem>>, vector<8x128xf32>,
    %c176_434 = arith.constant 176 : index
    %c0_435 = arith.constant 0 : index
    %848 = vector.load %arg36[%c176_434, %c0_435] : memref<256x128xf32, #tpu.memory_space<vmem>>, vector<8x128xf32>
    tpu.vector_store %arg36[%c176_434, %c0_435], %814 {strides = array<i32>} : memref<256x128xf32, #tpu.memory_space<vmem>>, vector<8x128xf32>,
    %849 = vector.extract_strided_slice %813 {offsets = [88, 0], sizes = [8, 128], strides = [1, 1]} : vector<128x128xf32> to vector<8x128xf32>
    %c184 = arith.constant 184 : index
    %c0_436 = arith.constant 0 : index
    %850 = vector.load %arg36[%c184, %c0_436] : memref<256x128xf32, #tpu.memory_space<vmem>>, vector<8x128xf32>
    tpu.vector_store %arg36[%c184, %c0_436], %849 {strides = array<i32>} : memref<256x128xf32, #tpu.memory_space<vmem>>, vector<8x128xf32>,
    %c192_437 = arith.constant 192 : index
    %c0_438 = arith.constant 0 : index
    %851 = vector.load %arg36[%c192_437, %c0_438] : memref<256x128xf32, #tpu.memory_space<vmem>>, vector<8x128xf32>
    tpu.vector_store %arg36[%c192_437, %c0_438], %814 {strides = array<i32>} : memref<256x128xf32, #tpu.memory_space<vmem>>, vector<8x128xf32>,
    %852 = vector.extract_strided_slice %813 {offsets = [96, 0], sizes = [8, 128], strides = [1, 1]} : vector<128x128xf32> to vector<8x128xf32>
    %c200_439 = arith.constant 200 : index
    %c0_440 = arith.constant 0 : index
    %853 = vector.load %arg36[%c200_439, %c0_440] : memref<256x128xf32, #tpu.memory_space<vmem>>, vector<8x128xf32>
    tpu.vector_store %arg36[%c200_439, %c0_440], %852 {strides = array<i32>} : memref<256x128xf32, #tpu.memory_space<vmem>>, vector<8x128xf32>,
    %c208 = arith.constant 208 : index
    %c0_441 = arith.constant 0 : index
    %854 = vector.load %arg36[%c208, %c0_441] : memref<256x128xf32, #tpu.memory_space<vmem>>, vector<8x128xf32>
    tpu.vector_store %arg36[%c208, %c0_441], %814 {strides = array<i32>} : memref<256x128xf32, #tpu.memory_space<vmem>>, vector<8x128xf32>,
    %855 = vector.extract_strided_slice %813 {offsets = [104, 0], sizes = [8, 128], strides = [1, 1]} : vector<128x128xf32> to vector<8x128xf32>
    %c216_442 = arith.constant 216 : index
    %c0_443 = arith.constant 0 : index
    %856 = vector.load %arg36[%c216_442, %c0_443] : memref<256x128xf32, #tpu.memory_space<vmem>>, vector<8x128xf32>
    tpu.vector_store %arg36[%c216_442, %c0_443], %855 {strides = array<i32>} : memref<256x128xf32, #tpu.memory_space<vmem>>, vector<8x128xf32>,
    %c224_444 = arith.constant 224 : index
    %c0_445 = arith.constant 0 : index
    %857 = vector.load %arg36[%c224_444, %c0_445] : memref<256x128xf32, #tpu.memory_space<vmem>>, vector<8x128xf32>
    tpu.vector_store %arg36[%c224_444, %c0_445], %814 {strides = array<i32>} : memref<256x128xf32, #tpu.memory_space<vmem>>, vector<8x128xf32>,
    %858 = vector.extract_strided_slice %813 {offsets = [112, 0], sizes = [8, 128], strides = [1, 1]} : vector<128x128xf32> to vector<8x128xf32>
    %c232 = arith.constant 232 : index
    %c0_446 = arith.constant 0 : index
    %859 = vector.load %arg36[%c232, %c0_446] : memref<256x128xf32, #tpu.memory_space<vmem>>, vector<8x128xf32>
    tpu.vector_store %arg36[%c232, %c0_446], %858 {strides = array<i32>} : memref<256x128xf32, #tpu.memory_space<vmem>>, vector<8x128xf32>,
    %c240_447 = arith.constant 240 : index
    %c0_448 = arith.constant 0 : index
    %860 = vector.load %arg36[%c240_447, %c0_448] : memref<256x128xf32, #tpu.memory_space<vmem>>, vector<8x128xf32>
    tpu.vector_store %arg36[%c240_447, %c0_448], %814 {strides = array<i32>} : memref<256x128xf32, #tpu.memory_space<vmem>>, vector<8x128xf32>,
    %861 = vector.extract_strided_slice %813 {offsets = [120, 0], sizes = [8, 128], strides = [1, 1]} : vector<128x128xf32> to vector<8x128xf32>
    %c248_449 = arith.constant 248 : index
    %c0_450 = arith.constant 0 : index
    %862 = vector.load %arg36[%c248_449, %c0_450] : memref<256x128xf32, #tpu.memory_space<vmem>>, vector<8x128xf32>
    tpu.vector_store %arg36[%c248_449, %c0_450], %861 {strides = array<i32>} : memref<256x128xf32, #tpu.memory_space<vmem>>, vector<8x128xf32>,
    %c0_451 = arith.constant 0 : index
    %c0_452 = arith.constant 0 : index
    %863 = vector.load %arg13[%c0_451, %c0_452] : memref<9x128xf32, #tpu.memory_space<vmem>>, vector<1x128xf32>
    %c1_453 = arith.constant 1 : index
    %c0_454 = arith.constant 0 : index
    %864 = vector.load %arg13[%c1_453, %c0_454] : memref<9x128xf32, #tpu.memory_space<vmem>>, vector<1x128xf32>
    %c2_455 = arith.constant 2 : index
    %c0_456 = arith.constant 0 : index
    %865 = vector.load %arg13[%c2_455, %c0_456] : memref<9x128xf32, #tpu.memory_space<vmem>>, vector<1x128xf32>
    %c3_457 = arith.constant 3 : index
    %c0_458 = arith.constant 0 : index
    %866 = vector.load %arg13[%c3_457, %c0_458] : memref<9x128xf32, #tpu.memory_space<vmem>>, vector<1x128xf32>
    %c4_459 = arith.constant 4 : index
    %c0_460 = arith.constant 0 : index
    %867 = vector.load %arg13[%c4_459, %c0_460] : memref<9x128xf32, #tpu.memory_space<vmem>>, vector<1x128xf32>
    %c5_461 = arith.constant 5 : index
    %c0_462 = arith.constant 0 : index
    %868 = vector.load %arg13[%c5_461, %c0_462] : memref<9x128xf32, #tpu.memory_space<vmem>>, vector<1x128xf32>
    %c6_463 = arith.constant 6 : index
    %c0_464 = arith.constant 0 : index
    %869 = vector.load %arg13[%c6_463, %c0_464] : memref<9x128xf32, #tpu.memory_space<vmem>>, vector<1x128xf32>
    %c7_465 = arith.constant 7 : index
    %c0_466 = arith.constant 0 : index
    %870 = vector.load %arg13[%c7_465, %c0_466] : memref<9x128xf32, #tpu.memory_space<vmem>>, vector<1x128xf32>
    %c8_467 = arith.constant 8 : index
    %c0_468 = arith.constant 0 : index
    %871 = vector.load %arg13[%c8_467, %c0_468] : memref<9x128xf32, #tpu.memory_space<vmem>>, vector<1x128xf32>
    %c0_469 = arith.constant 0 : index
    %c0_470 = arith.constant 0 : index
    %872 = vector.load %arg14[%c0_469, %c0_470] : memref<1x128xf32, #tpu.memory_space<vmem>>, vector<1x128xf32>
    %c7_471 = arith.constant 7 : index
    %c0_472 = arith.constant 0 : index
    %873 = tpu.strided_load %arg36[%c7_471, %c0_472] {strides = array<i32: 2, 1>} : memref<256x128xf32, #tpu.memory_space<vmem>>, vector<4x128xf32>
    %874 = vector.broadcast %866 : vector<1x128xf32> to vector<4x128xf32>
    %875 = arith.mulf %873, %874 : vector<4x128xf32>
    %c8_473 = arith.constant 8 : index
    %c0_474 = arith.constant 0 : index
    %876 = tpu.strided_load %arg36[%c8_473, %c0_474] {strides = array<i32: 2, 1>} : memref<256x128xf32, #tpu.memory_space<vmem>>, vector<4x128xf32>
    %877 = vector.broadcast %867 : vector<1x128xf32> to vector<4x128xf32>
    %878 = arith.mulf %876, %877 : vector<4x128xf32>
    %879 = arith.addf %875, %878 : vector<4x128xf32>
    %c9_475 = arith.constant 9 : index
    %c0_476 = arith.constant 0 : index
    %880 = tpu.strided_load %arg36[%c9_475, %c0_476] {strides = array<i32: 2, 1>} : memref<256x128xf32, #tpu.memory_space<vmem>>, vector<4x128xf32>
    %881 = vector.broadcast %868 : vector<1x128xf32> to vector<4x128xf32>
    %882 = arith.mulf %880, %881 : vector<4x128xf32>
    %883 = arith.addf %879, %882 : vector<4x128xf32>
    %c23 = arith.constant 23 : index
    %c0_477 = arith.constant 0 : index
    %884 = tpu.strided_load %arg36[%c23, %c0_477] {strides = array<i32: 2, 1>} : memref<256x128xf32, #tpu.memory_space<vmem>>, vector<4x128xf32>
    %885 = vector.broadcast %869 : vector<1x128xf32> to vector<4x128xf32>
    %886 = arith.mulf %884, %885 : vector<4x128xf32>
    %887 = arith.addf %883, %886 : vector<4x128xf32>
    %c24_478 = arith.constant 24 : index
    %c0_479 = arith.constant 0 : index
    %888 = tpu.strided_load %arg36[%c24_478, %c0_479] {strides = array<i32: 2, 1>} : memref<256x128xf32, #tpu.memory_space<vmem>>, vector<4x128xf32>
    %889 = vector.broadcast %870 : vector<1x128xf32> to vector<4x128xf32>
    %890 = arith.mulf %888, %889 : vector<4x128xf32>
    %891 = arith.addf %887, %890 : vector<4x128xf32>
    %c25 = arith.constant 25 : index
    %c0_480 = arith.constant 0 : index
    %892 = tpu.strided_load %arg36[%c25, %c0_480] {strides = array<i32: 2, 1>} : memref<256x128xf32, #tpu.memory_space<vmem>>, vector<4x128xf32>
    %893 = vector.broadcast %871 : vector<1x128xf32> to vector<4x128xf32>
    %894 = arith.mulf %892, %893 : vector<4x128xf32>
    %895 = arith.addf %891, %894 : vector<4x128xf32>
    %896 = vector.broadcast %872 : vector<1x128xf32> to vector<4x128xf32>
    %897 = arith.addf %895, %896 : vector<4x128xf32>
    %cst_481 = arith.constant 0.000000e+00 : f32
    %898 = vector.broadcast %cst_481 : f32 to vector<4x128xf32>
    %899 = arith.maximumf %897, %898 : vector<4x128xf32>
    %c0_482 = arith.constant 0 : index
    %c0_483 = arith.constant 0 : index
    %900 = vector.load %arg37[%c0_482, %c0_483] : memref<32x128xf32, #tpu.memory_space<vmem>>, vector<4x128xf32>
    tpu.vector_store %arg37[%c0_482, %c0_483], %899 {strides = array<i32>} : memref<32x128xf32, #tpu.memory_space<vmem>>, vector<4x128xf32>,
    %c23_484 = arith.constant 23 : index
    %c0_485 = arith.constant 0 : index
    %901 = tpu.strided_load %arg36[%c23_484, %c0_485] {strides = array<i32: 2, 1>} : memref<256x128xf32, #tpu.memory_space<vmem>>, vector<4x128xf32>
    %902 = vector.broadcast %863 : vector<1x128xf32> to vector<4x128xf32>
    %903 = arith.mulf %901, %902 : vector<4x128xf32>
    %c24_486 = arith.constant 24 : index
    %c0_487 = arith.constant 0 : index
    %904 = tpu.strided_load %arg36[%c24_486, %c0_487] {strides = array<i32: 2, 1>} : memref<256x128xf32, #tpu.memory_space<vmem>>, vector<4x128xf32>
    %905 = vector.broadcast %864 : vector<1x128xf32> to vector<4x128xf32>
    %906 = arith.mulf %904, %905 : vector<4x128xf32>
    %907 = arith.addf %903, %906 : vector<4x128xf32>
    %c25_488 = arith.constant 25 : index
    %c0_489 = arith.constant 0 : index
    %908 = tpu.strided_load %arg36[%c25_488, %c0_489] {strides = array<i32: 2, 1>} : memref<256x128xf32, #tpu.memory_space<vmem>>, vector<4x128xf32>
    %909 = vector.broadcast %865 : vector<1x128xf32> to vector<4x128xf32>
    %910 = arith.mulf %908, %909 : vector<4x128xf32>
    %911 = arith.addf %907, %910 : vector<4x128xf32>
    %c39 = arith.constant 39 : index
    %c0_490 = arith.constant 0 : index
    %912 = tpu.strided_load %arg36[%c39, %c0_490] {strides = array<i32: 2, 1>} : memref<256x128xf32, #tpu.memory_space<vmem>>, vector<4x128xf32>
    %913 = vector.broadcast %866 : vector<1x128xf32> to vector<4x128xf32>
    %914 = arith.mulf %912, %913 : vector<4x128xf32>
    %915 = arith.addf %911, %914 : vector<4x128xf32>
    %c40_491 = arith.constant 40 : index
    %c0_492 = arith.constant 0 : index
    %916 = tpu.strided_load %arg36[%c40_491, %c0_492] {strides = array<i32: 2, 1>} : memref<256x128xf32, #tpu.memory_space<vmem>>, vector<4x128xf32>
    %917 = vector.broadcast %867 : vector<1x128xf32> to vector<4x128xf32>
    %918 = arith.mulf %916, %917 : vector<4x128xf32>
    %919 = arith.addf %915, %918 : vector<4x128xf32>
    %c41 = arith.constant 41 : index
    %c0_493 = arith.constant 0 : index
    %920 = tpu.strided_load %arg36[%c41, %c0_493] {strides = array<i32: 2, 1>} : memref<256x128xf32, #tpu.memory_space<vmem>>, vector<4x128xf32>
    %921 = vector.broadcast %868 : vector<1x128xf32> to vector<4x128xf32>
    %922 = arith.mulf %920, %921 : vector<4x128xf32>
    %923 = arith.addf %919, %922 : vector<4x128xf32>
    %c55_494 = arith.constant 55 : index
    %c0_495 = arith.constant 0 : index
    %924 = tpu.strided_load %arg36[%c55_494, %c0_495] {strides = array<i32: 2, 1>} : memref<256x128xf32, #tpu.memory_space<vmem>>, vector<4x128xf32>
    %925 = vector.broadcast %869 : vector<1x128xf32> to vector<4x128xf32>
    %926 = arith.mulf %924, %925 : vector<4x128xf32>
    %927 = arith.addf %923, %926 : vector<4x128xf32>
    %c56_496 = arith.constant 56 : index
    %c0_497 = arith.constant 0 : index
    %928 = tpu.strided_load %arg36[%c56_496, %c0_497] {strides = array<i32: 2, 1>} : memref<256x128xf32, #tpu.memory_space<vmem>>, vector<4x128xf32>
    %929 = vector.broadcast %870 : vector<1x128xf32> to vector<4x128xf32>
    %930 = arith.mulf %928, %929 : vector<4x128xf32>
    %931 = arith.addf %927, %930 : vector<4x128xf32>
    %c57_498 = arith.constant 57 : index
    %c0_499 = arith.constant 0 : index
    %932 = tpu.strided_load %arg36[%c57_498, %c0_499] {strides = array<i32: 2, 1>} : memref<256x128xf32, #tpu.memory_space<vmem>>, vector<4x128xf32>
    %933 = vector.broadcast %871 : vector<1x128xf32> to vector<4x128xf32>
    %934 = arith.mulf %932, %933 : vector<4x128xf32>
    %935 = arith.addf %931, %934 : vector<4x128xf32>
    %936 = vector.broadcast %872 : vector<1x128xf32> to vector<4x128xf32>
    %937 = arith.addf %935, %936 : vector<4x128xf32>
    %cst_500 = arith.constant 0.000000e+00 : f32
    %938 = vector.broadcast %cst_500 : f32 to vector<4x128xf32>
    %939 = arith.maximumf %937, %938 : vector<4x128xf32>
    %c4_501 = arith.constant 4 : index
    %c0_502 = arith.constant 0 : index
    %940 = vector.load %arg37[%c4_501, %c0_502] : memref<32x128xf32, #tpu.memory_space<vmem>>, vector<4x128xf32>
    tpu.vector_store %arg37[%c4_501, %c0_502], %939 {strides = array<i32>} : memref<32x128xf32, #tpu.memory_space<vmem>>, vector<4x128xf32>,
    %c55_503 = arith.constant 55 : index
    %c0_504 = arith.constant 0 : index
    %941 = tpu.strided_load %arg36[%c55_503, %c0_504] {strides = array<i32: 2, 1>} : memref<256x128xf32, #tpu.memory_space<vmem>>, vector<4x128xf32>
    %942 = vector.broadcast %863 : vector<1x128xf32> to vector<4x128xf32>
    %943 = arith.mulf %941, %942 : vector<4x128xf32>
    %c56_505 = arith.constant 56 : index
    %c0_506 = arith.constant 0 : index
    %944 = tpu.strided_load %arg36[%c56_505, %c0_506] {strides = array<i32: 2, 1>} : memref<256x128xf32, #tpu.memory_space<vmem>>, vector<4x128xf32>
    %945 = vector.broadcast %864 : vector<1x128xf32> to vector<4x128xf32>
    %946 = arith.mulf %944, %945 : vector<4x128xf32>
    %947 = arith.addf %943, %946 : vector<4x128xf32>
    %c57_507 = arith.constant 57 : index
    %c0_508 = arith.constant 0 : index
    %948 = tpu.strided_load %arg36[%c57_507, %c0_508] {strides = array<i32: 2, 1>} : memref<256x128xf32, #tpu.memory_space<vmem>>, vector<4x128xf32>
    %949 = vector.broadcast %865 : vector<1x128xf32> to vector<4x128xf32>
    %950 = arith.mulf %948, %949 : vector<4x128xf32>
    %951 = arith.addf %947, %950 : vector<4x128xf32>
    %c71 = arith.constant 71 : index
    %c0_509 = arith.constant 0 : index
    %952 = tpu.strided_load %arg36[%c71, %c0_509] {strides = array<i32: 2, 1>} : memref<256x128xf32, #tpu.memory_space<vmem>>, vector<4x128xf32>
    %953 = vector.broadcast %866 : vector<1x128xf32> to vector<4x128xf32>
    %954 = arith.mulf %952, %953 : vector<4x128xf32>
    %955 = arith.addf %951, %954 : vector<4x128xf32>
    %c72_510 = arith.constant 72 : index
    %c0_511 = arith.constant 0 : index
    %956 = tpu.strided_load %arg36[%c72_510, %c0_511] {strides = array<i32: 2, 1>} : memref<256x128xf32, #tpu.memory_space<vmem>>, vector<4x128xf32>
    %957 = vector.broadcast %867 : vector<1x128xf32> to vector<4x128xf32>
    %958 = arith.mulf %956, %957 : vector<4x128xf32>
    %959 = arith.addf %955, %958 : vector<4x128xf32>
    %c73 = arith.constant 73 : index
    %c0_512 = arith.constant 0 : index
    %960 = tpu.strided_load %arg36[%c73, %c0_512] {strides = array<i32: 2, 1>} : memref<256x128xf32, #tpu.memory_space<vmem>>, vector<4x128xf32>
    %961 = vector.broadcast %868 : vector<1x128xf32> to vector<4x128xf32>
    %962 = arith.mulf %960, %961 : vector<4x128xf32>
    %963 = arith.addf %959, %962 : vector<4x128xf32>
    %c87 = arith.constant 87 : index
    %c0_513 = arith.constant 0 : index
    %964 = tpu.strided_load %arg36[%c87, %c0_513] {strides = array<i32: 2, 1>} : memref<256x128xf32, #tpu.memory_space<vmem>>, vector<4x128xf32>
    %965 = vector.broadcast %869 : vector<1x128xf32> to vector<4x128xf32>
    %966 = arith.mulf %964, %965 : vector<4x128xf32>
    %967 = arith.addf %963, %966 : vector<4x128xf32>
    %c88_514 = arith.constant 88 : index
    %c0_515 = arith.constant 0 : index
    %968 = tpu.strided_load %arg36[%c88_514, %c0_515] {strides = array<i32: 2, 1>} : memref<256x128xf32, #tpu.memory_space<vmem>>, vector<4x128xf32>
    %969 = vector.broadcast %870 : vector<1x128xf32> to vector<4x128xf32>
    %970 = arith.mulf %968, %969 : vector<4x128xf32>
    %971 = arith.addf %967, %970 : vector<4x128xf32>
    %c89 = arith.constant 89 : index
    %c0_516 = arith.constant 0 : index
    %972 = tpu.strided_load %arg36[%c89, %c0_516] {strides = array<i32: 2, 1>} : memref<256x128xf32, #tpu.memory_space<vmem>>, vector<4x128xf32>
    %973 = vector.broadcast %871 : vector<1x128xf32> to vector<4x128xf32>
    %974 = arith.mulf %972, %973 : vector<4x128xf32>
    %975 = arith.addf %971, %974 : vector<4x128xf32>
    %976 = vector.broadcast %872 : vector<1x128xf32> to vector<4x128xf32>
    %977 = arith.addf %975, %976 : vector<4x128xf32>
    %cst_517 = arith.constant 0.000000e+00 : f32
    %978 = vector.broadcast %cst_517 : f32 to vector<4x128xf32>
    %979 = arith.maximumf %977, %978 : vector<4x128xf32>
    %c8_518 = arith.constant 8 : index
    %c0_519 = arith.constant 0 : index
    %980 = vector.load %arg37[%c8_518, %c0_519] : memref<32x128xf32, #tpu.memory_space<vmem>>, vector<4x128xf32>
    tpu.vector_store %arg37[%c8_518, %c0_519], %979 {strides = array<i32>} : memref<32x128xf32, #tpu.memory_space<vmem>>, vector<4x128xf32>,
    %c87_520 = arith.constant 87 : index
    %c0_521 = arith.constant 0 : index
    %981 = tpu.strided_load %arg36[%c87_520, %c0_521] {strides = array<i32: 2, 1>} : memref<256x128xf32, #tpu.memory_space<vmem>>, vector<4x128xf32>
    %982 = vector.broadcast %863 : vector<1x128xf32> to vector<4x128xf32>
    %983 = arith.mulf %981, %982 : vector<4x128xf32>
    %c88_522 = arith.constant 88 : index
    %c0_523 = arith.constant 0 : index
    %984 = tpu.strided_load %arg36[%c88_522, %c0_523] {strides = array<i32: 2, 1>} : memref<256x128xf32, #tpu.memory_space<vmem>>, vector<4x128xf32>
    %985 = vector.broadcast %864 : vector<1x128xf32> to vector<4x128xf32>
    %986 = arith.mulf %984, %985 : vector<4x128xf32>
    %987 = arith.addf %983, %986 : vector<4x128xf32>
    %c89_524 = arith.constant 89 : index
    %c0_525 = arith.constant 0 : index
    %988 = tpu.strided_load %arg36[%c89_524, %c0_525] {strides = array<i32: 2, 1>} : memref<256x128xf32, #tpu.memory_space<vmem>>, vector<4x128xf32>
    %989 = vector.broadcast %865 : vector<1x128xf32> to vector<4x128xf32>
    %990 = arith.mulf %988, %989 : vector<4x128xf32>
    %991 = arith.addf %987, %990 : vector<4x128xf32>
    %c103_526 = arith.constant 103 : index
    %c0_527 = arith.constant 0 : index
    %992 = tpu.strided_load %arg36[%c103_526, %c0_527] {strides = array<i32: 2, 1>} : memref<256x128xf32, #tpu.memory_space<vmem>>, vector<4x128xf32>
    %993 = vector.broadcast %866 : vector<1x128xf32> to vector<4x128xf32>
    %994 = arith.mulf %992, %993 : vector<4x128xf32>
    %995 = arith.addf %991, %994 : vector<4x128xf32>
    %c104_528 = arith.constant 104 : index
    %c0_529 = arith.constant 0 : index
    %996 = tpu.strided_load %arg36[%c104_528, %c0_529] {strides = array<i32: 2, 1>} : memref<256x128xf32, #tpu.memory_space<vmem>>, vector<4x128xf32>
    %997 = vector.broadcast %867 : vector<1x128xf32> to vector<4x128xf32>
    %998 = arith.mulf %996, %997 : vector<4x128xf32>
    %999 = arith.addf %995, %998 : vector<4x128xf32>
    %c105_530 = arith.constant 105 : index
    %c0_531 = arith.constant 0 : index
    %1000 = tpu.strided_load %arg36[%c105_530, %c0_531] {strides = array<i32: 2, 1>} : memref<256x128xf32, #tpu.memory_space<vmem>>, vector<4x128xf32>
    %1001 = vector.broadcast %868 : vector<1x128xf32> to vector<4x128xf32>
    %1002 = arith.mulf %1000, %1001 : vector<4x128xf32>
    %1003 = arith.addf %999, %1002 : vector<4x128xf32>
    %c119 = arith.constant 119 : index
    %c0_532 = arith.constant 0 : index
    %1004 = tpu.strided_load %arg36[%c119, %c0_532] {strides = array<i32: 2, 1>} : memref<256x128xf32, #tpu.memory_space<vmem>>, vector<4x128xf32>
    %1005 = vector.broadcast %869 : vector<1x128xf32> to vector<4x128xf32>
    %1006 = arith.mulf %1004, %1005 : vector<4x128xf32>
    %1007 = arith.addf %1003, %1006 : vector<4x128xf32>
    %c120_533 = arith.constant 120 : index
    %c0_534 = arith.constant 0 : index
    %1008 = tpu.strided_load %arg36[%c120_533, %c0_534] {strides = array<i32: 2, 1>} : memref<256x128xf32, #tpu.memory_space<vmem>>, vector<4x128xf32>
    %1009 = vector.broadcast %870 : vector<1x128xf32> to vector<4x128xf32>
    %1010 = arith.mulf %1008, %1009 : vector<4x128xf32>
    %1011 = arith.addf %1007, %1010 : vector<4x128xf32>
    %c121 = arith.constant 121 : index
    %c0_535 = arith.constant 0 : index
    %1012 = tpu.strided_load %arg36[%c121, %c0_535] {strides = array<i32: 2, 1>} : memref<256x128xf32, #tpu.memory_space<vmem>>, vector<4x128xf32>
    %1013 = vector.broadcast %871 : vector<1x128xf32> to vector<4x128xf32>
    %1014 = arith.mulf %1012, %1013 : vector<4x128xf32>
    %1015 = arith.addf %1011, %1014 : vector<4x128xf32>
    %1016 = vector.broadcast %872 : vector<1x128xf32> to vector<4x128xf32>
    %1017 = arith.addf %1015, %1016 : vector<4x128xf32>
    %cst_536 = arith.constant 0.000000e+00 : f32
    %1018 = vector.broadcast %cst_536 : f32 to vector<4x128xf32>
    %1019 = arith.maximumf %1017, %1018 : vector<4x128xf32>
    %c12 = arith.constant 12 : index
    %c0_537 = arith.constant 0 : index
    %1020 = vector.load %arg37[%c12, %c0_537] : memref<32x128xf32, #tpu.memory_space<vmem>>, vector<4x128xf32>
    tpu.vector_store %arg37[%c12, %c0_537], %1019 {strides = array<i32>} : memref<32x128xf32, #tpu.memory_space<vmem>>, vector<4x128xf32>,
    %c135 = arith.constant 135 : index
    %c0_538 = arith.constant 0 : index
    %1021 = tpu.strided_load %arg36[%c135, %c0_538] {strides = array<i32: 2, 1>} : memref<256x128xf32, #tpu.memory_space<vmem>>, vector<4x128xf32>
    %1022 = vector.broadcast %866 : vector<1x128xf32> to vector<4x128xf32>
    %1023 = arith.mulf %1021, %1022 : vector<4x128xf32>
    %c136_539 = arith.constant 136 : index
    %c0_540 = arith.constant 0 : index
    %1024 = tpu.strided_load %arg36[%c136_539, %c0_540] {strides = array<i32: 2, 1>} : memref<256x128xf32, #tpu.memory_space<vmem>>, vector<4x128xf32>
    %1025 = vector.broadcast %867 : vector<1x128xf32> to vector<4x128xf32>
    %1026 = arith.mulf %1024, %1025 : vector<4x128xf32>
    %1027 = arith.addf %1023, %1026 : vector<4x128xf32>
    %c137 = arith.constant 137 : index
    %c0_541 = arith.constant 0 : index
    %1028 = tpu.strided_load %arg36[%c137, %c0_541] {strides = array<i32: 2, 1>} : memref<256x128xf32, #tpu.memory_space<vmem>>, vector<4x128xf32>
    %1029 = vector.broadcast %868 : vector<1x128xf32> to vector<4x128xf32>
    %1030 = arith.mulf %1028, %1029 : vector<4x128xf32>
    %1031 = arith.addf %1027, %1030 : vector<4x128xf32>
    %c151_542 = arith.constant 151 : index
    %c0_543 = arith.constant 0 : index
    %1032 = tpu.strided_load %arg36[%c151_542, %c0_543] {strides = array<i32: 2, 1>} : memref<256x128xf32, #tpu.memory_space<vmem>>, vector<4x128xf32>
    %1033 = vector.broadcast %869 : vector<1x128xf32> to vector<4x128xf32>
    %1034 = arith.mulf %1032, %1033 : vector<4x128xf32>
    %1035 = arith.addf %1031, %1034 : vector<4x128xf32>
    %c152_544 = arith.constant 152 : index
    %c0_545 = arith.constant 0 : index
    %1036 = tpu.strided_load %arg36[%c152_544, %c0_545] {strides = array<i32: 2, 1>} : memref<256x128xf32, #tpu.memory_space<vmem>>, vector<4x128xf32>
    %1037 = vector.broadcast %870 : vector<1x128xf32> to vector<4x128xf32>
    %1038 = arith.mulf %1036, %1037 : vector<4x128xf32>
    %1039 = arith.addf %1035, %1038 : vector<4x128xf32>
    %c153_546 = arith.constant 153 : index
    %c0_547 = arith.constant 0 : index
    %1040 = tpu.strided_load %arg36[%c153_546, %c0_547] {strides = array<i32: 2, 1>} : memref<256x128xf32, #tpu.memory_space<vmem>>, vector<4x128xf32>
    %1041 = vector.broadcast %871 : vector<1x128xf32> to vector<4x128xf32>
    %1042 = arith.mulf %1040, %1041 : vector<4x128xf32>
    %1043 = arith.addf %1039, %1042 : vector<4x128xf32>
    %1044 = vector.broadcast %872 : vector<1x128xf32> to vector<4x128xf32>
    %1045 = arith.addf %1043, %1044 : vector<4x128xf32>
    %cst_548 = arith.constant 0.000000e+00 : f32
    %1046 = vector.broadcast %cst_548 : f32 to vector<4x128xf32>
    %1047 = arith.maximumf %1045, %1046 : vector<4x128xf32>
    %c16_549 = arith.constant 16 : index
    %c0_550 = arith.constant 0 : index
    %1048 = vector.load %arg37[%c16_549, %c0_550] : memref<32x128xf32, #tpu.memory_space<vmem>>, vector<4x128xf32>
    tpu.vector_store %arg37[%c16_549, %c0_550], %1047 {strides = array<i32>} : memref<32x128xf32, #tpu.memory_space<vmem>>, vector<4x128xf32>,
    %c151_551 = arith.constant 151 : index
    %c0_552 = arith.constant 0 : index
    %1049 = tpu.strided_load %arg36[%c151_551, %c0_552] {strides = array<i32: 2, 1>} : memref<256x128xf32, #tpu.memory_space<vmem>>, vector<4x128xf32>
    %1050 = vector.broadcast %863 : vector<1x128xf32> to vector<4x128xf32>
    %1051 = arith.mulf %1049, %1050 : vector<4x128xf32>
    %c152_553 = arith.constant 152 : index
    %c0_554 = arith.constant 0 : index
    %1052 = tpu.strided_load %arg36[%c152_553, %c0_554] {strides = array<i32: 2, 1>} : memref<256x128xf32, #tpu.memory_space<vmem>>, vector<4x128xf32>
    %1053 = vector.broadcast %864 : vector<1x128xf32> to vector<4x128xf32>
    %1054 = arith.mulf %1052, %1053 : vector<4x128xf32>
    %1055 = arith.addf %1051, %1054 : vector<4x128xf32>
    %c153_555 = arith.constant 153 : index
    %c0_556 = arith.constant 0 : index
    %1056 = tpu.strided_load %arg36[%c153_555, %c0_556] {strides = array<i32: 2, 1>} : memref<256x128xf32, #tpu.memory_space<vmem>>, vector<4x128xf32>
    %1057 = vector.broadcast %865 : vector<1x128xf32> to vector<4x128xf32>
    %1058 = arith.mulf %1056, %1057 : vector<4x128xf32>
    %1059 = arith.addf %1055, %1058 : vector<4x128xf32>
    %c167 = arith.constant 167 : index
    %c0_557 = arith.constant 0 : index
    %1060 = tpu.strided_load %arg36[%c167, %c0_557] {strides = array<i32: 2, 1>} : memref<256x128xf32, #tpu.memory_space<vmem>>, vector<4x128xf32>
    %1061 = vector.broadcast %866 : vector<1x128xf32> to vector<4x128xf32>
    %1062 = arith.mulf %1060, %1061 : vector<4x128xf32>
    %1063 = arith.addf %1059, %1062 : vector<4x128xf32>
    %c168_558 = arith.constant 168 : index
    %c0_559 = arith.constant 0 : index
    %1064 = tpu.strided_load %arg36[%c168_558, %c0_559] {strides = array<i32: 2, 1>} : memref<256x128xf32, #tpu.memory_space<vmem>>, vector<4x128xf32>
    %1065 = vector.broadcast %867 : vector<1x128xf32> to vector<4x128xf32>
    %1066 = arith.mulf %1064, %1065 : vector<4x128xf32>
    %1067 = arith.addf %1063, %1066 : vector<4x128xf32>
    %c169 = arith.constant 169 : index
    %c0_560 = arith.constant 0 : index
    %1068 = tpu.strided_load %arg36[%c169, %c0_560] {strides = array<i32: 2, 1>} : memref<256x128xf32, #tpu.memory_space<vmem>>, vector<4x128xf32>
    %1069 = vector.broadcast %868 : vector<1x128xf32> to vector<4x128xf32>
    %1070 = arith.mulf %1068, %1069 : vector<4x128xf32>
    %1071 = arith.addf %1067, %1070 : vector<4x128xf32>
    %c183 = arith.constant 183 : index
    %c0_561 = arith.constant 0 : index
    %1072 = tpu.strided_load %arg36[%c183, %c0_561] {strides = array<i32: 2, 1>} : memref<256x128xf32, #tpu.memory_space<vmem>>, vector<4x128xf32>
    %1073 = vector.broadcast %869 : vector<1x128xf32> to vector<4x128xf32>
    %1074 = arith.mulf %1072, %1073 : vector<4x128xf32>
    %1075 = arith.addf %1071, %1074 : vector<4x128xf32>
    %c184_562 = arith.constant 184 : index
    %c0_563 = arith.constant 0 : index
    %1076 = tpu.strided_load %arg36[%c184_562, %c0_563] {strides = array<i32: 2, 1>} : memref<256x128xf32, #tpu.memory_space<vmem>>, vector<4x128xf32>
    %1077 = vector.broadcast %870 : vector<1x128xf32> to vector<4x128xf32>
    %1078 = arith.mulf %1076, %1077 : vector<4x128xf32>
    %1079 = arith.addf %1075, %1078 : vector<4x128xf32>
    %c185 = arith.constant 185 : index
    %c0_564 = arith.constant 0 : index
    %1080 = tpu.strided_load %arg36[%c185, %c0_564] {strides = array<i32: 2, 1>} : memref<256x128xf32, #tpu.memory_space<vmem>>, vector<4x128xf32>
    %1081 = vector.broadcast %871 : vector<1x128xf32> to vector<4x128xf32>
    %1082 = arith.mulf %1080, %1081 : vector<4x128xf32>
    %1083 = arith.addf %1079, %1082 : vector<4x128xf32>
    %1084 = vector.broadcast %872 : vector<1x128xf32> to vector<4x128xf32>
    %1085 = arith.addf %1083, %1084 : vector<4x128xf32>
    %cst_565 = arith.constant 0.000000e+00 : f32
    %1086 = vector.broadcast %cst_565 : f32 to vector<4x128xf32>
    %1087 = arith.maximumf %1085, %1086 : vector<4x128xf32>
    %c20 = arith.constant 20 : index
    %c0_566 = arith.constant 0 : index
    %1088 = vector.load %arg37[%c20, %c0_566] : memref<32x128xf32, #tpu.memory_space<vmem>>, vector<4x128xf32>
    tpu.vector_store %arg37[%c20, %c0_566], %1087 {strides = array<i32>} : memref<32x128xf32, #tpu.memory_space<vmem>>, vector<4x128xf32>,
    %c183_567 = arith.constant 183 : index
    %c0_568 = arith.constant 0 : index
    %1089 = tpu.strided_load %arg36[%c183_567, %c0_568] {strides = array<i32: 2, 1>} : memref<256x128xf32, #tpu.memory_space<vmem>>, vector<4x128xf32>
    %1090 = vector.broadcast %863 : vector<1x128xf32> to vector<4x128xf32>
    %1091 = arith.mulf %1089, %1090 : vector<4x128xf32>
    %c184_569 = arith.constant 184 : index
    %c0_570 = arith.constant 0 : index
    %1092 = tpu.strided_load %arg36[%c184_569, %c0_570] {strides = array<i32: 2, 1>} : memref<256x128xf32, #tpu.memory_space<vmem>>, vector<4x128xf32>
    %1093 = vector.broadcast %864 : vector<1x128xf32> to vector<4x128xf32>
    %1094 = arith.mulf %1092, %1093 : vector<4x128xf32>
    %1095 = arith.addf %1091, %1094 : vector<4x128xf32>
    %c185_571 = arith.constant 185 : index
    %c0_572 = arith.constant 0 : index
    %1096 = tpu.strided_load %arg36[%c185_571, %c0_572] {strides = array<i32: 2, 1>} : memref<256x128xf32, #tpu.memory_space<vmem>>, vector<4x128xf32>
    %1097 = vector.broadcast %865 : vector<1x128xf32> to vector<4x128xf32>
    %1098 = arith.mulf %1096, %1097 : vector<4x128xf32>
    %1099 = arith.addf %1095, %1098 : vector<4x128xf32>
    %c199_573 = arith.constant 199 : index
    %c0_574 = arith.constant 0 : index
    %1100 = tpu.strided_load %arg36[%c199_573, %c0_574] {strides = array<i32: 2, 1>} : memref<256x128xf32, #tpu.memory_space<vmem>>, vector<4x128xf32>
    %1101 = vector.broadcast %866 : vector<1x128xf32> to vector<4x128xf32>
    %1102 = arith.mulf %1100, %1101 : vector<4x128xf32>
    %1103 = arith.addf %1099, %1102 : vector<4x128xf32>
    %c200_575 = arith.constant 200 : index
    %c0_576 = arith.constant 0 : index
    %1104 = tpu.strided_load %arg36[%c200_575, %c0_576] {strides = array<i32: 2, 1>} : memref<256x128xf32, #tpu.memory_space<vmem>>, vector<4x128xf32>
    %1105 = vector.broadcast %867 : vector<1x128xf32> to vector<4x128xf32>
    %1106 = arith.mulf %1104, %1105 : vector<4x128xf32>
    %1107 = arith.addf %1103, %1106 : vector<4x128xf32>
    %c201_577 = arith.constant 201 : index
    %c0_578 = arith.constant 0 : index
    %1108 = tpu.strided_load %arg36[%c201_577, %c0_578] {strides = array<i32: 2, 1>} : memref<256x128xf32, #tpu.memory_space<vmem>>, vector<4x128xf32>
    %1109 = vector.broadcast %868 : vector<1x128xf32> to vector<4x128xf32>
    %1110 = arith.mulf %1108, %1109 : vector<4x128xf32>
    %1111 = arith.addf %1107, %1110 : vector<4x128xf32>
    %c215 = arith.constant 215 : index
    %c0_579 = arith.constant 0 : index
    %1112 = tpu.strided_load %arg36[%c215, %c0_579] {strides = array<i32: 2, 1>} : memref<256x128xf32, #tpu.memory_space<vmem>>, vector<4x128xf32>
    %1113 = vector.broadcast %869 : vector<1x128xf32> to vector<4x128xf32>
    %1114 = arith.mulf %1112, %1113 : vector<4x128xf32>
    %1115 = arith.addf %1111, %1114 : vector<4x128xf32>
    %c216_580 = arith.constant 216 : index
    %c0_581 = arith.constant 0 : index
    %1116 = tpu.strided_load %arg36[%c216_580, %c0_581] {strides = array<i32: 2, 1>} : memref<256x128xf32, #tpu.memory_space<vmem>>, vector<4x128xf32>
    %1117 = vector.broadcast %870 : vector<1x128xf32> to vector<4x128xf32>
    %1118 = arith.mulf %1116, %1117 : vector<4x128xf32>
    %1119 = arith.addf %1115, %1118 : vector<4x128xf32>
    %c217 = arith.constant 217 : index
    %c0_582 = arith.constant 0 : index
    %1120 = tpu.strided_load %arg36[%c217, %c0_582] {strides = array<i32: 2, 1>} : memref<256x128xf32, #tpu.memory_space<vmem>>, vector<4x128xf32>
    %1121 = vector.broadcast %871 : vector<1x128xf32> to vector<4x128xf32>
    %1122 = arith.mulf %1120, %1121 : vector<4x128xf32>
    %1123 = arith.addf %1119, %1122 : vector<4x128xf32>
    %1124 = vector.broadcast %872 : vector<1x128xf32> to vector<4x128xf32>
    %1125 = arith.addf %1123, %1124 : vector<4x128xf32>
    %cst_583 = arith.constant 0.000000e+00 : f32
    %1126 = vector.broadcast %cst_583 : f32 to vector<4x128xf32>
    %1127 = arith.maximumf %1125, %1126 : vector<4x128xf32>
    %c24_584 = arith.constant 24 : index
    %c0_585 = arith.constant 0 : index
    %1128 = vector.load %arg37[%c24_584, %c0_585] : memref<32x128xf32, #tpu.memory_space<vmem>>, vector<4x128xf32>
    tpu.vector_store %arg37[%c24_584, %c0_585], %1127 {strides = array<i32>} : memref<32x128xf32, #tpu.memory_space<vmem>>, vector<4x128xf32>,
    %c215_586 = arith.constant 215 : index
    %c0_587 = arith.constant 0 : index
    %1129 = tpu.strided_load %arg36[%c215_586, %c0_587] {strides = array<i32: 2, 1>} : memref<256x128xf32, #tpu.memory_space<vmem>>, vector<4x128xf32>
    %1130 = vector.broadcast %863 : vector<1x128xf32> to vector<4x128xf32>
    %1131 = arith.mulf %1129, %1130 : vector<4x128xf32>
    %c216_588 = arith.constant 216 : index
    %c0_589 = arith.constant 0 : index
    %1132 = tpu.strided_load %arg36[%c216_588, %c0_589] {strides = array<i32: 2, 1>} : memref<256x128xf32, #tpu.memory_space<vmem>>, vector<4x128xf32>
    %1133 = vector.broadcast %864 : vector<1x128xf32> to vector<4x128xf32>
    %1134 = arith.mulf %1132, %1133 : vector<4x128xf32>
    %1135 = arith.addf %1131, %1134 : vector<4x128xf32>
    %c217_590 = arith.constant 217 : index
    %c0_591 = arith.constant 0 : index
    %1136 = tpu.strided_load %arg36[%c217_590, %c0_591] {strides = array<i32: 2, 1>} : memref<256x128xf32, #tpu.memory_space<vmem>>, vector<4x128xf32>
    %1137 = vector.broadcast %865 : vector<1x128xf32> to vector<4x128xf32>
    %1138 = arith.mulf %1136, %1137 : vector<4x128xf32>
    %1139 = arith.addf %1135, %1138 : vector<4x128xf32>
    %c231 = arith.constant 231 : index
    %c0_592 = arith.constant 0 : index
    %1140 = tpu.strided_load %arg36[%c231, %c0_592] {strides = array<i32: 2, 1>} : memref<256x128xf32, #tpu.memory_space<vmem>>, vector<4x128xf32>
    %1141 = vector.broadcast %866 : vector<1x128xf32> to vector<4x128xf32>
    %1142 = arith.mulf %1140, %1141 : vector<4x128xf32>
    %1143 = arith.addf %1139, %1142 : vector<4x128xf32>
    %c232_593 = arith.constant 232 : index
    %c0_594 = arith.constant 0 : index
    %1144 = tpu.strided_load %arg36[%c232_593, %c0_594] {strides = array<i32: 2, 1>} : memref<256x128xf32, #tpu.memory_space<vmem>>, vector<4x128xf32>
    %1145 = vector.broadcast %867 : vector<1x128xf32> to vector<4x128xf32>
    %1146 = arith.mulf %1144, %1145 : vector<4x128xf32>
    %1147 = arith.addf %1143, %1146 : vector<4x128xf32>
    %c233 = arith.constant 233 : index
    %c0_595 = arith.constant 0 : index
    %1148 = tpu.strided_load %arg36[%c233, %c0_595] {strides = array<i32: 2, 1>} : memref<256x128xf32, #tpu.memory_space<vmem>>, vector<4x128xf32>
    %1149 = vector.broadcast %868 : vector<1x128xf32> to vector<4x128xf32>
    %1150 = arith.mulf %1148, %1149 : vector<4x128xf32>
    %1151 = arith.addf %1147, %1150 : vector<4x128xf32>
    %c247_596 = arith.constant 247 : index
    %c0_597 = arith.constant 0 : index
    %1152 = tpu.strided_load %arg36[%c247_596, %c0_597] {strides = array<i32: 2, 1>} : memref<256x128xf32, #tpu.memory_space<vmem>>, vector<4x128xf32>
    %1153 = vector.broadcast %869 : vector<1x128xf32> to vector<4x128xf32>
    %1154 = arith.mulf %1152, %1153 : vector<4x128xf32>
    %1155 = arith.addf %1151, %1154 : vector<4x128xf32>
    %c248_598 = arith.constant 248 : index
    %c0_599 = arith.constant 0 : index
    %1156 = tpu.strided_load %arg36[%c248_598, %c0_599] {strides = array<i32: 2, 1>} : memref<256x128xf32, #tpu.memory_space<vmem>>, vector<4x128xf32>
    %1157 = vector.broadcast %870 : vector<1x128xf32> to vector<4x128xf32>
    %1158 = arith.mulf %1156, %1157 : vector<4x128xf32>
    %1159 = arith.addf %1155, %1158 : vector<4x128xf32>
    %c249_600 = arith.constant 249 : index
    %c0_601 = arith.constant 0 : index
    %1160 = tpu.strided_load %arg36[%c249_600, %c0_601] {strides = array<i32: 2, 1>} : memref<256x128xf32, #tpu.memory_space<vmem>>, vector<4x128xf32>
    %1161 = vector.broadcast %871 : vector<1x128xf32> to vector<4x128xf32>
    %1162 = arith.mulf %1160, %1161 : vector<4x128xf32>
    %1163 = arith.addf %1159, %1162 : vector<4x128xf32>
    %1164 = vector.broadcast %872 : vector<1x128xf32> to vector<4x128xf32>
    %1165 = arith.addf %1163, %1164 : vector<4x128xf32>
    %cst_602 = arith.constant 0.000000e+00 : f32
    %1166 = vector.broadcast %cst_602 : f32 to vector<4x128xf32>
    %1167 = arith.maximumf %1165, %1166 : vector<4x128xf32>
    %c28 = arith.constant 28 : index
    %c0_603 = arith.constant 0 : index
    %1168 = vector.load %arg37[%c28, %c0_603] : memref<32x128xf32, #tpu.memory_space<vmem>>, vector<4x128xf32>
    tpu.vector_store %arg37[%c28, %c0_603], %1167 {strides = array<i32>} : memref<32x128xf32, #tpu.memory_space<vmem>>, vector<4x128xf32>,
    %c0_604 = arith.constant 0 : index
    %c0_605 = arith.constant 0 : index
    %1169 = vector.load %arg37[%c0_604, %c0_605] : memref<32x128xf32, #tpu.memory_space<vmem>>, vector<32x128xf32>
    %1170 = arith.truncf %1169 : vector<32x128xf32> to vector<32x128xbf16>
    %c0_606 = arith.constant 0 : index
    %c0_607 = arith.constant 0 : index
    %1171 = vector.load %arg15[%c0_606, %c0_607] : memref<128x128xbf16, #tpu.memory_space<vmem>>, vector<128x128xbf16>
    %cst_608 = arith.constant dense<0.000000e+00> : vector<32x128xf32>
    %1172 = tpu.matmul %1170, %1171, %cst_608 {dimension_numbers = #tpu.dot_dimension_numbers<[1], [0], [0], [1], [0, 0, 1, 1], [], []>} : vector<32x128xbf16>, vector<128x128xbf16>, vector<32x128xf32> -> vector<32x128xf32>
    %c0_609 = arith.constant 0 : index
    %c0_610 = arith.constant 0 : index
    %1173 = vector.load %arg16[%c0_609, %c0_610] : memref<1x128xf32, #tpu.memory_space<vmem>>, vector<1x128xf32>
    %1174 = vector.broadcast %1173 : vector<1x128xf32> to vector<32x128xf32>
    %1175 = arith.addf %1172, %1174 : vector<32x128xf32>
    %1176 = arith.truncf %1175 : vector<32x128xf32> to vector<32x128xbf16>
    %c0_611 = arith.constant 0 : index
    %c0_612 = arith.constant 0 : index
    %1177 = vector.load %arg17[%c0_611, %c0_612] : memref<128x128xbf16, #tpu.memory_space<vmem>>, vector<128x128xbf16>
    %cst_613 = arith.constant dense<0.000000e+00> : vector<32x128xf32>
    %1178 = tpu.matmul %1176, %1177, %cst_613 {dimension_numbers = #tpu.dot_dimension_numbers<[1], [0], [0], [1], [0, 0, 1, 1], [], []>} : vector<32x128xbf16>, vector<128x128xbf16>, vector<32x128xf32> -> vector<32x128xf32>
    %c0_614 = arith.constant 0 : index
    %c0_615 = arith.constant 0 : index
    %1179 = vector.load %arg18[%c0_614, %c0_615] : memref<1x128xf32, #tpu.memory_space<vmem>>, vector<1x128xf32>
    %1180 = vector.broadcast %1179 : vector<1x128xf32> to vector<32x128xf32>
    %1181 = arith.addf %1178, %1180 : vector<32x128xf32>
    %cst_616 = arith.constant 0.000000e+00 : f32
    %1182 = vector.broadcast %cst_616 : f32 to vector<32x128xf32>
    %1183 = arith.maximumf %1181, %1182 : vector<32x128xf32>
    %cst_617 = arith.constant 0.000000e+00 : f32
    %1184 = vector.broadcast %cst_617 : f32 to vector<8x128xf32>
    %cst_618 = arith.constant 0.000000e+00 : f32
    %1185 = vector.broadcast %cst_618 : f32 to vector<1x128xf32>
    %c0_619 = arith.constant 0 : index
    %c0_620 = arith.constant 0 : index
    %1186 = vector.load %arg38[%c0_619, %c0_620] : memref<128x128xf32, #tpu.memory_space<vmem>>, vector<8x128xf32>
    tpu.vector_store %arg38[%c0_619, %c0_620], %1184 {strides = array<i32>} : memref<128x128xf32, #tpu.memory_space<vmem>>, vector<8x128xf32>,
    %c12_621 = arith.constant 12 : index
    %c0_622 = arith.constant 0 : index
    %1187 = vector.load %arg38[%c12_621, %c0_622] : memref<128x128xf32, #tpu.memory_space<vmem>>, vector<1x128xf32>
    tpu.vector_store %arg38[%c12_621, %c0_622], %1185 {strides = array<i32>} : memref<128x128xf32, #tpu.memory_space<vmem>>, vector<1x128xf32>,
    %1188 = vector.extract_strided_slice %1183 {offsets = [0, 0], sizes = [4, 128], strides = [1, 1]} : vector<32x128xf32> to vector<4x128xf32>
    %c8_623 = arith.constant 8 : index
    %c0_624 = arith.constant 0 : index
    %1189 = vector.load %arg38[%c8_623, %c0_624] : memref<128x128xf32, #tpu.memory_space<vmem>>, vector<4x128xf32>
    tpu.vector_store %arg38[%c8_623, %c0_624], %1188 {strides = array<i32>} : memref<128x128xf32, #tpu.memory_space<vmem>>, vector<4x128xf32>,
    %c16_625 = arith.constant 16 : index
    %c0_626 = arith.constant 0 : index
    %1190 = vector.load %arg38[%c16_625, %c0_626] : memref<128x128xf32, #tpu.memory_space<vmem>>, vector<8x128xf32>
    tpu.vector_store %arg38[%c16_625, %c0_626], %1184 {strides = array<i32>} : memref<128x128xf32, #tpu.memory_space<vmem>>, vector<8x128xf32>,
    %c28_627 = arith.constant 28 : index
    %c0_628 = arith.constant 0 : index
    %1191 = vector.load %arg38[%c28_627, %c0_628] : memref<128x128xf32, #tpu.memory_space<vmem>>, vector<1x128xf32>
    tpu.vector_store %arg38[%c28_627, %c0_628], %1185 {strides = array<i32>} : memref<128x128xf32, #tpu.memory_space<vmem>>, vector<1x128xf32>,
    %1192 = vector.extract_strided_slice %1183 {offsets = [4, 0], sizes = [4, 128], strides = [1, 1]} : vector<32x128xf32> to vector<4x128xf32>
    %c24_629 = arith.constant 24 : index
    %c0_630 = arith.constant 0 : index
    %1193 = vector.load %arg38[%c24_629, %c0_630] : memref<128x128xf32, #tpu.memory_space<vmem>>, vector<4x128xf32>
    tpu.vector_store %arg38[%c24_629, %c0_630], %1192 {strides = array<i32>} : memref<128x128xf32, #tpu.memory_space<vmem>>, vector<4x128xf32>,
    %c32_631 = arith.constant 32 : index
    %c0_632 = arith.constant 0 : index
    %1194 = vector.load %arg38[%c32_631, %c0_632] : memref<128x128xf32, #tpu.memory_space<vmem>>, vector<8x128xf32>
    tpu.vector_store %arg38[%c32_631, %c0_632], %1184 {strides = array<i32>} : memref<128x128xf32, #tpu.memory_space<vmem>>, vector<8x128xf32>,
    %c44 = arith.constant 44 : index
    %c0_633 = arith.constant 0 : index
    %1195 = vector.load %arg38[%c44, %c0_633] : memref<128x128xf32, #tpu.memory_space<vmem>>, vector<1x128xf32>
    tpu.vector_store %arg38[%c44, %c0_633], %1185 {strides = array<i32>} : memref<128x128xf32, #tpu.memory_space<vmem>>, vector<1x128xf32>,
    %1196 = vector.extract_strided_slice %1183 {offsets = [8, 0], sizes = [4, 128], strides = [1, 1]} : vector<32x128xf32> to vector<4x128xf32>
    %c40_634 = arith.constant 40 : index
    %c0_635 = arith.constant 0 : index
    %1197 = vector.load %arg38[%c40_634, %c0_635] : memref<128x128xf32, #tpu.memory_space<vmem>>, vector<4x128xf32>
    tpu.vector_store %arg38[%c40_634, %c0_635], %1196 {strides = array<i32>} : memref<128x128xf32, #tpu.memory_space<vmem>>, vector<4x128xf32>,
    %c48_636 = arith.constant 48 : index
    %c0_637 = arith.constant 0 : index
    %1198 = vector.load %arg38[%c48_636, %c0_637] : memref<128x128xf32, #tpu.memory_space<vmem>>, vector<8x128xf32>
    tpu.vector_store %arg38[%c48_636, %c0_637], %1184 {strides = array<i32>} : memref<128x128xf32, #tpu.memory_space<vmem>>, vector<8x128xf32>,
    %c60 = arith.constant 60 : index
    %c0_638 = arith.constant 0 : index
    %1199 = vector.load %arg38[%c60, %c0_638] : memref<128x128xf32, #tpu.memory_space<vmem>>, vector<1x128xf32>
    tpu.vector_store %arg38[%c60, %c0_638], %1185 {strides = array<i32>} : memref<128x128xf32, #tpu.memory_space<vmem>>, vector<1x128xf32>,
    %1200 = vector.extract_strided_slice %1183 {offsets = [12, 0], sizes = [4, 128], strides = [1, 1]} : vector<32x128xf32> to vector<4x128xf32>
    %c56_639 = arith.constant 56 : index
    %c0_640 = arith.constant 0 : index
    %1201 = vector.load %arg38[%c56_639, %c0_640] : memref<128x128xf32, #tpu.memory_space<vmem>>, vector<4x128xf32>
    tpu.vector_store %arg38[%c56_639, %c0_640], %1200 {strides = array<i32>} : memref<128x128xf32, #tpu.memory_space<vmem>>, vector<4x128xf32>,
    %c64_641 = arith.constant 64 : index
    %c0_642 = arith.constant 0 : index
    %1202 = vector.load %arg38[%c64_641, %c0_642] : memref<128x128xf32, #tpu.memory_space<vmem>>, vector<8x128xf32>
    tpu.vector_store %arg38[%c64_641, %c0_642], %1184 {strides = array<i32>} : memref<128x128xf32, #tpu.memory_space<vmem>>, vector<8x128xf32>,
    %c76 = arith.constant 76 : index
    %c0_643 = arith.constant 0 : index
    %1203 = vector.load %arg38[%c76, %c0_643] : memref<128x128xf32, #tpu.memory_space<vmem>>, vector<1x128xf32>
    tpu.vector_store %arg38[%c76, %c0_643], %1185 {strides = array<i32>} : memref<128x128xf32, #tpu.memory_space<vmem>>, vector<1x128xf32>,
    %1204 = vector.extract_strided_slice %1183 {offsets = [16, 0], sizes = [4, 128], strides = [1, 1]} : vector<32x128xf32> to vector<4x128xf32>
    %c72_644 = arith.constant 72 : index
    %c0_645 = arith.constant 0 : index
    %1205 = vector.load %arg38[%c72_644, %c0_645] : memref<128x128xf32, #tpu.memory_space<vmem>>, vector<4x128xf32>
    tpu.vector_store %arg38[%c72_644, %c0_645], %1204 {strides = array<i32>} : memref<128x128xf32, #tpu.memory_space<vmem>>, vector<4x128xf32>,
    %c80_646 = arith.constant 80 : index
    %c0_647 = arith.constant 0 : index
    %1206 = vector.load %arg38[%c80_646, %c0_647] : memref<128x128xf32, #tpu.memory_space<vmem>>, vector<8x128xf32>
    tpu.vector_store %arg38[%c80_646, %c0_647], %1184 {strides = array<i32>} : memref<128x128xf32, #tpu.memory_space<vmem>>, vector<8x128xf32>,
    %c92 = arith.constant 92 : index
    %c0_648 = arith.constant 0 : index
    %1207 = vector.load %arg38[%c92, %c0_648] : memref<128x128xf32, #tpu.memory_space<vmem>>, vector<1x128xf32>
    tpu.vector_store %arg38[%c92, %c0_648], %1185 {strides = array<i32>} : memref<128x128xf32, #tpu.memory_space<vmem>>, vector<1x128xf32>,
    %1208 = vector.extract_strided_slice %1183 {offsets = [20, 0], sizes = [4, 128], strides = [1, 1]} : vector<32x128xf32> to vector<4x128xf32>
    %c88_649 = arith.constant 88 : index
    %c0_650 = arith.constant 0 : index
    %1209 = vector.load %arg38[%c88_649, %c0_650] : memref<128x128xf32, #tpu.memory_space<vmem>>, vector<4x128xf32>
    tpu.vector_store %arg38[%c88_649, %c0_650], %1208 {strides = array<i32>} : memref<128x128xf32, #tpu.memory_space<vmem>>, vector<4x128xf32>,
    %c96_651 = arith.constant 96 : index
    %c0_652 = arith.constant 0 : index
    %1210 = vector.load %arg38[%c96_651, %c0_652] : memref<128x128xf32, #tpu.memory_space<vmem>>, vector<8x128xf32>
    tpu.vector_store %arg38[%c96_651, %c0_652], %1184 {strides = array<i32>} : memref<128x128xf32, #tpu.memory_space<vmem>>, vector<8x128xf32>,
    %c108 = arith.constant 108 : index
    %c0_653 = arith.constant 0 : index
    %1211 = vector.load %arg38[%c108, %c0_653] : memref<128x128xf32, #tpu.memory_space<vmem>>, vector<1x128xf32>
    tpu.vector_store %arg38[%c108, %c0_653], %1185 {strides = array<i32>} : memref<128x128xf32, #tpu.memory_space<vmem>>, vector<1x128xf32>,
    %1212 = vector.extract_strided_slice %1183 {offsets = [24, 0], sizes = [4, 128], strides = [1, 1]} : vector<32x128xf32> to vector<4x128xf32>
    %c104_654 = arith.constant 104 : index
    %c0_655 = arith.constant 0 : index
    %1213 = vector.load %arg38[%c104_654, %c0_655] : memref<128x128xf32, #tpu.memory_space<vmem>>, vector<4x128xf32>
    tpu.vector_store %arg38[%c104_654, %c0_655], %1212 {strides = array<i32>} : memref<128x128xf32, #tpu.memory_space<vmem>>, vector<4x128xf32>,
    %c112_656 = arith.constant 112 : index
    %c0_657 = arith.constant 0 : index
    %1214 = vector.load %arg38[%c112_656, %c0_657] : memref<128x128xf32, #tpu.memory_space<vmem>>, vector<8x128xf32>
    tpu.vector_store %arg38[%c112_656, %c0_657], %1184 {strides = array<i32>} : memref<128x128xf32, #tpu.memory_space<vmem>>, vector<8x128xf32>,
    %c124 = arith.constant 124 : index
    %c0_658 = arith.constant 0 : index
    %1215 = vector.load %arg38[%c124, %c0_658] : memref<128x128xf32, #tpu.memory_space<vmem>>, vector<1x128xf32>
    tpu.vector_store %arg38[%c124, %c0_658], %1185 {strides = array<i32>} : memref<128x128xf32, #tpu.memory_space<vmem>>, vector<1x128xf32>,
    %1216 = vector.extract_strided_slice %1183 {offsets = [28, 0], sizes = [4, 128], strides = [1, 1]} : vector<32x128xf32> to vector<4x128xf32>
    %c120_659 = arith.constant 120 : index
    %c0_660 = arith.constant 0 : index
    %1217 = vector.load %arg38[%c120_659, %c0_660] : memref<128x128xf32, #tpu.memory_space<vmem>>, vector<4x128xf32>
    tpu.vector_store %arg38[%c120_659, %c0_660], %1216 {strides = array<i32>} : memref<128x128xf32, #tpu.memory_space<vmem>>, vector<4x128xf32>,
    %c0_661 = arith.constant 0 : index
    %c0_662 = arith.constant 0 : index
    %1218 = vector.load %arg19[%c0_661, %c0_662] : memref<9x128xf32, #tpu.memory_space<vmem>>, vector<1x128xf32>
    %c1_663 = arith.constant 1 : index
    %c0_664 = arith.constant 0 : index
    %1219 = vector.load %arg19[%c1_663, %c0_664] : memref<9x128xf32, #tpu.memory_space<vmem>>, vector<1x128xf32>
    %c2_665 = arith.constant 2 : index
    %c0_666 = arith.constant 0 : index
    %1220 = vector.load %arg19[%c2_665, %c0_666] : memref<9x128xf32, #tpu.memory_space<vmem>>, vector<1x128xf32>
    %c3_667 = arith.constant 3 : index
    %c0_668 = arith.constant 0 : index
    %1221 = vector.load %arg19[%c3_667, %c0_668] : memref<9x128xf32, #tpu.memory_space<vmem>>, vector<1x128xf32>
    %c4_669 = arith.constant 4 : index
    %c0_670 = arith.constant 0 : index
    %1222 = vector.load %arg19[%c4_669, %c0_670] : memref<9x128xf32, #tpu.memory_space<vmem>>, vector<1x128xf32>
    %c5_671 = arith.constant 5 : index
    %c0_672 = arith.constant 0 : index
    %1223 = vector.load %arg19[%c5_671, %c0_672] : memref<9x128xf32, #tpu.memory_space<vmem>>, vector<1x128xf32>
    %c6_673 = arith.constant 6 : index
    %c0_674 = arith.constant 0 : index
    %1224 = vector.load %arg19[%c6_673, %c0_674] : memref<9x128xf32, #tpu.memory_space<vmem>>, vector<1x128xf32>
    %c7_675 = arith.constant 7 : index
    %c0_676 = arith.constant 0 : index
    %1225 = vector.load %arg19[%c7_675, %c0_676] : memref<9x128xf32, #tpu.memory_space<vmem>>, vector<1x128xf32>
    %c8_677 = arith.constant 8 : index
    %c0_678 = arith.constant 0 : index
    %1226 = vector.load %arg19[%c8_677, %c0_678] : memref<9x128xf32, #tpu.memory_space<vmem>>, vector<1x128xf32>
    %c0_679 = arith.constant 0 : index
    %c0_680 = arith.constant 0 : index
    %1227 = vector.load %arg20[%c0_679, %c0_680] : memref<1x128xf32, #tpu.memory_space<vmem>>, vector<1x128xf32>
    %c7_681 = arith.constant 7 : index
    %c0_682 = arith.constant 0 : index
    %1228 = vector.load %arg38[%c7_681, %c0_682] : memref<128x128xf32, #tpu.memory_space<vmem>>, vector<4x128xf32>
    %1229 = vector.broadcast %1221 : vector<1x128xf32> to vector<4x128xf32>
    %1230 = arith.mulf %1228, %1229 : vector<4x128xf32>
    %c8_683 = arith.constant 8 : index
    %c0_684 = arith.constant 0 : index
    %1231 = vector.load %arg38[%c8_683, %c0_684] : memref<128x128xf32, #tpu.memory_space<vmem>>, vector<4x128xf32>
    %1232 = vector.broadcast %1222 : vector<1x128xf32> to vector<4x128xf32>
    %1233 = arith.mulf %1231, %1232 : vector<4x128xf32>
    %1234 = arith.addf %1230, %1233 : vector<4x128xf32>
    %c9_685 = arith.constant 9 : index
    %c0_686 = arith.constant 0 : index
    %1235 = vector.load %arg38[%c9_685, %c0_686] : memref<128x128xf32, #tpu.memory_space<vmem>>, vector<4x128xf32>
    %1236 = vector.broadcast %1223 : vector<1x128xf32> to vector<4x128xf32>
    %1237 = arith.mulf %1235, %1236 : vector<4x128xf32>
    %1238 = arith.addf %1234, %1237 : vector<4x128xf32>
    %c23_687 = arith.constant 23 : index
    %c0_688 = arith.constant 0 : index
    %1239 = vector.load %arg38[%c23_687, %c0_688] : memref<128x128xf32, #tpu.memory_space<vmem>>, vector<4x128xf32>
    %1240 = vector.broadcast %1224 : vector<1x128xf32> to vector<4x128xf32>
    %1241 = arith.mulf %1239, %1240 : vector<4x128xf32>
    %1242 = arith.addf %1238, %1241 : vector<4x128xf32>
    %c24_689 = arith.constant 24 : index
    %c0_690 = arith.constant 0 : index
    %1243 = vector.load %arg38[%c24_689, %c0_690] : memref<128x128xf32, #tpu.memory_space<vmem>>, vector<4x128xf32>
    %1244 = vector.broadcast %1225 : vector<1x128xf32> to vector<4x128xf32>
    %1245 = arith.mulf %1243, %1244 : vector<4x128xf32>
    %1246 = arith.addf %1242, %1245 : vector<4x128xf32>
    %c25_691 = arith.constant 25 : index
    %c0_692 = arith.constant 0 : index
    %1247 = vector.load %arg38[%c25_691, %c0_692] : memref<128x128xf32, #tpu.memory_space<vmem>>, vector<4x128xf32>
    %1248 = vector.broadcast %1226 : vector<1x128xf32> to vector<4x128xf32>
    %1249 = arith.mulf %1247, %1248 : vector<4x128xf32>
    %1250 = arith.addf %1246, %1249 : vector<4x128xf32>
    %1251 = vector.broadcast %1227 : vector<1x128xf32> to vector<4x128xf32>
    %1252 = arith.addf %1250, %1251 : vector<4x128xf32>
    %cst_693 = arith.constant 0.000000e+00 : f32
    %1253 = vector.broadcast %cst_693 : f32 to vector<4x128xf32>
    %1254 = arith.maximumf %1252, %1253 : vector<4x128xf32>
    %c0_694 = arith.constant 0 : index
    %c0_695 = arith.constant 0 : index
    %1255 = vector.load %arg39[%c0_694, %c0_695] : memref<32x128xf32, #tpu.memory_space<vmem>>, vector<4x128xf32>
    tpu.vector_store %arg39[%c0_694, %c0_695], %1254 {strides = array<i32>} : memref<32x128xf32, #tpu.memory_space<vmem>>, vector<4x128xf32>,
    %c7_696 = arith.constant 7 : index
    %c0_697 = arith.constant 0 : index
    %1256 = vector.load %arg38[%c7_696, %c0_697] : memref<128x128xf32, #tpu.memory_space<vmem>>, vector<4x128xf32>
    %1257 = vector.broadcast %1218 : vector<1x128xf32> to vector<4x128xf32>
    %1258 = arith.mulf %1256, %1257 : vector<4x128xf32>
    %c8_698 = arith.constant 8 : index
    %c0_699 = arith.constant 0 : index
    %1259 = vector.load %arg38[%c8_698, %c0_699] : memref<128x128xf32, #tpu.memory_space<vmem>>, vector<4x128xf32>
    %1260 = vector.broadcast %1219 : vector<1x128xf32> to vector<4x128xf32>
    %1261 = arith.mulf %1259, %1260 : vector<4x128xf32>
    %1262 = arith.addf %1258, %1261 : vector<4x128xf32>
    %c9_700 = arith.constant 9 : index
    %c0_701 = arith.constant 0 : index
    %1263 = vector.load %arg38[%c9_700, %c0_701] : memref<128x128xf32, #tpu.memory_space<vmem>>, vector<4x128xf32>
    %1264 = vector.broadcast %1220 : vector<1x128xf32> to vector<4x128xf32>
    %1265 = arith.mulf %1263, %1264 : vector<4x128xf32>
    %1266 = arith.addf %1262, %1265 : vector<4x128xf32>
    %c23_702 = arith.constant 23 : index
    %c0_703 = arith.constant 0 : index
    %1267 = vector.load %arg38[%c23_702, %c0_703] : memref<128x128xf32, #tpu.memory_space<vmem>>, vector<4x128xf32>
    %1268 = vector.broadcast %1221 : vector<1x128xf32> to vector<4x128xf32>
    %1269 = arith.mulf %1267, %1268 : vector<4x128xf32>
    %1270 = arith.addf %1266, %1269 : vector<4x128xf32>
    %c24_704 = arith.constant 24 : index
    %c0_705 = arith.constant 0 : index
    %1271 = vector.load %arg38[%c24_704, %c0_705] : memref<128x128xf32, #tpu.memory_space<vmem>>, vector<4x128xf32>
    %1272 = vector.broadcast %1222 : vector<1x128xf32> to vector<4x128xf32>
    %1273 = arith.mulf %1271, %1272 : vector<4x128xf32>
    %1274 = arith.addf %1270, %1273 : vector<4x128xf32>
    %c25_706 = arith.constant 25 : index
    %c0_707 = arith.constant 0 : index
    %1275 = vector.load %arg38[%c25_706, %c0_707] : memref<128x128xf32, #tpu.memory_space<vmem>>, vector<4x128xf32>
    %1276 = vector.broadcast %1223 : vector<1x128xf32> to vector<4x128xf32>
    %1277 = arith.mulf %1275, %1276 : vector<4x128xf32>
    %1278 = arith.addf %1274, %1277 : vector<4x128xf32>
    %c39_708 = arith.constant 39 : index
    %c0_709 = arith.constant 0 : index
    %1279 = vector.load %arg38[%c39_708, %c0_709] : memref<128x128xf32, #tpu.memory_space<vmem>>, vector<4x128xf32>
    %1280 = vector.broadcast %1224 : vector<1x128xf32> to vector<4x128xf32>
    %1281 = arith.mulf %1279, %1280 : vector<4x128xf32>
    %1282 = arith.addf %1278, %1281 : vector<4x128xf32>
    %c40_710 = arith.constant 40 : index
    %c0_711 = arith.constant 0 : index
    %1283 = vector.load %arg38[%c40_710, %c0_711] : memref<128x128xf32, #tpu.memory_space<vmem>>, vector<4x128xf32>
    %1284 = vector.broadcast %1225 : vector<1x128xf32> to vector<4x128xf32>
    %1285 = arith.mulf %1283, %1284 : vector<4x128xf32>
    %1286 = arith.addf %1282, %1285 : vector<4x128xf32>
    %c41_712 = arith.constant 41 : index
    %c0_713 = arith.constant 0 : index
    %1287 = vector.load %arg38[%c41_712, %c0_713] : memref<128x128xf32, #tpu.memory_space<vmem>>, vector<4x128xf32>
    %1288 = vector.broadcast %1226 : vector<1x128xf32> to vector<4x128xf32>
    %1289 = arith.mulf %1287, %1288 : vector<4x128xf32>
    %1290 = arith.addf %1286, %1289 : vector<4x128xf32>
    %1291 = vector.broadcast %1227 : vector<1x128xf32> to vector<4x128xf32>
    %1292 = arith.addf %1290, %1291 : vector<4x128xf32>
    %cst_714 = arith.constant 0.000000e+00 : f32
    %1293 = vector.broadcast %cst_714 : f32 to vector<4x128xf32>
    %1294 = arith.maximumf %1292, %1293 : vector<4x128xf32>
    %c4_715 = arith.constant 4 : index
    %c0_716 = arith.constant 0 : index
    %1295 = vector.load %arg39[%c4_715, %c0_716] : memref<32x128xf32, #tpu.memory_space<vmem>>, vector<4x128xf32>
    tpu.vector_store %arg39[%c4_715, %c0_716], %1294 {strides = array<i32>} : memref<32x128xf32, #tpu.memory_space<vmem>>, vector<4x128xf32>,
    %c23_717 = arith.constant 23 : index
    %c0_718 = arith.constant 0 : index
    %1296 = vector.load %arg38[%c23_717, %c0_718] : memref<128x128xf32, #tpu.memory_space<vmem>>, vector<4x128xf32>
    %1297 = vector.broadcast %1218 : vector<1x128xf32> to vector<4x128xf32>
    %1298 = arith.mulf %1296, %1297 : vector<4x128xf32>
    %c24_719 = arith.constant 24 : index
    %c0_720 = arith.constant 0 : index
    %1299 = vector.load %arg38[%c24_719, %c0_720] : memref<128x128xf32, #tpu.memory_space<vmem>>, vector<4x128xf32>
    %1300 = vector.broadcast %1219 : vector<1x128xf32> to vector<4x128xf32>
    %1301 = arith.mulf %1299, %1300 : vector<4x128xf32>
    %1302 = arith.addf %1298, %1301 : vector<4x128xf32>
    %c25_721 = arith.constant 25 : index
    %c0_722 = arith.constant 0 : index
    %1303 = vector.load %arg38[%c25_721, %c0_722] : memref<128x128xf32, #tpu.memory_space<vmem>>, vector<4x128xf32>
    %1304 = vector.broadcast %1220 : vector<1x128xf32> to vector<4x128xf32>
    %1305 = arith.mulf %1303, %1304 : vector<4x128xf32>
    %1306 = arith.addf %1302, %1305 : vector<4x128xf32>
    %c39_723 = arith.constant 39 : index
    %c0_724 = arith.constant 0 : index
    %1307 = vector.load %arg38[%c39_723, %c0_724] : memref<128x128xf32, #tpu.memory_space<vmem>>, vector<4x128xf32>
    %1308 = vector.broadcast %1221 : vector<1x128xf32> to vector<4x128xf32>
    %1309 = arith.mulf %1307, %1308 : vector<4x128xf32>
    %1310 = arith.addf %1306, %1309 : vector<4x128xf32>
    %c40_725 = arith.constant 40 : index
    %c0_726 = arith.constant 0 : index
    %1311 = vector.load %arg38[%c40_725, %c0_726] : memref<128x128xf32, #tpu.memory_space<vmem>>, vector<4x128xf32>
    %1312 = vector.broadcast %1222 : vector<1x128xf32> to vector<4x128xf32>
    %1313 = arith.mulf %1311, %1312 : vector<4x128xf32>
    %1314 = arith.addf %1310, %1313 : vector<4x128xf32>
    %c41_727 = arith.constant 41 : index
    %c0_728 = arith.constant 0 : index
    %1315 = vector.load %arg38[%c41_727, %c0_728] : memref<128x128xf32, #tpu.memory_space<vmem>>, vector<4x128xf32>
    %1316 = vector.broadcast %1223 : vector<1x128xf32> to vector<4x128xf32>
    %1317 = arith.mulf %1315, %1316 : vector<4x128xf32>
    %1318 = arith.addf %1314, %1317 : vector<4x128xf32>
    %c55_729 = arith.constant 55 : index
    %c0_730 = arith.constant 0 : index
    %1319 = vector.load %arg38[%c55_729, %c0_730] : memref<128x128xf32, #tpu.memory_space<vmem>>, vector<4x128xf32>
    %1320 = vector.broadcast %1224 : vector<1x128xf32> to vector<4x128xf32>
    %1321 = arith.mulf %1319, %1320 : vector<4x128xf32>
    %1322 = arith.addf %1318, %1321 : vector<4x128xf32>
    %c56_731 = arith.constant 56 : index
    %c0_732 = arith.constant 0 : index
    %1323 = vector.load %arg38[%c56_731, %c0_732] : memref<128x128xf32, #tpu.memory_space<vmem>>, vector<4x128xf32>
    %1324 = vector.broadcast %1225 : vector<1x128xf32> to vector<4x128xf32>
    %1325 = arith.mulf %1323, %1324 : vector<4x128xf32>
    %1326 = arith.addf %1322, %1325 : vector<4x128xf32>
    %c57_733 = arith.constant 57 : index
    %c0_734 = arith.constant 0 : index
    %1327 = vector.load %arg38[%c57_733, %c0_734] : memref<128x128xf32, #tpu.memory_space<vmem>>, vector<4x128xf32>
    %1328 = vector.broadcast %1226 : vector<1x128xf32> to vector<4x128xf32>
    %1329 = arith.mulf %1327, %1328 : vector<4x128xf32>
    %1330 = arith.addf %1326, %1329 : vector<4x128xf32>
    %1331 = vector.broadcast %1227 : vector<1x128xf32> to vector<4x128xf32>
    %1332 = arith.addf %1330, %1331 : vector<4x128xf32>
    %cst_735 = arith.constant 0.000000e+00 : f32
    %1333 = vector.broadcast %cst_735 : f32 to vector<4x128xf32>
    %1334 = arith.maximumf %1332, %1333 : vector<4x128xf32>
    %c8_736 = arith.constant 8 : index
    %c0_737 = arith.constant 0 : index
    %1335 = vector.load %arg39[%c8_736, %c0_737] : memref<32x128xf32, #tpu.memory_space<vmem>>, vector<4x128xf32>
    tpu.vector_store %arg39[%c8_736, %c0_737], %1334 {strides = array<i32>} : memref<32x128xf32, #tpu.memory_space<vmem>>, vector<4x128xf32>,
    %c39_738 = arith.constant 39 : index
    %c0_739 = arith.constant 0 : index
    %1336 = vector.load %arg38[%c39_738, %c0_739] : memref<128x128xf32, #tpu.memory_space<vmem>>, vector<4x128xf32>
    %1337 = vector.broadcast %1218 : vector<1x128xf32> to vector<4x128xf32>
    %1338 = arith.mulf %1336, %1337 : vector<4x128xf32>
    %c40_740 = arith.constant 40 : index
    %c0_741 = arith.constant 0 : index
    %1339 = vector.load %arg38[%c40_740, %c0_741] : memref<128x128xf32, #tpu.memory_space<vmem>>, vector<4x128xf32>
    %1340 = vector.broadcast %1219 : vector<1x128xf32> to vector<4x128xf32>
    %1341 = arith.mulf %1339, %1340 : vector<4x128xf32>
    %1342 = arith.addf %1338, %1341 : vector<4x128xf32>
    %c41_742 = arith.constant 41 : index
    %c0_743 = arith.constant 0 : index
    %1343 = vector.load %arg38[%c41_742, %c0_743] : memref<128x128xf32, #tpu.memory_space<vmem>>, vector<4x128xf32>
    %1344 = vector.broadcast %1220 : vector<1x128xf32> to vector<4x128xf32>
    %1345 = arith.mulf %1343, %1344 : vector<4x128xf32>
    %1346 = arith.addf %1342, %1345 : vector<4x128xf32>
    %c55_744 = arith.constant 55 : index
    %c0_745 = arith.constant 0 : index
    %1347 = vector.load %arg38[%c55_744, %c0_745] : memref<128x128xf32, #tpu.memory_space<vmem>>, vector<4x128xf32>
    %1348 = vector.broadcast %1221 : vector<1x128xf32> to vector<4x128xf32>
    %1349 = arith.mulf %1347, %1348 : vector<4x128xf32>
    %1350 = arith.addf %1346, %1349 : vector<4x128xf32>
    %c56_746 = arith.constant 56 : index
    %c0_747 = arith.constant 0 : index
    %1351 = vector.load %arg38[%c56_746, %c0_747] : memref<128x128xf32, #tpu.memory_space<vmem>>, vector<4x128xf32>
    %1352 = vector.broadcast %1222 : vector<1x128xf32> to vector<4x128xf32>
    %1353 = arith.mulf %1351, %1352 : vector<4x128xf32>
    %1354 = arith.addf %1350, %1353 : vector<4x128xf32>
    %c57_748 = arith.constant 57 : index
    %c0_749 = arith.constant 0 : index
    %1355 = vector.load %arg38[%c57_748, %c0_749] : memref<128x128xf32, #tpu.memory_space<vmem>>, vector<4x128xf32>
    %1356 = vector.broadcast %1223 : vector<1x128xf32> to vector<4x128xf32>
    %1357 = arith.mulf %1355, %1356 : vector<4x128xf32>
    %1358 = arith.addf %1354, %1357 : vector<4x128xf32>
    %1359 = vector.broadcast %1227 : vector<1x128xf32> to vector<4x128xf32>
    %1360 = arith.addf %1358, %1359 : vector<4x128xf32>
    %cst_750 = arith.constant 0.000000e+00 : f32
    %1361 = vector.broadcast %cst_750 : f32 to vector<4x128xf32>
    %1362 = arith.maximumf %1360, %1361 : vector<4x128xf32>
    %c12_751 = arith.constant 12 : index
    %c0_752 = arith.constant 0 : index
    %1363 = vector.load %arg39[%c12_751, %c0_752] : memref<32x128xf32, #tpu.memory_space<vmem>>, vector<4x128xf32>
    tpu.vector_store %arg39[%c12_751, %c0_752], %1362 {strides = array<i32>} : memref<32x128xf32, #tpu.memory_space<vmem>>, vector<4x128xf32>,
    %c71_753 = arith.constant 71 : index
    %c0_754 = arith.constant 0 : index
    %1364 = vector.load %arg38[%c71_753, %c0_754] : memref<128x128xf32, #tpu.memory_space<vmem>>, vector<4x128xf32>
    %1365 = vector.broadcast %1221 : vector<1x128xf32> to vector<4x128xf32>
    %1366 = arith.mulf %1364, %1365 : vector<4x128xf32>
    %c72_755 = arith.constant 72 : index
    %c0_756 = arith.constant 0 : index
    %1367 = vector.load %arg38[%c72_755, %c0_756] : memref<128x128xf32, #tpu.memory_space<vmem>>, vector<4x128xf32>
    %1368 = vector.broadcast %1222 : vector<1x128xf32> to vector<4x128xf32>
    %1369 = arith.mulf %1367, %1368 : vector<4x128xf32>
    %1370 = arith.addf %1366, %1369 : vector<4x128xf32>
    %c73_757 = arith.constant 73 : index
    %c0_758 = arith.constant 0 : index
    %1371 = vector.load %arg38[%c73_757, %c0_758] : memref<128x128xf32, #tpu.memory_space<vmem>>, vector<4x128xf32>
    %1372 = vector.broadcast %1223 : vector<1x128xf32> to vector<4x128xf32>
    %1373 = arith.mulf %1371, %1372 : vector<4x128xf32>
    %1374 = arith.addf %1370, %1373 : vector<4x128xf32>
    %c87_759 = arith.constant 87 : index
    %c0_760 = arith.constant 0 : index
    %1375 = vector.load %arg38[%c87_759, %c0_760] : memref<128x128xf32, #tpu.memory_space<vmem>>, vector<4x128xf32>
    %1376 = vector.broadcast %1224 : vector<1x128xf32> to vector<4x128xf32>
    %1377 = arith.mulf %1375, %1376 : vector<4x128xf32>
    %1378 = arith.addf %1374, %1377 : vector<4x128xf32>
    %c88_761 = arith.constant 88 : index
    %c0_762 = arith.constant 0 : index
    %1379 = vector.load %arg38[%c88_761, %c0_762] : memref<128x128xf32, #tpu.memory_space<vmem>>, vector<4x128xf32>
    %1380 = vector.broadcast %1225 : vector<1x128xf32> to vector<4x128xf32>
    %1381 = arith.mulf %1379, %1380 : vector<4x128xf32>
    %1382 = arith.addf %1378, %1381 : vector<4x128xf32>
    %c89_763 = arith.constant 89 : index
    %c0_764 = arith.constant 0 : index
    %1383 = vector.load %arg38[%c89_763, %c0_764] : memref<128x128xf32, #tpu.memory_space<vmem>>, vector<4x128xf32>
    %1384 = vector.broadcast %1226 : vector<1x128xf32> to vector<4x128xf32>
    %1385 = arith.mulf %1383, %1384 : vector<4x128xf32>
    %1386 = arith.addf %1382, %1385 : vector<4x128xf32>
    %1387 = vector.broadcast %1227 : vector<1x128xf32> to vector<4x128xf32>
    %1388 = arith.addf %1386, %1387 : vector<4x128xf32>
    %cst_765 = arith.constant 0.000000e+00 : f32
    %1389 = vector.broadcast %cst_765 : f32 to vector<4x128xf32>
    %1390 = arith.maximumf %1388, %1389 : vector<4x128xf32>
    %c16_766 = arith.constant 16 : index
    %c0_767 = arith.constant 0 : index
    %1391 = vector.load %arg39[%c16_766, %c0_767] : memref<32x128xf32, #tpu.memory_space<vmem>>, vector<4x128xf32>
    tpu.vector_store %arg39[%c16_766, %c0_767], %1390 {strides = array<i32>} : memref<32x128xf32, #tpu.memory_space<vmem>>, vector<4x128xf32>,
    %c71_768 = arith.constant 71 : index
    %c0_769 = arith.constant 0 : index
    %1392 = vector.load %arg38[%c71_768, %c0_769] : memref<128x128xf32, #tpu.memory_space<vmem>>, vector<4x128xf32>
    %1393 = vector.broadcast %1218 : vector<1x128xf32> to vector<4x128xf32>
    %1394 = arith.mulf %1392, %1393 : vector<4x128xf32>
    %c72_770 = arith.constant 72 : index
    %c0_771 = arith.constant 0 : index
    %1395 = vector.load %arg38[%c72_770, %c0_771] : memref<128x128xf32, #tpu.memory_space<vmem>>, vector<4x128xf32>
    %1396 = vector.broadcast %1219 : vector<1x128xf32> to vector<4x128xf32>
    %1397 = arith.mulf %1395, %1396 : vector<4x128xf32>
    %1398 = arith.addf %1394, %1397 : vector<4x128xf32>
    %c73_772 = arith.constant 73 : index
    %c0_773 = arith.constant 0 : index
    %1399 = vector.load %arg38[%c73_772, %c0_773] : memref<128x128xf32, #tpu.memory_space<vmem>>, vector<4x128xf32>
    %1400 = vector.broadcast %1220 : vector<1x128xf32> to vector<4x128xf32>
    %1401 = arith.mulf %1399, %1400 : vector<4x128xf32>
    %1402 = arith.addf %1398, %1401 : vector<4x128xf32>
    %c87_774 = arith.constant 87 : index
    %c0_775 = arith.constant 0 : index
    %1403 = vector.load %arg38[%c87_774, %c0_775] : memref<128x128xf32, #tpu.memory_space<vmem>>, vector<4x128xf32>
    %1404 = vector.broadcast %1221 : vector<1x128xf32> to vector<4x128xf32>
    %1405 = arith.mulf %1403, %1404 : vector<4x128xf32>
    %1406 = arith.addf %1402, %1405 : vector<4x128xf32>
    %c88_776 = arith.constant 88 : index
    %c0_777 = arith.constant 0 : index
    %1407 = vector.load %arg38[%c88_776, %c0_777] : memref<128x128xf32, #tpu.memory_space<vmem>>, vector<4x128xf32>
    %1408 = vector.broadcast %1222 : vector<1x128xf32> to vector<4x128xf32>
    %1409 = arith.mulf %1407, %1408 : vector<4x128xf32>
    %1410 = arith.addf %1406, %1409 : vector<4x128xf32>
    %c89_778 = arith.constant 89 : index
    %c0_779 = arith.constant 0 : index
    %1411 = vector.load %arg38[%c89_778, %c0_779] : memref<128x128xf32, #tpu.memory_space<vmem>>, vector<4x128xf32>
    %1412 = vector.broadcast %1223 : vector<1x128xf32> to vector<4x128xf32>
    %1413 = arith.mulf %1411, %1412 : vector<4x128xf32>
    %1414 = arith.addf %1410, %1413 : vector<4x128xf32>
    %c103_780 = arith.constant 103 : index
    %c0_781 = arith.constant 0 : index
    %1415 = vector.load %arg38[%c103_780, %c0_781] : memref<128x128xf32, #tpu.memory_space<vmem>>, vector<4x128xf32>
    %1416 = vector.broadcast %1224 : vector<1x128xf32> to vector<4x128xf32>
    %1417 = arith.mulf %1415, %1416 : vector<4x128xf32>
    %1418 = arith.addf %1414, %1417 : vector<4x128xf32>
    %c104_782 = arith.constant 104 : index
    %c0_783 = arith.constant 0 : index
    %1419 = vector.load %arg38[%c104_782, %c0_783] : memref<128x128xf32, #tpu.memory_space<vmem>>, vector<4x128xf32>
    %1420 = vector.broadcast %1225 : vector<1x128xf32> to vector<4x128xf32>
    %1421 = arith.mulf %1419, %1420 : vector<4x128xf32>
    %1422 = arith.addf %1418, %1421 : vector<4x128xf32>
    %c105_784 = arith.constant 105 : index
    %c0_785 = arith.constant 0 : index
    %1423 = vector.load %arg38[%c105_784, %c0_785] : memref<128x128xf32, #tpu.memory_space<vmem>>, vector<4x128xf32>
    %1424 = vector.broadcast %1226 : vector<1x128xf32> to vector<4x128xf32>
    %1425 = arith.mulf %1423, %1424 : vector<4x128xf32>
    %1426 = arith.addf %1422, %1425 : vector<4x128xf32>
    %1427 = vector.broadcast %1227 : vector<1x128xf32> to vector<4x128xf32>
    %1428 = arith.addf %1426, %1427 : vector<4x128xf32>
    %cst_786 = arith.constant 0.000000e+00 : f32
    %1429 = vector.broadcast %cst_786 : f32 to vector<4x128xf32>
    %1430 = arith.maximumf %1428, %1429 : vector<4x128xf32>
    %c20_787 = arith.constant 20 : index
    %c0_788 = arith.constant 0 : index
    %1431 = vector.load %arg39[%c20_787, %c0_788] : memref<32x128xf32, #tpu.memory_space<vmem>>, vector<4x128xf32>
    tpu.vector_store %arg39[%c20_787, %c0_788], %1430 {strides = array<i32>} : memref<32x128xf32, #tpu.memory_space<vmem>>, vector<4x128xf32>,
    %c87_789 = arith.constant 87 : index
    %c0_790 = arith.constant 0 : index
    %1432 = vector.load %arg38[%c87_789, %c0_790] : memref<128x128xf32, #tpu.memory_space<vmem>>, vector<4x128xf32>
    %1433 = vector.broadcast %1218 : vector<1x128xf32> to vector<4x128xf32>
    %1434 = arith.mulf %1432, %1433 : vector<4x128xf32>
    %c88_791 = arith.constant 88 : index
    %c0_792 = arith.constant 0 : index
    %1435 = vector.load %arg38[%c88_791, %c0_792] : memref<128x128xf32, #tpu.memory_space<vmem>>, vector<4x128xf32>
    %1436 = vector.broadcast %1219 : vector<1x128xf32> to vector<4x128xf32>
    %1437 = arith.mulf %1435, %1436 : vector<4x128xf32>
    %1438 = arith.addf %1434, %1437 : vector<4x128xf32>
    %c89_793 = arith.constant 89 : index
    %c0_794 = arith.constant 0 : index
    %1439 = vector.load %arg38[%c89_793, %c0_794] : memref<128x128xf32, #tpu.memory_space<vmem>>, vector<4x128xf32>
    %1440 = vector.broadcast %1220 : vector<1x128xf32> to vector<4x128xf32>
    %1441 = arith.mulf %1439, %1440 : vector<4x128xf32>
    %1442 = arith.addf %1438, %1441 : vector<4x128xf32>
    %c103_795 = arith.constant 103 : index
    %c0_796 = arith.constant 0 : index
    %1443 = vector.load %arg38[%c103_795, %c0_796] : memref<128x128xf32, #tpu.memory_space<vmem>>, vector<4x128xf32>
    %1444 = vector.broadcast %1221 : vector<1x128xf32> to vector<4x128xf32>
    %1445 = arith.mulf %1443, %1444 : vector<4x128xf32>
    %1446 = arith.addf %1442, %1445 : vector<4x128xf32>
    %c104_797 = arith.constant 104 : index
    %c0_798 = arith.constant 0 : index
    %1447 = vector.load %arg38[%c104_797, %c0_798] : memref<128x128xf32, #tpu.memory_space<vmem>>, vector<4x128xf32>
    %1448 = vector.broadcast %1222 : vector<1x128xf32> to vector<4x128xf32>
    %1449 = arith.mulf %1447, %1448 : vector<4x128xf32>
    %1450 = arith.addf %1446, %1449 : vector<4x128xf32>
    %c105_799 = arith.constant 105 : index
    %c0_800 = arith.constant 0 : index
    %1451 = vector.load %arg38[%c105_799, %c0_800] : memref<128x128xf32, #tpu.memory_space<vmem>>, vector<4x128xf32>
    %1452 = vector.broadcast %1223 : vector<1x128xf32> to vector<4x128xf32>
    %1453 = arith.mulf %1451, %1452 : vector<4x128xf32>
    %1454 = arith.addf %1450, %1453 : vector<4x128xf32>
    %c119_801 = arith.constant 119 : index
    %c0_802 = arith.constant 0 : index
    %1455 = vector.load %arg38[%c119_801, %c0_802] : memref<128x128xf32, #tpu.memory_space<vmem>>, vector<4x128xf32>
    %1456 = vector.broadcast %1224 : vector<1x128xf32> to vector<4x128xf32>
    %1457 = arith.mulf %1455, %1456 : vector<4x128xf32>
    %1458 = arith.addf %1454, %1457 : vector<4x128xf32>
    %c120_803 = arith.constant 120 : index
    %c0_804 = arith.constant 0 : index
    %1459 = vector.load %arg38[%c120_803, %c0_804] : memref<128x128xf32, #tpu.memory_space<vmem>>, vector<4x128xf32>
    %1460 = vector.broadcast %1225 : vector<1x128xf32> to vector<4x128xf32>
    %1461 = arith.mulf %1459, %1460 : vector<4x128xf32>
    %1462 = arith.addf %1458, %1461 : vector<4x128xf32>
    %c121_805 = arith.constant 121 : index
    %c0_806 = arith.constant 0 : index
    %1463 = vector.load %arg38[%c121_805, %c0_806] : memref<128x128xf32, #tpu.memory_space<vmem>>, vector<4x128xf32>
    %1464 = vector.broadcast %1226 : vector<1x128xf32> to vector<4x128xf32>
    %1465 = arith.mulf %1463, %1464 : vector<4x128xf32>
    %1466 = arith.addf %1462, %1465 : vector<4x128xf32>
    %1467 = vector.broadcast %1227 : vector<1x128xf32> to vector<4x128xf32>
    %1468 = arith.addf %1466, %1467 : vector<4x128xf32>
    %cst_807 = arith.constant 0.000000e+00 : f32
    %1469 = vector.broadcast %cst_807 : f32 to vector<4x128xf32>
    %1470 = arith.maximumf %1468, %1469 : vector<4x128xf32>
    %c24_808 = arith.constant 24 : index
    %c0_809 = arith.constant 0 : index
    %1471 = vector.load %arg39[%c24_808, %c0_809] : memref<32x128xf32, #tpu.memory_space<vmem>>, vector<4x128xf32>
    tpu.vector_store %arg39[%c24_808, %c0_809], %1470 {strides = array<i32>} : memref<32x128xf32, #tpu.memory_space<vmem>>, vector<4x128xf32>,
    %c103_810 = arith.constant 103 : index
    %c0_811 = arith.constant 0 : index
    %1472 = vector.load %arg38[%c103_810, %c0_811] : memref<128x128xf32, #tpu.memory_space<vmem>>, vector<4x128xf32>
    %1473 = vector.broadcast %1218 : vector<1x128xf32> to vector<4x128xf32>
    %1474 = arith.mulf %1472, %1473 : vector<4x128xf32>
    %c104_812 = arith.constant 104 : index
    %c0_813 = arith.constant 0 : index
    %1475 = vector.load %arg38[%c104_812, %c0_813] : memref<128x128xf32, #tpu.memory_space<vmem>>, vector<4x128xf32>
    %1476 = vector.broadcast %1219 : vector<1x128xf32> to vector<4x128xf32>
    %1477 = arith.mulf %1475, %1476 : vector<4x128xf32>
    %1478 = arith.addf %1474, %1477 : vector<4x128xf32>
    %c105_814 = arith.constant 105 : index
    %c0_815 = arith.constant 0 : index
    %1479 = vector.load %arg38[%c105_814, %c0_815] : memref<128x128xf32, #tpu.memory_space<vmem>>, vector<4x128xf32>
    %1480 = vector.broadcast %1220 : vector<1x128xf32> to vector<4x128xf32>
    %1481 = arith.mulf %1479, %1480 : vector<4x128xf32>
    %1482 = arith.addf %1478, %1481 : vector<4x128xf32>
    %c119_816 = arith.constant 119 : index
    %c0_817 = arith.constant 0 : index
    %1483 = vector.load %arg38[%c119_816, %c0_817] : memref<128x128xf32, #tpu.memory_space<vmem>>, vector<4x128xf32>
    %1484 = vector.broadcast %1221 : vector<1x128xf32> to vector<4x128xf32>
    %1485 = arith.mulf %1483, %1484 : vector<4x128xf32>
    %1486 = arith.addf %1482, %1485 : vector<4x128xf32>
    %c120_818 = arith.constant 120 : index
    %c0_819 = arith.constant 0 : index
    %1487 = vector.load %arg38[%c120_818, %c0_819] : memref<128x128xf32, #tpu.memory_space<vmem>>, vector<4x128xf32>
    %1488 = vector.broadcast %1222 : vector<1x128xf32> to vector<4x128xf32>
    %1489 = arith.mulf %1487, %1488 : vector<4x128xf32>
    %1490 = arith.addf %1486, %1489 : vector<4x128xf32>
    %c121_820 = arith.constant 121 : index
    %c0_821 = arith.constant 0 : index
    %1491 = vector.load %arg38[%c121_820, %c0_821] : memref<128x128xf32, #tpu.memory_space<vmem>>, vector<4x128xf32>
    %1492 = vector.broadcast %1223 : vector<1x128xf32> to vector<4x128xf32>
    %1493 = arith.mulf %1491, %1492 : vector<4x128xf32>
    %1494 = arith.addf %1490, %1493 : vector<4x128xf32>
    %1495 = vector.broadcast %1227 : vector<1x128xf32> to vector<4x128xf32>
    %1496 = arith.addf %1494, %1495 : vector<4x128xf32>
    %cst_822 = arith.constant 0.000000e+00 : f32
    %1497 = vector.broadcast %cst_822 : f32 to vector<4x128xf32>
    %1498 = arith.maximumf %1496, %1497 : vector<4x128xf32>
    %c28_823 = arith.constant 28 : index
    %c0_824 = arith.constant 0 : index
    %1499 = vector.load %arg39[%c28_823, %c0_824] : memref<32x128xf32, #tpu.memory_space<vmem>>, vector<4x128xf32>
    tpu.vector_store %arg39[%c28_823, %c0_824], %1498 {strides = array<i32>} : memref<32x128xf32, #tpu.memory_space<vmem>>, vector<4x128xf32>,
    %c0_825 = arith.constant 0 : index
    %c0_826 = arith.constant 0 : index
    %1500 = vector.load %arg39[%c0_825, %c0_826] : memref<32x128xf32, #tpu.memory_space<vmem>>, vector<32x128xf32>
    %1501 = arith.truncf %1500 : vector<32x128xf32> to vector<32x128xbf16>
    %c0_827 = arith.constant 0 : index
    %c0_828 = arith.constant 0 : index
    %1502 = vector.load %arg21[%c0_827, %c0_828] : memref<128x128xbf16, #tpu.memory_space<vmem>>, vector<128x128xbf16>
    %cst_829 = arith.constant dense<0.000000e+00> : vector<32x128xf32>
    %1503 = tpu.matmul %1501, %1502, %cst_829 {dimension_numbers = #tpu.dot_dimension_numbers<[1], [0], [0], [1], [0, 0, 1, 1], [], []>} : vector<32x128xbf16>, vector<128x128xbf16>, vector<32x128xf32> -> vector<32x128xf32>
    %c0_830 = arith.constant 0 : index
    %c0_831 = arith.constant 0 : index
    %1504 = vector.load %arg22[%c0_830, %c0_831] : memref<1x128xf32, #tpu.memory_space<vmem>>, vector<1x128xf32>
    %1505 = vector.broadcast %1504 : vector<1x128xf32> to vector<32x128xf32>
    %1506 = arith.addf %1503, %1505 : vector<32x128xf32>
    %1507 = arith.addf %1506, %1175 : vector<32x128xf32>
    %1508 = arith.truncf %1507 : vector<32x128xf32> to vector<32x128xbf16>
    %c0_832 = arith.constant 0 : index
    %c0_833 = arith.constant 0 : index
    %1509 = vector.load %arg23[%c0_832, %c0_833] : memref<128x128xbf16, #tpu.memory_space<vmem>>, vector<128x128xbf16>
    %cst_834 = arith.constant dense<0.000000e+00> : vector<32x128xf32>
    %1510 = tpu.matmul %1508, %1509, %cst_834 {dimension_numbers = #tpu.dot_dimension_numbers<[1], [0], [0], [1], [0, 0, 1, 1], [], []>} : vector<32x128xbf16>, vector<128x128xbf16>, vector<32x128xf32> -> vector<32x128xf32>
    %c0_835 = arith.constant 0 : index
    %c0_836 = arith.constant 0 : index
    %1511 = vector.load %arg24[%c0_835, %c0_836] : memref<1x128xf32, #tpu.memory_space<vmem>>, vector<1x128xf32>
    %1512 = vector.broadcast %1511 : vector<1x128xf32> to vector<32x128xf32>
    %1513 = arith.addf %1510, %1512 : vector<32x128xf32>
    %cst_837 = arith.constant 3.000000e+00 : f32
    %1514 = vector.broadcast %cst_837 : f32 to vector<32x128xf32>
    %1515 = arith.addf %1513, %1514 : vector<32x128xf32>
    %cst_838 = arith.constant 0.000000e+00 : f32
    %cst_839 = arith.constant 6.000000e+00 : f32
    %1516 = vector.broadcast %cst_838 : f32 to vector<32x128xf32>
    %1517 = arith.maximumf %1516, %1515 : vector<32x128xf32>
    %1518 = vector.broadcast %cst_839 : f32 to vector<32x128xf32>
    %1519 = arith.minimumf %1518, %1517 : vector<32x128xf32>
    %cst_840 = arith.constant 0.166666672 : f32
    %1520 = vector.broadcast %cst_840 : f32 to vector<32x128xf32>
    %1521 = arith.mulf %1519, %1520 : vector<32x128xf32>
    %1522 = arith.mulf %1513, %1521 : vector<32x128xf32>
    %cst_841 = arith.constant 0.000000e+00 : f32
    %1523 = vector.broadcast %cst_841 : f32 to vector<8x128xf32>
    %cst_842 = arith.constant 0.000000e+00 : f32
    %1524 = vector.broadcast %cst_842 : f32 to vector<1x128xf32>
    %c0_843 = arith.constant 0 : index
    %c0_844 = arith.constant 0 : index
    %1525 = vector.load %arg40[%c0_843, %c0_844] : memref<128x128xf32, #tpu.memory_space<vmem>>, vector<8x128xf32>
    tpu.vector_store %arg40[%c0_843, %c0_844], %1523 {strides = array<i32>} : memref<128x128xf32, #tpu.memory_space<vmem>>, vector<8x128xf32>,
    %c12_845 = arith.constant 12 : index
    %c0_846 = arith.constant 0 : index
    %1526 = vector.load %arg40[%c12_845, %c0_846] : memref<128x128xf32, #tpu.memory_space<vmem>>, vector<1x128xf32>
    tpu.vector_store %arg40[%c12_845, %c0_846], %1524 {strides = array<i32>} : memref<128x128xf32, #tpu.memory_space<vmem>>, vector<1x128xf32>,
    %1527 = vector.extract_strided_slice %1522 {offsets = [0, 0], sizes = [4, 128], strides = [1, 1]} : vector<32x128xf32> to vector<4x128xf32>
    %c8_847 = arith.constant 8 : index
    %c0_848 = arith.constant 0 : index
    %1528 = vector.load %arg40[%c8_847, %c0_848] : memref<128x128xf32, #tpu.memory_space<vmem>>, vector<4x128xf32>
    tpu.vector_store %arg40[%c8_847, %c0_848], %1527 {strides = array<i32>} : memref<128x128xf32, #tpu.memory_space<vmem>>, vector<4x128xf32>,
    %c16_849 = arith.constant 16 : index
    %c0_850 = arith.constant 0 : index
    %1529 = vector.load %arg40[%c16_849, %c0_850] : memref<128x128xf32, #tpu.memory_space<vmem>>, vector<8x128xf32>
    tpu.vector_store %arg40[%c16_849, %c0_850], %1523 {strides = array<i32>} : memref<128x128xf32, #tpu.memory_space<vmem>>, vector<8x128xf32>,
    %c28_851 = arith.constant 28 : index
    %c0_852 = arith.constant 0 : index
    %1530 = vector.load %arg40[%c28_851, %c0_852] : memref<128x128xf32, #tpu.memory_space<vmem>>, vector<1x128xf32>
    tpu.vector_store %arg40[%c28_851, %c0_852], %1524 {strides = array<i32>} : memref<128x128xf32, #tpu.memory_space<vmem>>, vector<1x128xf32>,
    %1531 = vector.extract_strided_slice %1522 {offsets = [4, 0], sizes = [4, 128], strides = [1, 1]} : vector<32x128xf32> to vector<4x128xf32>
    %c24_853 = arith.constant 24 : index
    %c0_854 = arith.constant 0 : index
    %1532 = vector.load %arg40[%c24_853, %c0_854] : memref<128x128xf32, #tpu.memory_space<vmem>>, vector<4x128xf32>
    tpu.vector_store %arg40[%c24_853, %c0_854], %1531 {strides = array<i32>} : memref<128x128xf32, #tpu.memory_space<vmem>>, vector<4x128xf32>,
    %c32_855 = arith.constant 32 : index
    %c0_856 = arith.constant 0 : index
    %1533 = vector.load %arg40[%c32_855, %c0_856] : memref<128x128xf32, #tpu.memory_space<vmem>>, vector<8x128xf32>
    tpu.vector_store %arg40[%c32_855, %c0_856], %1523 {strides = array<i32>} : memref<128x128xf32, #tpu.memory_space<vmem>>, vector<8x128xf32>,
    %c44_857 = arith.constant 44 : index
    %c0_858 = arith.constant 0 : index
    %1534 = vector.load %arg40[%c44_857, %c0_858] : memref<128x128xf32, #tpu.memory_space<vmem>>, vector<1x128xf32>
    tpu.vector_store %arg40[%c44_857, %c0_858], %1524 {strides = array<i32>} : memref<128x128xf32, #tpu.memory_space<vmem>>, vector<1x128xf32>,
    %1535 = vector.extract_strided_slice %1522 {offsets = [8, 0], sizes = [4, 128], strides = [1, 1]} : vector<32x128xf32> to vector<4x128xf32>
    %c40_859 = arith.constant 40 : index
    %c0_860 = arith.constant 0 : index
    %1536 = vector.load %arg40[%c40_859, %c0_860] : memref<128x128xf32, #tpu.memory_space<vmem>>, vector<4x128xf32>
    tpu.vector_store %arg40[%c40_859, %c0_860], %1535 {strides = array<i32>} : memref<128x128xf32, #tpu.memory_space<vmem>>, vector<4x128xf32>,
    %c48_861 = arith.constant 48 : index
    %c0_862 = arith.constant 0 : index
    %1537 = vector.load %arg40[%c48_861, %c0_862] : memref<128x128xf32, #tpu.memory_space<vmem>>, vector<8x128xf32>
    tpu.vector_store %arg40[%c48_861, %c0_862], %1523 {strides = array<i32>} : memref<128x128xf32, #tpu.memory_space<vmem>>, vector<8x128xf32>,
    %c60_863 = arith.constant 60 : index
    %c0_864 = arith.constant 0 : index
    %1538 = vector.load %arg40[%c60_863, %c0_864] : memref<128x128xf32, #tpu.memory_space<vmem>>, vector<1x128xf32>
    tpu.vector_store %arg40[%c60_863, %c0_864], %1524 {strides = array<i32>} : memref<128x128xf32, #tpu.memory_space<vmem>>, vector<1x128xf32>,
    %1539 = vector.extract_strided_slice %1522 {offsets = [12, 0], sizes = [4, 128], strides = [1, 1]} : vector<32x128xf32> to vector<4x128xf32>
    %c56_865 = arith.constant 56 : index
    %c0_866 = arith.constant 0 : index
    %1540 = vector.load %arg40[%c56_865, %c0_866] : memref<128x128xf32, #tpu.memory_space<vmem>>, vector<4x128xf32>
    tpu.vector_store %arg40[%c56_865, %c0_866], %1539 {strides = array<i32>} : memref<128x128xf32, #tpu.memory_space<vmem>>, vector<4x128xf32>,
    %c64_867 = arith.constant 64 : index
    %c0_868 = arith.constant 0 : index
    %1541 = vector.load %arg40[%c64_867, %c0_868] : memref<128x128xf32, #tpu.memory_space<vmem>>, vector<8x128xf32>
    tpu.vector_store %arg40[%c64_867, %c0_868], %1523 {strides = array<i32>} : memref<128x128xf32, #tpu.memory_space<vmem>>, vector<8x128xf32>,
    %c76_869 = arith.constant 76 : index
    %c0_870 = arith.constant 0 : index
    %1542 = vector.load %arg40[%c76_869, %c0_870] : memref<128x128xf32, #tpu.memory_space<vmem>>, vector<1x128xf32>
    tpu.vector_store %arg40[%c76_869, %c0_870], %1524 {strides = array<i32>} : memref<128x128xf32, #tpu.memory_space<vmem>>, vector<1x128xf32>,
    %1543 = vector.extract_strided_slice %1522 {offsets = [16, 0], sizes = [4, 128], strides = [1, 1]} : vector<32x128xf32> to vector<4x128xf32>
    %c72_871 = arith.constant 72 : index
    %c0_872 = arith.constant 0 : index
    %1544 = vector.load %arg40[%c72_871, %c0_872] : memref<128x128xf32, #tpu.memory_space<vmem>>, vector<4x128xf32>
    tpu.vector_store %arg40[%c72_871, %c0_872], %1543 {strides = array<i32>} : memref<128x128xf32, #tpu.memory_space<vmem>>, vector<4x128xf32>,
    %c80_873 = arith.constant 80 : index
    %c0_874 = arith.constant 0 : index
    %1545 = vector.load %arg40[%c80_873, %c0_874] : memref<128x128xf32, #tpu.memory_space<vmem>>, vector<8x128xf32>
    tpu.vector_store %arg40[%c80_873, %c0_874], %1523 {strides = array<i32>} : memref<128x128xf32, #tpu.memory_space<vmem>>, vector<8x128xf32>,
    %c92_875 = arith.constant 92 : index
    %c0_876 = arith.constant 0 : index
    %1546 = vector.load %arg40[%c92_875, %c0_876] : memref<128x128xf32, #tpu.memory_space<vmem>>, vector<1x128xf32>
    tpu.vector_store %arg40[%c92_875, %c0_876], %1524 {strides = array<i32>} : memref<128x128xf32, #tpu.memory_space<vmem>>, vector<1x128xf32>,
    %1547 = vector.extract_strided_slice %1522 {offsets = [20, 0], sizes = [4, 128], strides = [1, 1]} : vector<32x128xf32> to vector<4x128xf32>
    %c88_877 = arith.constant 88 : index
    %c0_878 = arith.constant 0 : index
    %1548 = vector.load %arg40[%c88_877, %c0_878] : memref<128x128xf32, #tpu.memory_space<vmem>>, vector<4x128xf32>
    tpu.vector_store %arg40[%c88_877, %c0_878], %1547 {strides = array<i32>} : memref<128x128xf32, #tpu.memory_space<vmem>>, vector<4x128xf32>,
    %c96_879 = arith.constant 96 : index
    %c0_880 = arith.constant 0 : index
    %1549 = vector.load %arg40[%c96_879, %c0_880] : memref<128x128xf32, #tpu.memory_space<vmem>>, vector<8x128xf32>
    tpu.vector_store %arg40[%c96_879, %c0_880], %1523 {strides = array<i32>} : memref<128x128xf32, #tpu.memory_space<vmem>>, vector<8x128xf32>,
    %c108_881 = arith.constant 108 : index
    %c0_882 = arith.constant 0 : index
    %1550 = vector.load %arg40[%c108_881, %c0_882] : memref<128x128xf32, #tpu.memory_space<vmem>>, vector<1x128xf32>
    tpu.vector_store %arg40[%c108_881, %c0_882], %1524 {strides = array<i32>} : memref<128x128xf32, #tpu.memory_space<vmem>>, vector<1x128xf32>,
    %1551 = vector.extract_strided_slice %1522 {offsets = [24, 0], sizes = [4, 128], strides = [1, 1]} : vector<32x128xf32> to vector<4x128xf32>
    %c104_883 = arith.constant 104 : index
    %c0_884 = arith.constant 0 : index
    %1552 = vector.load %arg40[%c104_883, %c0_884] : memref<128x128xf32, #tpu.memory_space<vmem>>, vector<4x128xf32>
    tpu.vector_store %arg40[%c104_883, %c0_884], %1551 {strides = array<i32>} : memref<128x128xf32, #tpu.memory_space<vmem>>, vector<4x128xf32>,
    %c112_885 = arith.constant 112 : index
    %c0_886 = arith.constant 0 : index
    %1553 = vector.load %arg40[%c112_885, %c0_886] : memref<128x128xf32, #tpu.memory_space<vmem>>, vector<8x128xf32>
    tpu.vector_store %arg40[%c112_885, %c0_886], %1523 {strides = array<i32>} : memref<128x128xf32, #tpu.memory_space<vmem>>, vector<8x128xf32>,
    %c124_887 = arith.constant 124 : index
    %c0_888 = arith.constant 0 : index
    %1554 = vector.load %arg40[%c124_887, %c0_888] : memref<128x128xf32, #tpu.memory_space<vmem>>, vector<1x128xf32>
    tpu.vector_store %arg40[%c124_887, %c0_888], %1524 {strides = array<i32>} : memref<128x128xf32, #tpu.memory_space<vmem>>, vector<1x128xf32>,
    %1555 = vector.extract_strided_slice %1522 {offsets = [28, 0], sizes = [4, 128], strides = [1, 1]} : vector<32x128xf32> to vector<4x128xf32>
    %c120_889 = arith.constant 120 : index
    %c0_890 = arith.constant 0 : index
    %1556 = vector.load %arg40[%c120_889, %c0_890] : memref<128x128xf32, #tpu.memory_space<vmem>>, vector<4x128xf32>
    tpu.vector_store %arg40[%c120_889, %c0_890], %1555 {strides = array<i32>} : memref<128x128xf32, #tpu.memory_space<vmem>>, vector<4x128xf32>,
    %c0_891 = arith.constant 0 : index
    %c0_892 = arith.constant 0 : index
    %1557 = vector.load %arg25[%c0_891, %c0_892] : memref<25x128xf32, #tpu.memory_space<vmem>>, vector<1x128xf32>
    %c1_893 = arith.constant 1 : index
    %c0_894 = arith.constant 0 : index
    %1558 = vector.load %arg25[%c1_893, %c0_894] : memref<25x128xf32, #tpu.memory_space<vmem>>, vector<1x128xf32>
    %c2_895 = arith.constant 2 : index
    %c0_896 = arith.constant 0 : index
    %1559 = vector.load %arg25[%c2_895, %c0_896] : memref<25x128xf32, #tpu.memory_space<vmem>>, vector<1x128xf32>
    %c3_897 = arith.constant 3 : index
    %c0_898 = arith.constant 0 : index
    %1560 = vector.load %arg25[%c3_897, %c0_898] : memref<25x128xf32, #tpu.memory_space<vmem>>, vector<1x128xf32>
    %c4_899 = arith.constant 4 : index
    %c0_900 = arith.constant 0 : index
    %1561 = vector.load %arg25[%c4_899, %c0_900] : memref<25x128xf32, #tpu.memory_space<vmem>>, vector<1x128xf32>
    %c5_901 = arith.constant 5 : index
    %c0_902 = arith.constant 0 : index
    %1562 = vector.load %arg25[%c5_901, %c0_902] : memref<25x128xf32, #tpu.memory_space<vmem>>, vector<1x128xf32>
    %c6_903 = arith.constant 6 : index
    %c0_904 = arith.constant 0 : index
    %1563 = vector.load %arg25[%c6_903, %c0_904] : memref<25x128xf32, #tpu.memory_space<vmem>>, vector<1x128xf32>
    %c7_905 = arith.constant 7 : index
    %c0_906 = arith.constant 0 : index
    %1564 = vector.load %arg25[%c7_905, %c0_906] : memref<25x128xf32, #tpu.memory_space<vmem>>, vector<1x128xf32>
    %c8_907 = arith.constant 8 : index
    %c0_908 = arith.constant 0 : index
    %1565 = vector.load %arg25[%c8_907, %c0_908] : memref<25x128xf32, #tpu.memory_space<vmem>>, vector<1x128xf32>
    %c9_909 = arith.constant 9 : index
    %c0_910 = arith.constant 0 : index
    %1566 = vector.load %arg25[%c9_909, %c0_910] : memref<25x128xf32, #tpu.memory_space<vmem>>, vector<1x128xf32>
    %c10 = arith.constant 10 : index
    %c0_911 = arith.constant 0 : index
    %1567 = vector.load %arg25[%c10, %c0_911] : memref<25x128xf32, #tpu.memory_space<vmem>>, vector<1x128xf32>
    %c11 = arith.constant 11 : index
    %c0_912 = arith.constant 0 : index
    %1568 = vector.load %arg25[%c11, %c0_912] : memref<25x128xf32, #tpu.memory_space<vmem>>, vector<1x128xf32>
    %c12_913 = arith.constant 12 : index
    %c0_914 = arith.constant 0 : index
    %1569 = vector.load %arg25[%c12_913, %c0_914] : memref<25x128xf32, #tpu.memory_space<vmem>>, vector<1x128xf32>
    %c13 = arith.constant 13 : index
    %c0_915 = arith.constant 0 : index
    %1570 = vector.load %arg25[%c13, %c0_915] : memref<25x128xf32, #tpu.memory_space<vmem>>, vector<1x128xf32>
    %c14 = arith.constant 14 : index
    %c0_916 = arith.constant 0 : index
    %1571 = vector.load %arg25[%c14, %c0_916] : memref<25x128xf32, #tpu.memory_space<vmem>>, vector<1x128xf32>
    %c15 = arith.constant 15 : index
    %c0_917 = arith.constant 0 : index
    %1572 = vector.load %arg25[%c15, %c0_917] : memref<25x128xf32, #tpu.memory_space<vmem>>, vector<1x128xf32>
    %c16_918 = arith.constant 16 : index
    %c0_919 = arith.constant 0 : index
    %1573 = vector.load %arg25[%c16_918, %c0_919] : memref<25x128xf32, #tpu.memory_space<vmem>>, vector<1x128xf32>
    %c17 = arith.constant 17 : index
    %c0_920 = arith.constant 0 : index
    %1574 = vector.load %arg25[%c17, %c0_920] : memref<25x128xf32, #tpu.memory_space<vmem>>, vector<1x128xf32>
    %c18 = arith.constant 18 : index
    %c0_921 = arith.constant 0 : index
    %1575 = vector.load %arg25[%c18, %c0_921] : memref<25x128xf32, #tpu.memory_space<vmem>>, vector<1x128xf32>
    %c19 = arith.constant 19 : index
    %c0_922 = arith.constant 0 : index
    %1576 = vector.load %arg25[%c19, %c0_922] : memref<25x128xf32, #tpu.memory_space<vmem>>, vector<1x128xf32>
    %c20_923 = arith.constant 20 : index
    %c0_924 = arith.constant 0 : index
    %1577 = vector.load %arg25[%c20_923, %c0_924] : memref<25x128xf32, #tpu.memory_space<vmem>>, vector<1x128xf32>
    %c21 = arith.constant 21 : index
    %c0_925 = arith.constant 0 : index
    %1578 = vector.load %arg25[%c21, %c0_925] : memref<25x128xf32, #tpu.memory_space<vmem>>, vector<1x128xf32>
    %c22 = arith.constant 22 : index
    %c0_926 = arith.constant 0 : index
    %1579 = vector.load %arg25[%c22, %c0_926] : memref<25x128xf32, #tpu.memory_space<vmem>>, vector<1x128xf32>
    %c23_927 = arith.constant 23 : index
    %c0_928 = arith.constant 0 : index
    %1580 = vector.load %arg25[%c23_927, %c0_928] : memref<25x128xf32, #tpu.memory_space<vmem>>, vector<1x128xf32>
    %c24_929 = arith.constant 24 : index
    %c0_930 = arith.constant 0 : index
    %1581 = vector.load %arg25[%c24_929, %c0_930] : memref<25x128xf32, #tpu.memory_space<vmem>>, vector<1x128xf32>
    %c0_931 = arith.constant 0 : index
    %c0_932 = arith.constant 0 : index
    %1582 = vector.load %arg26[%c0_931, %c0_932] : memref<1x128xf32, #tpu.memory_space<vmem>>, vector<1x128xf32>
    %c6_933 = arith.constant 6 : index
    %c0_934 = arith.constant 0 : index
    %1583 = tpu.strided_load %arg40[%c6_933, %c0_934] {strides = array<i32: 2, 1>} : memref<128x128xf32, #tpu.memory_space<vmem>>, vector<2x128xf32>
    %1584 = vector.broadcast %1567 : vector<1x128xf32> to vector<2x128xf32>
    %1585 = arith.mulf %1583, %1584 : vector<2x128xf32>
    %c7_935 = arith.constant 7 : index
    %c0_936 = arith.constant 0 : index
    %1586 = tpu.strided_load %arg40[%c7_935, %c0_936] {strides = array<i32: 2, 1>} : memref<128x128xf32, #tpu.memory_space<vmem>>, vector<2x128xf32>
    %1587 = vector.broadcast %1568 : vector<1x128xf32> to vector<2x128xf32>
    %1588 = arith.mulf %1586, %1587 : vector<2x128xf32>
    %1589 = arith.addf %1585, %1588 : vector<2x128xf32>
    %c8_937 = arith.constant 8 : index
    %c0_938 = arith.constant 0 : index
    %1590 = tpu.strided_load %arg40[%c8_937, %c0_938] {strides = array<i32: 2, 1>} : memref<128x128xf32, #tpu.memory_space<vmem>>, vector<2x128xf32>
    %1591 = vector.broadcast %1569 : vector<1x128xf32> to vector<2x128xf32>
    %1592 = arith.mulf %1590, %1591 : vector<2x128xf32>
    %1593 = arith.addf %1589, %1592 : vector<2x128xf32>
    %c9_939 = arith.constant 9 : index
    %c0_940 = arith.constant 0 : index
    %1594 = tpu.strided_load %arg40[%c9_939, %c0_940] {strides = array<i32: 2, 1>} : memref<128x128xf32, #tpu.memory_space<vmem>>, vector<2x128xf32>
    %1595 = vector.broadcast %1570 : vector<1x128xf32> to vector<2x128xf32>
    %1596 = arith.mulf %1594, %1595 : vector<2x128xf32>
    %1597 = arith.addf %1593, %1596 : vector<2x128xf32>
    %c10_941 = arith.constant 10 : index
    %c0_942 = arith.constant 0 : index
    %1598 = tpu.strided_load %arg40[%c10_941, %c0_942] {strides = array<i32: 2, 1>} : memref<128x128xf32, #tpu.memory_space<vmem>>, vector<2x128xf32>
    %1599 = vector.broadcast %1571 : vector<1x128xf32> to vector<2x128xf32>
    %1600 = arith.mulf %1598, %1599 : vector<2x128xf32>
    %1601 = arith.addf %1597, %1600 : vector<2x128xf32>
    %c22_943 = arith.constant 22 : index
    %c0_944 = arith.constant 0 : index
    %1602 = tpu.strided_load %arg40[%c22_943, %c0_944] {strides = array<i32: 2, 1>} : memref<128x128xf32, #tpu.memory_space<vmem>>, vector<2x128xf32>
    %1603 = vector.broadcast %1572 : vector<1x128xf32> to vector<2x128xf32>
    %1604 = arith.mulf %1602, %1603 : vector<2x128xf32>
    %1605 = arith.addf %1601, %1604 : vector<2x128xf32>
    %c23_945 = arith.constant 23 : index
    %c0_946 = arith.constant 0 : index
    %1606 = tpu.strided_load %arg40[%c23_945, %c0_946] {strides = array<i32: 2, 1>} : memref<128x128xf32, #tpu.memory_space<vmem>>, vector<2x128xf32>
    %1607 = vector.broadcast %1573 : vector<1x128xf32> to vector<2x128xf32>
    %1608 = arith.mulf %1606, %1607 : vector<2x128xf32>
    %1609 = arith.addf %1605, %1608 : vector<2x128xf32>
    %c24_947 = arith.constant 24 : index
    %c0_948 = arith.constant 0 : index
    %1610 = tpu.strided_load %arg40[%c24_947, %c0_948] {strides = array<i32: 2, 1>} : memref<128x128xf32, #tpu.memory_space<vmem>>, vector<2x128xf32>
    %1611 = vector.broadcast %1574 : vector<1x128xf32> to vector<2x128xf32>
    %1612 = arith.mulf %1610, %1611 : vector<2x128xf32>
    %1613 = arith.addf %1609, %1612 : vector<2x128xf32>
    %c25_949 = arith.constant 25 : index
    %c0_950 = arith.constant 0 : index
    %1614 = tpu.strided_load %arg40[%c25_949, %c0_950] {strides = array<i32: 2, 1>} : memref<128x128xf32, #tpu.memory_space<vmem>>, vector<2x128xf32>
    %1615 = vector.broadcast %1575 : vector<1x128xf32> to vector<2x128xf32>
    %1616 = arith.mulf %1614, %1615 : vector<2x128xf32>
    %1617 = arith.addf %1613, %1616 : vector<2x128xf32>
    %c26 = arith.constant 26 : index
    %c0_951 = arith.constant 0 : index
    %1618 = tpu.strided_load %arg40[%c26, %c0_951] {strides = array<i32: 2, 1>} : memref<128x128xf32, #tpu.memory_space<vmem>>, vector<2x128xf32>
    %1619 = vector.broadcast %1576 : vector<1x128xf32> to vector<2x128xf32>
    %1620 = arith.mulf %1618, %1619 : vector<2x128xf32>
    %1621 = arith.addf %1617, %1620 : vector<2x128xf32>
    %c38 = arith.constant 38 : index
    %c0_952 = arith.constant 0 : index
    %1622 = tpu.strided_load %arg40[%c38, %c0_952] {strides = array<i32: 2, 1>} : memref<128x128xf32, #tpu.memory_space<vmem>>, vector<2x128xf32>
    %1623 = vector.broadcast %1577 : vector<1x128xf32> to vector<2x128xf32>
    %1624 = arith.mulf %1622, %1623 : vector<2x128xf32>
    %1625 = arith.addf %1621, %1624 : vector<2x128xf32>
    %c39_953 = arith.constant 39 : index
    %c0_954 = arith.constant 0 : index
    %1626 = tpu.strided_load %arg40[%c39_953, %c0_954] {strides = array<i32: 2, 1>} : memref<128x128xf32, #tpu.memory_space<vmem>>, vector<2x128xf32>
    %1627 = vector.broadcast %1578 : vector<1x128xf32> to vector<2x128xf32>
    %1628 = arith.mulf %1626, %1627 : vector<2x128xf32>
    %1629 = arith.addf %1625, %1628 : vector<2x128xf32>
    %c40_955 = arith.constant 40 : index
    %c0_956 = arith.constant 0 : index
    %1630 = tpu.strided_load %arg40[%c40_955, %c0_956] {strides = array<i32: 2, 1>} : memref<128x128xf32, #tpu.memory_space<vmem>>, vector<2x128xf32>
    %1631 = vector.broadcast %1579 : vector<1x128xf32> to vector<2x128xf32>
    %1632 = arith.mulf %1630, %1631 : vector<2x128xf32>
    %1633 = arith.addf %1629, %1632 : vector<2x128xf32>
    %c41_957 = arith.constant 41 : index
    %c0_958 = arith.constant 0 : index
    %1634 = tpu.strided_load %arg40[%c41_957, %c0_958] {strides = array<i32: 2, 1>} : memref<128x128xf32, #tpu.memory_space<vmem>>, vector<2x128xf32>
    %1635 = vector.broadcast %1580 : vector<1x128xf32> to vector<2x128xf32>
    %1636 = arith.mulf %1634, %1635 : vector<2x128xf32>
    %1637 = arith.addf %1633, %1636 : vector<2x128xf32>
    %c42 = arith.constant 42 : index
    %c0_959 = arith.constant 0 : index
    %1638 = tpu.strided_load %arg40[%c42, %c0_959] {strides = array<i32: 2, 1>} : memref<128x128xf32, #tpu.memory_space<vmem>>, vector<2x128xf32>
    %1639 = vector.broadcast %1581 : vector<1x128xf32> to vector<2x128xf32>
    %1640 = arith.mulf %1638, %1639 : vector<2x128xf32>
    %1641 = arith.addf %1637, %1640 : vector<2x128xf32>
    %1642 = vector.broadcast %1582 : vector<1x128xf32> to vector<2x128xf32>
    %1643 = arith.addf %1641, %1642 : vector<2x128xf32>
    %cst_960 = arith.constant 3.000000e+00 : f32
    %1644 = vector.broadcast %cst_960 : f32 to vector<2x128xf32>
    %1645 = arith.addf %1643, %1644 : vector<2x128xf32>
    %cst_961 = arith.constant 0.000000e+00 : f32
    %cst_962 = arith.constant 6.000000e+00 : f32
    %1646 = vector.broadcast %cst_961 : f32 to vector<2x128xf32>
    %1647 = arith.maximumf %1646, %1645 : vector<2x128xf32>
    %1648 = vector.broadcast %cst_962 : f32 to vector<2x128xf32>
    %1649 = arith.minimumf %1648, %1647 : vector<2x128xf32>
    %cst_963 = arith.constant 0.166666672 : f32
    %1650 = vector.broadcast %cst_963 : f32 to vector<2x128xf32>
    %1651 = arith.mulf %1649, %1650 : vector<2x128xf32>
    %1652 = arith.mulf %1643, %1651 : vector<2x128xf32>
    %c0_964 = arith.constant 0 : index
    %c0_965 = arith.constant 0 : index
    %1653 = vector.load %arg41[%c0_964, %c0_965] : memref<8x128xf32, #tpu.memory_space<vmem>>, vector<2x128xf32>
    tpu.vector_store %arg41[%c0_964, %c0_965], %1652 {strides = array<i32>} : memref<8x128xf32, #tpu.memory_space<vmem>>, vector<2x128xf32>,
    %c6_966 = arith.constant 6 : index
    %c0_967 = arith.constant 0 : index
    %1654 = tpu.strided_load %arg40[%c6_966, %c0_967] {strides = array<i32: 2, 1>} : memref<128x128xf32, #tpu.memory_space<vmem>>, vector<2x128xf32>
    %1655 = vector.broadcast %1557 : vector<1x128xf32> to vector<2x128xf32>
    %1656 = arith.mulf %1654, %1655 : vector<2x128xf32>
    %c7_968 = arith.constant 7 : index
    %c0_969 = arith.constant 0 : index
    %1657 = tpu.strided_load %arg40[%c7_968, %c0_969] {strides = array<i32: 2, 1>} : memref<128x128xf32, #tpu.memory_space<vmem>>, vector<2x128xf32>
    %1658 = vector.broadcast %1558 : vector<1x128xf32> to vector<2x128xf32>
    %1659 = arith.mulf %1657, %1658 : vector<2x128xf32>
    %1660 = arith.addf %1656, %1659 : vector<2x128xf32>
    %c8_970 = arith.constant 8 : index
    %c0_971 = arith.constant 0 : index
    %1661 = tpu.strided_load %arg40[%c8_970, %c0_971] {strides = array<i32: 2, 1>} : memref<128x128xf32, #tpu.memory_space<vmem>>, vector<2x128xf32>
    %1662 = vector.broadcast %1559 : vector<1x128xf32> to vector<2x128xf32>
    %1663 = arith.mulf %1661, %1662 : vector<2x128xf32>
    %1664 = arith.addf %1660, %1663 : vector<2x128xf32>
    %c9_972 = arith.constant 9 : index
    %c0_973 = arith.constant 0 : index
    %1665 = tpu.strided_load %arg40[%c9_972, %c0_973] {strides = array<i32: 2, 1>} : memref<128x128xf32, #tpu.memory_space<vmem>>, vector<2x128xf32>
    %1666 = vector.broadcast %1560 : vector<1x128xf32> to vector<2x128xf32>
    %1667 = arith.mulf %1665, %1666 : vector<2x128xf32>
    %1668 = arith.addf %1664, %1667 : vector<2x128xf32>
    %c10_974 = arith.constant 10 : index
    %c0_975 = arith.constant 0 : index
    %1669 = tpu.strided_load %arg40[%c10_974, %c0_975] {strides = array<i32: 2, 1>} : memref<128x128xf32, #tpu.memory_space<vmem>>, vector<2x128xf32>
    %1670 = vector.broadcast %1561 : vector<1x128xf32> to vector<2x128xf32>
    %1671 = arith.mulf %1669, %1670 : vector<2x128xf32>
    %1672 = arith.addf %1668, %1671 : vector<2x128xf32>
    %c22_976 = arith.constant 22 : index
    %c0_977 = arith.constant 0 : index
    %1673 = tpu.strided_load %arg40[%c22_976, %c0_977] {strides = array<i32: 2, 1>} : memref<128x128xf32, #tpu.memory_space<vmem>>, vector<2x128xf32>
    %1674 = vector.broadcast %1562 : vector<1x128xf32> to vector<2x128xf32>
    %1675 = arith.mulf %1673, %1674 : vector<2x128xf32>
    %1676 = arith.addf %1672, %1675 : vector<2x128xf32>
    %c23_978 = arith.constant 23 : index
    %c0_979 = arith.constant 0 : index
    %1677 = tpu.strided_load %arg40[%c23_978, %c0_979] {strides = array<i32: 2, 1>} : memref<128x128xf32, #tpu.memory_space<vmem>>, vector<2x128xf32>
    %1678 = vector.broadcast %1563 : vector<1x128xf32> to vector<2x128xf32>
    %1679 = arith.mulf %1677, %1678 : vector<2x128xf32>
    %1680 = arith.addf %1676, %1679 : vector<2x128xf32>
    %c24_980 = arith.constant 24 : index
    %c0_981 = arith.constant 0 : index
    %1681 = tpu.strided_load %arg40[%c24_980, %c0_981] {strides = array<i32: 2, 1>} : memref<128x128xf32, #tpu.memory_space<vmem>>, vector<2x128xf32>
    %1682 = vector.broadcast %1564 : vector<1x128xf32> to vector<2x128xf32>
    %1683 = arith.mulf %1681, %1682 : vector<2x128xf32>
    %1684 = arith.addf %1680, %1683 : vector<2x128xf32>
    %c25_982 = arith.constant 25 : index
    %c0_983 = arith.constant 0 : index
    %1685 = tpu.strided_load %arg40[%c25_982, %c0_983] {strides = array<i32: 2, 1>} : memref<128x128xf32, #tpu.memory_space<vmem>>, vector<2x128xf32>
    %1686 = vector.broadcast %1565 : vector<1x128xf32> to vector<2x128xf32>
    %1687 = arith.mulf %1685, %1686 : vector<2x128xf32>
    %1688 = arith.addf %1684, %1687 : vector<2x128xf32>
    %c26_984 = arith.constant 26 : index
    %c0_985 = arith.constant 0 : index
    %1689 = tpu.strided_load %arg40[%c26_984, %c0_985] {strides = array<i32: 2, 1>} : memref<128x128xf32, #tpu.memory_space<vmem>>, vector<2x128xf32>
    %1690 = vector.broadcast %1566 : vector<1x128xf32> to vector<2x128xf32>
    %1691 = arith.mulf %1689, %1690 : vector<2x128xf32>
    %1692 = arith.addf %1688, %1691 : vector<2x128xf32>
    %c38_986 = arith.constant 38 : index
    %c0_987 = arith.constant 0 : index
    %1693 = tpu.strided_load %arg40[%c38_986, %c0_987] {strides = array<i32: 2, 1>} : memref<128x128xf32, #tpu.memory_space<vmem>>, vector<2x128xf32>
    %1694 = vector.broadcast %1567 : vector<1x128xf32> to vector<2x128xf32>
    %1695 = arith.mulf %1693, %1694 : vector<2x128xf32>
    %1696 = arith.addf %1692, %1695 : vector<2x128xf32>
    %c39_988 = arith.constant 39 : index
    %c0_989 = arith.constant 0 : index
    %1697 = tpu.strided_load %arg40[%c39_988, %c0_989] {strides = array<i32: 2, 1>} : memref<128x128xf32, #tpu.memory_space<vmem>>, vector<2x128xf32>
    %1698 = vector.broadcast %1568 : vector<1x128xf32> to vector<2x128xf32>
    %1699 = arith.mulf %1697, %1698 : vector<2x128xf32>
    %1700 = arith.addf %1696, %1699 : vector<2x128xf32>
    %c40_990 = arith.constant 40 : index
    %c0_991 = arith.constant 0 : index
    %1701 = tpu.strided_load %arg40[%c40_990, %c0_991] {strides = array<i32: 2, 1>} : memref<128x128xf32, #tpu.memory_space<vmem>>, vector<2x128xf32>
    %1702 = vector.broadcast %1569 : vector<1x128xf32> to vector<2x128xf32>
    %1703 = arith.mulf %1701, %1702 : vector<2x128xf32>
    %1704 = arith.addf %1700, %1703 : vector<2x128xf32>
    %c41_992 = arith.constant 41 : index
    %c0_993 = arith.constant 0 : index
    %1705 = tpu.strided_load %arg40[%c41_992, %c0_993] {strides = array<i32: 2, 1>} : memref<128x128xf32, #tpu.memory_space<vmem>>, vector<2x128xf32>
    %1706 = vector.broadcast %1570 : vector<1x128xf32> to vector<2x128xf32>
    %1707 = arith.mulf %1705, %1706 : vector<2x128xf32>
    %1708 = arith.addf %1704, %1707 : vector<2x128xf32>
    %c42_994 = arith.constant 42 : index
    %c0_995 = arith.constant 0 : index
    %1709 = tpu.strided_load %arg40[%c42_994, %c0_995] {strides = array<i32: 2, 1>} : memref<128x128xf32, #tpu.memory_space<vmem>>, vector<2x128xf32>
    %1710 = vector.broadcast %1571 : vector<1x128xf32> to vector<2x128xf32>
    %1711 = arith.mulf %1709, %1710 : vector<2x128xf32>
    %1712 = arith.addf %1708, %1711 : vector<2x128xf32>
    %c54 = arith.constant 54 : index
    %c0_996 = arith.constant 0 : index
    %1713 = tpu.strided_load %arg40[%c54, %c0_996] {strides = array<i32: 2, 1>} : memref<128x128xf32, #tpu.memory_space<vmem>>, vector<2x128xf32>
    %1714 = vector.broadcast %1572 : vector<1x128xf32> to vector<2x128xf32>
    %1715 = arith.mulf %1713, %1714 : vector<2x128xf32>
    %1716 = arith.addf %1712, %1715 : vector<2x128xf32>
    %c55_997 = arith.constant 55 : index
    %c0_998 = arith.constant 0 : index
    %1717 = tpu.strided_load %arg40[%c55_997, %c0_998] {strides = array<i32: 2, 1>} : memref<128x128xf32, #tpu.memory_space<vmem>>, vector<2x128xf32>
    %1718 = vector.broadcast %1573 : vector<1x128xf32> to vector<2x128xf32>
    %1719 = arith.mulf %1717, %1718 : vector<2x128xf32>
    %1720 = arith.addf %1716, %1719 : vector<2x128xf32>
    %c56_999 = arith.constant 56 : index
    %c0_1000 = arith.constant 0 : index
    %1721 = tpu.strided_load %arg40[%c56_999, %c0_1000] {strides = array<i32: 2, 1>} : memref<128x128xf32, #tpu.memory_space<vmem>>, vector<2x128xf32>
    %1722 = vector.broadcast %1574 : vector<1x128xf32> to vector<2x128xf32>
    %1723 = arith.mulf %1721, %1722 : vector<2x128xf32>
    %1724 = arith.addf %1720, %1723 : vector<2x128xf32>
    %c57_1001 = arith.constant 57 : index
    %c0_1002 = arith.constant 0 : index
    %1725 = tpu.strided_load %arg40[%c57_1001, %c0_1002] {strides = array<i32: 2, 1>} : memref<128x128xf32, #tpu.memory_space<vmem>>, vector<2x128xf32>
    %1726 = vector.broadcast %1575 : vector<1x128xf32> to vector<2x128xf32>
    %1727 = arith.mulf %1725, %1726 : vector<2x128xf32>
    %1728 = arith.addf %1724, %1727 : vector<2x128xf32>
    %c58 = arith.constant 58 : index
    %c0_1003 = arith.constant 0 : index
    %1729 = tpu.strided_load %arg40[%c58, %c0_1003] {strides = array<i32: 2, 1>} : memref<128x128xf32, #tpu.memory_space<vmem>>, vector<2x128xf32>
    %1730 = vector.broadcast %1576 : vector<1x128xf32> to vector<2x128xf32>
    %1731 = arith.mulf %1729, %1730 : vector<2x128xf32>
    %1732 = arith.addf %1728, %1731 : vector<2x128xf32>
    %1733 = vector.broadcast %1582 : vector<1x128xf32> to vector<2x128xf32>
    %1734 = arith.addf %1732, %1733 : vector<2x128xf32>
    %cst_1004 = arith.constant 3.000000e+00 : f32
    %1735 = vector.broadcast %cst_1004 : f32 to vector<2x128xf32>
    %1736 = arith.addf %1734, %1735 : vector<2x128xf32>
    %cst_1005 = arith.constant 0.000000e+00 : f32
    %cst_1006 = arith.constant 6.000000e+00 : f32
    %1737 = vector.broadcast %cst_1005 : f32 to vector<2x128xf32>
    %1738 = arith.maximumf %1737, %1736 : vector<2x128xf32>
    %1739 = vector.broadcast %cst_1006 : f32 to vector<2x128xf32>
    %1740 = arith.minimumf %1739, %1738 : vector<2x128xf32>
    %cst_1007 = arith.constant 0.166666672 : f32
    %1741 = vector.broadcast %cst_1007 : f32 to vector<2x128xf32>
    %1742 = arith.mulf %1740, %1741 : vector<2x128xf32>
    %1743 = arith.mulf %1734, %1742 : vector<2x128xf32>
    %c2_1008 = arith.constant 2 : index
    %c0_1009 = arith.constant 0 : index
    %1744 = vector.load %arg41[%c2_1008, %c0_1009] : memref<8x128xf32, #tpu.memory_space<vmem>>, vector<2x128xf32>
    tpu.vector_store %arg41[%c2_1008, %c0_1009], %1743 {strides = array<i32>} : memref<8x128xf32, #tpu.memory_space<vmem>>, vector<2x128xf32>,
    %c70 = arith.constant 70 : index
    %c0_1010 = arith.constant 0 : index
    %1745 = tpu.strided_load %arg40[%c70, %c0_1010] {strides = array<i32: 2, 1>} : memref<128x128xf32, #tpu.memory_space<vmem>>, vector<2x128xf32>
    %1746 = vector.broadcast %1567 : vector<1x128xf32> to vector<2x128xf32>
    %1747 = arith.mulf %1745, %1746 : vector<2x128xf32>
    %c71_1011 = arith.constant 71 : index
    %c0_1012 = arith.constant 0 : index
    %1748 = tpu.strided_load %arg40[%c71_1011, %c0_1012] {strides = array<i32: 2, 1>} : memref<128x128xf32, #tpu.memory_space<vmem>>, vector<2x128xf32>
    %1749 = vector.broadcast %1568 : vector<1x128xf32> to vector<2x128xf32>
    %1750 = arith.mulf %1748, %1749 : vector<2x128xf32>
    %1751 = arith.addf %1747, %1750 : vector<2x128xf32>
    %c72_1013 = arith.constant 72 : index
    %c0_1014 = arith.constant 0 : index
    %1752 = tpu.strided_load %arg40[%c72_1013, %c0_1014] {strides = array<i32: 2, 1>} : memref<128x128xf32, #tpu.memory_space<vmem>>, vector<2x128xf32>
    %1753 = vector.broadcast %1569 : vector<1x128xf32> to vector<2x128xf32>
    %1754 = arith.mulf %1752, %1753 : vector<2x128xf32>
    %1755 = arith.addf %1751, %1754 : vector<2x128xf32>
    %c73_1015 = arith.constant 73 : index
    %c0_1016 = arith.constant 0 : index
    %1756 = tpu.strided_load %arg40[%c73_1015, %c0_1016] {strides = array<i32: 2, 1>} : memref<128x128xf32, #tpu.memory_space<vmem>>, vector<2x128xf32>
    %1757 = vector.broadcast %1570 : vector<1x128xf32> to vector<2x128xf32>
    %1758 = arith.mulf %1756, %1757 : vector<2x128xf32>
    %1759 = arith.addf %1755, %1758 : vector<2x128xf32>
    %c74 = arith.constant 74 : index
    %c0_1017 = arith.constant 0 : index
    %1760 = tpu.strided_load %arg40[%c74, %c0_1017] {strides = array<i32: 2, 1>} : memref<128x128xf32, #tpu.memory_space<vmem>>, vector<2x128xf32>
    %1761 = vector.broadcast %1571 : vector<1x128xf32> to vector<2x128xf32>
    %1762 = arith.mulf %1760, %1761 : vector<2x128xf32>
    %1763 = arith.addf %1759, %1762 : vector<2x128xf32>
    %c86 = arith.constant 86 : index
    %c0_1018 = arith.constant 0 : index
    %1764 = tpu.strided_load %arg40[%c86, %c0_1018] {strides = array<i32: 2, 1>} : memref<128x128xf32, #tpu.memory_space<vmem>>, vector<2x128xf32>
    %1765 = vector.broadcast %1572 : vector<1x128xf32> to vector<2x128xf32>
    %1766 = arith.mulf %1764, %1765 : vector<2x128xf32>
    %1767 = arith.addf %1763, %1766 : vector<2x128xf32>
    %c87_1019 = arith.constant 87 : index
    %c0_1020 = arith.constant 0 : index
    %1768 = tpu.strided_load %arg40[%c87_1019, %c0_1020] {strides = array<i32: 2, 1>} : memref<128x128xf32, #tpu.memory_space<vmem>>, vector<2x128xf32>
    %1769 = vector.broadcast %1573 : vector<1x128xf32> to vector<2x128xf32>
    %1770 = arith.mulf %1768, %1769 : vector<2x128xf32>
    %1771 = arith.addf %1767, %1770 : vector<2x128xf32>
    %c88_1021 = arith.constant 88 : index
    %c0_1022 = arith.constant 0 : index
    %1772 = tpu.strided_load %arg40[%c88_1021, %c0_1022] {strides = array<i32: 2, 1>} : memref<128x128xf32, #tpu.memory_space<vmem>>, vector<2x128xf32>
    %1773 = vector.broadcast %1574 : vector<1x128xf32> to vector<2x128xf32>
    %1774 = arith.mulf %1772, %1773 : vector<2x128xf32>
    %1775 = arith.addf %1771, %1774 : vector<2x128xf32>
    %c89_1023 = arith.constant 89 : index
    %c0_1024 = arith.constant 0 : index
    %1776 = tpu.strided_load %arg40[%c89_1023, %c0_1024] {strides = array<i32: 2, 1>} : memref<128x128xf32, #tpu.memory_space<vmem>>, vector<2x128xf32>
    %1777 = vector.broadcast %1575 : vector<1x128xf32> to vector<2x128xf32>
    %1778 = arith.mulf %1776, %1777 : vector<2x128xf32>
    %1779 = arith.addf %1775, %1778 : vector<2x128xf32>
    %c90 = arith.constant 90 : index
    %c0_1025 = arith.constant 0 : index
    %1780 = tpu.strided_load %arg40[%c90, %c0_1025] {strides = array<i32: 2, 1>} : memref<128x128xf32, #tpu.memory_space<vmem>>, vector<2x128xf32>
    %1781 = vector.broadcast %1576 : vector<1x128xf32> to vector<2x128xf32>
    %1782 = arith.mulf %1780, %1781 : vector<2x128xf32>
    %1783 = arith.addf %1779, %1782 : vector<2x128xf32>
    %c102 = arith.constant 102 : index
    %c0_1026 = arith.constant 0 : index
    %1784 = tpu.strided_load %arg40[%c102, %c0_1026] {strides = array<i32: 2, 1>} : memref<128x128xf32, #tpu.memory_space<vmem>>, vector<2x128xf32>
    %1785 = vector.broadcast %1577 : vector<1x128xf32> to vector<2x128xf32>
    %1786 = arith.mulf %1784, %1785 : vector<2x128xf32>
    %1787 = arith.addf %1783, %1786 : vector<2x128xf32>
    %c103_1027 = arith.constant 103 : index
    %c0_1028 = arith.constant 0 : index
    %1788 = tpu.strided_load %arg40[%c103_1027, %c0_1028] {strides = array<i32: 2, 1>} : memref<128x128xf32, #tpu.memory_space<vmem>>, vector<2x128xf32>
    %1789 = vector.broadcast %1578 : vector<1x128xf32> to vector<2x128xf32>
    %1790 = arith.mulf %1788, %1789 : vector<2x128xf32>
    %1791 = arith.addf %1787, %1790 : vector<2x128xf32>
    %c104_1029 = arith.constant 104 : index
    %c0_1030 = arith.constant 0 : index
    %1792 = tpu.strided_load %arg40[%c104_1029, %c0_1030] {strides = array<i32: 2, 1>} : memref<128x128xf32, #tpu.memory_space<vmem>>, vector<2x128xf32>
    %1793 = vector.broadcast %1579 : vector<1x128xf32> to vector<2x128xf32>
    %1794 = arith.mulf %1792, %1793 : vector<2x128xf32>
    %1795 = arith.addf %1791, %1794 : vector<2x128xf32>
    %c105_1031 = arith.constant 105 : index
    %c0_1032 = arith.constant 0 : index
    %1796 = tpu.strided_load %arg40[%c105_1031, %c0_1032] {strides = array<i32: 2, 1>} : memref<128x128xf32, #tpu.memory_space<vmem>>, vector<2x128xf32>
    %1797 = vector.broadcast %1580 : vector<1x128xf32> to vector<2x128xf32>
    %1798 = arith.mulf %1796, %1797 : vector<2x128xf32>
    %1799 = arith.addf %1795, %1798 : vector<2x128xf32>
    %c106 = arith.constant 106 : index
    %c0_1033 = arith.constant 0 : index
    %1800 = tpu.strided_load %arg40[%c106, %c0_1033] {strides = array<i32: 2, 1>} : memref<128x128xf32, #tpu.memory_space<vmem>>, vector<2x128xf32>
    %1801 = vector.broadcast %1581 : vector<1x128xf32> to vector<2x128xf32>
    %1802 = arith.mulf %1800, %1801 : vector<2x128xf32>
    %1803 = arith.addf %1799, %1802 : vector<2x128xf32>
    %1804 = vector.broadcast %1582 : vector<1x128xf32> to vector<2x128xf32>
    %1805 = arith.addf %1803, %1804 : vector<2x128xf32>
    %cst_1034 = arith.constant 3.000000e+00 : f32
    %1806 = vector.broadcast %cst_1034 : f32 to vector<2x128xf32>
    %1807 = arith.addf %1805, %1806 : vector<2x128xf32>
    %cst_1035 = arith.constant 0.000000e+00 : f32
    %cst_1036 = arith.constant 6.000000e+00 : f32
    %1808 = vector.broadcast %cst_1035 : f32 to vector<2x128xf32>
    %1809 = arith.maximumf %1808, %1807 : vector<2x128xf32>
    %1810 = vector.broadcast %cst_1036 : f32 to vector<2x128xf32>
    %1811 = arith.minimumf %1810, %1809 : vector<2x128xf32>
    %cst_1037 = arith.constant 0.166666672 : f32
    %1812 = vector.broadcast %cst_1037 : f32 to vector<2x128xf32>
    %1813 = arith.mulf %1811, %1812 : vector<2x128xf32>
    %1814 = arith.mulf %1805, %1813 : vector<2x128xf32>
    %c4_1038 = arith.constant 4 : index
    %c0_1039 = arith.constant 0 : index
    %1815 = vector.load %arg41[%c4_1038, %c0_1039] : memref<8x128xf32, #tpu.memory_space<vmem>>, vector<2x128xf32>
    tpu.vector_store %arg41[%c4_1038, %c0_1039], %1814 {strides = array<i32>} : memref<8x128xf32, #tpu.memory_space<vmem>>, vector<2x128xf32>,
    %c70_1040 = arith.constant 70 : index
    %c0_1041 = arith.constant 0 : index
    %1816 = tpu.strided_load %arg40[%c70_1040, %c0_1041] {strides = array<i32: 2, 1>} : memref<128x128xf32, #tpu.memory_space<vmem>>, vector<2x128xf32>
    %1817 = vector.broadcast %1557 : vector<1x128xf32> to vector<2x128xf32>
    %1818 = arith.mulf %1816, %1817 : vector<2x128xf32>
    %c71_1042 = arith.constant 71 : index
    %c0_1043 = arith.constant 0 : index
    %1819 = tpu.strided_load %arg40[%c71_1042, %c0_1043] {strides = array<i32: 2, 1>} : memref<128x128xf32, #tpu.memory_space<vmem>>, vector<2x128xf32>
    %1820 = vector.broadcast %1558 : vector<1x128xf32> to vector<2x128xf32>
    %1821 = arith.mulf %1819, %1820 : vector<2x128xf32>
    %1822 = arith.addf %1818, %1821 : vector<2x128xf32>
    %c72_1044 = arith.constant 72 : index
    %c0_1045 = arith.constant 0 : index
    %1823 = tpu.strided_load %arg40[%c72_1044, %c0_1045] {strides = array<i32: 2, 1>} : memref<128x128xf32, #tpu.memory_space<vmem>>, vector<2x128xf32>
    %1824 = vector.broadcast %1559 : vector<1x128xf32> to vector<2x128xf32>
    %1825 = arith.mulf %1823, %1824 : vector<2x128xf32>
    %1826 = arith.addf %1822, %1825 : vector<2x128xf32>
    %c73_1046 = arith.constant 73 : index
    %c0_1047 = arith.constant 0 : index
    %1827 = tpu.strided_load %arg40[%c73_1046, %c0_1047] {strides = array<i32: 2, 1>} : memref<128x128xf32, #tpu.memory_space<vmem>>, vector<2x128xf32>
    %1828 = vector.broadcast %1560 : vector<1x128xf32> to vector<2x128xf32>
    %1829 = arith.mulf %1827, %1828 : vector<2x128xf32>
    %1830 = arith.addf %1826, %1829 : vector<2x128xf32>
    %c74_1048 = arith.constant 74 : index
    %c0_1049 = arith.constant 0 : index
    %1831 = tpu.strided_load %arg40[%c74_1048, %c0_1049] {strides = array<i32: 2, 1>} : memref<128x128xf32, #tpu.memory_space<vmem>>, vector<2x128xf32>
    %1832 = vector.broadcast %1561 : vector<1x128xf32> to vector<2x128xf32>
    %1833 = arith.mulf %1831, %1832 : vector<2x128xf32>
    %1834 = arith.addf %1830, %1833 : vector<2x128xf32>
    %c86_1050 = arith.constant 86 : index
    %c0_1051 = arith.constant 0 : index
    %1835 = tpu.strided_load %arg40[%c86_1050, %c0_1051] {strides = array<i32: 2, 1>} : memref<128x128xf32, #tpu.memory_space<vmem>>, vector<2x128xf32>
    %1836 = vector.broadcast %1562 : vector<1x128xf32> to vector<2x128xf32>
    %1837 = arith.mulf %1835, %1836 : vector<2x128xf32>
    %1838 = arith.addf %1834, %1837 : vector<2x128xf32>
    %c87_1052 = arith.constant 87 : index
    %c0_1053 = arith.constant 0 : index
    %1839 = tpu.strided_load %arg40[%c87_1052, %c0_1053] {strides = array<i32: 2, 1>} : memref<128x128xf32, #tpu.memory_space<vmem>>, vector<2x128xf32>
    %1840 = vector.broadcast %1563 : vector<1x128xf32> to vector<2x128xf32>
    %1841 = arith.mulf %1839, %1840 : vector<2x128xf32>
    %1842 = arith.addf %1838, %1841 : vector<2x128xf32>
    %c88_1054 = arith.constant 88 : index
    %c0_1055 = arith.constant 0 : index
    %1843 = tpu.strided_load %arg40[%c88_1054, %c0_1055] {strides = array<i32: 2, 1>} : memref<128x128xf32, #tpu.memory_space<vmem>>, vector<2x128xf32>
    %1844 = vector.broadcast %1564 : vector<1x128xf32> to vector<2x128xf32>
    %1845 = arith.mulf %1843, %1844 : vector<2x128xf32>
    %1846 = arith.addf %1842, %1845 : vector<2x128xf32>
    %c89_1056 = arith.constant 89 : index
    %c0_1057 = arith.constant 0 : index
    %1847 = tpu.strided_load %arg40[%c89_1056, %c0_1057] {strides = array<i32: 2, 1>} : memref<128x128xf32, #tpu.memory_space<vmem>>, vector<2x128xf32>
    %1848 = vector.broadcast %1565 : vector<1x128xf32> to vector<2x128xf32>
    %1849 = arith.mulf %1847, %1848 : vector<2x128xf32>
    %1850 = arith.addf %1846, %1849 : vector<2x128xf32>
    %c90_1058 = arith.constant 90 : index
    %c0_1059 = arith.constant 0 : index
    %1851 = tpu.strided_load %arg40[%c90_1058, %c0_1059] {strides = array<i32: 2, 1>} : memref<128x128xf32, #tpu.memory_space<vmem>>, vector<2x128xf32>
    %1852 = vector.broadcast %1566 : vector<1x128xf32> to vector<2x128xf32>
    %1853 = arith.mulf %1851, %1852 : vector<2x128xf32>
    %1854 = arith.addf %1850, %1853 : vector<2x128xf32>
    %c102_1060 = arith.constant 102 : index
    %c0_1061 = arith.constant 0 : index
    %1855 = tpu.strided_load %arg40[%c102_1060, %c0_1061] {strides = array<i32: 2, 1>} : memref<128x128xf32, #tpu.memory_space<vmem>>, vector<2x128xf32>
    %1856 = vector.broadcast %1567 : vector<1x128xf32> to vector<2x128xf32>
    %1857 = arith.mulf %1855, %1856 : vector<2x128xf32>
    %1858 = arith.addf %1854, %1857 : vector<2x128xf32>
    %c103_1062 = arith.constant 103 : index
    %c0_1063 = arith.constant 0 : index
    %1859 = tpu.strided_load %arg40[%c103_1062, %c0_1063] {strides = array<i32: 2, 1>} : memref<128x128xf32, #tpu.memory_space<vmem>>, vector<2x128xf32>
    %1860 = vector.broadcast %1568 : vector<1x128xf32> to vector<2x128xf32>
    %1861 = arith.mulf %1859, %1860 : vector<2x128xf32>
    %1862 = arith.addf %1858, %1861 : vector<2x128xf32>
    %c104_1064 = arith.constant 104 : index
    %c0_1065 = arith.constant 0 : index
    %1863 = tpu.strided_load %arg40[%c104_1064, %c0_1065] {strides = array<i32: 2, 1>} : memref<128x128xf32, #tpu.memory_space<vmem>>, vector<2x128xf32>
    %1864 = vector.broadcast %1569 : vector<1x128xf32> to vector<2x128xf32>
    %1865 = arith.mulf %1863, %1864 : vector<2x128xf32>
    %1866 = arith.addf %1862, %1865 : vector<2x128xf32>
    %c105_1066 = arith.constant 105 : index
    %c0_1067 = arith.constant 0 : index
    %1867 = tpu.strided_load %arg40[%c105_1066, %c0_1067] {strides = array<i32: 2, 1>} : memref<128x128xf32, #tpu.memory_space<vmem>>, vector<2x128xf32>
    %1868 = vector.broadcast %1570 : vector<1x128xf32> to vector<2x128xf32>
    %1869 = arith.mulf %1867, %1868 : vector<2x128xf32>
    %1870 = arith.addf %1866, %1869 : vector<2x128xf32>
    %c106_1068 = arith.constant 106 : index
    %c0_1069 = arith.constant 0 : index
    %1871 = tpu.strided_load %arg40[%c106_1068, %c0_1069] {strides = array<i32: 2, 1>} : memref<128x128xf32, #tpu.memory_space<vmem>>, vector<2x128xf32>
    %1872 = vector.broadcast %1571 : vector<1x128xf32> to vector<2x128xf32>
    %1873 = arith.mulf %1871, %1872 : vector<2x128xf32>
    %1874 = arith.addf %1870, %1873 : vector<2x128xf32>
    %c118 = arith.constant 118 : index
    %c0_1070 = arith.constant 0 : index
    %1875 = tpu.strided_load %arg40[%c118, %c0_1070] {strides = array<i32: 2, 1>} : memref<128x128xf32, #tpu.memory_space<vmem>>, vector<2x128xf32>
    %1876 = vector.broadcast %1572 : vector<1x128xf32> to vector<2x128xf32>
    %1877 = arith.mulf %1875, %1876 : vector<2x128xf32>
    %1878 = arith.addf %1874, %1877 : vector<2x128xf32>
    %c119_1071 = arith.constant 119 : index
    %c0_1072 = arith.constant 0 : index
    %1879 = tpu.strided_load %arg40[%c119_1071, %c0_1072] {strides = array<i32: 2, 1>} : memref<128x128xf32, #tpu.memory_space<vmem>>, vector<2x128xf32>
    %1880 = vector.broadcast %1573 : vector<1x128xf32> to vector<2x128xf32>
    %1881 = arith.mulf %1879, %1880 : vector<2x128xf32>
    %1882 = arith.addf %1878, %1881 : vector<2x128xf32>
    %c120_1073 = arith.constant 120 : index
    %c0_1074 = arith.constant 0 : index
    %1883 = tpu.strided_load %arg40[%c120_1073, %c0_1074] {strides = array<i32: 2, 1>} : memref<128x128xf32, #tpu.memory_space<vmem>>, vector<2x128xf32>
    %1884 = vector.broadcast %1574 : vector<1x128xf32> to vector<2x128xf32>
    %1885 = arith.mulf %1883, %1884 : vector<2x128xf32>
    %1886 = arith.addf %1882, %1885 : vector<2x128xf32>
    %c121_1075 = arith.constant 121 : index
    %c0_1076 = arith.constant 0 : index
    %1887 = tpu.strided_load %arg40[%c121_1075, %c0_1076] {strides = array<i32: 2, 1>} : memref<128x128xf32, #tpu.memory_space<vmem>>, vector<2x128xf32>
    %1888 = vector.broadcast %1575 : vector<1x128xf32> to vector<2x128xf32>
    %1889 = arith.mulf %1887, %1888 : vector<2x128xf32>
    %1890 = arith.addf %1886, %1889 : vector<2x128xf32>
    %c122 = arith.constant 122 : index
    %c0_1077 = arith.constant 0 : index
    %1891 = tpu.strided_load %arg40[%c122, %c0_1077] {strides = array<i32: 2, 1>} : memref<128x128xf32, #tpu.memory_space<vmem>>, vector<2x128xf32>
    %1892 = vector.broadcast %1576 : vector<1x128xf32> to vector<2x128xf32>
    %1893 = arith.mulf %1891, %1892 : vector<2x128xf32>
    %1894 = arith.addf %1890, %1893 : vector<2x128xf32>
    %1895 = vector.broadcast %1582 : vector<1x128xf32> to vector<2x128xf32>
    %1896 = arith.addf %1894, %1895 : vector<2x128xf32>
    %cst_1078 = arith.constant 3.000000e+00 : f32
    %1897 = vector.broadcast %cst_1078 : f32 to vector<2x128xf32>
    %1898 = arith.addf %1896, %1897 : vector<2x128xf32>
    %cst_1079 = arith.constant 0.000000e+00 : f32
    %cst_1080 = arith.constant 6.000000e+00 : f32
    %1899 = vector.broadcast %cst_1079 : f32 to vector<2x128xf32>
    %1900 = arith.maximumf %1899, %1898 : vector<2x128xf32>
    %1901 = vector.broadcast %cst_1080 : f32 to vector<2x128xf32>
    %1902 = arith.minimumf %1901, %1900 : vector<2x128xf32>
    %cst_1081 = arith.constant 0.166666672 : f32
    %1903 = vector.broadcast %cst_1081 : f32 to vector<2x128xf32>
    %1904 = arith.mulf %1902, %1903 : vector<2x128xf32>
    %1905 = arith.mulf %1896, %1904 : vector<2x128xf32>
    %c6_1082 = arith.constant 6 : index
    %c0_1083 = arith.constant 0 : index
    %1906 = vector.load %arg41[%c6_1082, %c0_1083] : memref<8x128xf32, #tpu.memory_space<vmem>>, vector<2x128xf32>
    tpu.vector_store %arg41[%c6_1082, %c0_1083], %1905 {strides = array<i32>} : memref<8x128xf32, #tpu.memory_space<vmem>>, vector<2x128xf32>,
    %c0_1084 = arith.constant 0 : index
    %c0_1085 = arith.constant 0 : index
    %1907 = vector.load %arg41[%c0_1084, %c0_1085] : memref<8x128xf32, #tpu.memory_space<vmem>>, vector<8x128xf32>
    %1908 = vector.extract_strided_slice %1907 {offsets = [0, 0], sizes = [4, 128], strides = [1, 1]} : vector<8x128xf32> to vector<4x128xf32>
    %cst_1086 = arith.constant dense<0.000000e+00> : vector<128xf32>
    %1909 = vector.multi_reduction <add>, %1908, %cst_1086 [0] : vector<4x128xf32> to vector<128xf32>
    %1910 = vector.shape_cast %1909 : vector<128xf32> to vector<1x128xf32>
    %cst_1087 = arith.constant 4.000000e+00 : f32
    %1911 = vector.broadcast %cst_1087 : f32 to vector<1x128xf32>
    %1912 = arith.divf %1910, %1911 : vector<1x128xf32>
    %1913 = arith.truncf %1912 : vector<1x128xf32> to vector<1x128xbf16>
    %c0_1088 = arith.constant 0 : index
    %c0_1089 = arith.constant 0 : index
    %1914 = vector.load %arg27[%c0_1088, %c0_1089] : memref<128x128xbf16, #tpu.memory_space<vmem>>, vector<128x128xbf16>
    %cst_1090 = arith.constant dense<0.000000e+00> : vector<1x128xf32>
    %1915 = tpu.matmul %1913, %1914, %cst_1090 {dimension_numbers = #tpu.dot_dimension_numbers<[1], [0], [0], [1], [0, 0, 1, 1], [], []>} : vector<1x128xbf16>, vector<128x128xbf16>, vector<1x128xf32> -> vector<1x128xf32>
    %c0_1091 = arith.constant 0 : index
    %c0_1092 = arith.constant 0 : index
    %1916 = vector.load %arg28[%c0_1091, %c0_1092] : memref<1x128xf32, #tpu.memory_space<vmem>>, vector<1x128xf32>
    %1917 = arith.addf %1915, %1916 : vector<1x128xf32>
    %cst_1093 = arith.constant 0.000000e+00 : f32
    %1918 = vector.broadcast %cst_1093 : f32 to vector<1x128xf32>
    %1919 = arith.maximumf %1917, %1918 : vector<1x128xf32>
    %1920 = arith.truncf %1919 : vector<1x128xf32> to vector<1x128xbf16>
    %c0_1094 = arith.constant 0 : index
    %c0_1095 = arith.constant 0 : index
    %1921 = vector.load %arg29[%c0_1094, %c0_1095] : memref<128x128xbf16, #tpu.memory_space<vmem>>, vector<128x128xbf16>
    %cst_1096 = arith.constant dense<0.000000e+00> : vector<1x128xf32>
    %1922 = tpu.matmul %1920, %1921, %cst_1096 {dimension_numbers = #tpu.dot_dimension_numbers<[1], [0], [0], [1], [0, 0, 1, 1], [], []>} : vector<1x128xbf16>, vector<128x128xbf16>, vector<1x128xf32> -> vector<1x128xf32>
    %c0_1097 = arith.constant 0 : index
    %c0_1098 = arith.constant 0 : index
    %1923 = vector.load %arg30[%c0_1097, %c0_1098] : memref<1x128xf32, #tpu.memory_space<vmem>>, vector<1x128xf32>
    %1924 = arith.addf %1922, %1923 : vector<1x128xf32>
    %cst_1099 = arith.constant 3.000000e+00 : f32
    %1925 = vector.broadcast %cst_1099 : f32 to vector<1x128xf32>
    %1926 = arith.addf %1924, %1925 : vector<1x128xf32>
    %cst_1100 = arith.constant 0.000000e+00 : f32
    %cst_1101 = arith.constant 6.000000e+00 : f32
    %1927 = vector.broadcast %cst_1100 : f32 to vector<1x128xf32>
    %1928 = arith.maximumf %1927, %1926 : vector<1x128xf32>
    %1929 = vector.broadcast %cst_1101 : f32 to vector<1x128xf32>
    %1930 = arith.minimumf %1929, %1928 : vector<1x128xf32>
    %cst_1102 = arith.constant 0.166666672 : f32
    %1931 = vector.broadcast %cst_1102 : f32 to vector<1x128xf32>
    %1932 = arith.mulf %1930, %1931 : vector<1x128xf32>
    %1933 = vector.extract_strided_slice %1907 {offsets = [4, 0], sizes = [4, 128], strides = [1, 1]} : vector<8x128xf32> to vector<4x128xf32>
    %cst_1103 = arith.constant dense<0.000000e+00> : vector<128xf32>
    %1934 = vector.multi_reduction <add>, %1933, %cst_1103 [0] : vector<4x128xf32> to vector<128xf32>
    %1935 = vector.shape_cast %1934 : vector<128xf32> to vector<1x128xf32>
    %cst_1104 = arith.constant 4.000000e+00 : f32
    %1936 = vector.broadcast %cst_1104 : f32 to vector<1x128xf32>
    %1937 = arith.divf %1935, %1936 : vector<1x128xf32>
    %1938 = arith.truncf %1937 : vector<1x128xf32> to vector<1x128xbf16>
    %c0_1105 = arith.constant 0 : index
    %c0_1106 = arith.constant 0 : index
    %1939 = vector.load %arg27[%c0_1105, %c0_1106] : memref<128x128xbf16, #tpu.memory_space<vmem>>, vector<128x128xbf16>
    %cst_1107 = arith.constant dense<0.000000e+00> : vector<1x128xf32>
    %1940 = tpu.matmul %1938, %1939, %cst_1107 {dimension_numbers = #tpu.dot_dimension_numbers<[1], [0], [0], [1], [0, 0, 1, 1], [], []>} : vector<1x128xbf16>, vector<128x128xbf16>, vector<1x128xf32> -> vector<1x128xf32>
    %c0_1108 = arith.constant 0 : index
    %c0_1109 = arith.constant 0 : index
    %1941 = vector.load %arg28[%c0_1108, %c0_1109] : memref<1x128xf32, #tpu.memory_space<vmem>>, vector<1x128xf32>
    %1942 = arith.addf %1940, %1941 : vector<1x128xf32>
    %cst_1110 = arith.constant 0.000000e+00 : f32
    %1943 = vector.broadcast %cst_1110 : f32 to vector<1x128xf32>
    %1944 = arith.maximumf %1942, %1943 : vector<1x128xf32>
    %1945 = arith.truncf %1944 : vector<1x128xf32> to vector<1x128xbf16>
    %c0_1111 = arith.constant 0 : index
    %c0_1112 = arith.constant 0 : index
    %1946 = vector.load %arg29[%c0_1111, %c0_1112] : memref<128x128xbf16, #tpu.memory_space<vmem>>, vector<128x128xbf16>
    %cst_1113 = arith.constant dense<0.000000e+00> : vector<1x128xf32>
    %1947 = tpu.matmul %1945, %1946, %cst_1113 {dimension_numbers = #tpu.dot_dimension_numbers<[1], [0], [0], [1], [0, 0, 1, 1], [], []>} : vector<1x128xbf16>, vector<128x128xbf16>, vector<1x128xf32> -> vector<1x128xf32>
    %c0_1114 = arith.constant 0 : index
    %c0_1115 = arith.constant 0 : index
    %1948 = vector.load %arg30[%c0_1114, %c0_1115] : memref<1x128xf32, #tpu.memory_space<vmem>>, vector<1x128xf32>
    %1949 = arith.addf %1947, %1948 : vector<1x128xf32>
    %cst_1116 = arith.constant 3.000000e+00 : f32
    %1950 = vector.broadcast %cst_1116 : f32 to vector<1x128xf32>
    %1951 = arith.addf %1949, %1950 : vector<1x128xf32>
    %cst_1117 = arith.constant 0.000000e+00 : f32
    %cst_1118 = arith.constant 6.000000e+00 : f32
    %1952 = vector.broadcast %cst_1117 : f32 to vector<1x128xf32>
    %1953 = arith.maximumf %1952, %1951 : vector<1x128xf32>
    %1954 = vector.broadcast %cst_1118 : f32 to vector<1x128xf32>
    %1955 = arith.minimumf %1954, %1953 : vector<1x128xf32>
    %cst_1119 = arith.constant 0.166666672 : f32
    %1956 = vector.broadcast %cst_1119 : f32 to vector<1x128xf32>
    %1957 = arith.mulf %1955, %1956 : vector<1x128xf32>
    %1958 = tpu.iota {dimensions = array<i32: 0>} : vector<8x1xi32>
    %c4_i32 = arith.constant 4 : i32
    %1959 = vector.broadcast %c4_i32 : i32 to vector<8x1xi32>
    %1960 = arith.cmpi slt, %1958, %1959 : vector<8x1xi32>
    %1961 = vector.shape_cast %1960 : vector<8x1xi1> to vector<8x1xi1>
    %1962 = vector.broadcast %1961 : vector<8x1xi1> to vector<8x128xi1>
    %1963 = vector.shape_cast %1932 : vector<1x128xf32> to vector<1x128xf32>
    %1964 = vector.broadcast %1963 : vector<1x128xf32> to vector<8x128xf32>
    %1965 = vector.shape_cast %1957 : vector<1x128xf32> to vector<1x128xf32>
    %1966 = vector.broadcast %1965 : vector<1x128xf32> to vector<8x128xf32>
    %1967 = arith.select %1962, %1964, %1966 : vector<8x128xi1>, vector<8x128xf32>
    %1968 = arith.mulf %1907, %1967 : vector<8x128xf32>
    %1969 = arith.truncf %1968 : vector<8x128xf32> to vector<8x128xbf16>
    %c0_1120 = arith.constant 0 : index
    %c0_1121 = arith.constant 0 : index
    %1970 = vector.load %arg31[%c0_1120, %c0_1121] : memref<128x128xbf16, #tpu.memory_space<vmem>>, vector<128x128xbf16>
    %cst_1122 = arith.constant dense<0.000000e+00> : vector<8x128xf32>
    %1971 = tpu.matmul %1969, %1970, %cst_1122 {dimension_numbers = #tpu.dot_dimension_numbers<[1], [0], [0], [1], [0, 0, 1, 1], [], []>} : vector<8x128xbf16>, vector<128x128xbf16>, vector<8x128xf32> -> vector<8x128xf32>
    %c0_1123 = arith.constant 0 : index
    %c0_1124 = arith.constant 0 : index
    %1972 = vector.load %arg32[%c0_1123, %c0_1124] : memref<1x128xf32, #tpu.memory_space<vmem>>, vector<1x128xf32>
    %1973 = vector.broadcast %1972 : vector<1x128xf32> to vector<8x128xf32>
    %1974 = arith.addf %1971, %1973 : vector<8x128xf32>
    %c0_1125 = arith.constant 0 : index
    %c0_1126 = arith.constant 0 : index
    %1975 = vector.load %arg33[%c0_1125, %c0_1126] : memref<8x128xf32, #tpu.memory_space<vmem>>, vector<8x128xf32>
    tpu.vector_store %arg33[%c0_1125, %c0_1126], %1974 {strides = array<i32>} : memref<8x128xf32, #tpu.memory_space<vmem>>, vector<8x128xf32>,
    return
  }
}

</mosaic_0001>

<bundles_post_ra>
// kernel: _lambda_.1
= control target key start
LH: loop header
LB: loop body
LE: loop exit
PB: predicated region body
PF: predicated region fallthrough
CT: control target
= control target key end

     0   :  { %s5622_s3 = smov 1   ;;  %v5623_v31 = vmov 0.0   ;;  %s5624_s10 = smov 5   ;;  %vm5625_vm0 = vmmov 0   ;;  %vm4160_vm1 = vcmask 1043456   ;;  %s7251_s0 = inlined_call_operand.smem [shape: u32[34], index: -1, kind: input, shape index: {}] }
   0x1   :  { %s4615_s6 = sld [smem:[%s7251_s0 + %s5622_s3]]   ;;  %1078 = vst [vmem:[#allocation2 + $0x18] sm:$0xff] %v5623_v31  ;;  %1075 = vst [vmem:[#allocation2] sm:$0xff] %v5623_v31  ;;  %5113 = vmatprep.subr.bf16.mxu1 %v5623_v31  ;;  %5129 = vmatprep.mubr.msk.bf16.mxu1 %vm5625_vm0, %v5623_v31  ;;  %s5626_s14 = smov 2  }
   0x2   :  { %s5668_s9 = sld [smem:[%s7251_s0]]   ;;  %1081 = vst [vmem:[#allocation2 + $0x30] sm:$0xff] %v5623_v31  ;;  %1084 = vst [vmem:[#allocation2 + $0x48] sm:$0xff] %v5623_v31  ;;  %s5627_s18 = smov 3  }
   0x3   :  { %1087 = vst [vmem:[#allocation2 + $0x60] sm:$0xff] %v5623_v31  ;;  %1090 = vst [vmem:[#allocation2 + $0x78] sm:$0xff] %v5623_v31  ;;  %s5789_s13 = sld [smem:[%s7251_s0 + %s5624_s10]]   ;;  %s5628_s22 = smov 4  }
   0x4   :  { %1093 = vst [vmem:[#allocation2 + $0x90] sm:$0xff] %v5623_v31  ;;  %1096 = vst [vmem:[#allocation2 + $0xa8] sm:$0xff] %v5623_v31  ;;  %s5812_s17 = sld [smem:[%s7251_s0 + %s5626_s14]]   ;;  %s5629_s26 = smov 7  }
   0x5   :  { %1099 = vst [vmem:[#allocation2 + $0xc0] sm:$0xff] %v5623_v31  ;;  %1102 = vst [vmem:[#allocation2 + $0xd8] sm:$0xff] %v5623_v31  ;;  %s5825_s21 = sld [smem:[%s7251_s0 + %s5627_s18]]   ;;  %s5630_s30 = smov 9  }
   0x6   :  { %1105 = vst [vmem:[#allocation2 + $0xf0] sm:$0xff] %v5623_v31  ;;  %1108 = vst [vmem:[#allocation2 + $0x108] sm:$0xff] %v5623_v31  ;;  %s5932_s25 = sld [smem:[%s7251_s0 + %s5628_s22]]   ;;  %s5631_s4 = smov 6  }
   0x7   :  { %v5472_v0 = vld [vmem:[%s4615_s6 + $0x38] sm:$0xff]   ;;  %v5473_v1 = vld [vmem:[%s4615_s6 + $0x30] sm:$0xff]   ;;  %v5474_v2 = vld [vmem:[%s4615_s6 + $0x28] sm:$0xff]   ;;  %1111 = vst [vmem:[#allocation2 + $0x120] sm:$0xff] %v5623_v31  ;;  %s5954_s29 = sld [smem:[%s7251_s0 + %s5629_s26]]   ;;  %s5632_s8 = smov 11  }
   0x8   :  { %5033 = vmatprep.subr.bf16.mxu0 %v5472_v0  ;;  %v5475_v3 = vld [vmem:[%s4615_s6 + $0x20] sm:$0xff]   ;;  %v5476_v5 = vld [vmem:[%s4615_s6 + $0x18] sm:$0xff]   ;;  %v5477_v6 = vld [vmem:[%s4615_s6 + $0x10] sm:$0xff]   ;;  %1114 = vst [vmem:[#allocation2 + $0x138] sm:$0xff] %v5623_v31  ;;  %s6362_s3 = sld [smem:[%s7251_s0 + %s5630_s30]]   ;;  %s5633_s12 = smov 8  }
   0x9   :  { %5034 = vmatpush3.bf16.msra.mxu0 %v5472_v0  ;;  %v5480_v4 = vld [vmem:[%s5668_s9] sm:$0xff]   ;;  %v5478_v7 = vld [vmem:[%s4615_s6 + $0x8] sm:$0xff]   ;;  %v5482_v10 = vld [vmem:[%s5668_s9 + $0x10] sm:$0xff]   ;;  %1117 = vst [vmem:[#allocation2 + $0x150] sm:$0xff] %v5623_v31  ;;  %s4620_s7 = sld [smem:[%s7251_s0 + %s5631_s4]]   ;;  %s5634_s16 = smov 10  }
   0xa   :  { %5035 = vmatprep.subr.bf16.mxu0 %v5473_v1  ;;  %5049 = vmatprep.mubr.bf16.mxu0 %v5480_v4  ;;  %v5479_v8 = vld [vmem:[%s4615_s6] sm:$0xff]   ;;  %v5481_v9 = vld [vmem:[%s5668_s9 + $0x8] sm:$0xff]   ;;  %v5483_v11 = vld [vmem:[%s5668_s9 + $0x18] sm:$0xff]   ;;  %1120 = vst [vmem:[#allocation2 + $0x168] sm:$0xff] %v5623_v31  ;;  %s6563_s11 = sld [smem:[%s7251_s0 + %s5632_s8]]   ;;  %s5635_s20 = smov 12  }
   0xb   :  { %v5484_v12 = vld [vmem:[%s5668_s9 + $0x20] sm:$0xff]   ;;  %v5485_v13 = vld [vmem:[%s5668_s9 + $0x28] sm:$0xff]   ;;  %v5486_v14 = vld [vmem:[%s5668_s9 + $0x30] sm:$0xff]   ;;  %1123 = vst [vmem:[#allocation2 + $0x180] sm:$0xff] %v5623_v31  ;;  %s4622_s15 = sld [smem:[%s7251_s0 + %s5633_s12]]   ;;  %s5636_s24 = smov 13  }
   0xc   :  { %v5487_v15 = vld [vmem:[%s5668_s9 + $0x38] sm:$0xff]   ;;  %v5488_v16 = vld [vmem:[%s5668_s9 + $0x40] sm:$0xff]   ;;  %v5489_v17 = vld [vmem:[%s5668_s9 + $0x48] sm:$0xff]   ;;  %1126 = vst [vmem:[#allocation2 + $0x198] sm:$0xff] %v5623_v31  ;;  %s4624_s19 = sld [smem:[%s7251_s0 + %s5634_s16]]   ;;  %s5637_s28 = smov 14  }
   0xd   :  { %5036 = vmatpush3.bf16.msra.mxu0 %v5473_v1  ;;  %v5490_v18 = vld [vmem:[%s5668_s9 + $0x50] sm:$0xff]   ;;  %v5491_v19 = vld [vmem:[%s5668_s9 + $0x58] sm:$0xff]   ;;  %v5492_v20 = vld [vmem:[%s5668_s9 + $0x60] sm:$0xff]   ;;  %1129 = vst [vmem:[#allocation2 + $0x1b0] sm:$0xff] %v5623_v31  ;;  %s4626_s23 = sld [smem:[%s7251_s0 + %s5635_s20]]   ;;  %s5638_s2 = smov 15  }
   0xe   :  { %5037 = vmatprep.subr.bf16.mxu0 %v5474_v2  ;;  %v5493_v21 = vld [vmem:[%s5668_s9 + $0x68] sm:$0xff]   ;;  %v5494_v22 = vld [vmem:[%s5668_s9 + $0x70] sm:$0xff]   ;;  %v5495_v23 = vld [vmem:[%s5668_s9 + $0x78] sm:$0xff]   ;;  %1132 = vst [vmem:[#allocation2 + $0x1c8] sm:$0xff] %v5623_v31  ;;  %s6643_s27 = sld [smem:[%s7251_s0 + %s5636_s24]]   ;;  %s5639_s6 = smov 17  }
   0xf   :  { %v5496_v24 = vld [vmem:[%s5668_s9 + $0x80] sm:$0xff]   ;;  %v5497_v25 = vld [vmem:[%s5668_s9 + $0x88] sm:$0xff]   ;;  %v5498_v26 = vld [vmem:[%s5668_s9 + $0x90] sm:$0xff]   ;;  %1135 = vst [vmem:[#allocation2 + $0x1e0] sm:$0xff] %v5623_v31  ;;  %s6674_s1 = sld [smem:[%s7251_s0 + %s5637_s28]]   ;;  %s5640_s10 = smov 16  }
  0x10   :  { %v5499_v27 = vld [vmem:[%s5668_s9 + $0x98] sm:$0xff]   ;;  %v5500_v28 = vld [vmem:[%s5668_s9 + $0xa0] sm:$0xff]   ;;  %v5501_v29 = vld [vmem:[%s5668_s9 + $0xa8] sm:$0xff]   ;;  %1138 = vst [vmem:[#allocation2 + $0x1f8] sm:$0xff] %v5623_v31  ;;  %s4629_s5 = sld [smem:[%s7251_s0 + %s5638_s2]]   ;;  %s5641_s14 = smov 21  }
  0x11   :  { %5038 = vmatpush3.bf16.msra.mxu0 %v5474_v2  ;;  %v5693_v30 = vld [vmem:[%s5668_s9 + $0xb0] sm:$0xff]   ;;  %1141 = vst [vmem:[#allocation2 + $0x210] sm:$0xff] %v5623_v31  ;;  %1144 = vst [vmem:[#allocation2 + $0x228] sm:$0xff] %v5623_v31  ;;  %v5503_v32 = vld [vmem:[%s5668_s9 + $0xb8] sm:$0xff]   ;;  %s5642_s18 = smov 23   ;;  %s5643_s22 = smov 18  }
  0x12   :  { %5039 = vmatprep.subr.bf16.mxu0 %v5475_v3  ;;  %1147 = vst [vmem:[#allocation2 + $0x240] sm:$0xff] %v5623_v31  ;;  %1150 = vst [vmem:[#allocation2 + $0x258] sm:$0xff] %v5623_v31  ;;  %v5504_v33 = vld [vmem:[%s5668_s9 + $0xc0] sm:$0xff]   ;;  %v5505_v34 = vld [vmem:[%s5668_s9 + $0xc8] sm:$0xff]   ;;  %s5644_s26 = smov 19   ;;  %s5645_s30 = smov 20  }
  0x13   :  { %1153 = vst [vmem:[#allocation2 + $0x270] sm:$0xff] %v5623_v31  ;;  %1156 = vst [vmem:[#allocation2 + $0x288] sm:$0xff] %v5623_v31  ;;  %v5506_v35 = vld [vmem:[%s5668_s9 + $0xd0] sm:$0xff]   ;;  %v5507_v36 = vld [vmem:[%s5668_s9 + $0xd8] sm:$0xff]   ;;  %s5646_s4 = smov 22   ;;  %s5647_s8 = smov 27  }
  0x14   :  { %1159 = vst [vmem:[#allocation2 + $0x2a0] sm:$0xff] %v5623_v31  ;;  %1162 = vst [vmem:[#allocation2 + $0x2b8] sm:$0xff] %v5623_v31  ;;  %v5508_v37 = vld [vmem:[%s5668_s9 + $0xe0] sm:$0xff]   ;;  %v5509_v38 = vld [vmem:[%s5668_s9 + $0xe8] sm:$0xff]   ;;  %s5648_s12 = smov 24   ;;  %s5649_s16 = smov 25  }
  0x15   :  { %5040 = vmatpush3.bf16.msra.mxu0 %v5475_v3  ;;  %1165 = vst [vmem:[#allocation2 + $0x2d0] sm:$0xff] %v5623_v31  ;;  %1168 = vst [vmem:[#allocation2 + $0x2e8] sm:$0xff] %v5623_v31  ;;  %v5510_v39 = vld [vmem:[%s5668_s9 + $0xf0] sm:$0xff]   ;;  %v5511_v40 = vld [vmem:[%s5668_s9 + $0xf8] sm:$0xff]   ;;  %s6737_s9 = sld [smem:[%s7251_s0 + %s5639_s6]]   ;;  %s5650_s20 = smov 26  }
  0x16   :  { %5041 = vmatprep.subr.bf16.mxu0 %v5476_v5  ;;  %2587 = vst [vmem:[#allocation4] sm:$0xff] %v5623_v31  ;;  %2589 = vst [vmem:[#allocation4 + $0x10] sm:$0xff] %v5623_v31  ;;  %v5512_v41 = vld [vmem:[%s5789_s13 + $0x38] sm:$0xff]   ;;  %v5513_v42 = vld [vmem:[%s5789_s13 + $0x30] sm:$0xff]   ;;  %s5651_s24 = smov 29   ;;  %s5652_s28 = smov 28  }
  0x17   :  { %2591 = vst [vmem:[#allocation4 + $0x20] sm:$0xff] %v5623_v31  ;;  %2593 = vst [vmem:[#allocation4 + $0x30] sm:$0xff] %v5623_v31  ;;  %5114 = vmatpush3.bf16.msra.mxu1 %v5512_v41  ;;  %v5514_v43 = vld [vmem:[%s5789_s13 + $0x28] sm:$0xff]   ;;  %v5515_v44 = vld [vmem:[%s5789_s13 + $0x20] sm:$0xff]   ;;  %s5653_s2 = smov 31   ;;  %s5654_s6 = smov 30  }
  0x18   :  { %2595 = vst [vmem:[#allocation4 + $0x40] sm:$0xff] %v5623_v31  ;;  %2597 = vst [vmem:[#allocation4 + $0x50] sm:$0xff] %v5623_v31  ;;  %5115 = vmatprep.subr.bf16.mxu1 %v5623_v31  ;;  %v5516_v45 = vld [vmem:[%s5789_s13 + $0x18] sm:$0xff]   ;;  %v5517_v46 = vld [vmem:[%s5789_s13 + $0x10] sm:$0xff]  }
  0x19   :  { %5042 = vmatpush3.bf16.msra.mxu0 %v5476_v5  ;;  %2599 = vst [vmem:[#allocation4 + $0x60] sm:$0xff] %v5623_v31  ;;  %2601 = vst [vmem:[#allocation4 + $0x70] sm:$0xff] %v5623_v31  ;;  %v5518_v47 = vld [vmem:[%s5789_s13 + $0x8] sm:$0xff]   ;;  %v5519_v48 = vld [vmem:[%s5789_s13] sm:$0xff]  }
  0x1a   :  { %5043 = vmatprep.subr.bf16.mxu0 %v5477_v6  ;;  %2603 = vst [vmem:[#allocation4 + $0x80] sm:$0xff] %v5623_v31  ;;  %2605 = vst [vmem:[#allocation4 + $0x90] sm:$0xff] %v5623_v31  ;;  %v5815_v49 = vld [vmem:[%s5812_s17] ss:$0 sm:$0xff] }
  0x1b   :  { %2607 = vst [vmem:[#allocation4 + $0xa0] sm:$0xff] %v5623_v31  ;;  %2609 = vst [vmem:[#allocation4 + $0xb0] sm:$0xff] %v5623_v31  ;;  %5116 = vmatpush3.bf16.msra.mxu1 %v5513_v42 }
  0x1c   :  { %2611 = vst [vmem:[#allocation4 + $0xc0] sm:$0xff] %v5623_v31  ;;  %2613 = vst [vmem:[#allocation4 + $0xd0] sm:$0xff] %v5623_v31  ;;  %5117 = vmatprep.subr.bf16.mxu1 %v5623_v31 }
  0x1d   :  { %5044 = vmatpush3.bf16.msra.mxu0 %v5477_v6  ;;  %2615 = vst [vmem:[#allocation4 + $0xe0] sm:$0xff] %v5623_v31  ;;  %2617 = vst [vmem:[#allocation4 + $0xf0] sm:$0xff] %v5623_v31 }
  0x1e   :  { %5045 = vmatprep.subr.bf16.mxu0 %v5478_v7  ;;  %3185 = vst [vmem:[#allocation6] sm:$0xff] %v5623_v31  ;;  %3186 = vst [vmem:[#allocation6 + $0xc] sm:$0x1] %v5623_v31 }
  0x1f   :  { %3188 = vst [vmem:[#allocation6 + $0x10] sm:$0xff] %v5623_v31  ;;  %3189 = vst [vmem:[#allocation6 + $0x1c] sm:$0x1] %v5623_v31  ;;  %5118 = vmatpush3.bf16.msra.mxu1 %v5514_v43 }
  0x20   :  { %3191 = vst [vmem:[#allocation6 + $0x20] sm:$0xff] %v5623_v31  ;;  %3192 = vst [vmem:[#allocation6 + $0x2c] sm:$0x1] %v5623_v31  ;;  %5119 = vmatprep.subr.bf16.mxu1 %v5623_v31 }
  0x21   :  { %5046 = vmatpush3.bf16.msra.mxu0 %v5478_v7  ;;  %3194 = vst [vmem:[#allocation6 + $0x30] sm:$0xff] %v5623_v31  ;;  %3195 = vst [vmem:[#allocation6 + $0x3c] sm:$0x1] %v5623_v31 }
  0x22   :  { %5047 = vmatprep.subr.bf16.mxu0 %v5479_v8  ;;  %3197 = vst [vmem:[#allocation6 + $0x40] sm:$0xff] %v5623_v31  ;;  %3198 = vst [vmem:[#allocation6 + $0x4c] sm:$0x1] %v5623_v31 }
  0x23   :  { %3200 = vst [vmem:[#allocation6 + $0x50] sm:$0xff] %v5623_v31  ;;  %3201 = vst [vmem:[#allocation6 + $0x5c] sm:$0x1] %v5623_v31  ;;  %5120 = vmatpush3.bf16.msra.mxu1 %v5515_v44 }
  0x24   :  { %3203 = vst [vmem:[#allocation6 + $0x60] sm:$0xff] %v5623_v31  ;;  %3204 = vst [vmem:[#allocation6 + $0x6c] sm:$0x1] %v5623_v31  ;;  %5121 = vmatprep.subr.bf16.mxu1 %v5623_v31 }
  0x25   :  { %5048 = vmatpush3.bf16.msra.mxu0 %v5479_v8  ;;  %3206 = vst [vmem:[#allocation6 + $0x70] sm:$0xff] %v5623_v31  ;;  %3207 = vst [vmem:[#allocation6 + $0x7c] sm:$0x1] %v5623_v31 }
  0x26   :  { %3729 = vst [vmem:[#allocation8] sm:$0xff] %v5623_v31  ;;  %3730 = vst [vmem:[#allocation8 + $0xc] sm:$0x1] %v5623_v31 }
  0x27   :  { %3732 = vst [vmem:[#allocation8 + $0x10] sm:$0xff] %v5623_v31  ;;  %3733 = vst [vmem:[#allocation8 + $0x1c] sm:$0x1] %v5623_v31  ;;  %5122 = vmatpush3.bf16.msra.mxu1 %v5516_v45 }
  0x28   :  { %5050 = vmatmul.mubr.bf16.vlgmr.msra.gmra.mxu0 %v5481_v9  ;;  %3735 = vst [vmem:[#allocation8 + $0x20] sm:$0xff] %v5623_v31  ;;  %3736 = vst [vmem:[#allocation8 + $0x2c] sm:$0x1] %v5623_v31  ;;  %5123 = vmatprep.subr.bf16.mxu1 %v5623_v31 }
  0x29   :  { %5053 = vmatprep.mubr.bf16.mxu0 %v5482_v10  ;;  %3738 = vst [vmem:[#allocation8 + $0x30] sm:$0xff] %v5623_v31  ;;  %3739 = vst [vmem:[#allocation8 + $0x3c] sm:$0x1] %v5623_v31 }
  0x2a   :  { %3741 = vst [vmem:[#allocation8 + $0x40] sm:$0xff] %v5623_v31  ;;  %3742 = vst [vmem:[#allocation8 + $0x4c] sm:$0x1] %v5623_v31 }
  0x2b   :  { %3744 = vst [vmem:[#allocation8 + $0x50] sm:$0xff] %v5623_v31  ;;  %3745 = vst [vmem:[#allocation8 + $0x5c] sm:$0x1] %v5623_v31  ;;  %5124 = vmatpush3.bf16.msra.mxu1 %v5517_v46 }
  0x2c   :  { %3747 = vst [vmem:[#allocation8 + $0x60] sm:$0xff] %v5623_v31  ;;  %3748 = vst [vmem:[#allocation8 + $0x6c] sm:$0x1] %v5623_v31  ;;  %5125 = vmatprep.subr.bf16.mxu1 %v5623_v31 }
  0x2d   :  { %3750 = vst [vmem:[#allocation8 + $0x70] sm:$0xff] %v5623_v31  ;;  %3751 = vst [vmem:[#allocation8 + $0x7c] sm:$0x1] %v5623_v31 }
  0x2f   :  { %5126 = vmatpush3.bf16.msra.mxu1 %v5518_v47 }
  0x30   :  { %5054 = vmatmul.mubr.bf16.gmra.mxu0 %v5483_v11  ;;  %5127 = vmatprep.subr.bf16.mxu1 %v5623_v31 }
  0x31   :  { %5057 = vmatprep.mubr.bf16.mxu0 %v5484_v12 }
  0x33   :  { %5128 = vmatpush3.bf16.msra.mxu1 %v5519_v48  ;;  %v5842_v48 = vld [vmem:[%s5825_s21 + $0x2] ss:$0 sm:$0xff] }
  0x34   :  { %5133 = vmatprep.subr.bf16.mxu1 %v5623_v31 }
  0x38   :  { %5058 = vmatmul.mubr.bf16.gmra.mxu0 %v5485_v13 }
  0x39   :  { %5061 = vmatprep.mubr.bf16.mxu0 %v5486_v14 }
  0x40   :  { %5062 = vmatmul.mubr.bf16.gmra.mxu0 %v5487_v15 }
  0x41   :  { %5065 = vmatprep.mubr.bf16.mxu0 %v5488_v16 }
  0x48   :  { %5066 = vmatmul.mubr.bf16.gmra.mxu0 %v5489_v17 }
  0x49   :  { %5069 = vmatprep.mubr.bf16.mxu0 %v5490_v18 }
  0x50   :  { %5070 = vmatmul.mubr.bf16.gmra.mxu0 %v5491_v19 }
  0x51   :  { %5073 = vmatprep.mubr.bf16.mxu0 %v5492_v20 }
  0x58   :  { %5074 = vmatmul.mubr.bf16.gmra.mxu0 %v5493_v21 }
  0x59   :  { %5077 = vmatprep.mubr.bf16.mxu0 %v5494_v22 }
  0x60   :  { %5078 = vmatmul.mubr.bf16.gmra.mxu0 %v5495_v23 }
  0x61   :  { %5081 = vmatprep.mubr.bf16.mxu0 %v5496_v24 }
  0x68   :  { %5082 = vmatmul.mubr.bf16.gmra.mxu0 %v5497_v25 }
  0x69   :  { %5085 = vmatprep.mubr.bf16.mxu0 %v5498_v26 }
  0x70   :  { %5086 = vmatmul.mubr.bf16.gmra.mxu0 %v5499_v27 }
  0x71   :  { %5089 = vmatprep.mubr.bf16.mxu0 %v5500_v28 }
  0x78   :  { %5090 = vmatmul.mubr.bf16.gmra.mxu0 %v5501_v29 }
  0x79   :  { %5093 = vmatprep.mubr.bf16.mxu0 %v5693_v30 }
  0x80   :  { %5094 = vmatmul.mubr.bf16.gmra.mxu0 %v5503_v32 }
  0x81   :  { %5097 = vmatprep.mubr.bf16.mxu0 %v5504_v33 }
  0x88   :  { %5098 = vmatmul.mubr.bf16.gmra.mxu0 %v5505_v34 }
  0x89   :  { %5101 = vmatprep.mubr.bf16.mxu0 %v5506_v35 }
  0x90   :  { %5102 = vmatmul.mubr.bf16.gmra.mxu0 %v5507_v36 }
  0x91   :  { %5105 = vmatprep.mubr.bf16.mxu0 %v5508_v37 }
  0x98   :  { %5106 = vmatmul.mubr.bf16.gmra.mxu0 %v5509_v38 }
  0x99   :  { %5109 = vmatprep.mubr.bf16.mxu0 %v5510_v39  ;;  %v5835_v39 = vld [vmem:[%s5825_s21] ss:$0 sm:$0xff] }
  0xa0   :  { %5110 = vmatmul.mubr.bf16.gmra.mxu0 %v5511_v40  ;;  %v5838_v40 = vld [vmem:[%s5825_s21 + $0x1] ss:$0 sm:$0xff] }
  0xe8   :  { %v5051_v50 = vpop.f32.mrf.mxu0 }
  0xe9   :  { %v509_v51 = vadd.f32 %v5051_v50, %v5815_v49  ;;  %v5845_v50 = vld [vmem:[%s5825_s21 + $0x3] ss:$0 sm:$0xff] }
  0xea   :  { %v500_v52 = vpop.f32.mrf.mxu0 }
  0xeb   :  { %v757_v53 = vadd.f32 3.0, %v509_v51  ;;  %v501_v54 = vadd.f32 %v5815_v49, %v500_v52 }
  0xec   :  { %v5052_v55 = vpop.f32.mrf.mxu0 }
  0xed   :  { %v821_v56 = vmax.f32 %v757_v53, 0.0  ;;  %v755_v57 = vadd.f32 3.0, %v501_v54  ;;  %v512_v58 = vadd.f32 %v5052_v55, %v5815_v49 }
  0xee   :  { %v503_v59 = vpop.f32.mrf.mxu0 }
  0xef   :  { %v885_v60 = vmin.f32 %v821_v56, 6.0  ;;  %v819_v61 = vmax.f32 %v755_v57, 0.0  ;;  %v758_v62 = vadd.f32 3.0, %v512_v58  ;;  %v504_v63 = vadd.f32 %v5815_v49, %v503_v59 }
  0xf0   :  { %v5055_v0 = vpop.f32.mrf.mxu0 }
  0xf1   :  { %v949_v1 = vmul.f32 0.16666667, %v885_v60  ;;  %v883_v2 = vmin.f32 %v819_v61, 6.0  ;;  %v822_v3 = vmax.f32 %v758_v62, 0.0  ;;  %v756_v4 = vadd.f32 3.0, %v504_v63 }
  0xf2   :  { %v525_v5 = vadd.f32 %v5055_v0, %v5815_v49  ;;  %v516_v6 = vpop.f32.mrf.mxu0 }
  0xf3   :  { %v1013_v7 = vmul.f32 %v949_v1, %v509_v51  ;;  %v947_v8 = vmul.f32 0.16666667, %v883_v2  ;;  %v886_v9 = vmin.f32 %v822_v3, 6.0  ;;  %v820_v10 = vmax.f32 %v756_v4, 0.0  ;;  %v5848_v51 = vld [vmem:[%s5825_s21 + $0x4] ss:$0 sm:$0xff] }
  0xf4   :  { %v761_v11 = vadd.f32 3.0, %v525_v5  ;;  %v517_v12 = vadd.f32 %v5815_v49, %v516_v6  ;;  %v5056_v13 = vpop.f32.mrf.mxu0  ;;  %v5862_v4 = vld [vmem:[%s5825_s21 + $0x7] ss:$0 sm:$0xff] }
  0xf5   :  { %1079 = vst [vmem:[#allocation2 + $0x20] sm:$0xff] %v1013_v7  ;;  %v1011_v14 = vmul.f32 %v947_v8, %v501_v54  ;;  %v950_v15 = vmul.f32 0.16666667, %v886_v9  ;;  %v884_v16 = vmin.f32 %v820_v10, 6.0  ;;  %v528_v17 = vadd.f32 %v5056_v13, %v5815_v49 }
  0xf6   :  { %v825_v18 = vmax.f32 %v761_v11, 0.0  ;;  %v759_v19 = vadd.f32 3.0, %v517_v12  ;;  %v519_v20 = vpop.f32.mrf.mxu0 }
  0xf7   :  { %1076 = vst [vmem:[#allocation2 + $0x8] sm:$0xff] %v1011_v14  ;;  %v1014_v21 = vmul.f32 %v950_v15, %v512_v58  ;;  %v948_v22 = vmul.f32 0.16666667, %v884_v16  ;;  %v762_v23 = vadd.f32 3.0, %v528_v17  ;;  %v520_v24 = vadd.f32 %v5815_v49, %v519_v20  ;;  %v5851_v58 = vld [vmem:[%s5825_s21 + $0x6] ss:$0 sm:$0xff] }
  0xf8   :  { %v889_v25 = vmin.f32 %v825_v18, 6.0  ;;  %v823_v26 = vmax.f32 %v759_v19, 0.0  ;;  %v5059_v27 = vpop.f32.mrf.mxu0 }
  0xf9   :  { %1080 = vst [vmem:[#allocation2 + $0x28] sm:$0xff] %v1014_v21  ;;  %v1012_v28 = vmul.f32 %v948_v22, %v504_v63  ;;  %v826_v29 = vmax.f32 %v762_v23, 0.0  ;;  %v760_v30 = vadd.f32 3.0, %v520_v24  ;;  %v541_v31 = vadd.f32 %v5059_v27, %v5815_v49 }
  0xfa   :  { %v953_v32 = vmul.f32 0.16666667, %v889_v25  ;;  %v887_v33 = vmin.f32 %v823_v26, 6.0  ;;  %v532_v34 = vpop.f32.mrf.mxu0 }
  0xfb   :  { %1077 = vst [vmem:[#allocation2 + $0x10] sm:$0xff] %v1012_v28  ;;  %v890_v35 = vmin.f32 %v826_v29, 6.0  ;;  %v824_v36 = vmax.f32 %v760_v30, 0.0  ;;  %v765_v37 = vadd.f32 3.0, %v541_v31  ;;  %v5832_v38 = vadd.f32 %v5815_v49, %v532_v34  ;;  %v5886_v28 = vld [vmem:[%s5825_s21 + $0x5] ss:$0 sm:$0xff] }
  0xfc   :  { %v1017_v41 = vmul.f32 %v953_v32, %v525_v5  ;;  %v951_v42 = vmul.f32 0.16666667, %v887_v33  ;;  %v5060_v43 = vpop.f32.mrf.mxu0 }
  0xfd   :  { %v954_v44 = vmul.f32 0.16666667, %v890_v35  ;;  %v888_v45 = vmin.f32 %v824_v36, 6.0  ;;  %v829_v46 = vmax.f32 %v765_v37, 0.0  ;;  %v763_v47 = vadd.f32 3.0, %v5832_v38 }
  0xfe   :  { %1085 = vst [vmem:[#allocation2 + $0x50] sm:$0xff] %v1017_v41  ;;  %v1015_v52 = vmul.f32 %v951_v42, %v517_v12  ;;  %v535_v53 = vpop.f32.mrf.mxu0  ;;  %v5854_v62 = vadd.f32 %v5060_v43, %v5815_v49 }
  0xff   :  { %v1018_v54 = vmul.f32 %v954_v44, %v528_v17  ;;  %v952_v55 = vmul.f32 0.16666667, %v888_v45  ;;  %v893_v56 = vmin.f32 %v829_v46, 6.0  ;;  %v827_v57 = vmax.f32 %v763_v47, 0.0  ;;  %v5874_v17 = vld [vmem:[%s5825_s21 + $0x8] ss:$0 sm:$0xff] }
 0x100   :  { %v1237_v59 = vld [vmem:[#allocation2 + $0x1f] ss:$2 sm:$0xff]  ;;  %v1243_v60 = vld [vmem:[#allocation2 + $0x20] ss:$2 sm:$0xff]  ;;  %1082 = vst [vmem:[#allocation2 + $0x38] sm:$0xff] %v1015_v52  ;;  %v5857_v63 = vadd.f32 %v5815_v49, %v535_v53  ;;  %v5063_v0 = vpop.f32.mrf.mxu0  ;;  %v766_v20 = vadd.f32 3.0, %v5854_v62 }
 0x101   :  { %v1250_v61 = vld [vmem:[#allocation2 + $0x21] ss:$2 sm:$0xff]  ;;  %v1242_v1 = vmul.f32 %v5835_v39, %v1237_v59  ;;  %v1248_v2 = vmul.f32 %v5838_v40, %v1243_v60  ;;  %1086 = vst [vmem:[#allocation2 + $0x58] sm:$0xff] %v1018_v54  ;;  %v1016_v3 = vmul.f32 %v952_v55, %v520_v24  ;;  %v5866_v9 = vadd.f32 %v5063_v0, %v5815_v49  ;;  %v1213_v12 = vld [vmem:[#allocation2 + $0x20] ss:$2 sm:$0xff] }
 0x102   :  { %v1205_v5 = vld [vmem:[#allocation2 + $0x1f] ss:$2 sm:$0xff]  ;;  %v1255_v6 = vmul.f32 %v5842_v48, %v1250_v61  ;;  %v1189_v8 = vld [vmem:[#allocation2 + $0x8] ss:$2 sm:$0xff]  ;;  %v548_v10 = vpop.f32.mrf.mxu0  ;;  %v957_v16 = vmul.f32 0.16666667, %v893_v56  ;;  %v5889_v29 = vmul.f32 %v5862_v4, %v1213_v12 }
 0x103   :  { %v1182_v7 = vld [vmem:[#allocation2 + $0x7] ss:$2 sm:$0xff]  ;;  %v5869_v11 = vmul.f32 %v5851_v58, %v1205_v5  ;;  %v1249_v13 = vadd.f32 %v1248_v2, %v1242_v1  ;;  %v1194_v15 = vmul.f32 %v5848_v51, %v1189_v8  ;;  %1083 = vst [vmem:[#allocation2 + $0x40] sm:$0xff] %v1016_v3  ;;  %v891_v19 = vmin.f32 %v827_v57, 6.0 }
 0x104   :  { %v1187_v14 = vmul.f32 %v5845_v50, %v1182_v7  ;;  %v1221_v18 = vld [vmem:[#allocation2 + $0x21] ss:$2 sm:$0xff]  ;;  %v764_v21 = vadd.f32 3.0, %v5857_v63  ;;  %v769_v22 = vadd.f32 3.0, %v5866_v9  ;;  %v5064_v23 = vpop.f32.mrf.mxu0  ;;  %v1021_v25 = vmul.f32 %v957_v16, %v541_v31 }
 0x105   :  { %v1197_v24 = vld [vmem:[#allocation2 + $0x9] ss:$2 sm:$0xff]  ;;  %v5880_v26 = vadd.f32 %v5815_v49, %v548_v10  ;;  %v5883_v27 = vadd.f32 %v5064_v23, %v5815_v49  ;;  %v955_v30 = vmul.f32 0.16666667, %v891_v19  ;;  %v830_v32 = vmax.f32 %v766_v20, 0.0 }
 0x106   :  { %v828_v33 = vmax.f32 %v764_v21, 0.0  ;;  %v551_v34 = vpop.f32.mrf.mxu0  ;;  %v5892_v35 = vmul.f32 %v5874_v17, %v1221_v18  ;;  %1091 = vst [vmem:[#allocation2 + $0x80] sm:$0xff] %v1021_v25  ;;  %v833_v31 = vmax.f32 %v769_v22, 0.0  ;;  %v1195_v41 = vadd.f32 %v1194_v15, %v1187_v14 }
 0x107   :  { %v767_v36 = vadd.f32 3.0, %v5880_v26  ;;  %v770_v37 = vadd.f32 3.0, %v5883_v27  ;;  %v5896_v42 = vadd.f32 %v1255_v6, %v1249_v13  ;;  %v1019_v46 = vmul.f32 %v955_v30, %v5832_v38 }
 0x108   :  { %v1284_v43 = vld [vmem:[#allocation2 + $0x4f] ss:$2 sm:$0xff]  ;;  %v1286_v44 = vld [vmem:[#allocation2 + $0x50] ss:$2 sm:$0xff]  ;;  %v5900_v47 = vadd.f32 %v5815_v49, %v551_v34  ;;  %v5067_v52 = vpop.f32.mrf.mxu0  ;;  %v1202_v53 = vmul.f32 %v5886_v28, %v1197_v24  ;;  %v894_v57 = vmin.f32 %v830_v32, 6.0  ;;  %v892_v12 = vmin.f32 %v828_v33, 6.0 }
 0x109   :  { %v1289_v45 = vld [vmem:[#allocation2 + $0x51] ss:$2 sm:$0xff]  ;;  %v1285_v54 = vmul.f32 %v5835_v39, %v1284_v43  ;;  %v1287_v55 = vmul.f32 %v5838_v40, %v1286_v44  ;;  %v1274_v60 = vld [vmem:[#allocation2 + $0x50] ss:$2 sm:$0xff]  ;;  %1088 = vst [vmem:[#allocation2 + $0x68] sm:$0xff] %v1019_v46  ;;  %v573_v38 = vadd.f32 %v5067_v52, %v5815_v49  ;;  %v897_v13 = vmin.f32 %v833_v31, 6.0 }
 0x10a   :  { %v5906_v56 = vmul.f32 %v5842_v48, %v1289_v45  ;;  %v1270_v59 = vld [vmem:[#allocation2 + $0x4f] ss:$2 sm:$0xff]  ;;  %v1262_v0 = vld [vmem:[#allocation2 + $0x38] ss:$2 sm:$0xff]  ;;  %v564_v1 = vpop.f32.mrf.mxu0  ;;  %v1203_v2 = vadd.f32 %v1202_v53, %v1195_v41  ;;  %v5913_v5 = vmul.f32 %v5862_v4, %v1274_v60  ;;  %v958_v10 = vmul.f32 0.16666667, %v894_v57 }
 0x10b   :  { %v1258_v61 = vld [vmem:[#allocation2 + $0x37] ss:$2 sm:$0xff]  ;;  %v5910_v3 = vmul.f32 %v5851_v58, %v1270_v59  ;;  %v5915_v6 = vadd.f32 %v1287_v55, %v1285_v54  ;;  %v5921_v8 = vmul.f32 %v5848_v51, %v1262_v0  ;;  %v831_v14 = vmax.f32 %v767_v36, 0.0 }
 0x10c   :  { %v5918_v7 = vmul.f32 %v5845_v50, %v1258_v61  ;;  %v834_v15 = vmax.f32 %v770_v37, 0.0  ;;  %v5068_v16 = vpop.f32.mrf.mxu0  ;;  %v1022_v18 = vmul.f32 %v958_v10, %v5854_v62  ;;  %v768_v19 = vadd.f32 3.0, %v5900_v47  ;;  %v1266_v53 = vld [vmem:[#allocation2 + $0x39] ss:$2 sm:$0xff] }
 0x10d   :  { %v773_v20 = vadd.f32 3.0, %v573_v38  ;;  %v565_v21 = vadd.f32 %v5815_v49, %v564_v1  ;;  %v956_v22 = vmul.f32 0.16666667, %v892_v12  ;;  %v961_v23 = vmul.f32 0.16666667, %v897_v13 }
 0x10e   :  { %v895_v24 = vmin.f32 %v831_v14, 6.0  ;;  %v898_v25 = vmin.f32 %v834_v15, 6.0  ;;  %v567_v30 = vpop.f32.mrf.mxu0  ;;  %1092 = vst [vmem:[#allocation2 + $0x88] sm:$0xff] %v1022_v18  ;;  %v832_v32 = vmax.f32 %v768_v19, 0.0  ;;  %v5927_v31 = vadd.f32 %v5068_v16, %v5815_v49 }
 0x10f   :  { %v837_v34 = vmax.f32 %v773_v20, 0.0  ;;  %v771_v33 = vadd.f32 3.0, %v565_v21  ;;  %v1020_v62 = vmul.f32 %v956_v22, %v5857_v63  ;;  %v1025_v36 = vmul.f32 %v961_v23, %v5866_v9 }
 0x110   :  { %v959_v37 = vmul.f32 0.16666667, %v895_v24  ;;  %v962_v41 = vmul.f32 0.16666667, %v898_v25  ;;  %v5071_v43 = vpop.f32.mrf.mxu0  ;;  %v896_v44 = vmin.f32 %v832_v32, 6.0  ;;  %v774_v52 = vadd.f32 3.0, %v5927_v31 }
 0x111   :  { %v901_v45 = vmin.f32 %v837_v34, 6.0  ;;  %v835_v46 = vmax.f32 %v771_v33, 0.0  ;;  %1089 = vst [vmem:[#allocation2 + $0x70] sm:$0xff] %v1020_v62  ;;  %1097 = vst [vmem:[#allocation2 + $0xb0] sm:$0xff] %v1025_v36  ;;  %v5940_v57 = vadd.f32 %v5815_v49, %v567_v30  ;;  %v5943_v63 = vadd.f32 %v5071_v43, %v5815_v49  ;;  %v5976_v32 = vld [vmem:[%s5932_s25] ss:$0 sm:$0xff] }
 0x112   :  { %v1023_v54 = vmul.f32 %v959_v37, %v5880_v26  ;;  %v1026_v55 = vmul.f32 %v962_v41, %v5883_v27  ;;  %v580_v9 = vpop.f32.mrf.mxu0  ;;  %v960_v59 = vmul.f32 0.16666667, %v896_v44  ;;  %v838_v0 = vmax.f32 %v774_v52, 0.0 }
 0x113   :  { %v965_v60 = vmul.f32 0.16666667, %v901_v45  ;;  %v899_v61 = vmin.f32 %v835_v46, 6.0  ;;  %v772_v1 = vadd.f32 3.0, %v5940_v57  ;;  %v777_v10 = vadd.f32 3.0, %v5943_v63 }
 0x114   :  { %1094 = vst [vmem:[#allocation2 + $0x98] sm:$0xff] %v1023_v54  ;;  %1098 = vst [vmem:[#allocation2 + $0xb8] sm:$0xff] %v1026_v55  ;;  %v5948_v26 = vadd.f32 %v5815_v49, %v580_v9  ;;  %v5072_v27 = vpop.f32.mrf.mxu0  ;;  %v1211_v12 = vadd.f32 %v5869_v11, %v1203_v2  ;;  %v1024_v13 = vmul.f32 %v960_v59, %v5900_v47  ;;  %v902_v16 = vmin.f32 %v838_v0, 6.0 }
 0x115   :  { %v1029_v14 = vmul.f32 %v965_v60, %v573_v38  ;;  %v963_v15 = vmul.f32 0.16666667, %v899_v61  ;;  %v1319_v18 = vld [vmem:[#allocation2 + $0x7f] ss:$2 sm:$0xff]  ;;  %v1321_v19 = vld [vmem:[#allocation2 + $0x80] ss:$2 sm:$0xff]  ;;  %v5958_v22 = vadd.f32 %v5072_v27, %v5815_v49  ;;  %v1260_v2 = vadd.f32 %v5918_v7, %v5896_v42 }
 0x116   :  { %v1324_v20 = vld [vmem:[#allocation2 + $0x81] ss:$2 sm:$0xff]  ;;  %v583_v23 = vpop.f32.mrf.mxu0  ;;  %v1219_v11 = vadd.f32 %v5889_v29, %v1211_v12  ;;  %v5964_v24 = vmul.f32 %v5886_v28, %v1266_v53  ;;  %v5967_v47 = vmul.f32 %v5835_v39, %v1319_v18  ;;  %v5970_v38 = vmul.f32 %v5838_v40, %v1321_v19  ;;  %1095 = vst [vmem:[#allocation2 + $0xa0] sm:$0xff] %v1024_v13  ;;  %v1278_v29 = vld [vmem:[#allocation2 + $0x51] ss:$2 sm:$0xff] }
 0x117   :  { %v5973_v25 = vmul.f32 %v5842_v48, %v1324_v20  ;;  %1103 = vst [vmem:[#allocation2 + $0xe0] sm:$0xff] %v1029_v14  ;;  %v1027_v30 = vmul.f32 %v963_v15, %v565_v21  ;;  %v966_v34 = vmul.f32 0.16666667, %v902_v16  ;;  %v836_v42 = vmax.f32 %v772_v1, 0.0 }
 0x118   :  { %v841_v7 = vmax.f32 %v777_v10, 0.0  ;;  %v775_v33 = vadd.f32 3.0, %v5948_v26  ;;  %v5075_v62 = vpop.f32.mrf.mxu0  ;;  %v1293_v36 = vld [vmem:[#allocation2 + $0x67] ss:$2 sm:$0xff]  ;;  %v778_v37 = vadd.f32 3.0, %v5958_v22  ;;  %v584_v41 = vadd.f32 %v5815_v49, %v583_v23 }
 0x119   :  { %1100 = vst [vmem:[#allocation2 + $0xc8] sm:$0xff] %v1027_v30  ;;  %v5982_v43 = vadd.f32 %v5075_v62, %v5815_v49  ;;  %v1227_v21 = vadd.f32 %v5892_v35, %v1219_v11  ;;  %v5986_v44 = vmul.f32 %v5845_v50, %v1293_v36  ;;  %v1030_v45 = vmul.f32 %v966_v34, %v5927_v31 }
 0x11a   :  { %v900_v46 = vmin.f32 %v836_v42, 6.0  ;;  %v905_v52 = vmin.f32 %v841_v7, 6.0  ;;  %v596_v53 = vpop.f32.mrf.mxu0  ;;  %v5994_v60 = vadd.f32 %v5921_v8, %v1260_v2  ;;  %v5997_v35 = vmul.f32 %v5874_v17, %v1278_v29 }
 0x11b   :  { %v1354_v54 = vld [vmem:[#allocation2 + $0xaf] ss:$2 sm:$0xff]  ;;  %v1356_v55 = vld [vmem:[#allocation2 + $0xb0] ss:$2 sm:$0xff]  ;;  %v597_v9 = vadd.f32 %v5815_v49, %v596_v53  ;;  %v5991_v59 = vadd.f32 %v5976_v32, %v1227_v21  ;;  %1104 = vst [vmem:[#allocation2 + $0xe8] sm:$0xff] %v1030_v45  ;;  %v839_v27 = vmax.f32 %v775_v33, 0.0 }
 0x11c   :  { %v6000_v61 = vmul.f32 %v5835_v39, %v1354_v54  ;;  %v6003_v31 = vmul.f32 %v5838_v40, %v1356_v55  ;;  %v964_v0 = vmul.f32 0.16666667, %v900_v46  ;;  %v969_v1 = vmul.f32 0.16666667, %v905_v52  ;;  %v5076_v10 = vpop.f32.mrf.mxu0 }
 0x11d   :  { %v842_v12 = vmax.f32 %v778_v37, 0.0  ;;  %v776_v13 = vadd.f32 3.0, %v584_v41  ;;  %v781_v14 = vadd.f32 3.0, %v5982_v43  ;;  %v779_v16 = vadd.f32 3.0, %v597_v9 }
 0x11e   :  { %v1028_v8 = vmul.f32 %v964_v0, %v5940_v57  ;;  %v1033_v15 = vmul.f32 %v969_v1, %v5943_v63  ;;  %v608_v18 = vadd.f32 %v5076_v10, %v5815_v49  ;;  %v599_v19 = vpop.f32.mrf.mxu0  ;;  %v903_v20 = vmin.f32 %v839_v27, 6.0 }
 0x11f   :  { %v906_v23 = vmin.f32 %v842_v12, 6.0  ;;  %v840_v11 = vmax.f32 %v776_v13, 0.0  ;;  %v845_v2 = vmax.f32 %v781_v14, 0.0  ;;  %v843_v30 = vmax.f32 %v779_v16, 0.0 }
 0x120   :  { %1101 = vst [vmem:[#allocation2 + $0xd0] sm:$0xff] %v1028_v8  ;;  %1109 = vst [vmem:[#allocation2 + $0x110] sm:$0xff] %v1033_v15  ;;  %v782_v29 = vadd.f32 3.0, %v608_v18  ;;  %v600_v34 = vadd.f32 %v5815_v49, %v599_v19  ;;  %v5079_v42 = vpop.f32.mrf.mxu0  ;;  %v1235_v7 = vmax.f32 %v5991_v59, 0.0  ;;  %v967_v57 = vmul.f32 0.16666667, %v903_v20 }
 0x121   :  { %v970_v33 = vmul.f32 0.16666667, %v906_v23  ;;  %v904_v63 = vmin.f32 %v840_v11, 6.0  ;;  %v909_v62 = vmin.f32 %v845_v2, 6.0  ;;  %v907_v36 = vmin.f32 %v843_v30, 6.0 }
 0x122   :  { %v846_v37 = vmax.f32 %v782_v29, 0.0  ;;  %v780_v21 = vadd.f32 3.0, %v600_v34  ;;  %v621_v45 = vadd.f32 %v5079_v42, %v5815_v49  ;;  %v612_v46 = vpop.f32.mrf.mxu0  ;;  %v1031_v52 = vmul.f32 %v967_v57, %v5948_v26  ;;  %v1297_v23 = vld [vmem:[#allocation2 + $0x68] ss:$2 sm:$0xff] }
 0x123   :  { %v1034_v53 = vmul.f32 %v970_v33, %v5958_v22  ;;  %v968_v54 = vmul.f32 0.16666667, %v904_v63  ;;  %v613_v55 = vadd.f32 %v5815_v49, %v612_v46  ;;  %v973_v0 = vmul.f32 0.16666667, %v909_v62  ;;  %v1309_v46 = vld [vmem:[#allocation2 + $0x80] ss:$2 sm:$0xff] }
 0x124   :  { %v971_v1 = vmul.f32 0.16666667, %v907_v36  ;;  %v910_v10 = vmin.f32 %v846_v37, 6.0  ;;  %v844_v27 = vmax.f32 %v780_v21, 0.0  ;;  %v5080_v12 = vpop.f32.mrf.mxu0  ;;  %1106 = vst [vmem:[#allocation2 + $0xf8] sm:$0xff] %v1031_v52  ;;  %v785_v14 = vadd.f32 3.0, %v621_v45 }
 0x125   :  { %1110 = vst [vmem:[#allocation2 + $0x118] sm:$0xff] %v1034_v53  ;;  %v1032_v13 = vmul.f32 %v968_v54, %v584_v41  ;;  %v783_v8 = vadd.f32 3.0, %v613_v55  ;;  %v624_v15 = vadd.f32 %v5080_v12, %v5815_v49  ;;  %v1037_v16 = vmul.f32 %v973_v0, %v5982_v43  ;;  %v1301_v21 = vld [vmem:[#allocation2 + $0x69] ss:$2 sm:$0xff] }
 0x126   :  { %v1035_v26 = vmul.f32 %v971_v1, %v597_v9  ;;  %v974_v19 = vmul.f32 0.16666667, %v910_v10  ;;  %v908_v22 = vmin.f32 %v844_v27, 6.0  ;;  %v615_v20 = vpop.f32.mrf.mxu0  ;;  %v849_v11 = vmax.f32 %v785_v14, 0.0  ;;  %v1305_v9 = vld [vmem:[#allocation2 + $0x7f] ss:$2 sm:$0xff] }
 0x127   :  { %1107 = vst [vmem:[#allocation2 + $0x100] sm:$0xff] %v1032_v13  ;;  %v847_v2 = vmax.f32 %v783_v8, 0.0  ;;  %v786_v30 = vadd.f32 3.0, %v624_v15  ;;  %v6018_v29 = vadd.f32 %v5815_v49, %v615_v20  ;;  %1115 = vst [vmem:[#allocation2 + $0x140] sm:$0xff] %v1037_v16  ;;  %v1268_v57 = vadd.f32 %v5964_v24, %v5994_v60  ;;  %v1313_v52 = vld [vmem:[#allocation2 + $0x81] ss:$2 sm:$0xff] }
 0x128   :  { %1112 = vst [vmem:[#allocation2 + $0x128] sm:$0xff] %v1035_v26  ;;  %v1038_v41 = vmul.f32 %v974_v19, %v608_v18  ;;  %v972_v42 = vmul.f32 0.16666667, %v908_v22  ;;  %v1291_v43 = vadd.f32 %v5906_v56, %v5915_v6  ;;  %v6024_v33 = vpop.f32.mrf.mxu0  ;;  %v913_v63 = vmin.f32 %v849_v11, 6.0  ;;  %v1328_v10 = vld [vmem:[#allocation2 + $0x97] ss:$2 sm:$0xff] }
 0x129   :  { %v911_v62 = vmin.f32 %v847_v2, 6.0  ;;  %v850_v36 = vmax.f32 %v786_v30, 0.0  ;;  %v784_v37 = vadd.f32 3.0, %v6018_v29  ;;  %v1272_v53 = vadd.f32 %v5910_v3, %v1268_v57  ;;  %v1332_v3 = vld [vmem:[#allocation2 + $0x98] ss:$2 sm:$0xff] }
 0x12a   :  { %1116 = vst [vmem:[#allocation2 + $0x148] sm:$0xff] %v1038_v41  ;;  %v1036_v18 = vmul.f32 %v972_v42, %v600_v34  ;;  %v1295_v24 = vadd.f32 %v5986_v44, %v1291_v43  ;;  %v1298_v60 = vmul.f32 %v5848_v51, %v1297_v23  ;;  %v6030_v56 = vpop.f32.mrf.mxu0  ;;  %v977_v6 = vmul.f32 0.16666667, %v913_v63  ;;  %v1336_v19 = vld [vmem:[#allocation2 + $0x99] ss:$2 sm:$0xff] }
 0x12b   :  { %v975_v54 = vmul.f32 0.16666667, %v911_v62  ;;  %v914_v0 = vmin.f32 %v850_v36, 6.0  ;;  %v848_v1 = vmax.f32 %v784_v37, 0.0  ;;  %v1276_v27 = vadd.f32 %v5913_v5, %v1272_v53  ;;  %v1359_v22 = vld [vmem:[#allocation2 + $0xb1] ss:$2 sm:$0xff] }
 0x12c   :  { %1113 = vst [vmem:[#allocation2 + $0x130] sm:$0xff] %v1036_v18  ;;  %v1299_v12 = vadd.f32 %v1298_v60, %v1295_v24  ;;  %v1302_v13 = vmul.f32 %v5886_v28, %v1301_v21  ;;  %v1306_v34 = vmul.f32 %v5851_v58, %v1305_v9  ;;  %v6035_v14 = vpop.f32.mrf.mxu0  ;;  %v1041_v44 = vmul.f32 %v977_v6, %v621_v45  ;;  %v1340_v2 = vld [vmem:[#allocation2 + $0xaf] ss:$2 sm:$0xff]  ;;  %v1344_v30 = vld [vmem:[#allocation2 + $0xb0] ss:$2 sm:$0xff] }
 0x12d   :  { %v1039_v8 = vmul.f32 %v975_v54, %v613_v55  ;;  %v978_v16 = vmul.f32 0.16666667, %v914_v0  ;;  %v912_v26 = vmin.f32 %v848_v1, 6.0  ;;  %v1280_v20 = vadd.f32 %v5997_v35, %v1276_v27  ;;  %v1348_v41 = vld [vmem:[#allocation2 + $0xb1] ss:$2 sm:$0xff] }
 0x12e   :  { %v1303_v23 = vadd.f32 %v1302_v13, %v1299_v12  ;;  %v1310_v11 = vmul.f32 %v5862_v4, %v1309_v46  ;;  %v1314_v5 = vmul.f32 %v5874_v17, %v1313_v52  ;;  %v6040_v42 = vpop.f32.mrf.mxu0  ;;  %1121 = vst [vmem:[#allocation2 + $0x170] sm:$0xff] %v1041_v44  ;;  %v1323_v57 = vadd.f32 %v5970_v38, %v5967_v47  ;;  %v1363_v35 = vld [vmem:[#allocation2 + $0xc7] ss:$2 sm:$0xff]  ;;  %v1367_v9 = vld [vmem:[#allocation2 + $0xc8] ss:$2 sm:$0xff] }
 0x12f   :  { %1118 = vst [vmem:[#allocation2 + $0x158] sm:$0xff] %v1039_v8  ;;  %v1042_v45 = vmul.f32 %v978_v16, %v624_v15  ;;  %v976_v55 = vmul.f32 0.16666667, %v912_v26  ;;  %v1329_v43 = vmul.f32 %v5845_v50, %v1328_v10  ;;  %v1389_v63 = vld [vmem:[#allocation2 + $0xdf] ss:$2 sm:$0xff]  ;;  %v6046_v62 = vadd.f32 %v5976_v32, %v1280_v20 }
 0x130   :  { %v1307_v36 = vadd.f32 %v1306_v34, %v1303_v23  ;;  %v1333_v37 = vmul.f32 %v5848_v51, %v1332_v3  ;;  %v1337_v21 = vmul.f32 %v5886_v28, %v1336_v19  ;;  %v6050_v46 = vpop.f32.mrf.mxu0  ;;  %v1391_v15 = vld [vmem:[#allocation2 + $0xe0] ss:$2 sm:$0xff]  ;;  %v1326_v47 = vadd.f32 %v5973_v25, %v1323_v57  ;;  %v1371_v53 = vld [vmem:[#allocation2 + $0xc9] ss:$2 sm:$0xff]  ;;  %v1414_v16 = vld [vmem:[#allocation2 + $0x110] ss:$2 sm:$0xff] }
 0x131   :  { %1122 = vst [vmem:[#allocation2 + $0x178] sm:$0xff] %v1042_v45  ;;  %v1040_v52 = vmul.f32 %v976_v55, %v6018_v29  ;;  %v1341_v38 = vmul.f32 %v5851_v58, %v1340_v2  ;;  %v6056_v18 = vmul.f32 %v5862_v4, %v1344_v30  ;;  %v1375_v24 = vld [vmem:[#allocation2 + $0xdf] ss:$2 sm:$0xff]  ;;  %v1379_v60 = vld [vmem:[#allocation2 + $0xe0] ss:$2 sm:$0xff]  ;;  %v6060_v0 = vmul.f32 %v5874_v17, %v1348_v41 }
 0x132   :  { %v1311_v54 = vadd.f32 %v1310_v11, %v1307_v36  ;;  %v1358_v1 = vadd.f32 %v6003_v31, %v6000_v61  ;;  %v1383_v29 = vld [vmem:[#allocation2 + $0xe1] ss:$2 sm:$0xff]  ;;  %v6064_v25 = vpop.f32.mrf.mxu0  ;;  %v1330_v27 = vadd.f32 %v1329_v43, %v1326_v47  ;;  %v1360_v12 = vmul.f32 %v5842_v48, %v1359_v22  ;;  %v1402_v44 = vld [vmem:[#allocation2 + $0xf8] ss:$2 sm:$0xff]  ;;  %v1418_v23 = vld [vmem:[#allocation2 + $0x111] ss:$2 sm:$0xff] }
 0x133   :  { %v1394_v10 = vld [vmem:[#allocation2 + $0xe1] ss:$2 sm:$0xff]  ;;  %1119 = vst [vmem:[#allocation2 + $0x160] sm:$0xff] %v1040_v52  ;;  %v1364_v13 = vmul.f32 %v5845_v50, %v1363_v35  ;;  %v1368_v34 = vmul.f32 %v5848_v51, %v1367_v9  ;;  %v1372_v19 = vmul.f32 %v5886_v28, %v1371_v53  ;;  %v1376_v61 = vmul.f32 %v5851_v58, %v1375_v24  ;;  %v1426_v35 = vld [vmem:[#allocation2 + $0x110] ss:$2 sm:$0xff] }
 0x134   :  { %v1398_v3 = vld [vmem:[#allocation2 + $0xf7] ss:$2 sm:$0xff]  ;;  %v1315_v26 = vadd.f32 %v1314_v5, %v1311_v54  ;;  %v6072_v31 = vmul.f32 %v5862_v4, %v1379_v60  ;;  %v6074_v22 = vpop.f32.mrf.mxu0  ;;  %v1334_v2 = vadd.f32 %v1333_v37, %v1330_v27  ;;  %v1361_v30 = vadd.f32 %v1360_v12, %v1358_v1  ;;  %v1437_v1 = vld [vmem:[#allocation2 + $0x128] ss:$2 sm:$0xff] }
 0x135   :  { %v1410_v8 = vld [vmem:[#allocation2 + $0x10f] ss:$2 sm:$0xff]  ;;  %v6077_v41 = vmul.f32 %v5874_v17, %v1383_v29  ;;  %v1390_v45 = vmul.f32 %v5835_v39, %v1389_v63  ;;  %v1392_v55 = vmul.f32 %v5838_v40, %v1391_v15  ;;  %v1395_v57 = vmul.f32 %v5842_v48, %v1394_v10 }
 0x136   :  { %v1406_v20 = vld [vmem:[#allocation2 + $0xf9] ss:$2 sm:$0xff]  ;;  %v6081_v5 = vadd.f32 %v5976_v32, %v1315_v26  ;;  %v1399_v43 = vmul.f32 %v5845_v50, %v1398_v3  ;;  %v6086_v9 = vpop.f32.mrf.mxu0  ;;  %v1338_v36 = vadd.f32 %v1337_v21, %v1334_v2  ;;  %v1365_v37 = vadd.f32 %v1364_v13, %v1361_v30  ;;  %v1441_v29 = vld [vmem:[#allocation2 + $0x129] ss:$2 sm:$0xff] }
 0x137   :  { %v1424_v11 = vld [vmem:[#allocation2 + $0x10f] ss:$2 sm:$0xff]  ;;  %v1403_v52 = vmul.f32 %v5848_v51, %v1402_v44  ;;  %v1407_v47 = vmul.f32 %v5886_v28, %v1406_v20  ;;  %v1393_v60 = vadd.f32 %v1392_v55, %v1390_v45  ;;  %v1411_v15 = vmul.f32 %v5851_v58, %v1410_v8  ;;  %v1445_v3 = vld [vmem:[#allocation2 + $0x13f] ss:$2 sm:$0xff]  ;;  %v1449_v44 = vld [vmem:[#allocation2 + $0x140] ss:$2 sm:$0xff] }
 0x138   :  { %v1429_v53 = vld [vmem:[#allocation2 + $0x111] ss:$2 sm:$0xff]  ;;  %v6093_v54 = vmul.f32 %v5862_v4, %v1414_v16  ;;  %v6095_v10 = vpop.f32.mrf.mxu0  ;;  %v1342_v21 = vadd.f32 %v1341_v38, %v1338_v36  ;;  %v1369_v27 = vadd.f32 %v1368_v34, %v1365_v37  ;;  %v6098_v12 = vmul.f32 %v5874_v17, %v1418_v23  ;;  %v1453_v2 = vld [vmem:[#allocation2 + $0x141] ss:$2 sm:$0xff]  ;;  %v1461_v55 = vld [vmem:[#allocation2 + $0x140] ss:$2 sm:$0xff] }
 0x139   :  { %v1433_v63 = vld [vmem:[#allocation2 + $0x127] ss:$2 sm:$0xff]  ;;  %v1425_v13 = vmul.f32 %v5835_v39, %v1424_v11  ;;  %v1396_v26 = vadd.f32 %v1395_v57, %v1393_v60  ;;  %v1427_v20 = vmul.f32 %v5838_v40, %v1426_v35  ;;  %v1430_v8 = vmul.f32 %v5842_v48, %v1429_v53 }
 0x13a   :  { %v1434_v16 = vmul.f32 %v5845_v50, %v1433_v63  ;;  %v1459_v30 = vld [vmem:[#allocation2 + $0x13f] ss:$2 sm:$0xff]  ;;  %v6104_v45 = vpop.f32.mrf.mxu0  ;;  %v1346_v38 = vadd.f32 %v6056_v18, %v1342_v21  ;;  %v1373_v34 = vadd.f32 %v1372_v19, %v1369_v27  ;;  %v1438_v23 = vmul.f32 %v5848_v51, %v1437_v1  ;;  %v1472_v60 = vld [vmem:[#allocation2 + $0x158] ss:$2 sm:$0xff] }
 0x13b   :  { %v1442_v11 = vmul.f32 %v5886_v28, %v1441_v29  ;;  %v1464_v36 = vld [vmem:[#allocation2 + $0x141] ss:$2 sm:$0xff]  ;;  %v1400_v57 = vadd.f32 %v1399_v43, %v1396_v26  ;;  %v1428_v37 = vadd.f32 %v1427_v20, %v1425_v13  ;;  %v1446_v35 = vmul.f32 %v5851_v58, %v1445_v3 }
 0x13c   :  { %v1450_v53 = vmul.f32 %v5862_v4, %v1449_v44  ;;  %v1468_v63 = vld [vmem:[#allocation2 + $0x157] ss:$2 sm:$0xff]  ;;  %v6111_v24 = vpop.f32.mrf.mxu0  ;;  %v1350_v6 = vadd.f32 %v6060_v0, %v1346_v38  ;;  %v1377_v18 = vadd.f32 %v1376_v61, %v1373_v34  ;;  %v1454_v19 = vmul.f32 %v5874_v17, %v1453_v2  ;;  %v1484_v44 = vld [vmem:[#allocation2 + $0x170] ss:$2 sm:$0xff] }
 0x13d   :  { %v1460_v1 = vmul.f32 %v5835_v39, %v1459_v30  ;;  %v1476_v29 = vld [vmem:[#allocation2 + $0x159] ss:$2 sm:$0xff]  ;;  %v1404_v21 = vadd.f32 %v1403_v52, %v1400_v57  ;;  %v1431_v27 = vadd.f32 %v1430_v8, %v1428_v37  ;;  %v1462_v43 = vmul.f32 %v5838_v40, %v1461_v55 }
 0x13e   :  { %v1465_v13 = vmul.f32 %v5842_v48, %v1464_v36  ;;  %v1480_v3 = vld [vmem:[#allocation2 + $0x16f] ss:$2 sm:$0xff]  ;;  %v6118_v26 = vpop.f32.mrf.mxu0  ;;  %v6121_v20 = vadd.f32 %v5976_v32, %v1350_v6  ;;  %v1381_v0 = vadd.f32 %v6072_v31, %v1377_v18  ;;  %v1469_v61 = vmul.f32 %v5845_v50, %v1468_v63 }
 0x13f   :  { %v1473_v39 = vmul.f32 %v5848_v51, %v1472_v60  ;;  %v1488_v2 = vld [vmem:[#allocation2 + $0x171] ss:$2 sm:$0xff]  ;;  %v1408_v52 = vadd.f32 %v1407_v47, %v1404_v21  ;;  %v1435_v8 = vadd.f32 %v1434_v16, %v1431_v27  ;;  %v1463_v30 = vadd.f32 %v1462_v43, %v1460_v1  ;;  %v6161_v43 = vld [vmem:[%s5812_s17] ss:$0 sm:$0xff]  ;;  %s4635_s17 = sld [smem:[%s7251_s0 + %s5641_s14]]   ;;  %s5656_s14 = smov 33  }
 0x140   :  { %v1477_v40 = vmul.f32 %v5886_v28, %v1476_v29  ;;  %v6127_v48 = vpop.f32.mrf.mxu0  ;;  %v1352_v38 = vmax.f32 %v6121_v20, 0.0  ;;  %v1385_v34 = vadd.f32 %v6077_v41, %v1381_v0  ;;  %v1481_v6 = vmul.f32 %v5851_v58, %v1480_v3 }
 0x141   :  { %v1485_v31 = vmul.f32 %v5862_v4, %v1484_v44  ;;  %v1412_v55 = vadd.f32 %v1411_v15, %v1408_v52  ;;  %v1439_v50 = vadd.f32 %v1438_v23, %v1435_v8  ;;  %v1466_v36 = vadd.f32 %v1465_v13, %v1463_v30 }
 0x142   :  { %v1489_v51 = vmul.f32 %v5874_v17, %v1488_v2  ;;  %v6134_v47 = vpop.f32.mrf.mxu0  ;;  %v6137_v16 = vadd.f32 %v5976_v32, %v1385_v34  ;;  %v7256_v28 = vmax.f32 %v6046_v62, 0.0  ;;  %v637_v58 = vadd.f32 %v6024_v33, %v5815_v49 }
 0x143   :  { %v629_v4 = vadd.f32 %v5815_v49, %v6030_v56  ;;  %v1416_v41 = vadd.f32 %v6093_v54, %v1412_v55  ;;  %v1443_v15 = vadd.f32 %v1442_v11, %v1439_v50  ;;  %v1470_v17 = vadd.f32 %v1469_v61, %v1466_v36 }
 0x144   :  { %v1781_v57 = vadd.f32 %v7256_v28, %v1235_v7  ;;  %v640_v23 = vadd.f32 %v6035_v14, %v5815_v49  ;;  %v6150_v37 = vpop.f32.mrf.mxu0  ;;  %v7255_v63 = vmax.f32 %v6137_v16, 0.0  ;;  %v7257_v60 = vmax.f32 %v6081_v5, 0.0 }
 0x145   :  { %v789_v1 = vadd.f32 3.0, %v637_v58  ;;  %v787_v33 = vadd.f32 3.0, %v629_v4  ;;  %v1420_v29 = vadd.f32 %v6098_v12, %v1416_v41  ;;  %v1447_v56 = vadd.f32 %v1446_v35, %v1443_v15 }
 0x146   :  { %v1782_v18 = vadd.f32 %v1781_v57, %v7257_v60  ;;  %v1474_v21 = vadd.f32 %v1473_v39, %v1470_v17  ;;  %v790_v54 = vadd.f32 3.0, %v640_v23  ;;  %v6156_v11 = vpop.f32.mrf.mxu0  ;;  %v632_v13 = vadd.f32 %v6161_v43, %v6040_v42 }
 0x147   :  { %v853_v49 = vmax.f32 %v789_v1, 0.0  ;;  %v851_v14 = vmax.f32 %v787_v33, 0.0  ;;  %v6166_v3 = vadd.f32 %v5976_v32, %v1420_v29  ;;  %v1451_v44 = vadd.f32 %v1450_v53, %v1447_v56 }
 0x148   :  { %v1783_v27 = vadd.f32 %v1782_v18, %v1352_v38  ;;  %v1478_v12 = vadd.f32 %v1477_v40, %v1474_v21  ;;  %v854_v35 = vmax.f32 %v790_v54, 0.0  ;;  %v6168_v0 = vpop.f32.mrf.mxu0  ;;  %v788_v52 = vadd.f32 3.0, %v632_v13 }
 0x149   :  { %v917_v39 = vmin.f32 %v853_v49, 6.0  ;;  %v915_v2 = vmin.f32 %v851_v14, 6.0  ;;  %v7254_v8 = vmax.f32 %v6166_v3, 0.0  ;;  %v1455_v30 = vadd.f32 %v1454_v19, %v1451_v44 }
 0x14a   :  { %v1784_v61 = vadd.f32 %v1783_v27, %v7255_v63  ;;  %v1482_v34 = vadd.f32 %v1481_v6, %v1478_v12  ;;  %v918_v55 = vmin.f32 %v854_v35, 6.0  ;;  %v6173_v42 = vpop.f32.mrf.mxu0  ;;  %v852_v53 = vmax.f32 %v788_v52, 0.0 }
 0x14b   :  { %v981_v50 = vmul.f32 0.16666667, %v917_v39  ;;  %v979_v36 = vmul.f32 0.16666667, %v915_v2  ;;  %v653_v40 = vadd.f32 %v6161_v43, %v6050_v46  ;;  %v6178_v28 = vadd.f32 %v5976_v32, %v1455_v30 }
 0x14c   :  { %v1486_v57 = vadd.f32 %v1485_v31, %v1482_v34  ;;  %v1785_v41 = vadd.f32 %v1784_v61, %v7254_v8  ;;  %v982_v15 = vmul.f32 0.16666667, %v918_v55  ;;  %v6182_v17 = vpop.f32.mrf.mxu0  ;;  %v916_v60 = vmin.f32 %v852_v53, 6.0 }
 0x14d   :  { %v1045_v19 = vmul.f32 %v981_v50, %v637_v58  ;;  %v1043_v6 = vmul.f32 %v979_v36, %v629_v4  ;;  %v793_v18 = vadd.f32 3.0, %v653_v40  ;;  %v7253_v1 = vmax.f32 %v6178_v28, 0.0 }
 0x14e   :  { %v1490_v33 = vadd.f32 %v1489_v51, %v1486_v57  ;;  %v1046_v29 = vmul.f32 %v982_v15, %v640_v23  ;;  %v645_v46 = vadd.f32 %v6161_v43, %v6064_v25  ;;  %v6187_v56 = vpop.f32.mrf.mxu0  ;;  %v980_v31 = vmul.f32 0.16666667, %v916_v60 }
 0x14f   :  { %1127 = vst [vmem:[#allocation2 + $0x1a0] sm:$0xff] %v1045_v19  ;;  %1124 = vst [vmem:[#allocation2 + $0x188] sm:$0xff] %v1043_v6  ;;  %v857_v21 = vmax.f32 %v793_v18, 0.0  ;;  %v656_v54 = vadd.f32 %v6161_v43, %v6074_v22  ;;  %v648_v58 = vadd.f32 %v6161_v43, %v6086_v9  ;;  %v1786_v51 = vadd.f32 %v1785_v41, %v7253_v1 }
 0x150   :  { %v6194_v4 = vadd.f32 %v5976_v32, %v1490_v33  ;;  %1128 = vst [vmem:[#allocation2 + $0x1a8] sm:$0xff] %v1046_v29  ;;  %v791_v25 = vadd.f32 3.0, %v645_v46  ;;  %v669_v23 = vadd.f32 %v6161_v43, %v6095_v10  ;;  %v6200_v27 = vpop.f32.mrf.mxu0  ;;  %v1044_v49 = vmul.f32 %v980_v31, %v632_v13 }
 0x151   :  { %v921_v14 = vmin.f32 %v857_v21, 6.0  ;;  %v794_v44 = vadd.f32 3.0, %v656_v54  ;;  %v792_v22 = vadd.f32 3.0, %v648_v58  ;;  %v661_v32 = vadd.f32 %v6161_v43, %v6104_v45 }
 0x152   :  { %v7252_v12 = vmax.f32 %v6194_v4, 0.0  ;;  %v855_v9 = vmax.f32 %v791_v25, 0.0  ;;  %v797_v35 = vadd.f32 3.0, %v669_v23  ;;  %v6205_v61 = vpop.f32.mrf.mxu0  ;;  %1125 = vst [vmem:[#allocation2 + $0x190] sm:$0xff] %v1044_v49  ;;  %v672_v53 = vadd.f32 %v6161_v43, %v6111_v24 }
 0x153   :  { %v985_v39 = vmul.f32 0.16666667, %v921_v14  ;;  %v858_v2 = vmax.f32 %v794_v44, 0.0  ;;  %v856_v52 = vmax.f32 %v792_v22, 0.0  ;;  %v795_v34 = vadd.f32 3.0, %v661_v32 }
 0x154   :  { %v1787_v10 = vadd.f32 %v1786_v51, %v7252_v12  ;;  %v919_v13 = vmin.f32 %v855_v9, 6.0  ;;  %v861_v30 = vmax.f32 %v797_v35, 0.0  ;;  %v6211_v15 = vpop.f32.mrf.mxu0  ;;  %v798_v29 = vadd.f32 3.0, %v672_v53 }
 0x155   :  { %v1049_v55 = vmul.f32 %v985_v39, %v653_v40  ;;  %v922_v50 = vmin.f32 %v858_v2, 6.0  ;;  %v920_v36 = vmin.f32 %v856_v52, 6.0  ;;  %v859_v41 = vmax.f32 %v795_v34, 0.0 }
 0x156   :  { %v1788_v57 = vrot.slane %v1787_v10, 4  ;;  %v983_v45 = vmul.f32 0.16666667, %v919_v13  ;;  %v925_v60 = vmin.f32 %v861_v30, 6.0  ;;  %v664_v21 = vadd.f32 %v6161_v43, %v6118_v26  ;;  %v6217_v51 = vpop.f32.mrf.mxu0 }
 0x157   :  { %1133 = vst [vmem:[#allocation2 + $0x1d0] sm:$0xff] %v1049_v55  ;;  %v986_v18 = vmul.f32 0.16666667, %v922_v50  ;;  %v984_v33 = vmul.f32 0.16666667, %v920_v36  ;;  %v923_v40 = vmin.f32 %v859_v41, 6.0  ;;  %v685_v24 = vadd.f32 %v6161_v43, %v6127_v48 }
 0x158   :  { %v1789_v19 = vadd.f32 %v1788_v57, %v1787_v10  ;;  %v1047_v6 = vmul.f32 %v983_v45, %v645_v46  ;;  %v677_v49 = vadd.f32 %v6161_v43, %v6134_v47  ;;  %v688_v46 = vadd.f32 %v6161_v43, %v6150_v37  ;;  %v6231_v37 = vpop.f32.mrf.mxu0 }
 0x159   :  { %v1050_v25 = vmul.f32 %v986_v18, %v656_v54  ;;  %v1048_v44 = vmul.f32 %v984_v33, %v648_v58  ;;  %v989_v22 = vmul.f32 0.16666667, %v925_v60  ;;  %v6225_v9 = vadd.f32 %v6161_v43, %v6156_v11  ;;  %v6238_v60 = vld [vmem:[%s5954_s29 + $0x38] sm:$0xff]  }
 0x15a   :  { %v1790_v31 = vrot.slane %v1789_v19, 2  ;;  %1130 = vst [vmem:[#allocation2 + $0x1b8] sm:$0xff] %v1047_v6  ;;  %v987_v26 = vmul.f32 0.16666667, %v923_v40  ;;  %v862_v35 = vmax.f32 %v798_v29, 0.0  ;;  %v6229_v48 = vadd.f32 %v6161_v43, %v6168_v0  ;;  %v6235_v41 = vpop.f32.mrf.mxu0 }
 0x15b   :  { %1134 = vst [vmem:[#allocation2 + $0x1d8] sm:$0xff] %v1050_v25  ;;  %1131 = vst [vmem:[#allocation2 + $0x1c0] sm:$0xff] %v1048_v44  ;;  %v1053_v47 = vmul.f32 %v989_v22, %v669_v23  ;;  %v796_v39 = vadd.f32 3.0, %v664_v21  ;;  %v801_v2 = vadd.f32 3.0, %v685_v24  ;;  %v799_v10 = vadd.f32 3.0, %v677_v49 }
 0x15c   :  { %v1791_v14 = vadd.f32 %v1790_v31, %v1789_v19  ;;  %v1051_v58 = vmul.f32 %v987_v26, %v661_v32  ;;  %v926_v52 = vmin.f32 %v862_v35, 6.0  ;;  %v802_v13 = vadd.f32 3.0, %v688_v46  ;;  %v6252_v35 = vld [vmem:[%s5954_s29 + $0x30] sm:$0xff]  }
 0x15d   :  { %1139 = vst [vmem:[#allocation2 + $0x200] sm:$0xff] %v1053_v47  ;;  %v860_v30 = vmax.f32 %v796_v39, 0.0  ;;  %v865_v34 = vmax.f32 %v801_v2, 0.0  ;;  %v800_v55 = vadd.f32 3.0, %v6225_v9  ;;  %v863_v50 = vmax.f32 %v799_v10, 0.0 }
 0x15e   :  { %v1792_v54 = vrot.slane %v1791_v14, 1  ;;  %1136 = vst [vmem:[#allocation2 + $0x1e8] sm:$0xff] %v1051_v58  ;;  %v990_v0 = vmul.f32 0.16666667, %v926_v52  ;;  %v866_v36 = vmax.f32 %v802_v13, 0.0  ;;  %v805_v23 = vadd.f32 3.0, %v6229_v48 }
 0x15f   :  { %v924_v45 = vmin.f32 %v860_v30, 6.0  ;;  %v929_v19 = vmin.f32 %v865_v34, 6.0  ;;  %v927_v6 = vmin.f32 %v863_v50, 6.0  ;;  %v864_v29 = vmax.f32 %v800_v55, 0.0  ;;  %v6260_v13 = vld [vmem:[%s5954_s29 + $0x28] sm:$0xff]  }
 0x160   :  { %v1793_v11 = vadd.f32 %v1792_v54, %v1791_v14  ;;  %v1054_v32 = vmul.f32 %v990_v0, %v672_v53  ;;  %v930_v33 = vmin.f32 %v866_v36, 6.0  ;;  %v869_v31 = vmax.f32 %v805_v23, 0.0  ;;  %v5108_v14 = vpop.f32.mrf.mxu0  ;;  %v6254_v54 = vld [vmem:[#allocation2 + $0x18] sm:$0xff] }
 0x161   :  { %v988_v40 = vmul.f32 0.16666667, %v924_v45  ;;  %v693_v25 = vadd.f32 %v6161_v43, %v6173_v42  ;;  %v993_v44 = vmul.f32 0.16666667, %v929_v19  ;;  %v991_v22 = vmul.f32 0.16666667, %v927_v6 }
 0x162   :  { %v1795_v57 = vmul.f32 0.015625, %v1793_v11  ;;  %1140 = vst [vmem:[#allocation2 + $0x208] sm:$0xff] %v1054_v32  ;;  %v6244_v53 = vadd.f32 %v6161_v43, %v6182_v17  ;;  %v6248_v26 = vadd.f32 %v6161_v43, %v6187_v56  ;;  %v994_v47 = vmul.f32 0.16666667, %v930_v33  ;;  %v727_v10 = vpop.f32.mrf.mxu0 }
 0x163   :  { %v1052_v42 = vmul.f32 %v988_v40, %v664_v21  ;;  %v1057_v17 = vmul.f32 %v993_v44, %v685_v24  ;;  %v1055_v39 = vmul.f32 %v991_v22, %v677_v49  ;;  %v928_v2 = vmin.f32 %v864_v29, 6.0 }
 0x164   :  { %v1796_v18 = vpack.c.bf16 %v1795_v57, %v1795_v57  ;;  %v933_v58 = vmin.f32 %v869_v31, 6.0  ;;  %v1058_v56 = vmul.f32 %v994_v47, %v688_v46  ;;  %v803_v52 = vadd.f32 3.0, %v693_v25  ;;  %v5111_v36 = vpop.f32.mrf.mxu0 }
 0x165   :  { %1137 = vst [vmem:[#allocation2 + $0x1f0] sm:$0xff] %v1052_v42  ;;  %1145 = vst [vmem:[#allocation2 + $0x230] sm:$0xff] %v1057_v17  ;;  %v992_v11 = vmul.f32 0.16666667, %v928_v2  ;;  %v806_v34 = vadd.f32 3.0, %v6244_v53  ;;  %v804_v21 = vadd.f32 3.0, %v6248_v26  ;;  %v6270_v46 = vadd.f32 %v6161_v43, %v6200_v27 }
 0x166   :  { %5130 = vmatmul.mubr.bf16.vlgmr.msra.gmra.mxu1 %v1796_v18  ;;  %1142 = vst [vmem:[#allocation2 + $0x218] sm:$0xff] %v1055_v39  ;;  %v997_v30 = vmul.f32 0.16666667, %v933_v58  ;;  %1146 = vst [vmem:[#allocation2 + $0x238] sm:$0xff] %v1058_v56  ;;  %v867_v55 = vmax.f32 %v803_v52, 0.0  ;;  %v6274_v23 = vadd.f32 %v6161_v43, %v6205_v61  ;;  %v6282_v27 = vadd.f32 %v6161_v43, %v6211_v15  ;;  %v740_v6 = vpop.f32.mrf.mxu0 }
 0x167   :  { %5134 = vmatpush3.bf16.msra.mxu1 %v6238_v60  ;;  %5149 = vmatprep.mubr.msk.bf16.mxu1 %vm5625_vm0, %v6254_v54  ;;  %v1056_v24 = vmul.f32 %v992_v11, %v6225_v9  ;;  %v870_v0 = vmax.f32 %v806_v34, 0.0  ;;  %v868_v50 = vmax.f32 %v804_v21, 0.0  ;;  %v6278_v9 = vld [vmem:[%s5954_s29 + $0x20] sm:$0xff]   ;;  %v6286_v57 = vadd.f32 %v6161_v43, %v6217_v51  ;;  %v6301_v51 = vld [vmem:[%s5954_s29 + $0x18] sm:$0xff]  }
 0x168   :  { %5135 = vmatprep.subr.bf16.mxu1 %v6254_v54  ;;  %v1061_v49 = vmul.f32 %v997_v30, %v6229_v48  ;;  %v931_v48 = vmin.f32 %v867_v55, 6.0  ;;  %v809_v61 = vadd.f32 3.0, %v6270_v46  ;;  %v807_v18 = vadd.f32 3.0, %v6274_v23  ;;  %v5112_v17 = vpop.f32.mrf.mxu0 }
 0x169   :  { %1143 = vst [vmem:[#allocation2 + $0x220] sm:$0xff] %v1056_v24  ;;  %v934_v45 = vmin.f32 %v870_v0, 6.0  ;;  %v932_v32 = vmin.f32 %v868_v50, 6.0  ;;  %v6293_v33 = vadd.f32 %v6161_v43, %v6231_v37  ;;  %v6297_v15 = vadd.f32 %v6161_v43, %v6235_v41 }
 0x16a   :  { %1151 = vst [vmem:[#allocation2 + $0x260] sm:$0xff] %v1061_v49  ;;  %v995_v19 = vmul.f32 0.16666667, %v931_v48  ;;  %v810_v29 = vadd.f32 3.0, %v6282_v27  ;;  %v808_v31 = vadd.f32 3.0, %v6286_v57  ;;  %v6306_v40 = vadd.f32 %v6161_v43, %v5108_v14 }
 0x16b   :  { %5136 = vmatpush3.bf16.msra.mxu1 %v6252_v35  ;;  %v6309_v44 = vadd.f32 %v6161_v43, %v727_v10  ;;  %v998_v41 = vmul.f32 0.16666667, %v934_v45  ;;  %v996_v22 = vmul.f32 0.16666667, %v932_v32  ;;  %v873_v42 = vmax.f32 %v809_v61, 0.0  ;;  %v6334_v45 = vld [vmem:[%s5954_s29 + $0x8] sm:$0xff]  }
 0x16c   :  { %5137 = vmatprep.subr.bf16.mxu1 %v6254_v54  ;;  %v1059_v37 = vmul.f32 %v995_v19, %v693_v25  ;;  %v6313_v47 = vadd.f32 %v6161_v43, %v5111_v36  ;;  %v6318_v14 = vadd.f32 %v6161_v43, %v740_v6  ;;  %v6321_v58 = vadd.f32 %v6161_v43, %v5112_v17  ;;  %v6325_v25 = vld [vmem:[%s5954_s29 + $0x10] sm:$0xff]  }
 0x16d   :  { %v1062_v39 = vmul.f32 %v998_v41, %v6244_v53  ;;  %v1060_v2 = vmul.f32 %v996_v22, %v6248_v26  ;;  %v937_v56 = vmin.f32 %v873_v42, 6.0  ;;  %v871_v52 = vmax.f32 %v807_v18, 0.0  ;;  %v743_v18 = vpop.f32.mrf.mxu0  ;;  %v1611_v1 = vld [vmem:[#allocation2 + $0x22f] ss:$2 sm:$0xff] }
 0x16e   :  { %1148 = vst [vmem:[#allocation2 + $0x248] sm:$0xff] %v1059_v37  ;;  %v874_v10 = vmax.f32 %v810_v29, 0.0  ;;  %v872_v11 = vmax.f32 %v808_v31, 0.0  ;;  %v813_v53 = vadd.f32 3.0, %v6293_v33  ;;  %v811_v26 = vadd.f32 3.0, %v6297_v15 }
 0x16f   :  { %5138 = vmatpush3.bf16.msra.mxu1 %v6260_v13  ;;  %1152 = vst [vmem:[#allocation2 + $0x268] sm:$0xff] %v1062_v39  ;;  %1149 = vst [vmem:[#allocation2 + $0x250] sm:$0xff] %v1060_v2  ;;  %v814_v30 = vadd.f32 3.0, %v6306_v40  ;;  %v812_v34 = vadd.f32 3.0, %v6309_v44  ;;  %v1001_v21 = vmul.f32 0.16666667, %v937_v56 }
 0x170   :  { %5139 = vmatprep.subr.bf16.mxu1 %v6254_v54  ;;  %v935_v24 = vmin.f32 %v871_v52, 6.0  ;;  %v938_v49 = vmin.f32 %v874_v10, 6.0  ;;  %v936_v55 = vmin.f32 %v872_v11, 6.0  ;;  %v877_v0 = vmax.f32 %v813_v53, 0.0 }
 0x171   :  { %v875_v50 = vmax.f32 %v811_v26, 0.0  ;;  %v878_v36 = vmax.f32 %v814_v30, 0.0  ;;  %v876_v48 = vmax.f32 %v812_v34, 0.0  ;;  %v1065_v32 = vmul.f32 %v1001_v21, %v6270_v46 }
 0x172   :  { %v999_v61 = vmul.f32 0.16666667, %v935_v24  ;;  %v1002_v19 = vmul.f32 0.16666667, %v938_v49  ;;  %v1000_v6 = vmul.f32 0.16666667, %v936_v55  ;;  %v744_v52 = vadd.f32 %v6161_v43, %v743_v18 }
 0x173   :  { %5140 = vmatpush3.bf16.msra.mxu1 %v6278_v9  ;;  %v941_v29 = vmin.f32 %v877_v0, 6.0  ;;  %v939_v31 = vmin.f32 %v875_v50, 6.0  ;;  %v942_v37 = vmin.f32 %v878_v36, 6.0  ;;  %v940_v41 = vmin.f32 %v876_v48, 6.0  ;;  %1157 = vst [vmem:[#allocation2 + $0x290] sm:$0xff] %v1065_v32 }
 0x174   :  { %5141 = vmatprep.subr.bf16.mxu1 %v6254_v54  ;;  %v1063_v22 = vmul.f32 %v999_v61, %v6274_v23  ;;  %v1066_v42 = vmul.f32 %v1002_v19, %v6282_v27  ;;  %v1064_v17 = vmul.f32 %v1000_v6, %v6286_v57  ;;  %v817_v39 = vadd.f32 3.0, %v6313_v47  ;;  %v6355_v19 = vld [vmem:[%s5954_s29] sm:$0xff]   ;;  %s4633_s29 = sld [smem:[%s7251_s0 + %s5644_s26]]  }
 0x175   :  { %v1005_v46 = vmul.f32 0.16666667, %v941_v29  ;;  %v1003_v2 = vmul.f32 0.16666667, %v939_v31  ;;  %v1006_v56 = vmul.f32 0.16666667, %v942_v37 }
 0x176   :  { %1154 = vst [vmem:[#allocation2 + $0x278] sm:$0xff] %v1063_v22  ;;  %1158 = vst [vmem:[#allocation2 + $0x298] sm:$0xff] %v1066_v42  ;;  %v1004_v10 = vmul.f32 0.16666667, %v940_v41  ;;  %v881_v11 = vmax.f32 %v817_v39, 0.0  ;;  %v815_v53 = vadd.f32 3.0, %v6318_v14 }
 0x177   :  { %5142 = vmatpush3.bf16.msra.mxu1 %v6301_v51  ;;  %1155 = vst [vmem:[#allocation2 + $0x280] sm:$0xff] %v1064_v17  ;;  %v1069_v23 = vmul.f32 %v1005_v46, %v6293_v33  ;;  %v1067_v27 = vmul.f32 %v1003_v2, %v6297_v15  ;;  %v1070_v57 = vmul.f32 %v1006_v56, %v6306_v40  ;;  %v818_v43 = vadd.f32 3.0, %v6321_v58  ;;  %v5531_v6 = vld [vmem:[%s6362_s3 + $0x20] sm:$0xff]   ;;  %v1555_v17 = vld [vmem:[#allocation2 + $0x1cf] ss:$2 sm:$0xff] }
 0x178   :  { %5143 = vmatprep.subr.bf16.mxu1 %v6254_v54  ;;  %v816_v26 = vadd.f32 3.0, %v744_v52  ;;  %v1068_v30 = vmul.f32 %v1004_v10, %v6309_v44  ;;  %v945_v34 = vmin.f32 %v881_v11, 6.0  ;;  %v879_v21 = vmax.f32 %v815_v53, 0.0  ;;  %v1520_v18 = vld [vmem:[#allocation2 + $0x19f] ss:$2 sm:$0xff] }
 0x179   :  { %1163 = vst [vmem:[#allocation2 + $0x2c0] sm:$0xff] %v1069_v23  ;;  %1160 = vst [vmem:[#allocation2 + $0x2a8] sm:$0xff] %v1067_v27  ;;  %v882_v24 = vmax.f32 %v818_v43, 0.0  ;;  %v1522_v29 = vld [vmem:[#allocation2 + $0x1a0] ss:$2 sm:$0xff] }
 0x17a   :  { %1164 = vst [vmem:[#allocation2 + $0x2c8] sm:$0xff] %v1070_v57  ;;  %v880_v33 = vmax.f32 %v816_v26, 0.0  ;;  %1161 = vst [vmem:[#allocation2 + $0x2b0] sm:$0xff] %v1068_v30  ;;  %v1009_v15 = vmul.f32 0.16666667, %v945_v34  ;;  %v943_v40 = vmin.f32 %v879_v21, 6.0 }
 0x17b   :  { %5144 = vmatpush3.bf16.msra.mxu1 %v6325_v25  ;;  %v946_v49 = vmin.f32 %v882_v24, 6.0  ;;  %v6369_v31 = vld [vmem:[%s5825_s21] ss:$0 sm:$0xff]  ;;  %v6373_v41 = vld [vmem:[%s5825_s21 + $0x1] ss:$0 sm:$0xff] }
 0x17c   :  { %5145 = vmatprep.subr.bf16.mxu1 %v6254_v54  ;;  %v944_v55 = vmin.f32 %v880_v33, 6.0  ;;  %v1073_v0 = vmul.f32 %v1009_v15, %v6313_v47  ;;  %v1007_v50 = vmul.f32 0.16666667, %v943_v40  ;;  %v5528_v47 = vld [vmem:[%s6362_s3 + $0x38] sm:$0xff]   ;;  %v1521_v37 = vmul.f32 %v6369_v31, %v1520_v18  ;;  %v1525_v42 = vld [vmem:[#allocation2 + $0x1a1] ss:$2 sm:$0xff] }
 0x17d   :  { %v1010_v36 = vmul.f32 0.16666667, %v946_v49  ;;  %5193 = vmatprep.subr.bf16.mxu0 %v5528_v47  ;;  %v1523_v22 = vmul.f32 %v6373_v41, %v1522_v29  ;;  %v1557_v39 = vld [vmem:[#allocation2 + $0x1d0] ss:$2 sm:$0xff]  ;;  %v6377_v2 = vld [vmem:[%s5825_s21 + $0x2] ss:$0 sm:$0xff] }
 0x17e   :  { %1169 = vst [vmem:[#allocation2 + $0x2f0] sm:$0xff] %v1073_v0  ;;  %v1071_v48 = vmul.f32 %v1007_v50, %v6318_v14  ;;  %v1008_v32 = vmul.f32 0.16666667, %v944_v55  ;;  %v5529_v14 = vld [vmem:[%s6362_s3 + $0x30] sm:$0xff]   ;;  %5194 = vmatpush3.bf16.msra.mxu0 %v5528_v47  ;;  %v1526_v56 = vmul.f32 %v6377_v2, %v1525_v42  ;;  %v1558_v23 = vmul.f32 %v6373_v41, %v1557_v39  ;;  %v1590_v10 = vld [vmem:[#allocation2 + $0x1ff] ss:$2 sm:$0xff] }
 0x17f   :  { %5146 = vmatpush3.bf16.msra.mxu1 %v6334_v45  ;;  %v1074_v44 = vmul.f32 %v1010_v36, %v6321_v58  ;;  %5195 = vmatprep.subr.bf16.mxu0 %v5529_v14  ;;  %v5530_v58 = vld [vmem:[%s6362_s3 + $0x28] sm:$0xff]   ;;  %v1524_v46 = vadd.f32 %v1523_v22, %v1521_v37  ;;  %v1529_v27 = vld [vmem:[#allocation2 + $0x1b7] ss:$2 sm:$0xff]  ;;  %v1533_v33 = vld [vmem:[#allocation2 + $0x1b8] ss:$2 sm:$0xff]  ;;  %v1591_v15 = vmul.f32 %v6369_v31, %v1590_v10 }
 0x180   :  { %5147 = vmatprep.subr.bf16.mxu1 %v6254_v54  ;;  %1166 = vst [vmem:[#allocation2 + $0x2d8] sm:$0xff] %v1071_v48  ;;  %v1072_v61 = vmul.f32 %v1008_v32, %v744_v52  ;;  %v1556_v52 = vmul.f32 %v6369_v31, %v1555_v17  ;;  %v1560_v57 = vld [vmem:[#allocation2 + $0x1d1] ss:$2 sm:$0xff]  ;;  %v1592_v11 = vld [vmem:[#allocation2 + $0x200] ss:$2 sm:$0xff] }
 0x181   :  { %1170 = vst [vmem:[#allocation2 + $0x2f8] sm:$0xff] %v1074_v44  ;;  %v1527_v53 = vadd.f32 %v1526_v56, %v1524_v46  ;;  %v6383_v43 = vld [vmem:[%s5825_s21 + $0x3] ss:$0 sm:$0xff]  ;;  %v1495_v30 = vld [vmem:[#allocation2 + $0x187] ss:$2 sm:$0xff]  ;;  %v1561_v24 = vmul.f32 %v6377_v2, %v1560_v57  ;;  %v1593_v40 = vmul.f32 %v6373_v41, %v1592_v11 }
 0x182   :  { %1167 = vst [vmem:[#allocation2 + $0x2e0] sm:$0xff] %v1072_v61  ;;  %5196 = vmatpush3.bf16.msra.mxu0 %v5529_v14  ;;  %v1530_v26 = vmul.f32 %v6383_v43, %v1529_v27  ;;  %v1498_v34 = vld [vmem:[#allocation2 + $0x188] ss:$2 sm:$0xff]  ;;  %v1559_v21 = vadd.f32 %v1558_v23, %v1556_v52  ;;  %v1595_v49 = vld [vmem:[#allocation2 + $0x201] ss:$2 sm:$0xff]  ;;  %v1496_v36 = vmul.f32 %v6383_v43, %v1495_v30 }
 0x183   :  { %5148 = vmatpush3.bf16.msra.mxu1 %v6355_v19  ;;  %5197 = vmatprep.subr.bf16.mxu0 %v5530_v58  ;;  %v1564_v55 = vld [vmem:[#allocation2 + $0x1e7] ss:$2 sm:$0xff]  ;;  %v1627_v50 = vld [vmem:[#allocation2 + $0x230] ss:$2 sm:$0xff]  ;;  %v6391_v48 = vld [vmem:[%s5825_s21 + $0x4] ss:$0 sm:$0xff]  ;;  %v1596_v18 = vmul.f32 %v6377_v2, %v1595_v49 }
 0x184   :  { %5153 = vmatprep.subr.bf16.mxu1 %v6254_v54  ;;  %v1625_v0 = vld [vmem:[#allocation2 + $0x22f] ss:$2 sm:$0xff]  ;;  %v1499_v32 = vmul.f32 %v6391_v48, %v1498_v34  ;;  %v1531_v44 = vadd.f32 %v1530_v26, %v1527_v53  ;;  %v1534_v61 = vmul.f32 %v6391_v48, %v1533_v33  ;;  %v1562_v14 = vadd.f32 %v1561_v24, %v1559_v21  ;;  %v1568_v37 = vld [vmem:[#allocation2 + $0x1e8] ss:$2 sm:$0xff]  ;;  %v1660_v46 = vld [vmem:[#allocation2 + $0x25f] ss:$2 sm:$0xff] }
 0x185   :  { %v1502_v47 = vld [vmem:[#allocation2 + $0x189] ss:$2 sm:$0xff]  ;;  %v1565_v29 = vmul.f32 %v6383_v43, %v1564_v55  ;;  %v1626_v22 = vmul.f32 %v6369_v31, %v1625_v0  ;;  %v1628_v42 = vmul.f32 %v6373_v41, %v1627_v50  ;;  %v1662_v56 = vld [vmem:[#allocation2 + $0x260] ss:$2 sm:$0xff]  ;;  %v6400_v23 = vld [vmem:[%s5825_s21 + $0x5] ss:$0 sm:$0xff]  ;;  %v1569_v34 = vmul.f32 %v6391_v48, %v1568_v37 }
 0x186   :  { %5198 = vmatpush3.bf16.msra.mxu0 %v5530_v58  ;;  %v1537_v58 = vld [vmem:[#allocation2 + $0x1b9] ss:$2 sm:$0xff]  ;;  %v1500_v52 = vadd.f32 %v1499_v32, %v1496_v36  ;;  %v1503_v27 = vmul.f32 %v6400_v23, %v1502_v47  ;;  %v1535_v57 = vadd.f32 %v1534_v61, %v1531_v44  ;;  %v1572_v24 = vld [vmem:[#allocation2 + $0x1e9] ss:$2 sm:$0xff]  ;;  %v1661_v49 = vmul.f32 %v6369_v31, %v1660_v46  ;;  %v6410_v36 = vld [vmem:[%s5825_s21 + $0x6] ss:$0 sm:$0xff] }
 0x187   :  { %5199 = vmatprep.subr.bf16.mxu0 %v5531_v6  ;;  %v1599_v17 = vld [vmem:[#allocation2 + $0x217] ss:$2 sm:$0xff]  ;;  %v1538_v10 = vmul.f32 %v6400_v23, %v1537_v58  ;;  %v1566_v30 = vadd.f32 %v1565_v29, %v1562_v14  ;;  %v1629_v33 = vadd.f32 %v1628_v42, %v1626_v22  ;;  %v1663_v55 = vmul.f32 %v6373_v41, %v1662_v56  ;;  %v1634_v50 = vld [vmem:[#allocation2 + $0x247] ss:$2 sm:$0xff]  ;;  %v1697_v47 = vld [vmem:[#allocation2 + $0x290] ss:$2 sm:$0xff] }
 0x188   :  { %v1630_v39 = vld [vmem:[#allocation2 + $0x231] ss:$2 sm:$0xff]  ;;  %v1600_v21 = vmul.f32 %v6383_v43, %v1599_v17  ;;  %v1665_v0 = vld [vmem:[#allocation2 + $0x261] ss:$2 sm:$0xff]  ;;  %v1504_v14 = vadd.f32 %v1503_v27, %v1500_v52  ;;  %v1573_v29 = vmul.f32 %v6400_v23, %v1572_v24  ;;  %v1635_v56 = vmul.f32 %v6383_v43, %v1634_v50  ;;  %v1638_v12 = vld [vmem:[#allocation2 + $0x248] ss:$2 sm:$0xff] }
 0x189   :  { %v1506_v11 = vld [vmem:[#allocation2 + $0x19f] ss:$2 sm:$0xff]  ;;  %v1541_v53 = vld [vmem:[#allocation2 + $0x1cf] ss:$2 sm:$0xff]  ;;  %v1539_v58 = vadd.f32 %v1538_v10, %v1535_v57  ;;  %v1570_v22 = vadd.f32 %v1569_v34, %v1566_v30  ;;  %v1666_v46 = vmul.f32 %v6377_v2, %v1665_v0  ;;  %v1698_v27 = vmul.f32 %v6373_v41, %v1697_v47  ;;  %v1580_v47 = vld [vmem:[#allocation2 + $0x200] ss:$2 sm:$0xff] }
 0x18a   :  { %5200 = vmatpush3.bf16.msra.mxu0 %v5531_v6  ;;  %v1594_v6 = vadd.f32 %v1593_v40, %v1591_v15  ;;  %v1631_v15 = vmul.f32 %v6377_v2, %v1630_v39  ;;  %v1603_v40 = vld [vmem:[#allocation2 + $0x218] ss:$2 sm:$0xff]  ;;  %v1507_v32 = vmul.f32 %v6410_v36, %v1506_v11  ;;  %v1542_v44 = vmul.f32 %v6410_v36, %v1541_v53  ;;  %v1695_v61 = vld [vmem:[#allocation2 + $0x28f] ss:$2 sm:$0xff]  ;;  %v1576_v17 = vld [vmem:[#allocation2 + $0x1ff] ss:$2 sm:$0xff] }
 0x18b   :  { %v1604_v37 = vmul.f32 %v6391_v48, %v1603_v40  ;;  %v1607_v39 = vld [vmem:[#allocation2 + $0x219] ss:$2 sm:$0xff]  ;;  %v1664_v53 = vadd.f32 %v1663_v55, %v1661_v49  ;;  %v1696_v52 = vmul.f32 %v6369_v31, %v1695_v61  ;;  %v1732_v40 = vld [vmem:[#allocation2 + $0x2c0] ss:$2 sm:$0xff]  ;;  %v1577_v49 = vmul.f32 %v6410_v36, %v1576_v17 }
 0x18c   :  { %v1597_v26 = vadd.f32 %v1596_v18, %v1594_v6  ;;  %v1510_v6 = vld [vmem:[#allocation2 + $0x1a0] ss:$2 sm:$0xff]  ;;  %v1545_v18 = vld [vmem:[#allocation2 + $0x1d0] ss:$2 sm:$0xff]  ;;  %v1632_v11 = vadd.f32 %v1631_v15, %v1629_v33  ;;  %v1669_v57 = vld [vmem:[#allocation2 + $0x277] ss:$2 sm:$0xff]  ;;  %v1508_v30 = vadd.f32 %v1507_v32, %v1504_v14  ;;  %v1574_v15 = vadd.f32 %v1573_v29, %v1570_v22 }
 0x18d   :  { %v1700_v10 = vld [vmem:[#allocation2 + $0x291] ss:$2 sm:$0xff]  ;;  %v6421_v34 = vld [vmem:[%s5825_s21 + $0x7] ss:$0 sm:$0xff]  ;;  %v1608_v61 = vmul.f32 %v6400_v23, %v1607_v39  ;;  %v1639_v32 = vmul.f32 %v6391_v48, %v1638_v12  ;;  %v1667_v14 = vadd.f32 %v1666_v46, %v1664_v53  ;;  %v1733_v22 = vmul.f32 %v6373_v41, %v1732_v40 }
 0x18e   :  { %v1601_v42 = vadd.f32 %v1600_v21, %v1597_v26  ;;  %v1730_v24 = vld [vmem:[#allocation2 + $0x2bf] ss:$2 sm:$0xff]  ;;  %v1511_v26 = vmul.f32 %v6421_v34, %v1510_v6  ;;  %v1543_v21 = vadd.f32 %v1542_v44, %v1539_v58  ;;  %v1546_v0 = vmul.f32 %v6421_v34, %v1545_v18  ;;  %v1673_v58 = vld [vmem:[#allocation2 + $0x278] ss:$2 sm:$0xff] }
 0x18f   :  { %v1514_v50 = vld [vmem:[#allocation2 + $0x1a1] ss:$2 sm:$0xff]  ;;  %v1549_v33 = vld [vmem:[#allocation2 + $0x1d1] ss:$2 sm:$0xff]  ;;  %v1636_v8 = vadd.f32 %v1635_v56, %v1632_v11  ;;  %v1670_v6 = vmul.f32 %v6383_v43, %v1669_v57  ;;  %v1699_v18 = vadd.f32 %v1698_v27, %v1696_v52  ;;  %v1701_v63 = vmul.f32 %v6377_v2, %v1700_v10 }
 0x190   :  { %v1605_v55 = vadd.f32 %v1604_v37, %v1601_v42  ;;  %v1642_v44 = vld [vmem:[#allocation2 + $0x249] ss:$2 sm:$0xff]  ;;  %v1731_v29 = vmul.f32 %v6369_v31, %v1730_v24  ;;  %v1512_v37 = vadd.f32 %v1511_v26, %v1508_v30  ;;  %v6433_v42 = vld [vmem:[%s5825_s21 + $0x8] ss:$0 sm:$0xff]  ;;  %v1547_v39 = vadd.f32 %v1546_v0, %v1543_v21  ;;  %v1615_v31 = vld [vmem:[#allocation2 + $0x230] ss:$2 sm:$0xff]  ;;  %s6813_s21 = sld [smem:[%s7251_s0 + %s5642_s18]]  }
 0x191   :  { %v1515_v17 = vmul.f32 %v6433_v42, %v1514_v50  ;;  %v1550_v12 = vmul.f32 %v6433_v42, %v1549_v33  ;;  %v1704_v46 = vld [vmem:[#allocation2 + $0x2a7] ss:$2 sm:$0xff]  ;;  %v1578_v11 = vadd.f32 %v1577_v49, %v1574_v15  ;;  %v1581_v53 = vmul.f32 %v6421_v34, %v1580_v47  ;;  %v1708_v50 = vld [vmem:[#allocation2 + $0x2a8] ss:$2 sm:$0xff] }
 0x192   :  { %v1735_v56 = vld [vmem:[#allocation2 + $0x2c1] ss:$2 sm:$0xff]  ;;  %v1609_v27 = vadd.f32 %v1608_v61, %v1605_v55  ;;  %v1612_v57 = vmul.f32 %v6410_v36, %v1611_v1  ;;  %v1640_v10 = vadd.f32 %v1639_v32, %v1636_v8  ;;  %v1643_v41 = vmul.f32 %v6400_v23, %v1642_v44 }
 0x193   :  { %v1584_v52 = vld [vmem:[#allocation2 + $0x201] ss:$2 sm:$0xff]  ;;  %v1671_v24 = vadd.f32 %v1670_v6, %v1667_v14  ;;  %v1674_v40 = vmul.f32 %v6391_v48, %v1673_v58  ;;  %v1702_v21 = vadd.f32 %v1701_v63, %v1699_v18  ;;  %v1705_v0 = vmul.f32 %v6383_v43, %v1704_v46  ;;  %v1619_v14 = vld [vmem:[#allocation2 + $0x231] ss:$2 sm:$0xff]  ;;  %v1650_v18 = vld [vmem:[#allocation2 + $0x260] ss:$2 sm:$0xff] }
 0x194   :  { %v1646_v30 = vld [vmem:[#allocation2 + $0x25f] ss:$2 sm:$0xff]  ;;  %v1734_v33 = vadd.f32 %v1733_v22, %v1731_v29  ;;  %v1736_v15 = vmul.f32 %v6377_v2, %v1735_v56  ;;  %v1516_v49 = vadd.f32 %v1515_v17, %v1512_v37  ;;  %v1585_v55 = vmul.f32 %v6433_v42, %v1584_v52  ;;  %v1681_v29 = vld [vmem:[#allocation2 + $0x28f] ss:$2 sm:$0xff]  ;;  %v1743_v56 = vld [vmem:[#allocation2 + $0x2d8] ss:$2 sm:$0xff] }
 0x195   :  { %v1677_v26 = vld [vmem:[#allocation2 + $0x279] ss:$2 sm:$0xff]  ;;  %v1551_v61 = vadd.f32 %v1550_v12, %v1547_v39  ;;  %v1582_v8 = vadd.f32 %v1581_v53, %v1578_v11  ;;  %v1613_v47 = vadd.f32 %v1612_v57, %v1609_v27  ;;  %v1616_v32 = vmul.f32 %v6421_v34, %v1615_v31  ;;  %v1712_v37 = vld [vmem:[#allocation2 + $0x2a9] ss:$2 sm:$0xff]  ;;  %v6450_v12 = vld [vmem:[%s5932_s25] ss:$0 sm:$0xff]  ;;  %s4632_s25 = sld [smem:[%s7251_s0 + %s5643_s22]]  }
 0x196   :  { %v1739_v1 = vld [vmem:[#allocation2 + $0x2d7] ss:$2 sm:$0xff]  ;;  %v1644_v6 = vadd.f32 %v1643_v41, %v1640_v10  ;;  %v1647_v63 = vmul.f32 %v6410_v36, %v1646_v30  ;;  %v1678_v44 = vmul.f32 %v6400_v23, %v1677_v26  ;;  %v1709_v58 = vmul.f32 %v6391_v48, %v1708_v50 }
 0x197   :  { %v1675_v2 = vadd.f32 %v1674_v40, %v1671_v24  ;;  %v1706_v22 = vadd.f32 %v1705_v0, %v1702_v21  ;;  %v1737_v17 = vadd.f32 %v1736_v15, %v1734_v33  ;;  %v1740_v39 = vmul.f32 %v6383_v43, %v1739_v1  ;;  %v1654_v10 = vld [vmem:[#allocation2 + $0x261] ss:$2 sm:$0xff]  ;;  %v1685_v40 = vld [vmem:[#allocation2 + $0x290] ss:$2 sm:$0xff] }
 0x198   :  { %v6453_v46 = vadd.f32 %v6450_v12, %v1516_v49  ;;  %v6456_v11 = vadd.f32 %v6450_v12, %v1551_v61  ;;  %v1586_v53 = vadd.f32 %v1585_v55, %v1582_v8  ;;  %v1617_v52 = vadd.f32 %v1616_v32, %v1613_v47  ;;  %v1716_v26 = vld [vmem:[#allocation2 + $0x2bf] ss:$2 sm:$0xff] }
 0x199   :  { %v1620_v27 = vmul.f32 %v6433_v42, %v1619_v14  ;;  %v1648_v57 = vadd.f32 %v1647_v63, %v1644_v6  ;;  %v1651_v31 = vmul.f32 %v6421_v34, %v1650_v18  ;;  %v1682_v41 = vmul.f32 %v6410_v36, %v1681_v29  ;;  %v1747_v50 = vld [vmem:[#allocation2 + $0x2d9] ss:$2 sm:$0xff] }
 0x19a   :  { %v1713_v43 = vmul.f32 %v6400_v23, %v1712_v37  ;;  %v1679_v24 = vadd.f32 %v1678_v44, %v1675_v2  ;;  %v1710_v30 = vadd.f32 %v1709_v58, %v1706_v22  ;;  %v1741_v21 = vadd.f32 %v1740_v39, %v1737_v17  ;;  %v1689_v47 = vld [vmem:[#allocation2 + $0x291] ss:$2 sm:$0xff] }
 0x19b   :  { %v1744_v0 = vmul.f32 %v6391_v48, %v1743_v56  ;;  %v1518_v33 = vmax.f32 %v6453_v46, 0.0  ;;  %v1553_v15 = vmax.f32 %v6456_v11, 0.0  ;;  %v6466_v49 = vadd.f32 %v6450_v12, %v1586_v53  ;;  %v1720_v48 = vld [vmem:[#allocation2 + $0x2c0] ss:$2 sm:$0xff]  ;;  %v1751_v58 = vld [vmem:[#allocation2 + $0x2ef] ss:$2 sm:$0xff] }
 0x19c   :  { %v1655_v55 = vmul.f32 %v6433_v42, %v1654_v10  ;;  %v1621_v1 = vadd.f32 %v1620_v27, %v1617_v52  ;;  %v1652_v61 = vadd.f32 %v1651_v31, %v1648_v57  ;;  %v1686_v8 = vmul.f32 %v6421_v34, %v1685_v40  ;;  %v1724_v53 = vld [vmem:[#allocation2 + $0x2c1] ss:$2 sm:$0xff]  ;;  %v1755_v27 = vld [vmem:[#allocation2 + $0x2f0] ss:$2 sm:$0xff]  ;;  %v1759_v40 = vld [vmem:[#allocation2 + $0x2f1] ss:$2 sm:$0xff] }
 0x19d   :  { %v1717_v32 = vmul.f32 %v6410_v36, %v1716_v26  ;;  %v1683_v14 = vadd.f32 %v1682_v41, %v1679_v24  ;;  %v1714_v6 = vadd.f32 %v1713_v43, %v1710_v30  ;;  %v1745_v63 = vadd.f32 %v1744_v0, %v1741_v21 }
 0x19e   :  { %v1748_v44 = vmul.f32 %v6400_v23, %v1747_v50  ;;  %v1588_v18 = vmax.f32 %v6466_v49, 0.0  ;;  %v1690_v2 = vmul.f32 %v6433_v42, %v1689_v47  ;;  %v6475_v29 = vadd.f32 %v6450_v12, %v1621_v1  ;;  %v6636_v49 = vld [vmem:[%s4626_s23] ss:$0 sm:$0xff]  ;;  %s7089_s23 = sld [smem:[%s7251_s0 + %s5650_s20]]  }
 0x19f   :  { %v1656_v22 = vadd.f32 %v1655_v55, %v1652_v61  ;;  %v1721_v37 = vmul.f32 %v6421_v34, %v1720_v48  ;;  %v1752_v17 = vmul.f32 %v6410_v36, %v1751_v58  ;;  %v1687_v39 = vadd.f32 %v1686_v8, %v1683_v14 }
 0x1a0   :  { %v1718_v56 = vadd.f32 %v1717_v32, %v1714_v6  ;;  %v1749_v52 = vadd.f32 %v1748_v44, %v1745_v63  ;;  %v2013_v23 = vadd.f32 %v1553_v15, %v1518_v33  ;;  %v1623_v57 = vmax.f32 %v6475_v29, 0.0  ;;  %v6513_v6 = vld [vmem:[%s4620_s7] sm:$0x1]  ;;  %s4636_s7 = sld [smem:[%s7251_s0 + %s5646_s4]]  }
 0x1a1   :  { %v6485_v31 = vadd.f32 %v6450_v12, %v1656_v22  ;;  %v1725_v10 = vmul.f32 %v6433_v42, %v1724_v53  ;;  %v1756_v41 = vmul.f32 %v6421_v34, %v1755_v27  ;;  %v1691_v36 = vadd.f32 %v1690_v2, %v1687_v39 }
 0x1a2   :  { %v1722_v43 = vadd.f32 %v1721_v37, %v1718_v56  ;;  %v1753_v24 = vadd.f32 %v1752_v17, %v1749_v52  ;;  %v2014_v30 = vadd.f32 %v2013_v23, %v1588_v18  ;;  %v1760_v21 = vmul.f32 %v6433_v42, %v1759_v40  ;;  %v5612_v56 = vld [vmem:[%s5789_s13 + $0x38] sm:$0xff]   ;;  %v5613_v52 = vld [vmem:[%s5789_s13 + $0x30] sm:$0xff]   ;;  %v5614_v23 = vld [vmem:[%s5789_s13 + $0x28] sm:$0xff]  }
 0x1a3   :  { %v1658_v26 = vmax.f32 %v6485_v31, 0.0  ;;  %v6494_v0 = vadd.f32 %v6450_v12, %v1691_v36  ;;  %v5617_v40 = vld [vmem:[%s5789_s13 + $0x10] sm:$0xff]  }
 0x1a4   :  { %v1726_v50 = vadd.f32 %v1725_v10, %v1722_v43  ;;  %v1757_v55 = vadd.f32 %v1756_v41, %v1753_v24  ;;  %v2015_v1 = vadd.f32 %v2014_v30, %v1623_v57  ;;  %v5615_v41 = vld [vmem:[%s5789_s13 + $0x20] sm:$0xff]   ;;  %v5616_v43 = vld [vmem:[%s5789_s13 + $0x18] sm:$0xff]  }
 0x1a5   :  { %v1693_v34 = vmax.f32 %v6494_v0, 0.0 }
 0x1a6   :  { %v6503_v61 = vadd.f32 %v6450_v12, %v1726_v50  ;;  %v1761_v8 = vadd.f32 %v1760_v21, %v1757_v55  ;;  %v2016_v42 = vadd.f32 %v2015_v1, %v1658_v26  ;;  %v5618_v21 = vld [vmem:[%s5789_s13 + $0x8] sm:$0xff]   ;;  %v5619_v55 = vld [vmem:[%s5789_s13] sm:$0xff]   ;;  %s4630_s13 = sld [smem:[%s7251_s0 + %s5640_s10]]   ;;  %s5655_s10 = smov 32  }
 0x1a8   :  { %v1728_v47 = vmax.f32 %v6503_v61, 0.0  ;;  %v6509_v32 = vadd.f32 %v6450_v12, %v1761_v8  ;;  %v2017_v14 = vadd.f32 %v2016_v42, %v1693_v34 }
 0x1aa   :  { %v1763_v44 = vmax.f32 %v6509_v32, 0.0  ;;  %v2018_v58 = vadd.f32 %v2017_v14, %v1728_v47 }
 0x1ac   :  { %v2019_v17 = vadd.f32 %v2018_v58, %v1763_v44 }
 0x1ae   :  { %v2020_v53 = vrot.slane %v2019_v17, 4 }
 0x1b0   :  { %v2021_v27 = vadd.f32 %v2020_v53, %v2019_v17  ;;  %v7259_v53 = vmax.f32 %v6081_v5, 0.0  ;;  %v7263_v5 = vmax.f32 %v6194_v4, 0.0  ;;  %v5539_v4 = vld [vmem:[%s6563_s11 + $0x20] sm:$0xff]  }
 0x1b2   :  { %v2022_v10 = vrot.slane %v2021_v27, 2 }
 0x1b4   :  { %v2023_v36 = vadd.f32 %v2022_v10, %v2021_v27 }
 0x1b6   :  { %v2024_v24 = vrot.slane %v2023_v36, 1 }
 0x1b8   :  { %v2025_v30 = vadd.f32 %v2024_v24, %v2023_v36 }
 0x1ba   :  { %v2026_v50 = vmul.f32 0.015625, %v2025_v30 }
 0x1bc   :  { %v2027_v1 = vpack.c.bf16 %v2026_v50, %v2026_v50 }
 0x226   :  { %v1896_v48 = vpop.f32.mrf.mxu1 }
 0x227   :  { %v1897_v63 = vadd.f32 %v1896_v48, %v6513_v6 }
 0x228   :  { %v5131_v2 = vpop.f32.mrf.mxu1 }
 0x229   :  { %v1902_v22 = vmax.f32 %v1897_v63, 0.0 }
 0x22a   :  { %v1899_v37 = vpop.f32.mrf.mxu1 }
 0x22b   :  { %v1903_v12 = vpack.c.bf16 %v1902_v22, %v1902_v22 }
 0x22c   :  { %v5132_v39 = vpop.f32.mrf.mxu1 }
 0x22d   :  { %5150 = vmatmul.mubr.bf16.vlgmr.msra.gmra.mxu1 %v1903_v12  ;;  %v7258_v39 = vmax.f32 %v6046_v62, 0.0 }
 0x22e   :  { %5154 = vmatpush3.bf16.msra.mxu1 %v5612_v56  ;;  %5169 = vmatprep.mubr.msk.bf16.mxu1 %vm5625_vm0, %v6254_v54 }
 0x22f   :  { %5155 = vmatprep.subr.bf16.mxu1 %v6254_v54 }
 0x232   :  { %5156 = vmatpush3.bf16.msra.mxu1 %v5613_v52 }
 0x233   :  { %5157 = vmatprep.subr.bf16.mxu1 %v6254_v54 }
 0x236   :  { %5158 = vmatpush3.bf16.msra.mxu1 %v5614_v23  ;;  %v7260_v23 = vmax.f32 %v6137_v16, 0.0 }
 0x237   :  { %5159 = vmatprep.subr.bf16.mxu1 %v6254_v54 }
 0x23a   :  { %5160 = vmatpush3.bf16.msra.mxu1 %v5615_v41  ;;  %v7261_v41 = vmax.f32 %v6166_v3, 0.0 }
 0x23b   :  { %5161 = vmatprep.subr.bf16.mxu1 %v6254_v54 }
 0x23e   :  { %5162 = vmatpush3.bf16.msra.mxu1 %v5616_v43 }
 0x23f   :  { %5163 = vmatprep.subr.bf16.mxu1 %v6254_v54 }
 0x242   :  { %5164 = vmatpush3.bf16.msra.mxu1 %v5617_v40 }
 0x243   :  { %5165 = vmatprep.subr.bf16.mxu1 %v6254_v54 }
 0x246   :  { %5166 = vmatpush3.bf16.msra.mxu1 %v5618_v21 }
 0x247   :  { %5167 = vmatprep.subr.bf16.mxu1 %v6254_v54 }
 0x24a   :  { %5168 = vmatpush3.bf16.msra.mxu1 %v5619_v55  ;;  %v5537_v55 = vld [vmem:[%s6563_s11 + $0x30] sm:$0xff]  }
 0x24b   :  { %5173 = vmatprep.subr.bf16.mxu1 %v6254_v54 }
 0x24d   :  { %5170 = vmatmul.mubr.bf16.vlgmr.msra.gmra.mxu1 %v2027_v1 }
 0x24e   :  { %5174 = vmatpush3.bf16.msra.mxu1 %v6238_v60  ;;  %5189 = vmatprep.mubr.msk.bf16.mxu1 %vm5625_vm0, %v6254_v54  ;;  %v5532_v60 = vld [vmem:[%s6362_s3 + $0x18] sm:$0xff]  }
 0x24f   :  { %5175 = vmatprep.subr.bf16.mxu1 %v6254_v54  ;;  %5201 = vmatprep.subr.bf16.mxu0 %v5532_v60 }
 0x250   :  { %5202 = vmatpush3.bf16.msra.mxu0 %v5532_v60  ;;  %v5541_v60 = vld [vmem:[%s6563_s11 + $0x10] sm:$0xff]  }
 0x252   :  { %5176 = vmatpush3.bf16.msra.mxu1 %v6252_v35  ;;  %v5533_v35 = vld [vmem:[%s6362_s3 + $0x10] sm:$0xff]  }
 0x253   :  { %5177 = vmatprep.subr.bf16.mxu1 %v6254_v54  ;;  %5203 = vmatprep.subr.bf16.mxu0 %v5533_v35 }
 0x254   :  { %5204 = vmatpush3.bf16.msra.mxu0 %v5533_v35  ;;  %v5542_v35 = vld [vmem:[%s6563_s11 + $0x8] sm:$0xff]  }
 0x256   :  { %5178 = vmatpush3.bf16.msra.mxu1 %v6260_v13  ;;  %v5534_v13 = vld [vmem:[%s6362_s3 + $0x8] sm:$0xff]  }
 0x257   :  { %5179 = vmatprep.subr.bf16.mxu1 %v6254_v54  ;;  %5205 = vmatprep.subr.bf16.mxu0 %v5534_v13 }
 0x258   :  { %5206 = vmatpush3.bf16.msra.mxu0 %v5534_v13  ;;  %v5543_v13 = vld [vmem:[%s6563_s11] sm:$0xff]  }
 0x25a   :  { %5180 = vmatpush3.bf16.msra.mxu1 %v6278_v9  ;;  %v5535_v9 = vld [vmem:[%s6362_s3] sm:$0xff]   ;;  %s6852_s3 = sld [smem:[%s7251_s0 + %s5645_s30]]  }
 0x25b   :  { %5181 = vmatprep.subr.bf16.mxu1 %v6254_v54  ;;  %5207 = vmatprep.subr.bf16.mxu0 %v5535_v9 }
 0x25c   :  { %5208 = vmatpush3.bf16.msra.mxu0 %v5535_v9 }
 0x25e   :  { %5182 = vmatpush3.bf16.msra.mxu1 %v6301_v51  ;;  %v6569_v51 = vld [vmem:[%s4622_s15] sm:$0x1]  ;;  %s4638_s15 = sld [smem:[%s7251_s0 + %s5648_s12]]  }
 0x25f   :  { %5183 = vmatprep.subr.bf16.mxu1 %v6254_v54 }
 0x262   :  { %5184 = vmatpush3.bf16.msra.mxu1 %v6325_v25  ;;  %v2114_v25 = vlaneseq }
 0x263   :  { %5185 = vmatprep.subr.bf16.mxu1 %v6254_v54 }
 0x264   :  { %v6572_v14 = vshrl.u32 %v2114_v25, 7 }
 0x266   :  { %5186 = vmatpush3.bf16.msra.mxu1 %v6334_v45  ;;  %v6575_v22 = vsub.s32 0, %v6572_v14  ;;  %vm4485_vm2 = vcmp.lt.s32.totalorder %v6572_v14, 4 }
 0x267   :  { %5187 = vmatprep.subr.bf16.mxu1 %v6254_v54  ;;  %v5536_v54 = vld [vmem:[%s6563_s11 + $0x38] sm:$0xff]  }
 0x26a   :  { %5188 = vmatpush3.bf16.msra.mxu1 %v6355_v19 }
 0x26b   :  { %5225 = vmatprep.subr.bf16.mxu1 %v5536_v54 }
 0x2ed   :  { %v2003_v45 = vpop.f32.mrf.mxu1 }
 0x2ee   :  { %v2004_v19 = vadd.f32 %v2003_v45, %v6569_v51  ;;  %v6605_v45 = vld [vmem:[%s4624_s19] ss:$0 sm:$0xff]  ;;  %s6982_s19 = sld [smem:[%s7251_s0 + %s5649_s16]]  }
 0x2ef   :  { %v5151_v8 = vpop.f32.mrf.mxu1 }
 0x2f0   :  { %v2009_v42 = vadd.f32 3.0, %v2004_v19 }
 0x2f1   :  { %v2006_v48 = vpop.f32.mrf.mxu1 }
 0x2f2   :  { %v2010_v63 = vmax.f32 %v2009_v42, 0.0 }
 0x2f3   :  { %v5152_v58 = vpop.f32.mrf.mxu1 }
 0x2f4   :  { %v2011_v2 = vmin.f32 %v2010_v63, 6.0 }
 0x2f6   :  { %v2012_v37 = vmul.f32 0.16666667, %v2011_v2 }
 0x2f8   :  { %v2182_v12 = vrot.slane %v2012_v37, %v6575_v22 }
 0x2fa   :  { %v2203_v17 = vmul.f32 %v2182_v12, %v1235_v7  ;;  %v2204_v56 = vmul.f32 %v2182_v12, %v7258_v39  ;;  %v2205_v52 = vmul.f32 %v2182_v12, %v7259_v53  ;;  %v2206_v27 = vmul.f32 %v2182_v12, %v1352_v38 }
 0x2fb   :  { %v2207_v10 = vmul.f32 %v2182_v12, %v7260_v23  ;;  %v2208_v36 = vmul.f32 %v2182_v12, %v7261_v41  ;;  %v7262_v7 = vmax.f32 %v6178_v28, 0.0  ;;  %v2210_v20 = vmul.f32 %v2182_v12, %v7263_v5  ;;  %v5538_v28 = vld [vmem:[%s6563_s11 + $0x28] sm:$0xff]  }
 0x2fc   :  { %v2219_v43 = vpack.c.bf16 %v2204_v56, %v2203_v17  ;;  %v2220_v24 = vpack.c.bf16 %v2206_v27, %v2205_v52 }
 0x2fd   :  { %v2221_v59 = vpack.c.bf16 %v2208_v36, %v2207_v10  ;;  %v2209_v62 = vmul.f32 %v2182_v12, %v7262_v7 }
 0x2fe   :  { %5209 = vmatprep.mubr.bf16.mxu0 %v2219_v43 }
 0x2ff   :  { %5210 = vmatmul.mubr.bf16.vlgmr.msra.gmra.mxu0 %v2220_v24  ;;  %v2222_v38 = vpack.c.bf16 %v2210_v20, %v2209_v62 }
 0x300   :  { %5213 = vmatprep.mubr.bf16.mxu0 %v2221_v59 }
 0x307   :  { %5214 = vmatmul.mubr.bf16.gmra.mxu0 %v2222_v38 }
 0x30d   :  { %v2062_v16 = vpop.f32.mrf.mxu1 }
 0x30e   :  { %v2063_v3 = vadd.f32 %v2062_v16, %v6513_v6  ;;  %v5540_v6 = vld [vmem:[%s6563_s11 + $0x18] sm:$0xff]   ;;  %s4641_s11 = sld [smem:[%s7251_s0 + %s5647_s8]]  }
 0x30f   :  { %v5171_v40 = vpop.f32.mrf.mxu1 }
 0x310   :  { %v2068_v30 = vmax.f32 %v2063_v3, 0.0 }
 0x311   :  { %v2065_v21 = vpop.f32.mrf.mxu1 }
 0x312   :  { %v2069_v50 = vpack.c.bf16 %v2068_v30, %v2068_v30 }
 0x313   :  { %v5172_v1 = vpop.f32.mrf.mxu1 }
 0x314   :  { %5190 = vmatmul.mubr.bf16.vlgmr.msra.gmra.mxu1 %v2069_v50 }
 0x315   :  { %5226 = vmatpush3.bf16.msra.mxu1 %v5536_v54 }
 0x316   :  { %5227 = vmatprep.subr.bf16.mxu1 %v5537_v55 }
 0x319   :  { %5228 = vmatpush3.bf16.msra.mxu1 %v5537_v55 }
 0x31a   :  { %5229 = vmatprep.subr.bf16.mxu1 %v5538_v28 }
 0x31d   :  { %5230 = vmatpush3.bf16.msra.mxu1 %v5538_v28 }
 0x31e   :  { %5231 = vmatprep.subr.bf16.mxu1 %v5539_v4 }
 0x321   :  { %5232 = vmatpush3.bf16.msra.mxu1 %v5539_v4 }
 0x322   :  { %5233 = vmatprep.subr.bf16.mxu1 %v5540_v6 }
 0x325   :  { %5234 = vmatpush3.bf16.msra.mxu1 %v5540_v6 }
 0x326   :  { %5235 = vmatprep.subr.bf16.mxu1 %v5541_v60 }
 0x329   :  { %5236 = vmatpush3.bf16.msra.mxu1 %v5541_v60 }
 0x32a   :  { %5237 = vmatprep.subr.bf16.mxu1 %v5542_v35 }
 0x32d   :  { %5238 = vmatpush3.bf16.msra.mxu1 %v5542_v35 }
 0x32e   :  { %5239 = vmatprep.subr.bf16.mxu1 %v5543_v13 }
 0x331   :  { %5240 = vmatpush3.bf16.msra.mxu1 %v5543_v13 }
 0x3bf   :  { %v5211_v9 = vpop.f32.mrf.mxu0 }
 0x3c0   :  { %v2341_v63 = vadd.f32 %v5211_v9, %v6605_v45  ;;  %v6650_v9 = vld [vmem:[%s6643_s27 + $0x3] ss:$0 sm:$0xff] }
 0x3c1   :  { %v2332_v54 = vpop.f32.mrf.mxu0 }
 0x3c2   :  { %v2333_v42 = vadd.f32 %v6605_v45, %v2332_v54  ;;  %v6653_v54 = vld [vmem:[%s6643_s27 + $0x4] ss:$0 sm:$0xff] }
 0x3c3   :  { %v5212_v25 = vpop.f32.mrf.mxu0 }
 0x3c4   :  { %v2344_v19 = vadd.f32 %v5212_v25, %v6605_v45 }
 0x3c5   :  { %v2335_v8 = vpop.f32.mrf.mxu0 }
 0x3c6   :  { %v2336_v48 = vadd.f32 %v6605_v45, %v2335_v8  ;;  %v2396_v37 = vpack.c.bf16 %v2344_v19, %v2341_v63 }
 0x3c7   :  { %v5215_v58 = vpop.f32.mrf.mxu0 }
 0x3c8   :  { %v2395_v2 = vpack.c.bf16 %v2336_v48, %v2333_v42  ;;  %v2357_v27 = vadd.f32 %v5215_v58, %v6605_v45 }
 0x3c9   :  { %v2348_v12 = vpop.f32.mrf.mxu0 }
 0x3ca   :  { %5241 = vmatprep.mubr.bf16.mxu1 %v2395_v2  ;;  %v2349_v53 = vadd.f32 %v6605_v45, %v2348_v12  ;;  %v6659_v2 = vld [vmem:[%s6643_s27] ss:$0 sm:$0xff]  ;;  %v6662_v12 = vld [vmem:[%s6643_s27 + $0x5] ss:$0 sm:$0xff] }
 0x3cb   :  { %v5216_v17 = vpop.f32.mrf.mxu0  ;;  %5242 = vmatmul.mubr.bf16.vlgmr.msra.gmra.mxu1 %v2396_v37 }
 0x3cc   :  { %v2360_v39 = vadd.f32 %v5216_v17, %v6605_v45  ;;  %v6665_v17 = vld [vmem:[%s6643_s27 + $0x1] ss:$0 sm:$0xff] }
 0x3cd   :  { %v2351_v56 = vpop.f32.mrf.mxu0 }
 0x3ce   :  { %v2352_v52 = vadd.f32 %v6605_v45, %v2351_v56  ;;  %v2398_v10 = vpack.c.bf16 %v2360_v39, %v2357_v27  ;;  %v6677_v27 = vld [vmem:[%s6643_s27 + $0x2] ss:$0 sm:$0xff] }
 0x3d0   :  { %v2397_v23 = vpack.c.bf16 %v2352_v52, %v2349_v53  ;;  %v6669_v53 = vld [vmem:[%s6643_s27 + $0x6] ss:$0 sm:$0xff] }
 0x3d2   :  { %5245 = vmatprep.mubr.bf16.mxu1 %v2397_v23 }
 0x3d3   :  { %5246 = vmatmul.mubr.bf16.gmra.mxu1 %v2398_v10 }
 0x3d4   :  { %v2104_v41 = vpop.f32.mrf.mxu1 }
 0x3d5   :  { %v2105_v36 = vadd.f32 %v2104_v41, %v6569_v51 }
 0x3d6   :  { %v5191_v43 = vpop.f32.mrf.mxu1 }
 0x3d7   :  { %v2110_v24 = vadd.f32 3.0, %v2105_v36  ;;  %v6681_v43 = vld [vmem:[%s6643_s27 + $0x7] ss:$0 sm:$0xff] }
 0x3d8   :  { %v2107_v59 = vpop.f32.mrf.mxu1 }
 0x3d9   :  { %v2111_v7 = vmax.f32 %v2110_v24, 0.0 }
 0x3da   :  { %v5192_v62 = vpop.f32.mrf.mxu1 }
 0x3db   :  { %v2112_v5 = vmin.f32 %v2111_v7, 6.0 }
 0x3dd   :  { %v2113_v20 = vmul.f32 0.16666667, %v2112_v5 }
 0x3df   :  { %v2186_v38 = vrot.slane %v2113_v20, %v6575_v22 }
 0x3e1   :  { %v2211_v16 = vmul.f32 %v2186_v38, %v1518_v33  ;;  %v2212_v3 = vmul.f32 %v2186_v38, %v1553_v15  ;;  %v2213_v40 = vmul.f32 %v2186_v38, %v1588_v18  ;;  %v2214_v51 = vmul.f32 %v2186_v38, %v1623_v57 }
 0x3e2   :  { %v2215_v30 = vmul.f32 %v2186_v38, %v1658_v26  ;;  %v2216_v21 = vmul.f32 %v2186_v38, %v1693_v34  ;;  %v2217_v11 = vmul.f32 %v2186_v38, %v1728_v47  ;;  %v2218_v33 = vmul.f32 %v2186_v38, %v1763_v44 }
 0x3e3   :  { %v2223_v50 = vpack.c.bf16 %v2212_v3, %v2211_v16  ;;  %v2224_v55 = vpack.c.bf16 %v2214_v51, %v2213_v40 }
 0x3e4   :  { %v2225_v46 = vpack.c.bf16 %v2216_v21, %v2215_v30  ;;  %v2226_v15 = vpack.c.bf16 %v2218_v33, %v2217_v11  ;;  %v6687_v30 = vld [vmem:[%s6643_s27 + $0x8] ss:$0 sm:$0xff]  ;;  %s7110_s27 = sld [smem:[%s7251_s0 + %s5651_s24]]  }
 0x3e5   :  { %5217 = vmatprep.mubr.bf16.mxu0 %v2223_v50 }
 0x3e6   :  { %5218 = vmatmul.mubr.bf16.gmra.mxu0 %v2224_v55 }
 0x3e7   :  { %5221 = vmatprep.mubr.bf16.mxu0 %v2225_v46 }
 0x3ee   :  { %5222 = vmatmul.mubr.bf16.gmra.mxu0 %v2226_v15 }
 0x48b   :  { %v5243_v18 = vpop.f32.mrf.mxu1 }
 0x48c   :  { %v2517_v29 = vadd.f32 %v5243_v18, %v6636_v49 }
 0x48d   :  { %v2508_v57 = vpop.f32.mrf.mxu1 }
 0x48e   :  { %v2573_v31 = vmax.f32 %v2517_v29, 0.0  ;;  %v2509_v26 = vadd.f32 %v6636_v49, %v2508_v57 }
 0x48f   :  { %v5244_v0 = vpop.f32.mrf.mxu1 }
 0x490   :  { %2592 = vst [vmem:[#allocation4 + $0x28] sm:$0xff] %v2573_v31  ;;  %v2571_v34 = vmax.f32 %v2509_v26, 0.0  ;;  %v2520_v61 = vadd.f32 %v5244_v0, %v6636_v49 }
 0x491   :  { %v2511_v47 = vpop.f32.mrf.mxu1 }
 0x492   :  { %2588 = vst [vmem:[#allocation4 + $0x8] sm:$0xff] %v2571_v34  ;;  %v2574_v32 = vmax.f32 %v2520_v61, 0.0  ;;  %v2512_v44 = vadd.f32 %v6636_v49, %v2511_v47  ;;  %v6697_v61 = vld [vmem:[%s6674_s1] ss:$0 sm:$0xff]  ;;  %s4642_s1 = sld [smem:[%s7251_s0 + %s5652_s28]]  }
 0x493   :  { %v5247_v1 = vpop.f32.mrf.mxu1 }
 0x494   :  { %2594 = vst [vmem:[#allocation4 + $0x38] sm:$0xff] %v2574_v32  ;;  %v2572_v28 = vmax.f32 %v2512_v44, 0.0  ;;  %v2533_v4 = vadd.f32 %v5247_v1, %v6636_v49 }
 0x495   :  { %v2524_v6 = vpop.f32.mrf.mxu1 }
 0x496   :  { %2590 = vst [vmem:[#allocation4 + $0x18] sm:$0xff] %v2572_v28  ;;  %v2577_v60 = vmax.f32 %v2533_v4, 0.0  ;;  %v2525_v35 = vadd.f32 %v6636_v49, %v2524_v6 }
 0x497   :  { %v5248_v13 = vpop.f32.mrf.mxu1  ;;  %v2706_v46 = vld [vmem:[#allocation4 + $0x27] ss:$2 sm:$0xf]  ;;  %v2710_v0 = vld [vmem:[#allocation4 + $0x28] ss:$2 sm:$0xf] }
 0x498   :  { %2600 = vst [vmem:[#allocation4 + $0x68] sm:$0xff] %v2577_v60  ;;  %v2575_v25 = vmax.f32 %v2525_v35, 0.0  ;;  %v2536_v19 = vadd.f32 %v5248_v13, %v6636_v49  ;;  %v2707_v47 = vmul.f32 %v6650_v9, %v2706_v46  ;;  %v2714_v28 = vld [vmem:[#allocation4 + $0x29] ss:$2 sm:$0xf]  ;;  %v2711_v35 = vmul.f32 %v6653_v54, %v2710_v0 }
 0x499   :  { %v2630_v8 = vld [vmem:[#allocation4 + $0x7] ss:$2 sm:$0xf]  ;;  %v2637_v42 = vld [vmem:[#allocation4 + $0x8] ss:$2 sm:$0xf]  ;;  %v2527_v38 = vpop.f32.mrf.mxu1 }
 0x49a   :  { %v2635_v48 = vmul.f32 %v6650_v9, %v2630_v8  ;;  %v2642_v63 = vmul.f32 %v6653_v54, %v2637_v42  ;;  %v2645_v58 = vld [vmem:[#allocation4 + $0x9] ss:$2 sm:$0xf]  ;;  %2596 = vst [vmem:[#allocation4 + $0x48] sm:$0xff] %v2575_v25  ;;  %v2578_v37 = vmax.f32 %v2536_v19, 0.0  ;;  %v2528_v18 = vadd.f32 %v6636_v49, %v2527_v38 }
 0x49b   :  { %v2650_v56 = vmul.f32 %v6662_v12, %v2645_v58  ;;  %v2732_v52 = vld [vmem:[#allocation4 + $0x37] ss:$2 sm:$0xf]  ;;  %v2734_v10 = vld [vmem:[#allocation4 + $0x38] ss:$2 sm:$0xf] }
 0x49c   :  { %v2643_v39 = vadd.f32 %v2642_v63, %v2635_v48  ;;  %2602 = vst [vmem:[#allocation4 + $0x78] sm:$0xff] %v2578_v37  ;;  %v2733_v23 = vmul.f32 %v6659_v2, %v2732_v52  ;;  %v2737_v41 = vld [vmem:[#allocation4 + $0x39] ss:$2 sm:$0xf]  ;;  %v2735_v24 = vmul.f32 %v6665_v17, %v2734_v10  ;;  %v2576_v6 = vmax.f32 %v2528_v18, 0.0 }
 0x49d   :  { %v2653_v59 = vld [vmem:[#allocation4 + $0x17] ss:$2 sm:$0xf]  ;;  %v2661_v7 = vld [vmem:[#allocation4 + $0x18] ss:$2 sm:$0xf]  ;;  %v2738_v11 = vmul.f32 %v6677_v27, %v2737_v41  ;;  %v2715_v48 = vmul.f32 %v6662_v12, %v2714_v28 }
 0x49e   :  { %v2651_v36 = vadd.f32 %v2650_v56, %v2643_v39  ;;  %v2658_v62 = vmul.f32 %v6669_v53, %v2653_v59  ;;  %v2669_v5 = vld [vmem:[#allocation4 + $0x19] ss:$2 sm:$0xf]  ;;  %v2736_v16 = vadd.f32 %v2735_v24, %v2733_v23  ;;  %v2691_v40 = vld [vmem:[#allocation4 + $0x18] ss:$2 sm:$0xf]  ;;  %v2666_v50 = vmul.f32 %v6681_v43, %v2661_v7 }
 0x49f   :  { %v2685_v20 = vld [vmem:[#allocation4 + $0x17] ss:$2 sm:$0xf]  ;;  %v2696_v55 = vmul.f32 %v6665_v17, %v2691_v40  ;;  %v2674_v33 = vmul.f32 %v6687_v30, %v2669_v5  ;;  %2598 = vst [vmem:[#allocation4 + $0x58] sm:$0xff] %v2576_v6 }
 0x4a0   :  { %v2690_v3 = vmul.f32 %v6659_v2, %v2685_v20  ;;  %v2698_v51 = vld [vmem:[#allocation4 + $0x19] ss:$2 sm:$0xf]  ;;  %v2659_v21 = vadd.f32 %v2658_v62, %v2651_v36  ;;  %v2739_v34 = vadd.f32 %v2738_v11, %v2736_v16  ;;  %v2722_v39 = vld [vmem:[#allocation4 + $0x38] ss:$2 sm:$0xf] }
 0x4a1   :  { %v2741_v15 = vld [vmem:[#allocation4 + $0x47] ss:$2 sm:$0xf]  ;;  %v2703_v31 = vmul.f32 %v6677_v27, %v2698_v51  ;;  %v2745_v1 = vld [vmem:[#allocation4 + $0x48] ss:$2 sm:$0xf]  ;;  %v2723_v7 = vmul.f32 %v6681_v43, %v2722_v39 }
 0x4a2   :  { %v2667_v29 = vadd.f32 %v2666_v50, %v2659_v21  ;;  %v2697_v57 = vadd.f32 %v2696_v55, %v2690_v3  ;;  %v2742_v26 = vmul.f32 %v6650_v9, %v2741_v15  ;;  %v2718_v19 = vld [vmem:[#allocation4 + $0x37] ss:$2 sm:$0xf]  ;;  %v2746_v8 = vmul.f32 %v6653_v54, %v2745_v1  ;;  %v2749_v58 = vld [vmem:[#allocation4 + $0x49] ss:$2 sm:$0xf] }
 0x4a3   :  { %v2719_v23 = vmul.f32 %v6669_v53, %v2718_v19  ;;  %v2726_v41 = vld [vmem:[#allocation4 + $0x39] ss:$2 sm:$0xf]  ;;  %v2750_v36 = vmul.f32 %v6662_v12, %v2749_v58  ;;  %v2784_v39 = vld [vmem:[#allocation4 + $0x69] ss:$2 sm:$0xf] }
 0x4a4   :  { %v2675_v32 = vadd.f32 %v2674_v33, %v2667_v29  ;;  %v2704_v44 = vadd.f32 %v2703_v31, %v2697_v57  ;;  %v2743_v4 = vadd.f32 %v2742_v26, %v2739_v34  ;;  %v2727_v40 = vmul.f32 %v6687_v30, %v2726_v41 }
 0x4a6   :  { %v5219_v60 = vpop.f32.mrf.mxu0  ;;  %v2708_v13 = vadd.f32 %v2707_v47, %v2704_v44  ;;  %v2682_v25 = vadd.f32 %v6697_v61, %v2675_v32  ;;  %v2747_v56 = vadd.f32 %v2746_v8, %v2743_v4  ;;  %v2753_v51 = vld [vmem:[#allocation4 + $0x57] ss:$2 sm:$0xf]  ;;  %v2757_v21 = vld [vmem:[#allocation4 + $0x58] ss:$2 sm:$0xf] }
 0x4a7   :  { %v2373_v16 = vadd.f32 %v5219_v60, %v6605_v45  ;;  %v2754_v46 = vmul.f32 %v6669_v53, %v2753_v51  ;;  %v2761_v11 = vld [vmem:[#allocation4 + $0x59] ss:$2 sm:$0xf]  ;;  %v2769_v57 = vld [vmem:[#allocation4 + $0x58] ss:$2 sm:$0xf]  ;;  %v2758_v34 = vmul.f32 %v6681_v43, %v2757_v21 }
 0x4a8   :  { %v2364_v42 = vpop.f32.mrf.mxu0  ;;  %v2712_v63 = vadd.f32 %v2711_v35, %v2708_v13  ;;  %v2683_v37 = vmax.f32 %v2682_v25, 0.0  ;;  %v2751_v38 = vadd.f32 %v2750_v36, %v2747_v56  ;;  %v2767_v33 = vld [vmem:[#allocation4 + $0x57] ss:$2 sm:$0xf]  ;;  %v2770_v47 = vmul.f32 %v6665_v17, %v2769_v57 }
 0x4a9   :  { %v2365_v62 = vadd.f32 %v6605_v45, %v2364_v42  ;;  %v2768_v29 = vmul.f32 %v6659_v2, %v2767_v33  ;;  %v2772_v31 = vld [vmem:[#allocation4 + $0x59] ss:$2 sm:$0xf]  ;;  %v2776_v44 = vld [vmem:[#allocation4 + $0x67] ss:$2 sm:$0xf]  ;;  %v2762_v1 = vmul.f32 %v6687_v30, %v2761_v11 }
 0x4aa   :  { %v5220_v52 = vpop.f32.mrf.mxu0  ;;  %v2716_v10 = vadd.f32 %v2715_v48, %v2712_v63  ;;  %2684 = vst [vmem:[#allocation5] sm:$0xf] %v2683_v37  ;;  %v2755_v0 = vadd.f32 %v2754_v46, %v2751_v38  ;;  %v2773_v60 = vmul.f32 %v6677_v27, %v2772_v31  ;;  %v2780_v25 = vld [vmem:[#allocation4 + $0x68] ss:$2 sm:$0xf]  ;;  %v2777_v48 = vmul.f32 %v6650_v9, %v2776_v44  ;;  %v5544_v33 = vld [vmem:[%s4629_s5 + $0x38] sm:$0xff]  }
 0x4ab   :  { %v2376_v24 = vadd.f32 %v5220_v52, %v6605_v45  ;;  %v2771_v6 = vadd.f32 %v2770_v47, %v2768_v29  ;;  %v2781_v52 = vmul.f32 %v6653_v54, %v2780_v25  ;;  %v2788_v36 = vld [vmem:[#allocation4 + $0x77] ss:$2 sm:$0xf]  ;;  %5257 = vmatprep.subr.bf16.mxu0 %v5544_v33  ;;  %v5547_v29 = vld [vmem:[%s4629_s5 + $0x20] sm:$0xff]  }
 0x4ac   :  { %v2367_v59 = vpop.f32.mrf.mxu0  ;;  %v2720_v20 = vadd.f32 %v2719_v23, %v2716_v10  ;;  %v2759_v4 = vadd.f32 %v2758_v34, %v2755_v0  ;;  %5258 = vmatpush3.bf16.msra.mxu0 %v5544_v33  ;;  %v5548_v57 = vld [vmem:[%s4629_s5 + $0x18] sm:$0xff]   ;;  %v5549_v31 = vld [vmem:[%s4629_s5 + $0x10] sm:$0xff]   ;;  %v5551_v0 = vld [vmem:[%s4629_s5] sm:$0xff]  }
 0x4ad   :  { %v2368_v5 = vadd.f32 %v6605_v45, %v2367_v59  ;;  %v2400_v15 = vpack.c.bf16 %v2376_v24, %v2373_v16  ;;  %v2774_v58 = vadd.f32 %v2773_v60, %v2771_v6  ;;  %v2785_v24 = vmul.f32 %v6662_v12, %v2784_v39  ;;  %v5552_v34 = vld [vmem:[%s6737_s9 + $0x38] sm:$0xff]   ;;  %v5553_v47 = vld [vmem:[%s6737_s9 + $0x30] sm:$0xff]   ;;  %v5555_v44 = vld [vmem:[%s6737_s9 + $0x20] sm:$0xff]  }
 0x4ae   :  { %v5223_v3 = vpop.f32.mrf.mxu0  ;;  %v2724_v55 = vadd.f32 %v2723_v7, %v2720_v20  ;;  %v2763_v63 = vadd.f32 %v2762_v1, %v2759_v4  ;;  %v2796_v20 = vld [vmem:[#allocation4 + $0x79] ss:$2 sm:$0xf]  ;;  %5277 = vmatprep.subr.bf16.mxu1 %v5552_v34 }
 0x4af   :  { %v2399_v50 = vpack.c.bf16 %v2368_v5, %v2365_v62  ;;  %v2389_v37 = vadd.f32 %v5223_v3, %v6605_v45  ;;  %v2778_v23 = vadd.f32 %v2777_v48, %v2774_v58  ;;  %v2792_v62 = vld [vmem:[#allocation4 + $0x78] ss:$2 sm:$0xf]  ;;  %v2789_v5 = vmul.f32 %v6669_v53, %v2788_v36  ;;  %5278 = vmatpush3.bf16.msra.mxu1 %v5552_v34 }
 0x4b0   :  { %v2380_v18 = vpop.f32.mrf.mxu0  ;;  %v2728_v26 = vadd.f32 %v2727_v40, %v2724_v55  ;;  %v2764_v41 = vadd.f32 %v6697_v61, %v2763_v63  ;;  %v2793_v38 = vmul.f32 %v6681_v43, %v2792_v62  ;;  %v2797_v3 = vmul.f32 %v6687_v30, %v2796_v20  ;;  %5279 = vmatprep.subr.bf16.mxu1 %v5553_v47  ;;  %v5556_v1 = vld [vmem:[%s6737_s9 + $0x18] sm:$0xff]  }
 0x4b1   :  { %5249 = vmatprep.mubr.bf16.mxu1 %v2399_v50  ;;  %v2381_v19 = vadd.f32 %v6605_v45, %v2380_v18  ;;  %v2782_v59 = vadd.f32 %v2781_v52, %v2778_v23  ;;  %v5546_v18 = vld [vmem:[%s4629_s5 + $0x28] sm:$0xff]  }
 0x4b2   :  { %v5224_v32 = vpop.f32.mrf.mxu0  ;;  %5250 = vmatmul.mubr.bf16.gmra.mxu1 %v2400_v15  ;;  %v2729_v28 = vadd.f32 %v6697_v61, %v2728_v26  ;;  %v2765_v7 = vmax.f32 %v2764_v41, 0.0  ;;  %v5545_v15 = vld [vmem:[%s4629_s5 + $0x30] sm:$0xff]   ;;  %v5550_v26 = vld [vmem:[%s4629_s5 + $0x8] sm:$0xff]   ;;  %s4645_s5 = sld [smem:[%s7251_s0 + %s5653_s2]]  }
 0x4b3   :  { %v2392_v35 = vadd.f32 %v5224_v32, %v6605_v45  ;;  %5259 = vmatprep.subr.bf16.mxu0 %v5545_v15  ;;  %v5554_v32 = vld [vmem:[%s6737_s9 + $0x28] sm:$0xff]   ;;  %5280 = vmatpush3.bf16.msra.mxu1 %v5553_v47 }
 0x4b4   :  { %v2383_v13 = vpop.f32.mrf.mxu0  ;;  %v2730_v42 = vmax.f32 %v2729_v28, 0.0  ;;  %2766 = vst [vmem:[#allocation5 + $0x8] sm:$0xf] %v2765_v7  ;;  %5260 = vmatpush3.bf16.msra.mxu0 %v5545_v15  ;;  %5281 = vmatprep.subr.bf16.mxu1 %v5554_v32  ;;  %v5557_v28 = vld [vmem:[%s6737_s9 + $0x10] sm:$0xff]  }
 0x4b5   :  { %v2384_v8 = vadd.f32 %v6605_v45, %v2383_v13  ;;  %v2402_v10 = vpack.c.bf16 %v2392_v35, %v2389_v37  ;;  %v2786_v45 = vadd.f32 %v2785_v24, %v2782_v59  ;;  %5261 = vmatprep.subr.bf16.mxu0 %v5546_v18 }
 0x4b6   :  { %2731 = vst [vmem:[#allocation5 + $0x4] sm:$0xf] %v2730_v42 }
 0x4b7   :  { %v2401_v56 = vpack.c.bf16 %v2384_v8, %v2381_v19  ;;  %v2790_v16 = vadd.f32 %v2789_v5, %v2786_v45  ;;  %5282 = vmatpush3.bf16.msra.mxu1 %v5554_v32 }
 0x4b8   :  { %5262 = vmatpush3.bf16.msra.mxu0 %v5546_v18  ;;  %5283 = vmatprep.subr.bf16.mxu1 %v5555_v44 }
 0x4b9   :  { %5253 = vmatprep.mubr.bf16.mxu1 %v2401_v56  ;;  %v2794_v40 = vadd.f32 %v2793_v38, %v2790_v16  ;;  %5263 = vmatprep.subr.bf16.mxu0 %v5547_v29 }
 0x4ba   :  { %5254 = vmatmul.mubr.bf16.gmra.mxu1 %v2402_v10 }
 0x4bb   :  { %v2798_v51 = vadd.f32 %v2797_v3, %v2794_v40  ;;  %5284 = vmatpush3.bf16.msra.mxu1 %v5555_v44 }
 0x4bc   :  { %5264 = vmatpush3.bf16.msra.mxu0 %v5547_v29  ;;  %5285 = vmatprep.subr.bf16.mxu1 %v5556_v1 }
 0x4bd   :  { %v2799_v21 = vadd.f32 %v6697_v61, %v2798_v51  ;;  %v2933_v55 = vld [vmem:[#allocation5] sm:$0xff]  ;;  %5265 = vmatprep.subr.bf16.mxu0 %v5548_v57 }
 0x4bf   :  { %v2800_v50 = vmax.f32 %v2799_v21, 0.0  ;;  %5286 = vmatpush3.bf16.msra.mxu1 %v5556_v1 }
 0x4c0   :  { %5266 = vmatpush3.bf16.msra.mxu0 %v5548_v57  ;;  %5287 = vmatprep.subr.bf16.mxu1 %v5557_v28 }
 0x4c1   :  { %2801 = vst [vmem:[#allocation5 + $0xc] sm:$0xf] %v2800_v50  ;;  %5267 = vmatprep.subr.bf16.mxu0 %v5549_v31 }
 0x4c3   :  { %5288 = vmatpush3.bf16.msra.mxu1 %v5557_v28 }
 0x4c4   :  { %5268 = vmatpush3.bf16.msra.mxu0 %v5549_v31 }
 0x4c5   :  { %5269 = vmatprep.subr.bf16.mxu0 %v5550_v26 }
 0x4c8   :  { %v2934_v46 = vld [vmem:[#allocation5 + $0x8] sm:$0xff]  ;;  %5270 = vmatpush3.bf16.msra.mxu0 %v5550_v26 }
 0x4c9   :  { %v2937_v11 = vpack.c.bf16 %v2934_v46, %v2933_v55  ;;  %5271 = vmatprep.subr.bf16.mxu0 %v5551_v0 }
 0x4cb   :  { %5273 = vmatprep.mubr.bf16.mxu0 %v2937_v11 }
 0x4cc   :  { %5272 = vmatpush3.bf16.msra.mxu0 %v5551_v0 }
 0x572   :  { %v5251_v4 = vpop.f32.mrf.mxu1 }
 0x573   :  { %v2549_v6 = vadd.f32 %v5251_v4, %v6636_v49 }
 0x574   :  { %v2540_v60 = vpop.f32.mrf.mxu1 }
 0x575   :  { %v2581_v35 = vmax.f32 %v2549_v6, 0.0  ;;  %v2541_v13 = vadd.f32 %v6636_v49, %v2540_v60 }
 0x576   :  { %v5252_v25 = vpop.f32.mrf.mxu1 }
 0x577   :  { %2608 = vst [vmem:[#allocation4 + $0xa8] sm:$0xff] %v2581_v35  ;;  %v2579_v19 = vmax.f32 %v2541_v13, 0.0  ;;  %v2552_v8 = vadd.f32 %v5252_v25, %v6636_v49 }
 0x578   :  { %v2543_v42 = vpop.f32.mrf.mxu1 }
 0x579   :  { %2604 = vst [vmem:[#allocation4 + $0x88] sm:$0xff] %v2579_v19  ;;  %v2582_v48 = vmax.f32 %v2552_v8, 0.0  ;;  %v2544_v63 = vadd.f32 %v6636_v49, %v2543_v42 }
 0x57a   :  { %v5255_v58 = vpop.f32.mrf.mxu1 }
 0x57b   :  { %2610 = vst [vmem:[#allocation4 + $0xb8] sm:$0xff] %v2582_v48  ;;  %v2580_v37 = vmax.f32 %v2544_v63, 0.0  ;;  %v2565_v39 = vadd.f32 %v5255_v58, %v6636_v49 }
 0x57c   :  { %v2556_v56 = vpop.f32.mrf.mxu1 }
 0x57d   :  { %2606 = vst [vmem:[#allocation4 + $0x98] sm:$0xff] %v2580_v37  ;;  %v2585_v52 = vmax.f32 %v2565_v39, 0.0  ;;  %v2557_v23 = vadd.f32 %v6636_v49, %v2556_v56 }
 0x57e   :  { %v5256_v10 = vpop.f32.mrf.mxu1  ;;  %v2837_v32 = vld [vmem:[#allocation4 + $0xa7] ss:$2 sm:$0xf]  ;;  %v2841_v25 = vld [vmem:[#allocation4 + $0xa8] ss:$2 sm:$0xf] }
 0x57f   :  { %2616 = vst [vmem:[#allocation4 + $0xe8] sm:$0xff] %v2585_v52  ;;  %v2583_v41 = vmax.f32 %v2557_v23, 0.0  ;;  %v2568_v36 = vadd.f32 %v5256_v10, %v6636_v49  ;;  %v2838_v8 = vmul.f32 %v6650_v9, %v2837_v32  ;;  %v2845_v58 = vld [vmem:[#allocation4 + $0xa9] ss:$2 sm:$0xf]  ;;  %v2842_v56 = vmul.f32 %v6653_v54, %v2841_v25 }
 0x580   :  { %v2803_v24 = vld [vmem:[#allocation4 + $0x87] ss:$2 sm:$0xf]  ;;  %v2806_v59 = vld [vmem:[#allocation4 + $0x88] ss:$2 sm:$0xf]  ;;  %v2559_v18 = vpop.f32.mrf.mxu1 }
 0x581   :  { %v2804_v7 = vmul.f32 %v6650_v9, %v2803_v24  ;;  %v2807_v62 = vmul.f32 %v6653_v54, %v2806_v59  ;;  %v2810_v5 = vld [vmem:[#allocation4 + $0x89] ss:$2 sm:$0xf]  ;;  %2612 = vst [vmem:[#allocation4 + $0xc8] sm:$0xff] %v2583_v41  ;;  %v2586_v45 = vmax.f32 %v2568_v36, 0.0  ;;  %v2560_v4 = vadd.f32 %v6636_v49, %v2559_v18 }
 0x582   :  { %v2811_v38 = vmul.f32 %v6662_v12, %v2810_v5  ;;  %v2863_v16 = vld [vmem:[#allocation4 + $0xb7] ss:$2 sm:$0xf]  ;;  %v2865_v40 = vld [vmem:[#allocation4 + $0xb8] ss:$2 sm:$0xf]  ;;  %v2846_v41 = vmul.f32 %v6662_v12, %v2845_v58 }
 0x583   :  { %v2808_v20 = vadd.f32 %v2807_v62, %v2804_v7  ;;  %2618 = vst [vmem:[#allocation4 + $0xf8] sm:$0xff] %v2586_v45  ;;  %v2864_v3 = vmul.f32 %v6659_v2, %v2863_v16  ;;  %v2868_v51 = vld [vmem:[#allocation4 + $0xb9] ss:$2 sm:$0xf]  ;;  %v2866_v50 = vmul.f32 %v6665_v17, %v2865_v40  ;;  %v2584_v39 = vmax.f32 %v2560_v4, 0.0 }
 0x584   :  { %v2814_v55 = vld [vmem:[#allocation4 + $0x97] ss:$2 sm:$0xf]  ;;  %v2818_v46 = vld [vmem:[#allocation4 + $0x98] ss:$2 sm:$0xf]  ;;  %v2869_v44 = vmul.f32 %v6677_v27, %v2868_v51 }
 0x585   :  { %v2812_v21 = vadd.f32 %v2811_v38, %v2808_v20  ;;  %v2815_v11 = vmul.f32 %v6669_v53, %v2814_v55  ;;  %v2822_v33 = vld [vmem:[#allocation4 + $0x99] ss:$2 sm:$0xf]  ;;  %v2867_v29 = vadd.f32 %v2866_v50, %v2864_v3  ;;  %v2830_v31 = vld [vmem:[#allocation4 + $0x98] ss:$2 sm:$0xf]  ;;  %v2819_v34 = vmul.f32 %v6681_v43, %v2818_v46 }
 0x586   :  { %v2828_v15 = vld [vmem:[#allocation4 + $0x97] ss:$2 sm:$0xf]  ;;  %v2831_v47 = vmul.f32 %v6665_v17, %v2830_v31  ;;  %v2823_v1 = vmul.f32 %v6687_v30, %v2822_v33  ;;  %2614 = vst [vmem:[#allocation4 + $0xd8] sm:$0xff] %v2584_v39 }
 0x587   :  { %v2829_v57 = vmul.f32 %v6659_v2, %v2828_v15  ;;  %v2833_v26 = vld [vmem:[#allocation4 + $0x99] ss:$2 sm:$0xf]  ;;  %v2816_v0 = vadd.f32 %v2815_v11, %v2812_v21  ;;  %v2870_v19 = vadd.f32 %v2869_v44, %v2867_v29  ;;  %v2853_v7 = vld [vmem:[#allocation4 + $0xb8] ss:$2 sm:$0xf] }
 0x588   :  { %v2872_v28 = vld [vmem:[#allocation4 + $0xc7] ss:$2 sm:$0xf]  ;;  %v2834_v35 = vmul.f32 %v6677_v27, %v2833_v26  ;;  %v2876_v63 = vld [vmem:[#allocation4 + $0xc8] ss:$2 sm:$0xf]  ;;  %v2854_v16 = vmul.f32 %v6681_v43, %v2853_v7 }
 0x589   :  { %v2820_v6 = vadd.f32 %v2819_v34, %v2816_v0  ;;  %v2832_v60 = vadd.f32 %v2831_v47, %v2829_v57  ;;  %v2873_v13 = vmul.f32 %v6650_v9, %v2872_v28  ;;  %v2849_v23 = vld [vmem:[#allocation4 + $0xb7] ss:$2 sm:$0xf]  ;;  %v2877_v10 = vmul.f32 %v6653_v54, %v2876_v63  ;;  %v2880_v59 = vld [vmem:[#allocation4 + $0xc9] ss:$2 sm:$0xf] }
 0x58a   :  { %v2850_v5 = vmul.f32 %v6669_v53, %v2849_v23  ;;  %v2857_v20 = vld [vmem:[#allocation4 + $0xb9] ss:$2 sm:$0xf]  ;;  %v2881_v38 = vmul.f32 %v6662_v12, %v2880_v59  ;;  %v2907_v34 = vld [vmem:[#allocation4 + $0xe7] ss:$2 sm:$0xf] }
 0x58b   :  { %v2824_v42 = vadd.f32 %v2823_v1, %v2820_v6  ;;  %v2835_v48 = vadd.f32 %v2834_v35, %v2832_v60  ;;  %v2874_v37 = vadd.f32 %v2873_v13, %v2870_v19  ;;  %v2858_v51 = vmul.f32 %v6687_v30, %v2857_v20  ;;  %v2911_v4 = vld [vmem:[#allocation4 + $0xe8] ss:$2 sm:$0xf]  ;;  %v2915_v13 = vld [vmem:[#allocation4 + $0xe9] ss:$2 sm:$0xf] }
 0x58c   :  { %v2912_v25 = vmul.f32 %v6653_v54, %v2911_v4  ;;  %v2923_v58 = vld [vmem:[#allocation4 + $0xf8] ss:$2 sm:$0xf]  ;;  %v4743_v59 = vld [vmem:[%s4630_s13] ss:$0 sm:$0xff]  ;;  %s4646_s13 = sld [smem:[%s7251_s0 + %s5655_s10]]  }
 0x58d   :  { %v2825_v49 = vadd.f32 %v6697_v61, %v2824_v42  ;;  %v2839_v52 = vadd.f32 %v2838_v8, %v2835_v48  ;;  %v2878_v62 = vadd.f32 %v2877_v10, %v2874_v37  ;;  %v2884_v50 = vld [vmem:[#allocation4 + $0xd7] ss:$2 sm:$0xf]  ;;  %v2888_v55 = vld [vmem:[#allocation4 + $0xd8] ss:$2 sm:$0xf]  ;;  %v2916_v42 = vmul.f32 %v6662_v12, %v2915_v13 }
 0x58e   :  { %v2885_v46 = vmul.f32 %v6669_v53, %v2884_v50  ;;  %v2892_v11 = vld [vmem:[#allocation4 + $0xd9] ss:$2 sm:$0xf]  ;;  %v2900_v18 = vld [vmem:[#allocation4 + $0xd8] ss:$2 sm:$0xf]  ;;  %v2889_v26 = vmul.f32 %v6681_v43, %v2888_v55  ;;  %v2924_v39 = vmul.f32 %v6681_v43, %v2923_v58 }
 0x58f   :  { %v2826_v36 = vmax.f32 %v2825_v49, 0.0  ;;  %v2843_v24 = vadd.f32 %v2842_v56, %v2839_v52  ;;  %v2882_v40 = vadd.f32 %v2881_v38, %v2878_v62  ;;  %v2898_v33 = vld [vmem:[#allocation4 + $0xd7] ss:$2 sm:$0xf]  ;;  %v2901_v0 = vmul.f32 %v6665_v17, %v2900_v18  ;;  %v6829_v13 = vld [vmem:[%s4633_s29] ss:$0 sm:$0xff] }
 0x590   :  { %v2899_v15 = vmul.f32 %v6659_v2, %v2898_v33  ;;  %v2903_v29 = vld [vmem:[#allocation4 + $0xd9] ss:$2 sm:$0xf]  ;;  %v2893_v44 = vmul.f32 %v6687_v30, %v2892_v11  ;;  %v2908_v2 = vmul.f32 %v6650_v9, %v2907_v34  ;;  %v5565_v55 = vld [vmem:[%s4635_s17 + $0x10] sm:$0xff]   ;;  %v5567_v11 = vld [vmem:[%s4635_s17] sm:$0xff]  }
 0x591   :  { %2827 = vst [vmem:[#allocation5 + $0x10] sm:$0xf] %v2826_v36  ;;  %v2847_v45 = vadd.f32 %v2846_v41, %v2843_v24  ;;  %v2886_v31 = vadd.f32 %v2885_v46, %v2882_v40  ;;  %v2904_v28 = vmul.f32 %v6677_v27, %v2903_v29  ;;  %v2919_v8 = vld [vmem:[#allocation4 + $0xf7] ss:$2 sm:$0xf]  ;;  %v5559_v24 = vld [vmem:[%s6737_s9] sm:$0xff]  }
 0x592   :  { %v2902_v1 = vadd.f32 %v2901_v0, %v2899_v15  ;;  %v2920_v27 = vmul.f32 %v6669_v53, %v2919_v8  ;;  %v2927_v37 = vld [vmem:[#allocation4 + $0xf9] ss:$2 sm:$0xf]  ;;  %v5558_v53 = vld [vmem:[%s6737_s9 + $0x8] sm:$0xff]   ;;  %v5561_v40 = vld [vmem:[%s4635_s17 + $0x30] sm:$0xff]   ;;  %s4644_s9 = sld [smem:[%s7251_s0 + %s5654_s6]]  }
 0x593   :  { %v2851_v3 = vadd.f32 %v2850_v5, %v2847_v45  ;;  %v2890_v32 = vadd.f32 %v2889_v26, %v2886_v31  ;;  %v2928_v54 = vmul.f32 %v6687_v30, %v2927_v37  ;;  %5289 = vmatprep.subr.bf16.mxu1 %v5558_v53  ;;  %v5564_v50 = vld [vmem:[%s4635_s17 + $0x18] sm:$0xff]   ;;  %v5566_v46 = vld [vmem:[%s4635_s17 + $0x8] sm:$0xff]   ;;  %v5569_v18 = vld [vmem:[%s6813_s21 + $0x30] sm:$0xff]  }
 0x594   :  { %v2905_v35 = vadd.f32 %v2904_v28, %v2902_v1  ;;  %5290 = vmatpush3.bf16.msra.mxu1 %v5558_v53  ;;  %v6815_v33 = vld [vmem:[#allocation2 + $0x18] sm:$0xff]  ;;  %v5570_v29 = vld [vmem:[%s6813_s21 + $0x28] sm:$0xff]   ;;  %v4752_v26 = vld [vmem:[%s4632_s25] ss:$0 sm:$0xff] }
 0x595   :  { %v2855_v21 = vadd.f32 %v2854_v16, %v2851_v3  ;;  %v2894_v60 = vadd.f32 %v2893_v44, %v2890_v32  ;;  %5291 = vmatprep.subr.bf16.mxu1 %v5559_v24  ;;  %v5560_v3 = vld [vmem:[%s4635_s17 + $0x38] sm:$0xff]   ;;  %v6837_v8 = vld [vmem:[%s4633_s29 + $0x2] ss:$0 sm:$0xff]  ;;  %v6845_v37 = vld [vmem:[%s4633_s29 + $0x8] ss:$0 sm:$0xff] }
 0x596   :  { %v2909_v19 = vadd.f32 %v2908_v2, %v2905_v35  ;;  %5297 = vmatprep.subr.bf16.mxu0 %v5560_v3  ;;  %v5568_v15 = vld [vmem:[%s6813_s21 + $0x38] sm:$0xff]   ;;  %v4831_v14 = vld [vmem:[%s4646_s13] ss:$0 sm:$0xff] }
 0x597   :  { %v2859_v57 = vadd.f32 %v2858_v51, %v2855_v21  ;;  %v2895_v17 = vadd.f32 %v6697_v61, %v2894_v60  ;;  %v5562_v51 = vld [vmem:[%s4635_s17 + $0x28] sm:$0xff]   ;;  %v5563_v21 = vld [vmem:[%s4635_s17 + $0x20] sm:$0xff]   ;;  %v5572_v31 = vld [vmem:[%s6813_s21 + $0x18] sm:$0xff]   ;;  %s4647_s17 = sld [smem:[%s7251_s0 + %s5656_s14]]  }
 0x598   :  { %v2913_v63 = vadd.f32 %v2912_v25, %v2909_v19  ;;  %5292 = vmatpush3.bf16.msra.mxu1 %v5559_v24  ;;  %v6831_v25 = vld [vmem:[%s4633_s29 + $0x1] ss:$0 sm:$0xff]  ;;  %v6835_v19 = vld [vmem:[%s4633_s29 + $0x4] ss:$0 sm:$0xff] }
 0x599   :  { %v2860_v47 = vadd.f32 %v6697_v61, %v2859_v57  ;;  %v2896_v48 = vmax.f32 %v2895_v17, 0.0  ;;  %5317 = vmatprep.subr.bf16.mxu1 %v5568_v15  ;;  %v5571_v57 = vld [vmem:[%s6813_s21 + $0x20] sm:$0xff]  }
 0x59a   :  { %v2917_v9 = vadd.f32 %v2916_v42, %v2913_v63  ;;  %v6833_v17 = vld [vmem:[%s4633_s29 + $0x3] ss:$0 sm:$0xff]  ;;  %v6839_v42 = vld [vmem:[%s4633_s29 + $0x5] ss:$0 sm:$0xff]  ;;  %v6843_v63 = vld [vmem:[%s4633_s29 + $0x7] ss:$0 sm:$0xff] }
 0x59b   :  { %v2861_v6 = vmax.f32 %v2860_v47, 0.0  ;;  %2897 = vst [vmem:[#allocation5 + $0x18] sm:$0xf] %v2896_v48  ;;  %v6841_v48 = vld [vmem:[%s4633_s29 + $0x6] ss:$0 sm:$0xff] }
 0x59c   :  { %v2921_v56 = vadd.f32 %v2920_v27, %v2917_v9 }
 0x59d   :  { %2862 = vst [vmem:[#allocation5 + $0x14] sm:$0xf] %v2861_v6 }
 0x59e   :  { %v2925_v49 = vadd.f32 %v2924_v39, %v2921_v56 }
 0x5a0   :  { %v2929_v52 = vadd.f32 %v2928_v54, %v2925_v49 }
 0x5a2   :  { %v2930_v23 = vadd.f32 %v6697_v61, %v2929_v52 }
 0x5a4   :  { %v2931_v12 = vmax.f32 %v2930_v23, 0.0  ;;  %v2935_v10 = vld [vmem:[#allocation5 + $0x10] sm:$0xff] }
 0x5a6   :  { %2932 = vst [vmem:[#allocation5 + $0x1c] sm:$0xf] %v2931_v12 }
 0x5ad   :  { %v2936_v41 = vld [vmem:[#allocation5 + $0x18] sm:$0xff] }
 0x5ae   :  { %v2938_v36 = vpack.c.bf16 %v2936_v41, %v2935_v10 }
 0x5b0   :  { %5274 = vmatmul.mubr.bf16.vlgmr.msra.gmra.mxu0 %v2938_v36 }
 0x5b1   :  { %5298 = vmatpush3.bf16.msra.mxu0 %v5560_v3 }
 0x5b2   :  { %5299 = vmatprep.subr.bf16.mxu0 %v5561_v40 }
 0x5b5   :  { %5300 = vmatpush3.bf16.msra.mxu0 %v5561_v40 }
 0x5b6   :  { %5301 = vmatprep.subr.bf16.mxu0 %v5562_v51 }
 0x5b9   :  { %5302 = vmatpush3.bf16.msra.mxu0 %v5562_v51 }
 0x5ba   :  { %5303 = vmatprep.subr.bf16.mxu0 %v5563_v21 }
 0x5bd   :  { %5304 = vmatpush3.bf16.msra.mxu0 %v5563_v21 }
 0x5be   :  { %5305 = vmatprep.subr.bf16.mxu0 %v5564_v50 }
 0x5c1   :  { %5306 = vmatpush3.bf16.msra.mxu0 %v5564_v50 }
 0x5c2   :  { %5307 = vmatprep.subr.bf16.mxu0 %v5565_v55 }
 0x5c5   :  { %5308 = vmatpush3.bf16.msra.mxu0 %v5565_v55 }
 0x5c6   :  { %5309 = vmatprep.subr.bf16.mxu0 %v5566_v46 }
 0x5c9   :  { %5310 = vmatpush3.bf16.msra.mxu0 %v5566_v46 }
 0x5ca   :  { %5311 = vmatprep.subr.bf16.mxu0 %v5567_v11 }
 0x5cd   :  { %5312 = vmatpush3.bf16.msra.mxu0 %v5567_v11 }
 0x5ce   :  { %5337 = vmatprep.subr.bf16.mxu0 %v6815_v33 }
 0x670   :  { %v5275_v43 = vpop.f32.mrf.mxu0 }
 0x671   :  { %v6801_v20 = vadd.f32 %v5275_v43, %v4743_v59 }
 0x672   :  { %v3044_v30 = vpop.f32.mrf.mxu0 }
 0x673   :  { %v6797_v5 = vadd.f32 %v4743_v59, %v3044_v30 }
 0x674   :  { %v5276_v61 = vpop.f32.mrf.mxu0 }
 0x675   :  { %v6795_v7 = vadd.f32 %v5276_v61, %v4743_v59 }
 0x676   :  { %v3047_v62 = vpop.f32.mrf.mxu0 }
 0x677   :  { %v6799_v45 = vadd.f32 %v4743_v59, %v3047_v62  ;;  %v3060_v16 = vpack.c.bf16 %v6795_v7, %v6801_v20 }
 0x679   :  { %v3059_v38 = vpack.c.bf16 %v6799_v45, %v6797_v5 }
 0x67b   :  { %5293 = vmatprep.mubr.bf16.mxu1 %v3059_v38 }
 0x67c   :  { %5294 = vmatmul.mubr.bf16.vlgmr.msra.gmra.mxu1 %v3060_v16 }
 0x67d   :  { %5318 = vmatpush3.bf16.msra.mxu1 %v5568_v15 }
 0x67e   :  { %5319 = vmatprep.subr.bf16.mxu1 %v5569_v18 }
 0x681   :  { %5320 = vmatpush3.bf16.msra.mxu1 %v5569_v18 }
 0x682   :  { %5321 = vmatprep.subr.bf16.mxu1 %v5570_v29 }
 0x685   :  { %5322 = vmatpush3.bf16.msra.mxu1 %v5570_v29 }
 0x686   :  { %5323 = vmatprep.subr.bf16.mxu1 %v5571_v57 }
 0x689   :  { %5324 = vmatpush3.bf16.msra.mxu1 %v5571_v57 }
 0x68a   :  { %5325 = vmatprep.subr.bf16.mxu1 %v5572_v31 }
 0x68d   :  { %5326 = vmatpush3.bf16.msra.mxu1 %v5572_v31 }
 0x73c   :  { %v5295_v0 = vpop.f32.mrf.mxu1 }
 0x73d   :  { %v3175_v34 = vadd.f32 %v5295_v0, %v4752_v26 }
 0x73e   :  { %v3166_v47 = vpop.f32.mrf.mxu1 }
 0x73f   :  { %v3183_v32 = vmax.f32 %v3175_v34, 0.0  ;;  %v3167_v44 = vadd.f32 %v4752_v26, %v3166_v47 }
 0x740   :  { %v5296_v1 = vpop.f32.mrf.mxu1 }
 0x741   :  { %3199 = vst [vmem:[#allocation6 + $0x48] ss:$16 sps:$4 sm:$0xff] %v3183_v32   ;;  %v3181_v28 = vmax.f32 %v3167_v44, 0.0  ;;  %v3178_v4 = vadd.f32 %v5296_v1, %v4752_v26 }
 0x742   :  { %v3169_v6 = vpop.f32.mrf.mxu1 }
 0x743   :  { %3187 = vst [vmem:[#allocation6 + $0x8] ss:$16 sps:$4 sm:$0xff] %v3181_v28   ;;  %v3184_v2 = vmax.f32 %v3178_v4, 0.0  ;;  %v3170_v60 = vadd.f32 %v4752_v26, %v3169_v6 }
 0x745   :  { %3205 = vst [vmem:[#allocation6 + $0x68] ss:$16 sps:$4 sm:$0xff] %v3184_v2   ;;  %v3182_v35 = vmax.f32 %v3170_v60, 0.0 }
 0x747   :  { %3193 = vst [vmem:[#allocation6 + $0x28] ss:$16 sps:$4 sm:$0xff] %v3182_v35  }
 0x748   :  { %v3359_v58 = vld [vmem:[#allocation6 + $0x47] sm:$0xf]  ;;  %v3367_v54 = vld [vmem:[#allocation6 + $0x57] sm:$0xf] }
 0x749   :  { %v3361_v27 = vld [vmem:[#allocation6 + $0x48] sm:$0xf]  ;;  %v3360_v39 = vmul.f32 %v6833_v17, %v3359_v58  ;;  %v3370_v49 = vld [vmem:[#allocation6 + $0x58] sm:$0xf]  ;;  %v3368_v61 = vmul.f32 %v6841_v48, %v3367_v54 }
 0x74a   :  { %v3364_v9 = vld [vmem:[#allocation6 + $0x49] sm:$0xf]  ;;  %v3362_v56 = vmul.f32 %v6835_v19, %v3361_v27  ;;  %v3373_v36 = vld [vmem:[#allocation6 + $0x59] sm:$0xf]  ;;  %v3371_v59 = vmul.f32 %v6843_v63, %v3370_v49 }
 0x74b   :  { %v3379_v52 = vld [vmem:[#allocation6 + $0x47] sm:$0xf]  ;;  %v3365_v41 = vmul.f32 %v6839_v42, %v3364_v9  ;;  %v3387_v43 = vld [vmem:[#allocation6 + $0x57] sm:$0xf]  ;;  %v3374_v15 = vmul.f32 %v6845_v37, %v3373_v36 }
 0x74c   :  { %v3381_v23 = vld [vmem:[#allocation6 + $0x48] sm:$0xf]  ;;  %v3363_v10 = vadd.f32 %v3362_v56, %v3360_v39  ;;  %v3380_v53 = vmul.f32 %v6829_v13, %v3379_v52  ;;  %v3390_v30 = vld [vmem:[#allocation6 + $0x58] sm:$0xf]  ;;  %v3388_v18 = vmul.f32 %v6833_v17, %v3387_v43  ;;  %v6873_v52 = vld [vmem:[%s6852_s3] ss:$0 sm:$0xff] }
 0x74d   :  { %v3384_v12 = vld [vmem:[#allocation6 + $0x49] sm:$0xf]  ;;  %v3382_v24 = vmul.f32 %v6831_v25, %v3381_v23  ;;  %v3408_v38 = vld [vmem:[#allocation6 + $0x57] sm:$0xf]  ;;  %v3391_v47 = vmul.f32 %v6835_v19, %v3390_v30 }
 0x74e   :  { %v3385_v62 = vmul.f32 %v6837_v8, %v3384_v12  ;;  %v3410_v16 = vld [vmem:[#allocation6 + $0x58] sm:$0xf]  ;;  %v3366_v40 = vadd.f32 %v3365_v41, %v3363_v10  ;;  %v3409_v21 = vmul.f32 %v6829_v13, %v3408_v38  ;;  %v3219_v55 = vld [vmem:[#allocation6 + $0x7] sm:$0xf] }
 0x74f   :  { %v3413_v3 = vld [vmem:[#allocation6 + $0x59] sm:$0xf]  ;;  %v3383_v51 = vadd.f32 %v3382_v24, %v3380_v53  ;;  %v3411_v50 = vmul.f32 %v6831_v25, %v3410_v16  ;;  %v3225_v46 = vld [vmem:[#allocation6 + $0x8] sm:$0xf]  ;;  %v3224_v57 = vmul.f32 %v6833_v17, %v3219_v55 }
 0x750   :  { %v3232_v11 = vld [vmem:[#allocation6 + $0x9] sm:$0xf]  ;;  %v3393_v29 = vld [vmem:[#allocation6 + $0x59] sm:$0xf]  ;;  %v3230_v31 = vmul.f32 %v6835_v19, %v3225_v46  ;;  %v3369_v0 = vadd.f32 %v3368_v61, %v3366_v40  ;;  %v3414_v4 = vmul.f32 %v6837_v8, %v3413_v3 }
 0x751   :  { %v3239_v26 = vld [vmem:[#allocation6 + $0x17] sm:$0xf]  ;;  %v3386_v34 = vadd.f32 %v3385_v62, %v3383_v51  ;;  %v3412_v32 = vadd.f32 %v3411_v50, %v3409_v21  ;;  %v3269_v1 = vld [vmem:[#allocation6 + $0x7] sm:$0xf]  ;;  %v3237_v2 = vmul.f32 %v6839_v42, %v3232_v11  ;;  %v3394_v9 = vmul.f32 %v6839_v42, %v3393_v29 }
 0x752   :  { %v3246_v44 = vld [vmem:[#allocation6 + $0x18] sm:$0xf]  ;;  %v3275_v28 = vld [vmem:[#allocation6 + $0x8] sm:$0xf]  ;;  %v3231_v6 = vadd.f32 %v3230_v31, %v3224_v57  ;;  %v3274_v60 = vmul.f32 %v6829_v13, %v3269_v1  ;;  %v3372_v58 = vadd.f32 %v3371_v59, %v3369_v0  ;;  %v3244_v10 = vmul.f32 %v6841_v48, %v3239_v26 }
 0x753   :  { %v3282_v35 = vld [vmem:[#allocation6 + $0x9] sm:$0xf]  ;;  %v3389_v27 = vadd.f32 %v3388_v18, %v3386_v34  ;;  %v3280_v39 = vmul.f32 %v6831_v25, %v3275_v28  ;;  %v3289_v56 = vld [vmem:[#allocation6 + $0x17] sm:$0xf]  ;;  %v3415_v23 = vadd.f32 %v3414_v4, %v3412_v32  ;;  %v3251_v41 = vmul.f32 %v6843_v63, %v3246_v44 }
 0x754   :  { %v3310_v54 = vld [vmem:[#allocation6 + $0x17] sm:$0xf]  ;;  %v3238_v12 = vadd.f32 %v3237_v2, %v3231_v6  ;;  %v3396_v36 = vld [vmem:[#allocation6 + $0x67] sm:$0xf]  ;;  %v3375_v53 = vadd.f32 %v3374_v15, %v3372_v58  ;;  %v3287_v30 = vmul.f32 %v6837_v8, %v3282_v35  ;;  %v3290_v16 = vmul.f32 %v6833_v17, %v3289_v56 }
 0x755   :  { %v3312_v49 = vld [vmem:[#allocation6 + $0x18] sm:$0xf]  ;;  %v3392_v24 = vadd.f32 %v3391_v47, %v3389_v27  ;;  %v3281_v43 = vadd.f32 %v3280_v39, %v3274_v60  ;;  %v3399_v59 = vld [vmem:[#allocation6 + $0x68] sm:$0xf]  ;;  %v3311_v3 = vmul.f32 %v6829_v13, %v3310_v54  ;;  %v3397_v15 = vmul.f32 %v6841_v48, %v3396_v36 }
 0x756   :  { %v3292_v61 = vld [vmem:[#allocation6 + $0x18] sm:$0xf]  ;;  %v3245_v62 = vadd.f32 %v3244_v10, %v3238_v12  ;;  %v3313_v40 = vmul.f32 %v6831_v25, %v3312_v49  ;;  %v3416_v51 = vld [vmem:[#allocation6 + $0x67] sm:$0xf]  ;;  %v3376_v21 = vadd.f32 %v6873_v52, %v3375_v53  ;;  %v3400_v26 = vmul.f32 %v6843_v63, %v3399_v59 }
 0x757   :  { %v3253_v38 = vld [vmem:[#allocation6 + $0x19] sm:$0xf]  ;;  %v3395_v50 = vadd.f32 %v3394_v9, %v3392_v24  ;;  %v3288_v55 = vadd.f32 %v3287_v30, %v3281_v43  ;;  %v3402_v18 = vld [vmem:[#allocation6 + $0x69] sm:$0xf]  ;;  %v3293_v57 = vmul.f32 %v6835_v19, %v3292_v61  ;;  %v3417_v44 = vmul.f32 %v6833_v17, %v3416_v51 }
 0x758   :  { %v3295_v46 = vld [vmem:[#allocation6 + $0x19] sm:$0xf]  ;;  %v3252_v29 = vadd.f32 %v3251_v41, %v3245_v62  ;;  %v3314_v31 = vadd.f32 %v3313_v40, %v3311_v3  ;;  %v3419_v0 = vld [vmem:[#allocation6 + $0x68] sm:$0xf]  ;;  %v3377_v34 = vmax.f32 %v3376_v21, 0.0  ;;  %v3258_v4 = vmul.f32 %v6845_v37, %v3253_v38 }
 0x759   :  { %v3315_v11 = vld [vmem:[#allocation6 + $0x19] sm:$0xf]  ;;  %v3291_v47 = vadd.f32 %v3290_v16, %v3288_v55  ;;  %v3398_v32 = vadd.f32 %v3397_v15, %v3395_v50  ;;  %v3437_v1 = vld [vmem:[#allocation6 + $0x67] sm:$0xf]  ;;  %v3296_v6 = vmul.f32 %v6839_v42, %v3295_v46  ;;  %v3403_v60 = vmul.f32 %v6845_v37, %v3402_v18 }
 0x75a   :  { %v3439_v28 = vld [vmem:[#allocation6 + $0x68] sm:$0xf]  ;;  %v3316_v2 = vmul.f32 %v6837_v8, %v3315_v11  ;;  %3378 = vst [vmem:[#allocation7 + $0x10] sm:$0xf] %v3377_v34  ;;  %v3418_v9 = vadd.f32 %v3417_v44, %v3415_v23  ;;  %v3420_v39 = vmul.f32 %v6835_v19, %v3419_v0  ;;  %v3425_v56 = vld [vmem:[#allocation6 + $0x77] sm:$0xf]  ;;  %v6891_v12 = vadd.f32 %v3258_v4, %v3252_v29 }
 0x75b   :  { %v3422_v35 = vld [vmem:[#allocation6 + $0x69] sm:$0xf]  ;;  %v3294_v58 = vadd.f32 %v3293_v57, %v3291_v47  ;;  %v3401_v27 = vadd.f32 %v3400_v26, %v3398_v32  ;;  %v3428_v54 = vld [vmem:[#allocation6 + $0x78] sm:$0xf]  ;;  %v3438_v36 = vmul.f32 %v6829_v13, %v3437_v1  ;;  %v3440_v53 = vmul.f32 %v6831_v25, %v3439_v28 }
 0x75c   :  { %v3442_v49 = vld [vmem:[#allocation6 + $0x69] sm:$0xf]  ;;  %v3317_v10 = vadd.f32 %v3316_v2, %v3314_v31  ;;  %v3431_v41 = vld [vmem:[#allocation6 + $0x79] sm:$0xf]  ;;  %v3421_v61 = vadd.f32 %v3420_v39, %v3418_v9  ;;  %v3423_v59 = vmul.f32 %v6839_v42, %v3422_v35  ;;  %v3426_v16 = vmul.f32 %v6841_v48, %v3425_v56 }
 0x75d   :  { %v3298_v24 = vld [vmem:[#allocation6 + $0x27] sm:$0xf]  ;;  %v3297_v43 = vadd.f32 %v3296_v6, %v3294_v58  ;;  %v3404_v30 = vadd.f32 %v3403_v60, %v3401_v27  ;;  %v3445_v23 = vld [vmem:[#allocation6 + $0x77] sm:$0xf]  ;;  %v3429_v3 = vmul.f32 %v6843_v63, %v3428_v54  ;;  %v3441_v40 = vadd.f32 %v3440_v53, %v3438_v36 }
 0x75e   :  { %v3448_v62 = vld [vmem:[#allocation6 + $0x78] sm:$0xf]  ;;  %v3318_v38 = vld [vmem:[#allocation6 + $0x27] sm:$0xf]  ;;  %v3443_v51 = vmul.f32 %v6837_v8, %v3442_v49  ;;  %v3424_v55 = vadd.f32 %v3423_v59, %v3421_v61  ;;  %v3432_v46 = vmul.f32 %v6845_v37, %v3431_v41  ;;  %v3299_v15 = vmul.f32 %v6841_v48, %v3298_v24 }
 0x75f   :  { %v3301_v21 = vld [vmem:[#allocation6 + $0x28] sm:$0xf]  ;;  %v3405_v50 = vadd.f32 %v6873_v52, %v3404_v30  ;;  %v3451_v11 = vld [vmem:[#allocation6 + $0x79] sm:$0xf]  ;;  %v3446_v57 = vmul.f32 %v6833_v17, %v3445_v23  ;;  %v3449_v31 = vmul.f32 %v6835_v19, %v3448_v62  ;;  %v3319_v0 = vmul.f32 %v6833_v17, %v3318_v38 }
 0x760   :  { %v3321_v18 = vld [vmem:[#allocation6 + $0x28] sm:$0xf]  ;;  %v3444_v29 = vadd.f32 %v3443_v51, %v3441_v40  ;;  %v3427_v32 = vadd.f32 %v3426_v16, %v3424_v55  ;;  %v3300_v44 = vadd.f32 %v3299_v15, %v3297_v43  ;;  %v3302_v1 = vmul.f32 %v6843_v63, %v3301_v21  ;;  %v3327_v58 = vld [vmem:[#allocation6 + $0x37] sm:$0xf] }
 0x761   :  { %v3304_v26 = vld [vmem:[#allocation6 + $0x29] sm:$0xf]  ;;  %v3406_v47 = vmax.f32 %v3405_v50, 0.0  ;;  %v3452_v2 = vmul.f32 %v6839_v42, %v3451_v11  ;;  %v3320_v60 = vadd.f32 %v3319_v0, %v3317_v10  ;;  %v3322_v35 = vmul.f32 %v6835_v19, %v3321_v18  ;;  %v3330_v53 = vld [vmem:[#allocation6 + $0x38] sm:$0xf] }
 0x762   :  { %v3339_v34 = vld [vmem:[#allocation6 + $0x27] sm:$0xf]  ;;  %v3447_v6 = vadd.f32 %v3446_v57, %v3444_v29  ;;  %v3430_v27 = vadd.f32 %v3429_v3, %v3427_v32  ;;  %v3303_v9 = vadd.f32 %v3302_v1, %v3300_v44  ;;  %v3305_v39 = vmul.f32 %v6845_v37, %v3304_v26  ;;  %v3347_v61 = vld [vmem:[#allocation6 + $0x37] sm:$0xf] }
 0x763   :  { %v3324_v28 = vld [vmem:[#allocation6 + $0x29] sm:$0xf]  ;;  %3407 = vst [vmem:[#allocation7 + $0x14] sm:$0xf] %v3406_v47  ;;  %v3340_v56 = vmul.f32 %v6829_v13, %v3339_v34  ;;  %v3323_v41 = vadd.f32 %v3322_v35, %v3320_v60  ;;  %v3328_v30 = vmul.f32 %v6841_v48, %v3327_v58  ;;  %v3333_v62 = vld [vmem:[#allocation6 + $0x39] sm:$0xf]  ;;  %v3331_v3 = vmul.f32 %v6843_v63, %v3330_v53 }
 0x764   :  { %v3341_v4 = vld [vmem:[#allocation6 + $0x28] sm:$0xf]  ;;  %v3450_v49 = vadd.f32 %v3449_v31, %v3447_v6  ;;  %v3325_v36 = vmul.f32 %v6839_v42, %v3324_v28  ;;  %v3433_v43 = vadd.f32 %v3432_v46, %v3430_v27  ;;  %v3306_v10 = vadd.f32 %v3305_v39, %v3303_v9  ;;  %v3350_v40 = vld [vmem:[#allocation6 + $0x38] sm:$0xf]  ;;  %v4771_v58 = vld [vmem:[%s4636_s7] ss:$0 sm:$0xff] }
 0x765   :  { %v3344_v54 = vld [vmem:[#allocation6 + $0x29] sm:$0xf]  ;;  %v3342_v24 = vmul.f32 %v6831_v25, %v3341_v4  ;;  %v3266_v51 = vadd.f32 %v6873_v52, %v6891_v12  ;;  %v3348_v55 = vmul.f32 %v6833_v17, %v3347_v61  ;;  %v3334_v11 = vmul.f32 %v6845_v37, %v3333_v62  ;;  %v6963_v61 = vld [vmem:[%s4641_s11 + $0x10] sm:$0xff]   ;;  %v4780_v62 = vld [vmem:[%s4638_s15] ss:$0 sm:$0xff] }
 0x766   :  { %v3453_v59 = vadd.f32 %v3452_v2, %v3450_v49  ;;  %v3326_v23 = vadd.f32 %v3325_v36, %v3323_v41  ;;  %v3345_v16 = vmul.f32 %v6837_v8, %v3344_v54  ;;  %v3434_v13 = vadd.f32 %v6873_v52, %v3433_v43  ;;  %v3353_v8 = vld [vmem:[#allocation6 + $0x39] sm:$0xf]  ;;  %v5575_v2 = vld [vmem:[%s6813_s21] sm:$0xff]  }
 0x767   :  { %v3343_v38 = vadd.f32 %v3342_v24, %v3340_v56  ;;  %v3307_v25 = vadd.f32 %v6873_v52, %v3306_v10  ;;  %v3267_v15 = vmax.f32 %v3266_v51, 0.0  ;;  %v3351_v31 = vmul.f32 %v6835_v19, %v3350_v40 }
 0x768   :  { %v3454_v21 = vadd.f32 %v6873_v52, %v3453_v59  ;;  %v3329_v48 = vadd.f32 %v3328_v30, %v3326_v23  ;;  %v3435_v46 = vmax.f32 %v3434_v13, 0.0  ;;  %v3354_v0 = vmul.f32 %v6839_v42, %v3353_v8  ;;  %v5573_v42 = vld [vmem:[%s6813_s21 + $0x10] sm:$0xff]   ;;  %v6944_v30 = vld [vmem:[%s4641_s11 + $0x38] sm:$0xff]   ;;  %v6967_v59 = vld [vmem:[%s4641_s11 + $0x8] sm:$0xff]  }
 0x769   :  { %v3346_v50 = vadd.f32 %v3345_v16, %v3343_v38  ;;  %v3308_v18 = vmax.f32 %v3307_v25, 0.0  ;;  %3268 = vst [vmem:[#allocation7] sm:$0xf] %v3267_v15  ;;  %5327 = vmatprep.subr.bf16.mxu1 %v5573_v42  ;;  %v6974_v23 = vld [vmem:[%s4641_s11] sm:$0xff]  }
 0x76a   :  { %v3455_v29 = vmax.f32 %v3454_v21, 0.0  ;;  %v3332_v63 = vadd.f32 %v3331_v3, %v3329_v48  ;;  %3436 = vst [vmem:[#allocation7 + $0x18] sm:$0xf] %v3435_v46  ;;  %v3459_v44 = vld [vmem:[#allocation7 + $0x10] sm:$0xff]  ;;  %5328 = vmatpush3.bf16.msra.mxu1 %v5573_v42 }
 0x76b   :  { %v3349_v57 = vadd.f32 %v3348_v55, %v3346_v50  ;;  %3309 = vst [vmem:[#allocation7 + $0x4] sm:$0xf] %v3308_v18 }
 0x76c   :  { %3456 = vst [vmem:[#allocation7 + $0x1c] sm:$0xf] %v3455_v29  ;;  %v3335_v12 = vadd.f32 %v3334_v11, %v3332_v63 }
 0x76d   :  { %v3352_v26 = vadd.f32 %v3351_v31, %v3349_v57 }
 0x76e   :  { %v3336_v37 = vadd.f32 %v6873_v52, %v3335_v12 }
 0x76f   :  { %v3355_v17 = vadd.f32 %v3354_v0, %v3352_v26 }
 0x770   :  { %v3337_v34 = vmax.f32 %v3336_v37, 0.0 }
 0x771   :  { %v3356_v47 = vadd.f32 %v6873_v52, %v3355_v17  ;;  %v5574_v52 = vld [vmem:[%s6813_s21 + $0x8] sm:$0xff]  }
 0x772   :  { %3338 = vst [vmem:[#allocation7 + $0x8] sm:$0xf] %v3337_v34  ;;  %v3457_v19 = vld [vmem:[#allocation7] sm:$0xff]  ;;  %5329 = vmatprep.subr.bf16.mxu1 %v5574_v52 }
 0x773   :  { %v3357_v32 = vmax.f32 %v3356_v47, 0.0  ;;  %v3460_v1 = vld [vmem:[#allocation7 + $0x18] sm:$0xff]  ;;  %5330 = vmatpush3.bf16.msra.mxu1 %v5574_v52 }
 0x774   :  { %v3462_v6 = vpack.c.bf16 %v3460_v1, %v3459_v44  ;;  %5331 = vmatprep.subr.bf16.mxu1 %v5575_v2  ;;  %v6991_v44 = vld [vmem:[%s6982_s19 + $0xc] ss:$0 sm:$0xff] }
 0x775   :  { %3358 = vst [vmem:[#allocation7 + $0xc] sm:$0xf] %v3357_v32  ;;  %v6985_v32 = vld [vmem:[%s6982_s19 + $0xa] ss:$0 sm:$0xff] }
 0x777   :  { %5332 = vmatpush3.bf16.msra.mxu1 %v5575_v2  ;;  %v6999_v2 = vld [vmem:[%s6982_s19 + $0xd] ss:$0 sm:$0xff] }
 0x778   :  { %5357 = vmatprep.subr.bf16.mxu1 %v6815_v33 }
 0x77c   :  { %v3458_v28 = vld [vmem:[#allocation7 + $0x8] sm:$0xff] }
 0x77d   :  { %v3461_v4 = vpack.c.bf16 %v3458_v28, %v3457_v19  ;;  %v6988_v19 = vld [vmem:[%s6982_s19 + $0xb] ss:$0 sm:$0xff] }
 0x77f   :  { %5313 = vmatprep.mubr.bf16.mxu0 %v3461_v4  ;;  %v6994_v4 = vld [vmem:[%s6982_s19] ss:$0 sm:$0xff] }
 0x780   :  { %5314 = vmatmul.mubr.bf16.vlgmr.msra.gmra.mxu0 %v3462_v6 }
 0x781   :  { %5353 = vmatprep.mubr.msk.bf16.mxu0 %vm5625_vm0, %v6815_v33  ;;  %5338 = vmatpush3.bf16.msra.mxu0 %v6944_v30 }
 0x782   :  { %5339 = vmatprep.subr.bf16.mxu0 %v6815_v33 }
 0x840   :  { %v5315_v60 = vpop.f32.mrf.mxu0 }
 0x841   :  { %v3577_v56 = vadd.f32 %v5315_v60, %v4771_v58 }
 0x842   :  { %v3568_v35 = vpop.f32.mrf.mxu0 }
 0x843   :  { %v3569_v9 = vadd.f32 %v4771_v58, %v3568_v35  ;;  %v3585_v24 = vadd.f32 %v3577_v56, %v6801_v20  ;;  %v6959_v20 = vld [vmem:[%s4641_s11 + $0x18] sm:$0xff]   ;;  %v7002_v35 = vld [vmem:[%s6982_s19 + $0x1] ss:$0 sm:$0xff]  ;;  %v7012_v56 = vld [vmem:[%s6982_s19 + $0xf] ss:$0 sm:$0xff] }
 0x844   :  { %v5316_v27 = vpop.f32.mrf.mxu0 }
 0x845   :  { %v3580_v39 = vadd.f32 %v5316_v27, %v4771_v58  ;;  %v3583_v36 = vadd.f32 %v3569_v9, %v6797_v5  ;;  %v6951_v5 = vld [vmem:[%s4641_s11 + $0x28] sm:$0xff]  }
 0x846   :  { %v3571_v54 = vpop.f32.mrf.mxu0  ;;  %v7008_v27 = vld [vmem:[%s6982_s19 + $0xe] ss:$0 sm:$0xff] }
 0x847   :  { %v3572_v49 = vadd.f32 %v4771_v58, %v3571_v54  ;;  %v3586_v41 = vadd.f32 %v3580_v39, %v6795_v7  ;;  %v6947_v7 = vld [vmem:[%s4641_s11 + $0x30] sm:$0xff]   ;;  %v7005_v58 = vld [vmem:[%s6982_s19 + $0x2] ss:$0 sm:$0xff] }
 0x848   :  { %5340 = vmatpush3.bf16.msra.mxu0 %v6947_v7 }
 0x849   :  { %v3584_v53 = vadd.f32 %v3572_v49, %v6799_v45  ;;  %v3588_v10 = vpack.c.bf16 %v3586_v41, %v3585_v24  ;;  %5341 = vmatprep.subr.bf16.mxu0 %v6815_v33  ;;  %v6955_v45 = vld [vmem:[%s4641_s11 + $0x20] sm:$0xff]  }
 0x84a   :  { %v7015_v49 = vld [vmem:[%s6982_s19 + $0x3] ss:$0 sm:$0xff] }
 0x84b   :  { %v3587_v43 = vpack.c.bf16 %v3584_v53, %v3583_v36 }
 0x84c   :  { %5342 = vmatpush3.bf16.msra.mxu0 %v6951_v5 }
 0x84d   :  { %5333 = vmatprep.mubr.bf16.mxu1 %v3587_v43  ;;  %5343 = vmatprep.subr.bf16.mxu0 %v6815_v33 }
 0x84e   :  { %5334 = vmatmul.mubr.bf16.vlgmr.msra.gmra.mxu1 %v3588_v10 }
 0x84f   :  { %5373 = vmatprep.mubr.msk.bf16.mxu1 %vm5625_vm0, %v6815_v33 }
 0x850   :  { %5344 = vmatpush3.bf16.msra.mxu0 %v6955_v45 }
 0x851   :  { %5345 = vmatprep.subr.bf16.mxu0 %v6815_v33 }
 0x854   :  { %5346 = vmatpush3.bf16.msra.mxu0 %v6959_v20 }
 0x855   :  { %5347 = vmatprep.subr.bf16.mxu0 %v6815_v33 }
 0x858   :  { %5348 = vmatpush3.bf16.msra.mxu0 %v6963_v61 }
 0x859   :  { %5349 = vmatprep.subr.bf16.mxu0 %v6815_v33 }
 0x85c   :  { %5350 = vmatpush3.bf16.msra.mxu0 %v6967_v59 }
 0x85d   :  { %5351 = vmatprep.subr.bf16.mxu0 %v6815_v33 }
 0x860   :  { %5352 = vmatpush3.bf16.msra.mxu0 %v6974_v23 }
 0x861   :  { %5377 = vmatprep.subr.bf16.mxu0 %v6815_v33 }
 0x90e   :  { %v5335_v38 = vpop.f32.mrf.mxu1 }
 0x90f   :  { %v3703_v16 = vadd.f32 %v5335_v38, %v4780_v62 }
 0x910   :  { %v3694_v13 = vpop.f32.mrf.mxu1 }
 0x911   :  { %v3711_v3 = vadd.f32 3.0, %v3703_v16  ;;  %v3695_v40 = vadd.f32 %v4780_v62, %v3694_v13  ;;  %v7024_v13 = vld [vmem:[%s6982_s19 + $0x10] ss:$0 sm:$0xff] }
 0x912   :  { %v5336_v51 = vpop.f32.mrf.mxu1 }
 0x913   :  { %v3715_v25 = vmax.f32 %v3711_v3, 0.0  ;;  %v3709_v21 = vadd.f32 3.0, %v3695_v40  ;;  %v3706_v48 = vadd.f32 %v5336_v51, %v4780_v62 }
 0x914   :  { %v3697_v50 = vpop.f32.mrf.mxu1 }
 0x915   :  { %v3719_v55 = vmin.f32 %v3715_v25, 6.0  ;;  %v3713_v46 = vmax.f32 %v3709_v21, 0.0  ;;  %v3712_v11 = vadd.f32 3.0, %v3706_v48  ;;  %v3698_v8 = vadd.f32 %v4780_v62, %v3697_v50  ;;  %v7028_v25 = vld [vmem:[%s6982_s19 + $0x11] ss:$0 sm:$0xff] }
 0x917   :  { %v3723_v15 = vmul.f32 0.16666667, %v3719_v55  ;;  %v3717_v18 = vmin.f32 %v3713_v46, 6.0  ;;  %v3716_v29 = vmax.f32 %v3712_v11, 0.0  ;;  %v3710_v63 = vadd.f32 3.0, %v3698_v8 }
 0x918   :  { %v7032_v55 = vld [vmem:[%s6982_s19 + $0x5] ss:$0 sm:$0xff] }
 0x919   :  { %v3727_v33 = vmul.f32 %v3723_v15, %v3703_v16  ;;  %v3721_v57 = vmul.f32 0.16666667, %v3717_v18  ;;  %v3720_v31 = vmin.f32 %v3716_v29, 6.0  ;;  %v3714_v12 = vmax.f32 %v3710_v63, 0.0  ;;  %v7021_v16 = vld [vmem:[%s6982_s19 + $0x4] ss:$0 sm:$0xff] }
 0x91a   :  { %v7036_v18 = vld [vmem:[%s6982_s19 + $0x12] ss:$0 sm:$0xff] }
 0x91b   :  { %3743 = vst [vmem:[#allocation8 + $0x48] ss:$16 sps:$4 sm:$0xff] %v3727_v33   ;;  %v3725_v26 = vmul.f32 %v3721_v57, %v3695_v40  ;;  %v3724_v0 = vmul.f32 0.16666667, %v3720_v31  ;;  %v3718_v17 = vmin.f32 %v3714_v12, 6.0 }
 0x91c   :  { %v7040_v31 = vld [vmem:[%s6982_s19 + $0x6] ss:$0 sm:$0xff] }
 0x91d   :  { %3731 = vst [vmem:[#allocation8 + $0x8] ss:$16 sps:$4 sm:$0xff] %v3725_v26   ;;  %v3728_v37 = vmul.f32 %v3724_v0, %v3706_v48  ;;  %v3722_v34 = vmul.f32 0.16666667, %v3718_v17 }
 0x91f   :  { %3749 = vst [vmem:[#allocation8 + $0x68] ss:$16 sps:$4 sm:$0xff] %v3728_v37   ;;  %v3726_v47 = vmul.f32 %v3722_v34, %v3698_v8 }
 0x921   :  { %3737 = vst [vmem:[#allocation8 + $0x28] ss:$16 sps:$4 sm:$0xff] %v3726_v47   ;;  %v7046_v47 = vld [vmem:[%s6982_s19 + $0x13] ss:$0 sm:$0xff] }
 0x922   :  { %v4023_v1 = vld [vmem:[#allocation8 + $0x46] ss:$2 sm:$0x3]  ;;  %v4026_v28 = vld [vmem:[#allocation8 + $0x47] ss:$2 sm:$0x3] }
 0x923   :  { %v4024_v6 = vmul.f32 %v6985_v32, %v4023_v1  ;;  %v4027_v42 = vmul.f32 %v6988_v19, %v4026_v28  ;;  %v4030_v52 = vld [vmem:[#allocation8 + $0x48] ss:$2 sm:$0x3]  ;;  %v4034_v60 = vld [vmem:[#allocation8 + $0x49] ss:$2 sm:$0x3] }
 0x924   :  { %v4031_v39 = vmul.f32 %v6991_v44, %v4030_v52  ;;  %v4038_v54 = vld [vmem:[#allocation8 + $0x4a] ss:$2 sm:$0x3]  ;;  %v4035_v36 = vmul.f32 %v6999_v2, %v4034_v60  ;;  %v4088_v53 = vld [vmem:[#allocation8 + $0x46] ss:$2 sm:$0x3] }
 0x925   :  { %v4028_v9 = vadd.f32 %v4027_v42, %v4024_v6  ;;  %v4090_v24 = vld [vmem:[#allocation8 + $0x47] ss:$2 sm:$0x3]  ;;  %v4042_v43 = vld [vmem:[#allocation8 + $0x56] ss:$2 sm:$0x3]  ;;  %v4089_v10 = vmul.f32 %v6994_v4, %v4088_v53  ;;  %v4039_v40 = vmul.f32 %v7008_v27, %v4038_v54 }
 0x926   :  { %v4091_v62 = vmul.f32 %v7002_v35, %v4090_v24  ;;  %v4093_v38 = vld [vmem:[#allocation8 + $0x48] ss:$2 sm:$0x3]  ;;  %v4096_v51 = vld [vmem:[#allocation8 + $0x49] ss:$2 sm:$0x3]  ;;  %v4043_v11 = vmul.f32 %v7012_v56, %v4042_v43 }
 0x927   :  { %v4032_v41 = vadd.f32 %v4031_v39, %v4028_v9  ;;  %v4046_v21 = vld [vmem:[#allocation8 + $0x57] ss:$2 sm:$0x3]  ;;  %v4094_v50 = vmul.f32 %v7005_v58, %v4093_v38  ;;  %v4050_v8 = vld [vmem:[#allocation8 + $0x58] ss:$2 sm:$0x3]  ;;  %v4097_v63 = vmul.f32 %v7015_v49, %v4096_v51 }
 0x928   :  { %v4092_v48 = vadd.f32 %v4091_v62, %v4089_v10  ;;  %v4099_v15 = vld [vmem:[#allocation8 + $0x4a] ss:$2 sm:$0x3]  ;;  %v3780_v33 = vld [vmem:[#allocation8 + $0x6] ss:$2 sm:$0x3]  ;;  %v4047_v26 = vmul.f32 %v7024_v13, %v4046_v21  ;;  %v4051_v9 = vmul.f32 %v7028_v25, %v4050_v8 }
 0x929   :  { %v4036_v3 = vadd.f32 %v4035_v36, %v4032_v41  ;;  %v3787_v57 = vld [vmem:[#allocation8 + $0x7] ss:$2 sm:$0x3]  ;;  %v4102_v0 = vld [vmem:[#allocation8 + $0x56] ss:$2 sm:$0x3]  ;;  %v3785_v17 = vmul.f32 %v6985_v32, %v3780_v33  ;;  %v4100_v6 = vmul.f32 %v7021_v16, %v4099_v15 }
 0x92a   :  { %v4095_v29 = vadd.f32 %v4094_v50, %v4092_v48  ;;  %v3792_v37 = vmul.f32 %v6988_v19, %v3787_v57  ;;  %v3795_v34 = vld [vmem:[#allocation8 + $0x8] ss:$2 sm:$0x3]  ;;  %v4054_v1 = vld [vmem:[#allocation8 + $0x59] ss:$2 sm:$0x3]  ;;  %v4103_v24 = vmul.f32 %v7032_v55, %v4102_v0 }
 0x92b   :  { %v4040_v46 = vadd.f32 %v4039_v40, %v4036_v3  ;;  %v3803_v42 = vld [vmem:[#allocation8 + $0x9] ss:$2 sm:$0x3]  ;;  %v7050_v52 = vld [vmem:[%s6982_s19 + $0x7] ss:$0 sm:$0xff]  ;;  %v3800_v36 = vmul.f32 %v6991_v44, %v3795_v34  ;;  %v4055_v3 = vmul.f32 %v7036_v18, %v4054_v1 }
 0x92c   :  { %v4098_v28 = vadd.f32 %v4097_v63, %v4095_v29  ;;  %v4058_v39 = vld [vmem:[#allocation8 + $0x5a] ss:$2 sm:$0x3]  ;;  %v4105_v54 = vld [vmem:[#allocation8 + $0x57] ss:$2 sm:$0x3]  ;;  %v3793_v41 = vadd.f32 %v3792_v37, %v3785_v17  ;;  %v3808_v51 = vmul.f32 %v6999_v2, %v3803_v42 }
 0x92d   :  { %v4044_v12 = vadd.f32 %v4043_v11, %v4040_v46  ;;  %v4108_v43 = vld [vmem:[#allocation8 + $0x58] ss:$2 sm:$0x3]  ;;  %v3811_v10 = vld [vmem:[#allocation8 + $0xa] ss:$2 sm:$0x3]  ;;  %v4106_v46 = vmul.f32 %v7040_v31, %v4105_v54 }
 0x92e   :  { %v4101_v53 = vadd.f32 %v4100_v6, %v4098_v28  ;;  %v7056_v62 = vld [vmem:[%s6982_s19 + $0x8] ss:$0 sm:$0xff]  ;;  %v3801_v40 = vadd.f32 %v3800_v36, %v3793_v41  ;;  %v3917_v48 = vld [vmem:[#allocation8 + $0x7] ss:$2 sm:$0x3]  ;;  %v3816_v17 = vmul.f32 %v7008_v27, %v3811_v10 }
 0x92f   :  { %v4048_v60 = vadd.f32 %v4047_v26, %v4044_v12  ;;  %v3911_v21 = vld [vmem:[#allocation8 + $0x6] ss:$2 sm:$0x3]  ;;  %v3819_v11 = vld [vmem:[#allocation8 + $0x16] ss:$2 sm:$0x3]  ;;  %v3922_v15 = vmul.f32 %v7002_v35, %v3917_v48  ;;  %v4059_v12 = vmul.f32 %v7046_v47, %v4058_v39 }
 0x930   :  { %v4104_v50 = vadd.f32 %v4103_v24, %v4101_v53  ;;  %v3916_v8 = vmul.f32 %v6994_v4, %v3911_v21  ;;  %v3924_v29 = vld [vmem:[#allocation8 + $0x8] ss:$2 sm:$0x3]  ;;  %v7064_v63 = vld [vmem:[%s6982_s19 + $0x14] ss:$0 sm:$0xff]  ;;  %v3809_v0 = vadd.f32 %v3808_v51, %v3801_v40  ;;  %v4109_v4 = vmul.f32 %v7050_v52, %v4108_v43 }
 0x931   :  { %v4052_v38 = vadd.f32 %v4051_v9, %v4048_v60  ;;  %v7067_v33 = vld [vmem:[%s6982_s19 + $0x9] ss:$0 sm:$0xff]  ;;  %v4111_v26 = vld [vmem:[#allocation8 + $0x59] ss:$2 sm:$0x3]  ;;  %v3929_v6 = vmul.f32 %v7005_v58, %v3924_v29  ;;  %v3824_v39 = vmul.f32 %v7012_v56, %v3819_v11 }
 0x932   :  { %v3931_v37 = vld [vmem:[#allocation8 + $0x9] ss:$2 sm:$0x3]  ;;  %v4107_v34 = vadd.f32 %v4106_v46, %v4104_v50  ;;  %v4114_v1 = vld [vmem:[#allocation8 + $0x5a] ss:$2 sm:$0x3]  ;;  %v3923_v28 = vadd.f32 %v3922_v15, %v3916_v8  ;;  %v3817_v9 = vadd.f32 %v3816_v17, %v3809_v0  ;;  %v4112_v53 = vmul.f32 %v7056_v62, %v4111_v26 }
 0x933   :  { %v4056_v57 = vadd.f32 %v4055_v3, %v4052_v38  ;;  %v3827_v35 = vld [vmem:[#allocation8 + $0x17] ss:$2 sm:$0x3]  ;;  %v7074_v42 = vld [vmem:[%s6982_s19 + $0x15] ss:$0 sm:$0xff]  ;;  %v3936_v43 = vmul.f32 %v7015_v49, %v3931_v37  ;;  %v4115_v46 = vmul.f32 %v7067_v33, %v4114_v1 }
 0x934   :  { %v3835_v54 = vld [vmem:[#allocation8 + $0x18] ss:$2 sm:$0x3]  ;;  %v3938_v41 = vld [vmem:[#allocation8 + $0xa] ss:$2 sm:$0x3]  ;;  %v4110_v36 = vadd.f32 %v4109_v4, %v4107_v34  ;;  %v3930_v24 = vadd.f32 %v3929_v6, %v3923_v28  ;;  %v3825_v58 = vadd.f32 %v3824_v39, %v3817_v9  ;;  %v3832_v40 = vmul.f32 %v7024_v13, %v3827_v35 }
 0x935   :  { %v4060_v60 = vadd.f32 %v4059_v12, %v4056_v57  ;;  %v7080_v10 = vld [vmem:[%s6982_s19 + $0x16] ss:$0 sm:$0xff]  ;;  %v4062_v38 = vld [vmem:[#allocation8 + $0x66] ss:$2 sm:$0x3]  ;;  %v3943_v8 = vmul.f32 %v7021_v16, %v3938_v41  ;;  %v3840_v12 = vmul.f32 %v7028_v25, %v3835_v54 }
 0x936   :  { %v4066_v3 = vld [vmem:[#allocation8 + $0x67] ss:$2 sm:$0x3]  ;;  %v3843_v51 = vld [vmem:[#allocation8 + $0x19] ss:$2 sm:$0x3]  ;;  %v4063_v48 = vmul.f32 %v7064_v63, %v4062_v38  ;;  %v4113_v50 = vadd.f32 %v4112_v53, %v4110_v36  ;;  %v3937_v11 = vadd.f32 %v3936_v43, %v3930_v24  ;;  %v3833_v57 = vadd.f32 %v3832_v40, %v3825_v58 }
 0x937   :  { %v3945_v21 = vld [vmem:[#allocation8 + $0x16] ss:$2 sm:$0x3]  ;;  %v7092_v49 = vld [vmem:[%s6982_s19 + $0x17] ss:$0 sm:$0xff]  ;;  %v4067_v17 = vmul.f32 %v7074_v42, %v4066_v3  ;;  %v3848_v39 = vmul.f32 %v7036_v18, %v3843_v51 }
 0x938   :  { %v4070_v15 = vld [vmem:[#allocation8 + $0x68] ss:$2 sm:$0x3]  ;;  %v3952_v26 = vld [vmem:[#allocation8 + $0x17] ss:$2 sm:$0x3]  ;;  %v4064_v0 = vadd.f32 %v4063_v48, %v4060_v60  ;;  %v4116_v16 = vadd.f32 %v4115_v46, %v4113_v50  ;;  %v3944_v4 = vadd.f32 %v3943_v8, %v3937_v11  ;;  %v3950_v1 = vmul.f32 %v7032_v55, %v3945_v21 }
 0x939   :  { %v4117_v29 = vld [vmem:[#allocation8 + $0x66] ss:$2 sm:$0x3]  ;;  %v4120_v37 = vld [vmem:[#allocation8 + $0x67] ss:$2 sm:$0x3]  ;;  %v3841_v9 = vadd.f32 %v3840_v12, %v3833_v57  ;;  %v4071_v60 = vmul.f32 %v7080_v10, %v4070_v15  ;;  %v3957_v24 = vmul.f32 %v7040_v31, %v3952_v26 }
 0x93a   :  { %v3851_v34 = vld [vmem:[#allocation8 + $0x1a] ss:$2 sm:$0x3]  ;;  %v7098_v35 = vld [vmem:[%s6982_s19 + $0x18] ss:$0 sm:$0xff]  ;;  %v4118_v6 = vmul.f32 %v6985_v32, %v4117_v29  ;;  %v4068_v54 = vadd.f32 %v4067_v17, %v4064_v0  ;;  %v3951_v53 = vadd.f32 %v3950_v1, %v3944_v4  ;;  %v4121_v55 = vmul.f32 %v6988_v19, %v4120_v37 }
 0x93b   :  { %v4074_v28 = vld [vmem:[#allocation8 + $0x69] ss:$2 sm:$0x3]  ;;  %v3959_v41 = vld [vmem:[#allocation8 + $0x18] ss:$2 sm:$0x3]  ;;  %v3849_v58 = vadd.f32 %v3848_v39, %v3841_v9  ;;  %v3856_v40 = vmul.f32 %v7046_v47, %v3851_v34 }
 0x93c   :  { %v4123_v36 = vld [vmem:[#allocation8 + $0x68] ss:$2 sm:$0x3]  ;;  %v3966_v43 = vld [vmem:[#allocation8 + $0x19] ss:$2 sm:$0x3]  ;;  %v4119_v3 = vadd.f32 %v4118_v6, %v4116_v16  ;;  %v4072_v21 = vadd.f32 %v4071_v60, %v4068_v54  ;;  %v4075_v48 = vmul.f32 %v7092_v49, %v4074_v28  ;;  %v3958_v31 = vadd.f32 %v3957_v24, %v3951_v53 }
 0x93d   :  { %v4078_v38 = vld [vmem:[#allocation8 + $0x6a] ss:$2 sm:$0x3]  ;;  %v4126_v51 = vld [vmem:[#allocation8 + $0x69] ss:$2 sm:$0x3]  ;;  %v3964_v46 = vmul.f32 %v7050_v52, %v3959_v41  ;;  %v4124_v8 = vmul.f32 %v6991_v44, %v4123_v36  ;;  %v3857_v29 = vadd.f32 %v3856_v40, %v3849_v58  ;;  %v3971_v16 = vmul.f32 %v7056_v62, %v3966_v43 }
 0x93e   :  { %v3859_v50 = vld [vmem:[#allocation8 + $0x26] ss:$2 sm:$0x3]  ;;  %v4122_v11 = vadd.f32 %v4121_v55, %v4119_v3  ;;  %v3867_v15 = vld [vmem:[#allocation8 + $0x27] ss:$2 sm:$0x3]  ;;  %v4076_v12 = vadd.f32 %v4075_v48, %v4072_v21  ;;  %v4079_v26 = vmul.f32 %v7098_v35, %v4078_v38  ;;  %v4127_v52 = vmul.f32 %v6999_v2, %v4126_v51 }
 0x93f   :  { %v3973_v57 = vld [vmem:[#allocation8 + $0x1a] ss:$2 sm:$0x3]  ;;  %v4129_v0 = vld [vmem:[#allocation8 + $0x6a] ss:$2 sm:$0x3]  ;;  %v3864_v17 = vmul.f32 %v7064_v63, %v3859_v50  ;;  %v3965_v37 = vadd.f32 %v3964_v46, %v3958_v31  ;;  %v3872_v39 = vmul.f32 %v7074_v42, %v3867_v15 }
 0x940   :  { %v7118_v34 = vld [vmem:[%s7089_s23] ss:$0 sm:$0xff]  ;;  %v4125_v4 = vadd.f32 %v4124_v8, %v4122_v11  ;;  %v3875_v1 = vld [vmem:[#allocation8 + $0x28] ss:$2 sm:$0x3]  ;;  %v4080_v28 = vadd.f32 %v4079_v26, %v4076_v12  ;;  %v3978_v60 = vmul.f32 %v7067_v33, %v3973_v57  ;;  %v4130_v63 = vmul.f32 %v7008_v27, %v4129_v0  ;;  %v7130_v8 = vld [vmem:[%s7110_s27 + $0x38] sm:$0xff]  }
 0x941   :  { %v4133_v6 = vld [vmem:[#allocation8 + $0x76] ss:$2 sm:$0x3]  ;;  %v3865_v9 = vadd.f32 %v3864_v17, %v3857_v29  ;;  %v3980_v41 = vld [vmem:[#allocation8 + $0x26] ss:$2 sm:$0x3]  ;;  %v3972_v54 = vadd.f32 %v3971_v16, %v3965_v37  ;;  %v3880_v3 = vmul.f32 %v7080_v10, %v3875_v1  ;;  %5358 = vmatpush3.bf16.msra.mxu1 %v7130_v8 }
 0x942   :  { %v4128_v36 = vadd.f32 %v4127_v52, %v4125_v4  ;;  %v4137_v53 = vld [vmem:[#allocation8 + $0x77] ss:$2 sm:$0x3]  ;;  %v3883_v62 = vld [vmem:[#allocation8 + $0x29] ss:$2 sm:$0x3]  ;;  %v4081_v24 = vadd.f32 %v7118_v34, %v4080_v28  ;;  %v4134_v42 = vmul.f32 %v7012_v56, %v4133_v6  ;;  %v3981_v33 = vmul.f32 %v6985_v32, %v3980_v41 }
 0x943   :  { %v4141_v43 = vld [vmem:[#allocation8 + $0x78] ss:$2 sm:$0x3]  ;;  %v3873_v38 = vadd.f32 %v3872_v39, %v3865_v9  ;;  %v3983_v55 = vld [vmem:[#allocation8 + $0x27] ss:$2 sm:$0x3]  ;;  %v3979_v58 = vadd.f32 %v3978_v60, %v3972_v54  ;;  %v3888_v46 = vmul.f32 %v7092_v49, %v3883_v62  ;;  %v4138_v10 = vmul.f32 %v7024_v13, %v4137_v53 }
 0x944   :  { %v4131_v40 = vadd.f32 %v4130_v63, %v4128_v36  ;;  %v3891_v21 = vld [vmem:[#allocation8 + $0x2a] ss:$2 sm:$0x3]  ;;  %v4082_v51 = vadd.f32 3.0, %v4081_v24  ;;  %v3984_v57 = vmul.f32 %v6988_v19, %v3983_v55  ;;  %v7137_v37 = vld [vmem:[%s7110_s27 + $0x30] sm:$0xff]   ;;  %v4142_v16 = vmul.f32 %v7028_v25, %v4141_v43  ;;  %v7141_v1 = vld [vmem:[#allocation2 + $0x18] sm:$0xff] }
 0x945   :  { %v3986_v48 = vld [vmem:[#allocation8 + $0x28] ss:$2 sm:$0x3]  ;;  %v4145_v50 = vld [vmem:[#allocation8 + $0x79] ss:$2 sm:$0x3]  ;;  %v3881_v31 = vadd.f32 %v3880_v3, %v3873_v38  ;;  %v3982_v29 = vadd.f32 %v3981_v33, %v3979_v58  ;;  %v3896_v32 = vmul.f32 %v7098_v35, %v3891_v21  ;;  %5359 = vmatprep.subr.bf16.mxu1 %v7141_v1 }
 0x946   :  { %v3989_v11 = vld [vmem:[#allocation8 + $0x29] ss:$2 sm:$0x3]  ;;  %v4135_v15 = vadd.f32 %v4134_v42, %v4131_v40  ;;  %v4083_v12 = vmax.f32 %v4082_v51, 0.0  ;;  %v3987_v52 = vmul.f32 %v6991_v44, %v3986_v48  ;;  %v4146_v9 = vmul.f32 %v7036_v18, %v4145_v50  ;;  %5360 = vmatpush3.bf16.msra.mxu1 %v7137_v37  ;;  %v7157_v21 = vld [vmem:[%s7110_s27 + $0x20] sm:$0xff]  }
 0x947   :  { %v4149_v26 = vld [vmem:[#allocation8 + $0x7a] ss:$2 sm:$0x3]  ;;  %v3889_v0 = vadd.f32 %v3888_v46, %v3881_v31  ;;  %v3992_v17 = vld [vmem:[#allocation8 + $0x2a] ss:$2 sm:$0x3]  ;;  %v3985_v4 = vadd.f32 %v3984_v57, %v3982_v29  ;;  %v3990_v41 = vmul.f32 %v6999_v2, %v3989_v11  ;;  %5361 = vmatprep.subr.bf16.mxu1 %v7141_v1 }
 0x948   :  { %v4139_v49 = vadd.f32 %v4138_v10, %v4135_v15  ;;  %v4084_v19 = vmin.f32 %v4083_v12, 6.0  ;;  %v3996_v6 = vld [vmem:[#allocation8 + $0x36] ss:$2 sm:$0x3]  ;;  %v7147_v54 = vld [vmem:[%s7110_s27 + $0x28] sm:$0xff]   ;;  %v4150_v63 = vmul.f32 %v7046_v47, %v4149_v26  ;;  %v3993_v62 = vmul.f32 %v7008_v27, %v3992_v17 }
 0x949   :  { %v3897_v28 = vadd.f32 %v3896_v32, %v3889_v0  ;;  %v3988_v39 = vadd.f32 %v3987_v52, %v3985_v4  ;;  %v4000_v3 = vld [vmem:[#allocation8 + $0x37] ss:$2 sm:$0x3]  ;;  %v3997_v58 = vmul.f32 %v7012_v56, %v3996_v6  ;;  %v4004_v42 = vld [vmem:[#allocation8 + $0x38] ss:$2 sm:$0x3] }
 0x94a   :  { %v4143_v35 = vadd.f32 %v4142_v16, %v4139_v49  ;;  %v4085_v60 = vmul.f32 0.16666667, %v4084_v19  ;;  %5362 = vmatpush3.bf16.msra.mxu1 %v7147_v54  ;;  %v4001_v48 = vmul.f32 %v7024_v13, %v4000_v3  ;;  %v4008_v51 = vld [vmem:[#allocation8 + $0x39] ss:$2 sm:$0x3]  ;;  %v4005_v56 = vmul.f32 %v7028_v25, %v4004_v42  ;;  %v7172_v25 = vld [vmem:[%s7110_s27 + $0x10] sm:$0xff]  }
 0x94b   :  { %v3904_v36 = vadd.f32 %v7118_v34, %v3897_v28  ;;  %v3991_v53 = vadd.f32 %v3990_v41, %v3988_v39  ;;  %5363 = vmatprep.subr.bf16.mxu1 %v7141_v1  ;;  %v4012_v11 = vld [vmem:[#allocation8 + $0x3a] ss:$2 sm:$0x3]  ;;  %v4009_v13 = vmul.f32 %v7036_v18, %v4008_v51  ;;  %v7178_v18 = vld [vmem:[%s7110_s27 + $0x8] sm:$0xff]  }
 0x94c   :  { %v4147_v44 = vadd.f32 %v4146_v9, %v4143_v35  ;;  %v4086_v43 = vmul.f32 %v4085_v60, %v4081_v24  ;;  %v7165_v15 = vld [vmem:[%s7110_s27 + $0x18] sm:$0xff]   ;;  %v4013_v0 = vmul.f32 %v7046_v47, %v4012_v11  ;;  %v5597_v11 = vld [vmem:[%s4645_s5 + $0x10] sm:$0xff]  }
 0x94d   :  { %v3905_v38 = vadd.f32 3.0, %v3904_v36  ;;  %v3994_v55 = vadd.f32 %v3993_v62, %v3991_v53  ;;  %v5592_v51 = vld [vmem:[%s4645_s5 + $0x38] sm:$0xff]  }
 0x94e   :  { %v4151_v2 = vadd.f32 %v4150_v63, %v4147_v44  ;;  %4087 = vst [vmem:[#allocation9 + $0x4] sm:$0x3] %v4086_v43  ;;  %5364 = vmatpush3.bf16.msra.mxu1 %v7157_v21 }
 0x94f   :  { %v3906_v40 = vmax.f32 %v3905_v38, 0.0  ;;  %v3998_v27 = vadd.f32 %v3997_v58, %v3994_v55  ;;  %5365 = vmatprep.subr.bf16.mxu1 %v7141_v1 }
 0x950   :  { %v4152_v33 = vadd.f32 %v7118_v34, %v4151_v2 }
 0x951   :  { %v3907_v24 = vmin.f32 %v3906_v40, 6.0  ;;  %v4002_v31 = vadd.f32 %v4001_v48, %v3998_v27 }
 0x952   :  { %v4153_v50 = vadd.f32 3.0, %v4152_v33  ;;  %5366 = vmatpush3.bf16.msra.mxu1 %v7165_v15 }
 0x953   :  { %v3908_v46 = vmul.f32 0.16666667, %v3907_v24  ;;  %v4006_v29 = vadd.f32 %v4005_v56, %v4002_v31  ;;  %5367 = vmatprep.subr.bf16.mxu1 %v7141_v1  ;;  %v5594_v31 = vld [vmem:[%s4645_s5 + $0x28] sm:$0xff]   ;;  %v5595_v56 = vld [vmem:[%s4645_s5 + $0x20] sm:$0xff]  }
 0x954   :  { %v4154_v10 = vmax.f32 %v4153_v50, 0.0  ;;  %v5593_v50 = vld [vmem:[%s4645_s5 + $0x30] sm:$0xff]  }
 0x955   :  { %v3909_v57 = vmul.f32 %v3908_v46, %v3904_v36  ;;  %v4010_v26 = vadd.f32 %v4009_v13, %v4006_v29  ;;  %v5596_v46 = vld [vmem:[%s4645_s5 + $0x18] sm:$0xff]  }
 0x956   :  { %v4155_v12 = vmin.f32 %v4154_v10, 6.0  ;;  %5368 = vmatpush3.bf16.msra.mxu1 %v7172_v25  ;;  %v5599_v10 = vld [vmem:[%s4645_s5] sm:$0xff]  }
 0x957   :  { %3910 = vst [vmem:[#allocation9] sm:$0x3] %v3909_v57  ;;  %v4014_v17 = vadd.f32 %v4013_v0, %v4010_v26  ;;  %5369 = vmatprep.subr.bf16.mxu1 %v7141_v1  ;;  %v4294_v26 = vld [vmem:[%s4644_s9] sm:$0x1] }
 0x958   :  { %v4156_v32 = vmul.f32 0.16666667, %v4155_v12 }
 0x959   :  { %v4015_v16 = vadd.f32 %v7118_v34, %v4014_v17 }
 0x95a   :  { %v4157_v49 = vmul.f32 %v4156_v32, %v4152_v33  ;;  %5370 = vmatpush3.bf16.msra.mxu1 %v7178_v18 }
 0x95b   :  { %v4016_v4 = vadd.f32 3.0, %v4015_v16  ;;  %5371 = vmatprep.subr.bf16.mxu1 %v7141_v1 }
 0x95c   :  { %4158 = vst [vmem:[#allocation9 + $0x6] sm:$0x3] %v4157_v49 }
 0x95d   :  { %v4017_v47 = vmax.f32 %v4016_v4, 0.0 }
 0x95f   :  { %v4018_v52 = vmin.f32 %v4017_v47, 6.0 }
 0x961   :  { %v4019_v19 = vmul.f32 0.16666667, %v4018_v52 }
 0x963   :  { %v4020_v28 = vmul.f32 %v4019_v19, %v4015_v16 }
 0x965   :  { %4021 = vst [vmem:[#allocation9 + $0x2] sm:$0x3] %v4020_v28 }
 0x96c   :  { %v7183_v6 = vld [vmem:[#allocation9] sm:$0xff] }
 0x96d   :  { %v4161_v34 = vsel %vm4160_vm1, %v7183_v6, 0.0  ;;  %v4388_v44 = vrot.slane %v7183_v6, 4 }
 0x96e   :  { %v4162_v35 = vrot.slane %v4161_v34, 4 }
 0x96f   :  { %v4390_v62 = vsel %vm4160_vm1, %v4388_v44, 0.0 }
 0x970   :  { %v4163_v9 = vadd.f32 %v4162_v35, %v4161_v34  ;;  %v4391_v43 = vrot.slane %v4390_v62, 4 }
 0x972   :  { %v4164_v39 = vrot.slane %v4163_v9, 2  ;;  %v4392_v38 = vadd.f32 %v4391_v43, %v4390_v62 }
 0x974   :  { %v4165_v41 = vadd.f32 %v4164_v39, %v4163_v9  ;;  %v4393_v3 = vrot.slane %v4392_v38, 2 }
 0x976   :  { %v4166_v60 = vrot.slane %v4165_v41, 1 }
 0x978   :  { %v4167_v36 = vadd.f32 %v4166_v60, %v4165_v41 }
 0x97a   :  { %v4169_v63 = vmul.f32 0.25, %v4167_v36 }
 0x97c   :  { %v4170_v53 = vpack.c.bf16 %v4169_v63, %v4169_v63 }
 0x97e   :  { %5354 = vmatmul.mubr.bf16.vlgmr.msra.gmra.mxu0 %v4170_v53 }
 0x97f   :  { %5378 = vmatpush3.bf16.msra.mxu0 %v6944_v30  ;;  %5393 = vmatprep.mubr.msk.bf16.mxu0 %vm5625_vm0, %v7141_v1  ;;  %v4394_v30 = vadd.f32 %v4393_v3, %v4392_v38 }
 0x980   :  { %5379 = vmatprep.subr.bf16.mxu0 %v7141_v1 }
 0x981   :  { %v4395_v2 = vrot.slane %v4394_v30, 1 }
 0x983   :  { %5380 = vmatpush3.bf16.msra.mxu0 %v6947_v7  ;;  %v4396_v7 = vadd.f32 %v4395_v2, %v4394_v30 }
 0x984   :  { %5381 = vmatprep.subr.bf16.mxu0 %v7141_v1 }
 0x987   :  { %5382 = vmatpush3.bf16.msra.mxu0 %v6951_v5  ;;  %v4397_v5 = vmul.f32 0.25, %v4396_v7 }
 0x988   :  { %5383 = vmatprep.subr.bf16.mxu0 %v7141_v1 }
 0x98b   :  { %5384 = vmatpush3.bf16.msra.mxu0 %v6955_v45  ;;  %v4398_v45 = vpack.c.bf16 %v4397_v5, %v4397_v5 }
 0x98c   :  { %5385 = vmatprep.subr.bf16.mxu0 %v7141_v1 }
 0x98f   :  { %5386 = vmatpush3.bf16.msra.mxu0 %v6959_v20  ;;  %v5591_v20 = vld [vmem:[%s7110_s27] sm:$0xff]  }
 0x990   :  { %5387 = vmatprep.subr.bf16.mxu0 %v7141_v1  ;;  %5372 = vmatpush3.bf16.msra.mxu1 %v5591_v20 }
 0x991   :  { %5397 = vmatprep.subr.bf16.mxu1 %v7141_v1 }
 0x993   :  { %5388 = vmatpush3.bf16.msra.mxu0 %v6963_v61  ;;  %v4187_v61 = vld [vmem:[%s4642_s1] sm:$0x1] }
 0x994   :  { %5389 = vmatprep.subr.bf16.mxu0 %v7141_v1 }
 0x997   :  { %5390 = vmatpush3.bf16.msra.mxu0 %v6967_v59 }
 0x998   :  { %5391 = vmatprep.subr.bf16.mxu0 %v7141_v1 }
 0x99b   :  { %5392 = vmatpush3.bf16.msra.mxu0 %v6974_v23 }
 0x99c   :  { %5417 = vmatprep.subr.bf16.mxu0 %v7141_v1 }
 0x99e   :  { %5394 = vmatmul.mubr.bf16.vlgmr.msra.gmra.mxu0 %v4398_v45 }
 0x99f   :  { %5433 = vmatprep.mubr.msk.bf16.mxu0 %vm5625_vm0, %v7141_v1  ;;  %5418 = vmatpush3.bf16.msra.mxu0 %v5592_v51 }
 0x9a0   :  { %5419 = vmatprep.subr.bf16.mxu0 %v7141_v1 }
 0x9a3   :  { %5420 = vmatpush3.bf16.msra.mxu0 %v5593_v50 }
 0x9a4   :  { %5421 = vmatprep.subr.bf16.mxu0 %v7141_v1 }
 0x9a7   :  { %5422 = vmatpush3.bf16.msra.mxu0 %v5594_v31 }
 0x9a8   :  { %5423 = vmatprep.subr.bf16.mxu0 %v7141_v1 }
 0x9ab   :  { %5424 = vmatpush3.bf16.msra.mxu0 %v5595_v56 }
 0x9ac   :  { %5425 = vmatprep.subr.bf16.mxu0 %v7141_v1 }
 0x9af   :  { %5426 = vmatpush3.bf16.msra.mxu0 %v5596_v46 }
 0x9b0   :  { %5427 = vmatprep.subr.bf16.mxu0 %v7141_v1 }
 0x9b3   :  { %5428 = vmatpush3.bf16.msra.mxu0 %v5597_v11 }
 0x9b4   :  { %5429 = vmatprep.subr.bf16.mxu0 %v7141_v1 }
 0xa3e   :  { %v4270_v59 = vpop.f32.mrf.mxu0 }
 0xa3f   :  { %v4271_v55 = vadd.f32 %v4270_v59, %v4187_v61 }
 0xa40   :  { %v5355_v23 = vpop.f32.mrf.mxu0 }
 0xa41   :  { %v4276_v58 = vmax.f32 %v4271_v55, 0.0 }
 0xa42   :  { %v4273_v40 = vpop.f32.mrf.mxu0 }
 0xa43   :  { %v4277_v42 = vpack.c.bf16 %v4276_v58, %v4276_v58 }
 0xa44   :  { %v5356_v33 = vpop.f32.mrf.mxu0 }
 0xa45   :  { %5374 = vmatmul.mubr.bf16.vlgmr.msra.gmra.mxu1 %v4277_v42 }
 0xa46   :  { %5398 = vmatpush3.bf16.msra.mxu1 %v7130_v8  ;;  %5413 = vmatprep.mubr.msk.bf16.mxu1 %vm5625_vm0, %v7141_v1 }
 0xa47   :  { %5399 = vmatprep.subr.bf16.mxu1 %v7141_v1 }
 0xa4a   :  { %5400 = vmatpush3.bf16.msra.mxu1 %v7137_v37 }
 0xa4b   :  { %5401 = vmatprep.subr.bf16.mxu1 %v7141_v1 }
 0xa4e   :  { %5402 = vmatpush3.bf16.msra.mxu1 %v7147_v54 }
 0xa4f   :  { %5403 = vmatprep.subr.bf16.mxu1 %v7141_v1 }
 0xa52   :  { %5404 = vmatpush3.bf16.msra.mxu1 %v7157_v21 }
 0xa53   :  { %5405 = vmatprep.subr.bf16.mxu1 %v7141_v1 }
 0xa56   :  { %5406 = vmatpush3.bf16.msra.mxu1 %v7165_v15  ;;  %v5598_v15 = vld [vmem:[%s4645_s5 + $0x8] sm:$0xff]  }
 0xa57   :  { %5407 = vmatprep.subr.bf16.mxu1 %v7141_v1  ;;  %5430 = vmatpush3.bf16.msra.mxu0 %v5598_v15 }
 0xa58   :  { %5431 = vmatprep.subr.bf16.mxu0 %v7141_v1 }
 0xa5a   :  { %5408 = vmatpush3.bf16.msra.mxu1 %v7172_v25 }
 0xa5b   :  { %5409 = vmatprep.subr.bf16.mxu1 %v7141_v1  ;;  %5432 = vmatpush3.bf16.msra.mxu0 %v5599_v10 }
 0xa5e   :  { %v4433_v8 = vpop.f32.mrf.mxu0  ;;  %5410 = vmatpush3.bf16.msra.mxu1 %v7178_v18 }
 0xa5f   :  { %v4434_v37 = vadd.f32 %v4433_v8, %v4187_v61  ;;  %5411 = vmatprep.subr.bf16.mxu1 %v7141_v1 }
 0xa60   :  { %v5395_v54 = vpop.f32.mrf.mxu0 }
 0xa61   :  { %v4439_v27 = vmax.f32 %v4434_v37, 0.0 }
 0xa62   :  { %v4436_v48 = vpop.f32.mrf.mxu0  ;;  %5412 = vmatpush3.bf16.msra.mxu1 %v5591_v20 }
 0xa63   :  { %v4440_v21 = vpack.c.bf16 %v4439_v27, %v4439_v27 }
 0xa64   :  { %v5396_v24 = vpop.f32.mrf.mxu0 }
 0xa65   :  { %5414 = vmatmul.mubr.bf16.vlgmr.msra.gmra.mxu1 %v4440_v21 }
 0xb05   :  { %v4377_v29 = vpop.f32.mrf.mxu1 }
 0xb06   :  { %v4378_v0 = vadd.f32 %v4377_v29, %v4294_v26 }
 0xb07   :  { %v5375_v13 = vpop.f32.mrf.mxu1 }
 0xb08   :  { %v4383_v25 = vadd.f32 3.0, %v4378_v0 }
 0xb09   :  { %v4380_v57 = vpop.f32.mrf.mxu1 }
 0xb0a   :  { %v4384_v32 = vmax.f32 %v4383_v25, 0.0 }
 0xb0b   :  { %v5376_v12 = vpop.f32.mrf.mxu1 }
 0xb0c   :  { %v4385_v18 = vmin.f32 %v4384_v32, 6.0 }
 0xb0e   :  { %v4386_v19 = vmul.f32 0.16666667, %v4385_v18 }
 0xb10   :  { %v4491_v35 = vrot.slane %v4386_v19, %v6575_v22 }
 0xb25   :  { %v4475_v17 = vpop.f32.mrf.mxu1 }
 0xb26   :  { %v4476_v49 = vadd.f32 %v4475_v17, %v4294_v26 }
 0xb27   :  { %v5415_v16 = vpop.f32.mrf.mxu1 }
 0xb28   :  { %v4481_v4 = vadd.f32 3.0, %v4476_v49 }
 0xb29   :  { %v4478_v1 = vpop.f32.mrf.mxu1 }
 0xb2a   :  { %v4482_v47 = vmax.f32 %v4481_v4, 0.0 }
 0xb2b   :  { %v5416_v52 = vpop.f32.mrf.mxu1 }
 0xb2c   :  { %v4483_v28 = vmin.f32 %v4482_v47, 6.0 }
 0xb2e   :  { %v4484_v34 = vmul.f32 0.16666667, %v4483_v28 }
 0xb30   :  { %v4495_v9 = vrot.slane %v4484_v34, %v6575_v22 }
 0xb32   :  { %v4496_v39 = vsel %vm4485_vm2, %v4491_v35, %v4495_v9 }
 0xb33   :  { %v4497_v41 = vmul.f32 %v4496_v39, %v7183_v6 }
 0xb35   :  { %v4498_v60 = vpack.c.bf16 %v4497_v41, %v4497_v41 }
 0xb37   :  { %5434 = vmatmul.mubr.bf16.vlgmr.msra.gmra.mxu0 %v4498_v60 }
 0xbf7   :  { %v4604_v36 = vpop.f32.mrf.mxu0 }
 0xbf8   :  { %v4605_v44 = vadd.f32 %v4831_v14, %v4604_v36 }
 0xbf9   :  { %v5435_v63 = vpop.f32.mrf.mxu0 }
 0xbfa   :  { %4610 = vst [vmem:[%s4647_s17] sm:$0xff] %v4605_v44 }
 0xbfb   :  { %v4607_v22 = vpop.f32.mrf.mxu0 }
 0xbfd   :  { %v5436_v53 = vpop.f32.mrf.mxu0 }

</bundles_post_ra>
